<compile_context>
chip_gen: v7x
topology: tpu7x:2x2x1
jax: 0.10.0
libtpu: 0.0.40
codegen_flags: <defaults>
</compile_context>

<pallas_src>
import functools

import jax
import jax.numpy as jnp
import numpy as np
from jax import lax
from jax.experimental import pallas as pl
from jax.experimental.pallas import tpu as pltpu


def _round_up(x, m):
  return ((x + m - 1) // m) * m


def _ftb_kernel(x1p_ref, w1_ref, w2_ref, bias_ref, out_ref, pad2_ref, *,
                avg: bool, Nb: int, H: int, W: int, Cout: int,
                W0p: int, WS: int):
  """Processes Nb batch elements per grid step.

  x1p_ref : (Nb, H+4, WS, Cout) bf16 -- conv1 input slab, pre-padded (zero ring).
  w1_ref  : (9*Cout, Cout) bf16      -- conv1 taps stacked along K, BN-scaled.
  w2_ref  : (9*Cout, Cout) bf16      -- conv2 taps stacked along K.
  bias_ref: (1, Cout) f32            -- folded BatchNorm bias.
  out_ref : (Nb, Hout, 1, Wout*Cout) f32 -- lane-dense pooled output.
  pad2_ref: (Nb, H+4, WS, Cout) bf16 VMEM scratch -- conv2 padded input.
  """
  f32 = jnp.float32
  bf16 = jnp.bfloat16
  H0, W0 = H + 2, W + 2          # spatial size after conv0 (k=1, pad=1)
  HP = H + 4                     # padded rows held in the slabs
  M2 = Nb * H0 * W0p
  K9 = 9 * Cout

  def im2col(src_ref):
    # 9 shifted window reads concatenated along lanes -> (M2, 9*Cout) bf16.
    taps = [src_ref[:, dy:dy + H0, dx:dx + W0p, :]
            for dy in range(3) for dx in range(3)]
    return jnp.concatenate(taps, axis=3).reshape(M2, K9)

  # ---- conv1 (3x3, pad=1): single K-fused matmul; BN scale already in w1. ----
  o1 = jnp.dot(im2col(x1p_ref), w1_ref[...], preferred_element_type=f32)
  o1 = o1.reshape(Nb, H0, W0p, Cout)
  y1 = jnp.maximum(o1 + bias_ref[0, :], 0.0)          # BN bias + ReLU (f32)

  # ---- conv2 input slab: refresh only the consumed zero border, then write
  #      the interior.  (Scratch is uninitialized; a program_id==0-only init
  #      would be unsafe when the parallel batch axis is sharded across cores.)
  zrow = jnp.zeros((Nb, 1, WS, Cout), bf16)
  zcol = jnp.zeros((Nb, HP, 1, Cout), bf16)
  pad2_ref[:, 0:1, :, :] = zrow
  pad2_ref[:, H0 + 1:H0 + 2, :, :] = zrow
  pad2_ref[:, :, 0:1, :] = zcol
  pad2_ref[:, :, W0 + 1:W0 + 2, :] = zcol
  pad2_ref[:, 1:1 + H0, 1:1 + W0, :] = y1[:, :, 0:W0, :].astype(bf16)

  # ---- conv2 (3x3, pad=1): second K-fused matmul, then residual add (x1). ----
  o2 = jnp.dot(im2col(pad2_ref), w2_ref[...], preferred_element_type=f32)
  o2 = o2.reshape(Nb, H0, W0p, Cout)
  o = o2[:, :, 0:W0, :] + x1p_ref[:, 1:1 + H0, 1:1 + W0, :].astype(f32)

  # ---- pooling, emitted directly in lane-dense (Wout*Cout on lanes) form. ----
  if avg:
    # AvgPool2d(kernel=(2,2), stride=2), floor mode.
    Hp, Wp = H0 // 2, W0 // 2
    o5 = o[:, 0:2 * Hp].reshape(Nb, Hp, 2, W0, Cout)   # leading-dim split: free
    rsum = o5[:, :, 0] + o5[:, :, 1]                   # (Nb, Hp, W0, Cout)
    parts = [rsum[:, :, 2 * j:2 * j + 1, :] + rsum[:, :, 2 * j + 1:2 * j + 2, :]
             for j in range(Wp)]
    dense = jnp.concatenate(parts, axis=3) * 0.25      # (Nb, Hp, 1, Wp*Cout)
  else:
    # AvgPool2d(kernel=(3,3), stride=1).
    Ho, Wo = H0 - 2, W0 - 2
    rows = o[:, 0:Ho] + o[:, 1:Ho + 1] + o[:, 2:Ho + 2]          # (Nb,Ho,W0,C)
    cols = (rows[:, :, 0:Wo, :] + rows[:, :, 1:Wo + 1, :]
            + rows[:, :, 2:Wo + 2, :])                           # (Nb,Ho,Wo,C)
    dense = jnp.concatenate([cols[:, :, j:j + 1, :] for j in range(Wo)],
                            axis=3) * (1.0 / 9.0)                # (Nb,Ho,1,Wo*C)
  out_ref[...] = dense.astype(out_ref.dtype)


def _pick_nb(n, max_nb=16):
  """Batch elements per grid step; ensures >= 2 grid steps when n >= 2."""
  if n <= 1:
    return 1
  cap = min(max_nb, n // 2)            # at least 2 steps (megacore / v7x cores)
  best = 1
  for nb in range(cap, 0, -1):
    if n % nb == 0:
      best = nb
      break
  if best >= max(1, cap // 2):
    return best                        # good-enough exact divisor: no padded work
  return cap                           # accept batch padding to keep steps big


def ftb_forward(x_nhwc, w0_pt, w1_pt, w2_pt, gamma, beta, rmean, rvar,
                avg=True, eps=1e-5):
  """x_nhwc: (N, H, W, Cin) float32.  Conv weights in PyTorch OIHW layout."""
  N, H, W, Cin = x_nhwc.shape
  Cout = w0_pt.shape[0]
  H0, W0 = H + 2, W + 2
  HP = H + 4
  W0p = _round_up(W0, 16)              # im2col / conv output width (bf16 aligned)
  WS = _round_up(W0p + 2, 8)           # conv input slab width (>= W0p + 2)
  if avg:
    Hout, Wout = H0 // 2, W0 // 2
  else:
    Hout, Wout = H0 - 2, W0 - 2

  Nb = _pick_nb(N)
  Np = _round_up(N, Nb)
  f32 = jnp.float32

  # ---- parameter glue (plain JAX).  BN folded into w1-scale + bias. ----
  inv = (gamma / jnp.sqrt(rvar + eps)).astype(f32)
  bias = (beta - rmean * inv).reshape(1, Cout).astype(f32)
  w0 = w0_pt[:, :, 0, 0].astype(f32)                                  # (Cout, Cin)
  w1cat = jnp.transpose(w1_pt.astype(f32) * inv[:, None, None, None],
                        (2, 3, 1, 0)).reshape(9 * Cout, Cout).astype(jnp.bfloat16)
  w2cat = jnp.transpose(w2_pt.astype(f32),
                        (2, 3, 1, 0)).reshape(9 * Cout, Cout).astype(jnp.bfloat16)

  # ---- conv0 (1x1, pad=1, bias-free) hoisted to one XLA matmul; its zero ring
  #      plus conv1's padding ring are materialized here so the kernel reads a
  #      ready padded slab (kills the Cin=4 tile bloat + in-kernel pad1 work). ----
  x1core = jnp.einsum('nhwi,oi->nhwo', x_nhwc.astype(f32), w0)        # (N,H,W,Cout)
  x1p = jnp.pad(x1core, ((0, Np - N), (2, 2), (2, WS - W - 2), (0, 0)))
  x1p = x1p.astype(jnp.bfloat16)                                      # (Np,HP,WS,Cout)

  kernel = functools.partial(_ftb_kernel, avg=avg, Nb=Nb, H=H, W=W,
                             Cout=Cout, W0p=W0p, WS=WS)
  out4 = pl.pallas_call(
      kernel,
      out_shape=jax.ShapeDtypeStruct((Np, Hout, 1, Wout * Cout), f32),
      grid_spec=pltpu.PrefetchScalarGridSpec(
          num_scalar_prefetch=0,
          grid=(Np // Nb,),
          in_specs=[
              pl.BlockSpec((Nb, HP, WS, Cout), lambda b: (b, 0, 0, 0)),
              pl.BlockSpec((9 * Cout, Cout), lambda b: (0, 0)),
              pl.BlockSpec((9 * Cout, Cout), lambda b: (0, 0)),
              pl.BlockSpec((1, Cout), lambda b: (0, 0)),
          ],
          out_specs=pl.BlockSpec((Nb, Hout, 1, Wout * Cout),
                                 lambda b: (b, 0, 0, 0)),
          scratch_shapes=[
              pltpu.VMEM((Nb, HP, WS, Cout), jnp.bfloat16),   # conv2 padded input
          ],
      ),
      compiler_params=pltpu.CompilerParams(
          dimension_semantics=("parallel",),
          vmem_limit_bytes=32 * 1024 * 1024),
  )(x1p, w1cat, w2cat, bias)

  return out4.reshape(Np, Hout, Wout, Cout)[:N]


# ------------------------- plain-JAX reference -------------------------
def _conv_ref(x, w_oihw, pad):
  w = jnp.transpose(w_oihw, (2, 3, 1, 0))  # OIHW -> HWIO
  return lax.conv_general_dilated(
      x, w, window_strides=(1, 1), padding=[(pad, pad), (pad, pad)],
      dimension_numbers=("NHWC", "HWIO", "NHWC"))


def ftb_reference(x_nhwc, w0_pt, w1_pt, w2_pt, gamma, beta, rmean, rvar,
                  avg=True, eps=1e-5):
  x1 = _conv_ref(x_nhwc, w0_pt, 1)
  out = _conv_ref(x1, w1_pt, 1)
  out = (out - rmean) * (gamma / jnp.sqrt(rvar + eps)) + beta
  out = jnp.maximum(out, 0.0)
  out = _conv_ref(out, w2_pt, 1)
  out = out + x1
  if avg:
    out = lax.reduce_window(out, 0.0, lax.add, (1, 2, 2, 1), (1, 2, 2, 1), "VALID") / 4.0
  else:
    out = lax.reduce_window(out, 0.0, lax.add, (1, 3, 3, 1), (1, 1, 1, 1), "VALID") / 9.0
  return out


if __name__ == "__main__":
  N, Cin, H, W, Cout = 2, 4, 16, 16, 32
  key = jax.random.PRNGKey(0)
  k1, k2, k3, k4, k5, k6, k7, k8 = jax.random.split(key, 8)

  x_nchw = jax.random.normal(k1, (N, Cin, H, W), jnp.float32)        # PyTorch NCHW input
  w0_pt = 0.05 * jax.random.normal(k2, (Cout, Cin, 1, 1), jnp.float32)
  w1_pt = 0.05 * jax.random.normal(k3, (Cout, Cout, 3, 3), jnp.float32)
  w2_pt = 0.05 * jax.random.normal(k4, (Cout, Cout, 3, 3), jnp.float32)
  gamma = 1.0 + 0.1 * jax.random.normal(k5, (Cout,), jnp.float32)
  beta = 0.1 * jax.random.normal(k6, (Cout,), jnp.float32)
  rmean = 0.1 * jax.random.normal(k7, (Cout,), jnp.float32)
  rvar = jax.random.uniform(k8, (Cout,), jnp.float32, minval=0.5, maxval=1.5)

  x_nhwc = jnp.transpose(x_nchw, (0, 2, 3, 1))                       # NCHW -> NHWC

  out_avg = jax.block_until_ready(
      ftb_forward(x_nhwc, w0_pt, w1_pt, w2_pt, gamma, beta, rmean, rvar, avg=True))
  out_p3 = jax.block_until_ready(
      ftb_forward(x_nhwc, w0_pt, w1_pt, w2_pt, gamma, beta, rmean, rvar, avg=False))

  ref_avg = ftb_reference(x_nhwc, w0_pt, w1_pt, w2_pt, gamma, beta, rmean, rvar, avg=True)
  ref_p3 = ftb_reference(x_nhwc, w0_pt, w1_pt, w2_pt, gamma, beta, rmean, rvar, avg=False)

  assert out_avg.shape == (N, (H + 2) // 2, (W + 2) // 2, Cout), out_avg.shape
  assert out_p3.shape == (N, H, W, Cout), out_p3.shape
  np.testing.assert_allclose(np.asarray(out_avg), np.asarray(ref_avg), rtol=2e-2, atol=2e-2)
  np.testing.assert_allclose(np.asarray(out_p3), np.asarray(ref_p3), rtol=2e-2, atol=2e-2)

  print("KERNEL_OK")
</pallas_src>

<mosaic_0001>
module attributes {stable_mosaic.version = 11 : i64} {
  func.func @_ftb_kernel(%arg0: i32, %arg1: memref<1x20x40x32xbf16, #tpu.memory_space<vmem>>, %arg2: memref<288x32xbf16, #tpu.memory_space<vmem>>, %arg3: memref<288x32xbf16, #tpu.memory_space<vmem>>, %arg4: memref<1x32xf32, #tpu.memory_space<vmem>>, %arg5: memref<1x9x1x288xf32, #tpu.memory_space<vmem>>, %arg6: memref<1x20x40x32xbf16, #tpu.memory_space<vmem>>) attributes {dimension_semantics = [#tpu.dimension_semantics<parallel>], iteration_bounds = array<i64: 2>, scalar_prefetch = 0 : i64, scratch_operands = 1 : i64, tpu.core_type = #tpu.core_type<tc>, window_params = [{transform_indices = @transform_0, window_bounds = array<i64: 1, 20, 40, 32>}, {pipeline_mode = #tpu.pipeline_mode<synchronous>, transform_indices = @transform_1, window_bounds = array<i64: 288, 32>}, {pipeline_mode = #tpu.pipeline_mode<synchronous>, transform_indices = @transform_2, window_bounds = array<i64: 288, 32>}, {pipeline_mode = #tpu.pipeline_mode<synchronous>, transform_indices = @transform_3, window_bounds = array<i64: 1, 32>}, {transform_indices = @transform_4, window_bounds = array<i64: 1, 9, 1, 288>}]} {
    %c0 = arith.constant 0 : index
    %c0_0 = arith.constant 0 : index
    %c0_1 = arith.constant 0 : index
    %c0_2 = arith.constant 0 : index
    %0 = vector.load %arg1[%c0, %c0_0, %c0_1, %c0_2] : memref<1x20x40x32xbf16, #tpu.memory_space<vmem>>, vector<1x18x32x32xbf16>
    %c0_3 = arith.constant 0 : index
    %c0_4 = arith.constant 0 : index
    %c1 = arith.constant 1 : index
    %c0_5 = arith.constant 0 : index
    %1 = vector.load %arg1[%c0_3, %c0_4, %c1, %c0_5] : memref<1x20x40x32xbf16, #tpu.memory_space<vmem>>, vector<1x18x32x32xbf16>
    %c0_6 = arith.constant 0 : index
    %c0_7 = arith.constant 0 : index
    %c2 = arith.constant 2 : index
    %c0_8 = arith.constant 0 : index
    %2 = vector.load %arg1[%c0_6, %c0_7, %c2, %c0_8] : memref<1x20x40x32xbf16, #tpu.memory_space<vmem>>, vector<1x18x32x32xbf16>
    %c0_9 = arith.constant 0 : index
    %c1_10 = arith.constant 1 : index
    %c0_11 = arith.constant 0 : index
    %c0_12 = arith.constant 0 : index
    %3 = vector.load %arg1[%c0_9, %c1_10, %c0_11, %c0_12] : memref<1x20x40x32xbf16, #tpu.memory_space<vmem>>, vector<1x18x32x32xbf16>
    %c0_13 = arith.constant 0 : index
    %c1_14 = arith.constant 1 : index
    %c1_15 = arith.constant 1 : index
    %c0_16 = arith.constant 0 : index
    %4 = vector.load %arg1[%c0_13, %c1_14, %c1_15, %c0_16] : memref<1x20x40x32xbf16, #tpu.memory_space<vmem>>, vector<1x18x32x32xbf16>
    %c0_17 = arith.constant 0 : index
    %c1_18 = arith.constant 1 : index
    %c2_19 = arith.constant 2 : index
    %c0_20 = arith.constant 0 : index
    %5 = vector.load %arg1[%c0_17, %c1_18, %c2_19, %c0_20] : memref<1x20x40x32xbf16, #tpu.memory_space<vmem>>, vector<1x18x32x32xbf16>
    %c0_21 = arith.constant 0 : index
    %c2_22 = arith.constant 2 : index
    %c0_23 = arith.constant 0 : index
    %c0_24 = arith.constant 0 : index
    %6 = vector.load %arg1[%c0_21, %c2_22, %c0_23, %c0_24] : memref<1x20x40x32xbf16, #tpu.memory_space<vmem>>, vector<1x18x32x32xbf16>
    %c0_25 = arith.constant 0 : index
    %c2_26 = arith.constant 2 : index
    %c1_27 = arith.constant 1 : index
    %c0_28 = arith.constant 0 : index
    %7 = vector.load %arg1[%c0_25, %c2_26, %c1_27, %c0_28] : memref<1x20x40x32xbf16, #tpu.memory_space<vmem>>, vector<1x18x32x32xbf16>
    %c0_29 = arith.constant 0 : index
    %c2_30 = arith.constant 2 : index
    %c2_31 = arith.constant 2 : index
    %c0_32 = arith.constant 0 : index
    %8 = vector.load %arg1[%c0_29, %c2_30, %c2_31, %c0_32] : memref<1x20x40x32xbf16, #tpu.memory_space<vmem>>, vector<1x18x32x32xbf16>
    %9 = tpu.concatenate %0, %1, %2, %3, %4, %5, %6, %7, %8 in 3 : vector<1x18x32x32xbf16>, vector<1x18x32x32xbf16>, vector<1x18x32x32xbf16>, vector<1x18x32x32xbf16>, vector<1x18x32x32xbf16>, vector<1x18x32x32xbf16>, vector<1x18x32x32xbf16>, vector<1x18x32x32xbf16>, vector<1x18x32x32xbf16> -> vector<1x18x32x288xbf16>
    %10 = vector.shape_cast %9 : vector<1x18x32x288xbf16> to vector<576x288xbf16>
    %c0_33 = arith.constant 0 : index
    %c0_34 = arith.constant 0 : index
    %11 = vector.load %arg2[%c0_33, %c0_34] : memref<288x32xbf16, #tpu.memory_space<vmem>>, vector<288x32xbf16>
    %cst = arith.constant dense<0.000000e+00> : vector<576x32xf32>
    %12 = tpu.matmul %10, %11, %cst {dimension_numbers = #tpu.dot_dimension_numbers<[1], [0], [0], [1], [0, 0, 1, 1], [], []>} : vector<576x288xbf16>, vector<288x32xbf16>, vector<576x32xf32> -> vector<576x32xf32>
    %13 = vector.shape_cast %12 : vector<576x32xf32> to vector<1x18x32x32xf32>
    %c0_35 = arith.constant 0 : index
    %c0_36 = arith.constant 0 : index
    %14 = vector.load %arg4[%c0_35, %c0_36] : memref<1x32xf32, #tpu.memory_space<vmem>>, vector<1x32xf32>
    %15 = vector.shape_cast %14 : vector<1x32xf32> to vector<32xf32>
    %16 = vector.shape_cast %15 : vector<32xf32> to vector<1x1x1x32xf32>
    %17 = vector.broadcast %16 : vector<1x1x1x32xf32> to vector<1x18x32x32xf32>
    %18 = arith.addf %13, %17 : vector<1x18x32x32xf32>
    %cst_37 = arith.constant 0.000000e+00 : f32
    %19 = vector.broadcast %cst_37 : f32 to vector<1x18x32x32xf32>
    %20 = arith.maximumf %18, %19 : vector<1x18x32x32xf32>
    %cst_38 = arith.constant 0.000000e+00 : bf16
    %21 = vector.broadcast %cst_38 : bf16 to vector<1x1x40x32xbf16>
    %cst_39 = arith.constant 0.000000e+00 : bf16
    %22 = vector.broadcast %cst_39 : bf16 to vector<1x20x1x32xbf16>
    %c0_40 = arith.constant 0 : index
    %c0_41 = arith.constant 0 : index
    %c0_42 = arith.constant 0 : index
    %c0_43 = arith.constant 0 : index
    %23 = vector.load %arg6[%c0_40, %c0_41, %c0_42, %c0_43] : memref<1x20x40x32xbf16, #tpu.memory_space<vmem>>, vector<1x1x40x32xbf16>
    tpu.vector_store %arg6[%c0_40, %c0_41, %c0_42, %c0_43], %21 {strides = array<i32>} : memref<1x20x40x32xbf16, #tpu.memory_space<vmem>>, vector<1x1x40x32xbf16>,
    %c0_44 = arith.constant 0 : index
    %c19 = arith.constant 19 : index
    %c0_45 = arith.constant 0 : index
    %c0_46 = arith.constant 0 : index
    %24 = vector.load %arg6[%c0_44, %c19, %c0_45, %c0_46] : memref<1x20x40x32xbf16, #tpu.memory_space<vmem>>, vector<1x1x40x32xbf16>
    tpu.vector_store %arg6[%c0_44, %c19, %c0_45, %c0_46], %21 {strides = array<i32>} : memref<1x20x40x32xbf16, #tpu.memory_space<vmem>>, vector<1x1x40x32xbf16>,
    %c0_47 = arith.constant 0 : index
    %c0_48 = arith.constant 0 : index
    %c0_49 = arith.constant 0 : index
    %c0_50 = arith.constant 0 : index
    %25 = vector.load %arg6[%c0_47, %c0_48, %c0_49, %c0_50] : memref<1x20x40x32xbf16, #tpu.memory_space<vmem>>, vector<1x20x1x32xbf16>
    tpu.vector_store %arg6[%c0_47, %c0_48, %c0_49, %c0_50], %22 {strides = array<i32>} : memref<1x20x40x32xbf16, #tpu.memory_space<vmem>>, vector<1x20x1x32xbf16>,
    %c0_51 = arith.constant 0 : index
    %c0_52 = arith.constant 0 : index
    %c19_53 = arith.constant 19 : index
    %c0_54 = arith.constant 0 : index
    %26 = vector.load %arg6[%c0_51, %c0_52, %c19_53, %c0_54] : memref<1x20x40x32xbf16, #tpu.memory_space<vmem>>, vector<1x20x1x32xbf16>
    tpu.vector_store %arg6[%c0_51, %c0_52, %c19_53, %c0_54], %22 {strides = array<i32>} : memref<1x20x40x32xbf16, #tpu.memory_space<vmem>>, vector<1x20x1x32xbf16>,
    %27 = vector.extract_strided_slice %20 {offsets = [0, 0, 0, 0], sizes = [1, 18, 18, 32], strides = [1, 1, 1, 1]} : vector<1x18x32x32xf32> to vector<1x18x18x32xf32>
    %28 = arith.truncf %27 : vector<1x18x18x32xf32> to vector<1x18x18x32xbf16>
    %c0_55 = arith.constant 0 : index
    %c1_56 = arith.constant 1 : index
    %c1_57 = arith.constant 1 : index
    %c0_58 = arith.constant 0 : index
    %29 = vector.load %arg6[%c0_55, %c1_56, %c1_57, %c0_58] : memref<1x20x40x32xbf16, #tpu.memory_space<vmem>>, vector<1x18x18x32xbf16>
    tpu.vector_store %arg6[%c0_55, %c1_56, %c1_57, %c0_58], %28 {strides = array<i32>} : memref<1x20x40x32xbf16, #tpu.memory_space<vmem>>, vector<1x18x18x32xbf16>,
    %c0_59 = arith.constant 0 : index
    %c0_60 = arith.constant 0 : index
    %c0_61 = arith.constant 0 : index
    %c0_62 = arith.constant 0 : index
    %30 = vector.load %arg6[%c0_59, %c0_60, %c0_61, %c0_62] : memref<1x20x40x32xbf16, #tpu.memory_space<vmem>>, vector<1x18x32x32xbf16>
    %c0_63 = arith.constant 0 : index
    %c0_64 = arith.constant 0 : index
    %c1_65 = arith.constant 1 : index
    %c0_66 = arith.constant 0 : index
    %31 = vector.load %arg6[%c0_63, %c0_64, %c1_65, %c0_66] : memref<1x20x40x32xbf16, #tpu.memory_space<vmem>>, vector<1x18x32x32xbf16>
    %c0_67 = arith.constant 0 : index
    %c0_68 = arith.constant 0 : index
    %c2_69 = arith.constant 2 : index
    %c0_70 = arith.constant 0 : index
    %32 = vector.load %arg6[%c0_67, %c0_68, %c2_69, %c0_70] : memref<1x20x40x32xbf16, #tpu.memory_space<vmem>>, vector<1x18x32x32xbf16>
    %c0_71 = arith.constant 0 : index
    %c1_72 = arith.constant 1 : index
    %c0_73 = arith.constant 0 : index
    %c0_74 = arith.constant 0 : index
    %33 = vector.load %arg6[%c0_71, %c1_72, %c0_73, %c0_74] : memref<1x20x40x32xbf16, #tpu.memory_space<vmem>>, vector<1x18x32x32xbf16>
    %c0_75 = arith.constant 0 : index
    %c1_76 = arith.constant 1 : index
    %c1_77 = arith.constant 1 : index
    %c0_78 = arith.constant 0 : index
    %34 = vector.load %arg6[%c0_75, %c1_76, %c1_77, %c0_78] : memref<1x20x40x32xbf16, #tpu.memory_space<vmem>>, vector<1x18x32x32xbf16>
    %c0_79 = arith.constant 0 : index
    %c1_80 = arith.constant 1 : index
    %c2_81 = arith.constant 2 : index
    %c0_82 = arith.constant 0 : index
    %35 = vector.load %arg6[%c0_79, %c1_80, %c2_81, %c0_82] : memref<1x20x40x32xbf16, #tpu.memory_space<vmem>>, vector<1x18x32x32xbf16>
    %c0_83 = arith.constant 0 : index
    %c2_84 = arith.constant 2 : index
    %c0_85 = arith.constant 0 : index
    %c0_86 = arith.constant 0 : index
    %36 = vector.load %arg6[%c0_83, %c2_84, %c0_85, %c0_86] : memref<1x20x40x32xbf16, #tpu.memory_space<vmem>>, vector<1x18x32x32xbf16>
    %c0_87 = arith.constant 0 : index
    %c2_88 = arith.constant 2 : index
    %c1_89 = arith.constant 1 : index
    %c0_90 = arith.constant 0 : index
    %37 = vector.load %arg6[%c0_87, %c2_88, %c1_89, %c0_90] : memref<1x20x40x32xbf16, #tpu.memory_space<vmem>>, vector<1x18x32x32xbf16>
    %c0_91 = arith.constant 0 : index
    %c2_92 = arith.constant 2 : index
    %c2_93 = arith.constant 2 : index
    %c0_94 = arith.constant 0 : index
    %38 = vector.load %arg6[%c0_91, %c2_92, %c2_93, %c0_94] : memref<1x20x40x32xbf16, #tpu.memory_space<vmem>>, vector<1x18x32x32xbf16>
    %39 = tpu.concatenate %30, %31, %32, %33, %34, %35, %36, %37, %38 in 3 : vector<1x18x32x32xbf16>, vector<1x18x32x32xbf16>, vector<1x18x32x32xbf16>, vector<1x18x32x32xbf16>, vector<1x18x32x32xbf16>, vector<1x18x32x32xbf16>, vector<1x18x32x32xbf16>, vector<1x18x32x32xbf16>, vector<1x18x32x32xbf16> -> vector<1x18x32x288xbf16>
    %40 = vector.shape_cast %39 : vector<1x18x32x288xbf16> to vector<576x288xbf16>
    %c0_95 = arith.constant 0 : index
    %c0_96 = arith.constant 0 : index
    %41 = vector.load %arg3[%c0_95, %c0_96] : memref<288x32xbf16, #tpu.memory_space<vmem>>, vector<288x32xbf16>
    %cst_97 = arith.constant dense<0.000000e+00> : vector<576x32xf32>
    %42 = tpu.matmul %40, %41, %cst_97 {dimension_numbers = #tpu.dot_dimension_numbers<[1], [0], [0], [1], [0, 0, 1, 1], [], []>} : vector<576x288xbf16>, vector<288x32xbf16>, vector<576x32xf32> -> vector<576x32xf32>
    %43 = vector.shape_cast %42 : vector<576x32xf32> to vector<1x18x32x32xf32>
    %44 = vector.extract_strided_slice %43 {offsets = [0, 0, 0, 0], sizes = [1, 18, 18, 32], strides = [1, 1, 1, 1]} : vector<1x18x32x32xf32> to vector<1x18x18x32xf32>
    %c0_98 = arith.constant 0 : index
    %c1_99 = arith.constant 1 : index
    %c1_100 = arith.constant 1 : index
    %c0_101 = arith.constant 0 : index
    %45 = vector.load %arg1[%c0_98, %c1_99, %c1_100, %c0_101] : memref<1x20x40x32xbf16, #tpu.memory_space<vmem>>, vector<1x18x18x32xbf16>
    %46 = arith.extf %45 : vector<1x18x18x32xbf16> to vector<1x18x18x32xf32>
    %47 = arith.addf %44, %46 : vector<1x18x18x32xf32>
    %48 = vector.shape_cast %47 : vector<1x18x18x32xf32> to vector<1x9x2x18x32xf32>
    %49 = vector.extract_strided_slice %48 {offsets = [0, 0, 0, 0, 0], sizes = [1, 9, 1, 18, 32], strides = [1, 1, 1, 1, 1]} : vector<1x9x2x18x32xf32> to vector<1x9x1x18x32xf32>
    %50 = vector.shape_cast %49 : vector<1x9x1x18x32xf32> to vector<1x9x18x32xf32>
    %51 = vector.extract_strided_slice %48 {offsets = [0, 0, 1, 0, 0], sizes = [1, 9, 1, 18, 32], strides = [1, 1, 1, 1, 1]} : vector<1x9x2x18x32xf32> to vector<1x9x1x18x32xf32>
    %52 = vector.shape_cast %51 : vector<1x9x1x18x32xf32> to vector<1x9x18x32xf32>
    %53 = arith.addf %50, %52 : vector<1x9x18x32xf32>
    %54 = vector.extract_strided_slice %53 {offsets = [0, 0, 0, 0], sizes = [1, 9, 1, 32], strides = [1, 1, 1, 1]} : vector<1x9x18x32xf32> to vector<1x9x1x32xf32>
    %55 = vector.extract_strided_slice %53 {offsets = [0, 0, 1, 0], sizes = [1, 9, 1, 32], strides = [1, 1, 1, 1]} : vector<1x9x18x32xf32> to vector<1x9x1x32xf32>
    %56 = arith.addf %54, %55 : vector<1x9x1x32xf32>
    %57 = vector.extract_strided_slice %53 {offsets = [0, 0, 2, 0], sizes = [1, 9, 1, 32], strides = [1, 1, 1, 1]} : vector<1x9x18x32xf32> to vector<1x9x1x32xf32>
    %58 = vector.extract_strided_slice %53 {offsets = [0, 0, 3, 0], sizes = [1, 9, 1, 32], strides = [1, 1, 1, 1]} : vector<1x9x18x32xf32> to vector<1x9x1x32xf32>
    %59 = arith.addf %57, %58 : vector<1x9x1x32xf32>
    %60 = vector.extract_strided_slice %53 {offsets = [0, 0, 4, 0], sizes = [1, 9, 1, 32], strides = [1, 1, 1, 1]} : vector<1x9x18x32xf32> to vector<1x9x1x32xf32>
    %61 = vector.extract_strided_slice %53 {offsets = [0, 0, 5, 0], sizes = [1, 9, 1, 32], strides = [1, 1, 1, 1]} : vector<1x9x18x32xf32> to vector<1x9x1x32xf32>
    %62 = arith.addf %60, %61 : vector<1x9x1x32xf32>
    %63 = vector.extract_strided_slice %53 {offsets = [0, 0, 6, 0], sizes = [1, 9, 1, 32], strides = [1, 1, 1, 1]} : vector<1x9x18x32xf32> to vector<1x9x1x32xf32>
    %64 = vector.extract_strided_slice %53 {offsets = [0, 0, 7, 0], sizes = [1, 9, 1, 32], strides = [1, 1, 1, 1]} : vector<1x9x18x32xf32> to vector<1x9x1x32xf32>
    %65 = arith.addf %63, %64 : vector<1x9x1x32xf32>
    %66 = vector.extract_strided_slice %53 {offsets = [0, 0, 8, 0], sizes = [1, 9, 1, 32], strides = [1, 1, 1, 1]} : vector<1x9x18x32xf32> to vector<1x9x1x32xf32>
    %67 = vector.extract_strided_slice %53 {offsets = [0, 0, 9, 0], sizes = [1, 9, 1, 32], strides = [1, 1, 1, 1]} : vector<1x9x18x32xf32> to vector<1x9x1x32xf32>
    %68 = arith.addf %66, %67 : vector<1x9x1x32xf32>
    %69 = vector.extract_strided_slice %53 {offsets = [0, 0, 10, 0], sizes = [1, 9, 1, 32], strides = [1, 1, 1, 1]} : vector<1x9x18x32xf32> to vector<1x9x1x32xf32>
    %70 = vector.extract_strided_slice %53 {offsets = [0, 0, 11, 0], sizes = [1, 9, 1, 32], strides = [1, 1, 1, 1]} : vector<1x9x18x32xf32> to vector<1x9x1x32xf32>
    %71 = arith.addf %69, %70 : vector<1x9x1x32xf32>
    %72 = vector.extract_strided_slice %53 {offsets = [0, 0, 12, 0], sizes = [1, 9, 1, 32], strides = [1, 1, 1, 1]} : vector<1x9x18x32xf32> to vector<1x9x1x32xf32>
    %73 = vector.extract_strided_slice %53 {offsets = [0, 0, 13, 0], sizes = [1, 9, 1, 32], strides = [1, 1, 1, 1]} : vector<1x9x18x32xf32> to vector<1x9x1x32xf32>
    %74 = arith.addf %72, %73 : vector<1x9x1x32xf32>
    %75 = vector.extract_strided_slice %53 {offsets = [0, 0, 14, 0], sizes = [1, 9, 1, 32], strides = [1, 1, 1, 1]} : vector<1x9x18x32xf32> to vector<1x9x1x32xf32>
    %76 = vector.extract_strided_slice %53 {offsets = [0, 0, 15, 0], sizes = [1, 9, 1, 32], strides = [1, 1, 1, 1]} : vector<1x9x18x32xf32> to vector<1x9x1x32xf32>
    %77 = arith.addf %75, %76 : vector<1x9x1x32xf32>
    %78 = vector.extract_strided_slice %53 {offsets = [0, 0, 16, 0], sizes = [1, 9, 1, 32], strides = [1, 1, 1, 1]} : vector<1x9x18x32xf32> to vector<1x9x1x32xf32>
    %79 = vector.extract_strided_slice %53 {offsets = [0, 0, 17, 0], sizes = [1, 9, 1, 32], strides = [1, 1, 1, 1]} : vector<1x9x18x32xf32> to vector<1x9x1x32xf32>
    %80 = arith.addf %78, %79 : vector<1x9x1x32xf32>
    %81 = tpu.concatenate %56, %59, %62, %65, %68, %71, %74, %77, %80 in 3 : vector<1x9x1x32xf32>, vector<1x9x1x32xf32>, vector<1x9x1x32xf32>, vector<1x9x1x32xf32>, vector<1x9x1x32xf32>, vector<1x9x1x32xf32>, vector<1x9x1x32xf32>, vector<1x9x1x32xf32>, vector<1x9x1x32xf32> -> vector<1x9x1x288xf32>
    %cst_102 = arith.constant 2.500000e-01 : f32
    %82 = vector.broadcast %cst_102 : f32 to vector<1x9x1x288xf32>
    %83 = arith.mulf %81, %82 : vector<1x9x1x288xf32>
    %c0_103 = arith.constant 0 : index
    %c0_104 = arith.constant 0 : index
    %c0_105 = arith.constant 0 : index
    %c0_106 = arith.constant 0 : index
    %84 = vector.load %arg5[%c0_103, %c0_104, %c0_105, %c0_106] : memref<1x9x1x288xf32, #tpu.memory_space<vmem>>, vector<1x9x1x288xf32>
    tpu.vector_store %arg5[%c0_103, %c0_104, %c0_105, %c0_106], %83 {strides = array<i32>} : memref<1x9x1x288xf32, #tpu.memory_space<vmem>>, vector<1x9x1x288xf32>,
    return
  }
  func.func @transform_0(%arg0: i32) -> (i32, i32, i32, i32) {
    %c0_i32 = arith.constant 0 : i32
    %c0_i32_0 = arith.constant 0 : i32
    %c0_i32_1 = arith.constant 0 : i32
    %c0_i32_2 = arith.constant 0 : i32
    return %arg0, %c0_i32, %c0_i32_0, %c0_i32_1 : i32, i32, i32, i32
  }
  func.func @transform_1(%arg0: i32) -> (i32, i32) {
    %c0_i32 = arith.constant 0 : i32
    %c0_i32_0 = arith.constant 0 : i32
    %c0_i32_1 = arith.constant 0 : i32
    return %c0_i32, %c0_i32_0 : i32, i32
  }
  func.func @transform_2(%arg0: i32) -> (i32, i32) {
    %c0_i32 = arith.constant 0 : i32
    %c0_i32_0 = arith.constant 0 : i32
    %c0_i32_1 = arith.constant 0 : i32
    return %c0_i32, %c0_i32_0 : i32, i32
  }
  func.func @transform_3(%arg0: i32) -> (i32, i32) {
    %c0_i32 = arith.constant 0 : i32
    %c0_i32_0 = arith.constant 0 : i32
    %c0_i32_1 = arith.constant 0 : i32
    return %c0_i32, %c0_i32_0 : i32, i32
  }
  func.func @transform_4(%arg0: i32) -> (i32, i32, i32, i32) {
    %c0_i32 = arith.constant 0 : i32
    %c0_i32_0 = arith.constant 0 : i32
    %c0_i32_1 = arith.constant 0 : i32
    %c0_i32_2 = arith.constant 0 : i32
    return %arg0, %c0_i32, %c0_i32_0, %c0_i32_1 : i32, i32, i32, i32
  }
}

</mosaic_0001>

<bundles_post_ra>
// kernel: tpu_custom_call.1
= control target key start
LH: loop header
LB: loop body
LE: loop exit
PB: predicated region body
PF: predicated region fallthrough
CT: control target
= control target key end

     0   :  { %9 = vsyncpa [#allocation4], 0  ;;  %s19691_s0 = inlined_call_operand.vmem [shape: bf16[2,20,40,32], index: 0, kind: input, shape index: {}]   ;;  %s19692_s1 = inlined_call_operand.vmem [shape: bf16[288,32], index: 1, kind: input, shape index: {}]   ;;  %s19693_s2 = inlined_call_operand.vmem [shape: bf16[288,32], index: 2, kind: input, shape index: {}]   ;;  %s19694_s3 = inlined_call_operand.vmem [shape: f32[1,32], index: 3, kind: input, shape index: {}]   ;;  %s19695_s4 = inlined_call_operand.hbm [shape: f32[2,9,1,288], index: 4, kind: output, shape index: {}]  }
   0x1   :  { %11 = vsyncpa [#allocation4 + $0x1], 0  ;;  %s13036_s15 = smov 0   ;;  %s13038_s16 = smov 0  }
   0x2   :  { %s13040_s17 = smov 0   ;;  %s13042_s18 = smov 0  }
   0x3 LB: > { %s13057_s19 = sadd.s32 4294967295, %s13001_s18   ;;  %s11156_s20 = sadd.s32 4294967294, %s13001_s18   ;;  %s13001_s18 = sphi %s13042_s18, %s20228_s18   ;;  %s12997_s17 = sphi %s13040_s17, %s20227_s17   ;;  %s12993_s16 = sphi %s13038_s16, %s20226_s16   ;;  %s12989_s15 = sphi %s13036_s15, %s20225_s15  }
   0x4   : > { %s13061_s21 = sadd.s32 1, %s13001_s18   ;;  %s113_s22 = sadd.s32 1, %s12997_s17 }
   0x5   : > { %s110_s23 = ssub.s32 %s13001_s18, %s13061_s21  ;;  %p123_p0 = scmp.ne.s32.totalorder %s12997_s17, %s12993_s16 }
   0x6   : > { %p111_p1 = scmp.eq.s32.totalorder %s110_s23, 0  ;;  %p124_p2 = scmp.eq.s32.totalorder %s13057_s19, 1 }
   0x7   : > { %p129_p3 = scmp.ne.s32.totalorder %s12993_s16, %s12989_s15  ;;  %p130_p4 = scmp.eq.s32.totalorder %s11156_s20, 1 }
   0x8   : > { %s13072_s24 = scalar_select %p111_p1, %s12997_s17, %s113_s22  }
   0x9   : > { %p13074_p5 = por %p124_p2, %p123_p0  ;;  %p13078_p6 = por %p130_p4, %p129_p3 }
   0xa   : > { %p11159_p7 = scmp.ge.s32.totalorder %s13001_s18, 1  ;;  %p165_p8 = scmp.lt.s32.totalorder %s13001_s18, 3 }
   0xc   : > { %p166_p9 = pnand %p11159_p7, %p165_p8 }
   0xe   : > { %169 = sbr.rel (%p166_p9) target bundleno = 1426 (0x592), region = 36 }
  0x15   : > { %p191_p10 = scmp.lt.s32.totalorder %s13057_s19, 1  ;;  %v19696_v0 = vmov 0   ;;  %v12444_v1 = vld [vmem:[%s19692_s1] sm:$0xff]   ;;  %v12449_v2 = vld [vmem:[%s19692_s1 + $0x8] sm:$0xff]   ;;  %vm1244_vm0 = vcmask 1046528   ;;  %v12453_v3 = vld [vmem:[%s19692_s1 + $0x10] sm:$0xff]  }
  0x16   : > { %3966 = vmatprep.subr.bf16.mxu0 %v19696_v0  ;;  %s13004_s12 = smov 64   ;;  %v12456_v13 = vld [vmem:[%s19692_s1 + $0x18] sm:$0xff]   ;;  %vm757_vm1 = vsmask.f32 7424  ;;  %s13005_s20 = smov 32   ;;  %v12459_v36 = vld [vmem:[%s19692_s1 + $0x20] sm:$0xff]  }
  0x17   : > { %s192_s27 = scalar_select %p191_p10, %s13057_s19, 1  ;;  %3967 = vmatpush1.bf16.msra.mxu0 %v12444_v1  ;;  %vm3171_vm2 = vcmask 261120   ;;  %vm3244_vm3 = vcmask 523264   ;;  %vm3317_vm4 = vcmask 785408   ;;  %vm4699_vm5 = vcmask 253952  }
  0x18   : > { %3968 = vmatprep.subr.bf16.mxu0 %v19696_v0  ;;  %s13006_s22 = smov 96   ;;  %vm4700_vm6 = vsmask.f32 256  ;;  %vm4687_vm7 = vcmask 257024   ;;  %vm4762_vm9 = vcmask 254977   ;;  %vm5519_vm14 = vcmask 254976  }
  0x19   : > { %s12361_s30 = smul.u32 400, %s192_s27  ;;  %vm14118_vm8 = vmand %vm4699_vm5, %vm4700_vm6  ;;  %4688 = vst.msk [vmem:[#allocation2] sm:$0xf] %vm4687_vm7, %v19696_v0  ;;  %vm4763_vm10 = vsmask.f32 7942  ;;  %s188_s28 = sand.u32 1, %s12993_s16  }
  0x1a   : > { %4689 = vst.msk [vmem:[#allocation2 + $0x4] sm:$0xf] %vm4687_vm7, %v19696_v0  ;;  %4690 = vst.msk [vmem:[#allocation2 + $0x8] sm:$0xf] %vm4687_vm7, %v19696_v0  ;;  %vm5513_vm12 = vsmask.f32 7938 }
  0x1b   : > { %s13097_s9 = scalar_lea.vmem %s19691_s0, %s12361_s30  ;;  %3969 = vmatpush1.bf16.msra.mxu0 %v12449_v2  ;;  %4691 = vst.msk [vmem:[#allocation2 + $0xc] sm:$0xf] %vm4687_vm7, %v19696_v0  ;;  %4692 = vst.msk [vmem:[#allocation2 + $0x10] sm:$0xf] %vm4687_vm7, %v19696_v0  ;;  %vm5005_vm13 = vsmask.f32 4368 }
  0x1c   : > { %v13103_v4 = vld [vmem:[%s13097_s9 + $0x30] sm:$0xff]   ;;  %v11269_v5 = vld [vmem:[%s13097_s9 + $0x28] sm:$0xf]  ;;  %v13107_v6 = vld [vmem:[%s13097_s9 + $0x2c] sm:$0xf]  ;;  %3970 = vmatprep.subr.bf16.mxu0 %v19696_v0  ;;  %s19476_s29 = smul.u32 27, %s188_s28 }
  0x1d   : > { %v11162_v7 = vld [vmem:[%s13097_s9 + $0x18] sm:$0xf]  ;;  %2471 = vrot.lane.b32.xlu0 %v13103_v4, %s13004_s12  ;;  %v11521_v8 = vcombine.low %v11269_v5, %v13107_v6  ;;  %v11251_v9 = vld [vmem:[%s13097_s9 + $0x14] sm:$0xe]  ;;  %v13116_v10 = vld [vmem:[%s13097_s9 + $0x1c] sm:$0xff]   ;;  %v2603_v26 = vshll.u32 %v13103_v4, 16 }
  0x1e   : > { %v11503_v11 = vcombine.low %v11251_v9, %v11162_v7  ;;  %v11161_v12 = vld [vmem:[%s13097_s9 + $0x14] sm:$0xf]  ;;  %v12414_v16 = vld [vmem:[%s13097_s9 + $0x24] ss:$0 sps:$4 sm:$0x11]   ;;  %v2128_v19 = vrot.slane %v13116_v10, 1  ;;  %vm14201_vm11 = vmand %vm4762_vm9, %vm4763_vm10 }
  0x1f   : > { %2469 = vrot.lane.b32.xlu1 %v11521_v8, %s13004_s12  ;;  %v2598_v14 = vshll.u32 %v11521_v8, 16  ;;  %v13123_v15 = vcombine.low %v11161_v12, %v11162_v7  ;;  %v198_v17 = vld [vmem:[%s13097_s9 + $0x4] sm:$0xf]  ;;  %3971 = vmatpush1.bf16.msra.mxu0 %v12453_v3  ;;  %v2130_v20 = vrot.slane %v12414_v16, 1  ;;  %v287_v21 = vld [vmem:[%s13097_s9] sm:$0xe]  ;;  %vm15361_vm5 = vmand %vm4687_vm7, %vm5513_vm12 }
  0x20   : > { %v2127_v18 = vrot.slane %v11503_v11, 1  ;;  %v12415_v22 = vld [vmem:[%s13097_s9 + $0x8] sm:$0xff]   ;;  %3972 = vmatprep.subr.bf16.mxu0 %v19696_v0  ;;  %v11431_v24 = vcombine.low %v287_v21, %v198_v17  ;;  %v197_v25 = vld [vmem:[%s13097_s9] sm:$0xf]  ;;  %v2596_v30 = vshrl.u32 %v11521_v8, 16  ;;  %v2605_v47 = vrot.slane %v2603_v26, 1  ;;  %vm15383_vm9 = vmor %vm4700_vm6, %vm5005_vm13 }
  0x21   : > { %v1246_v27 = vrot.slane %v12415_v22, 1  ;;  %v13137_v28 = vcombine.low %v197_v25, %v198_v17  ;;  %v12418_v29 = vld [vmem:[%s13097_s9 + $0x10] ss:$0 sps:$4 sm:$0x11]   ;;  %v2600_v31 = vrot.slane %v2598_v14, 1  ;;  %v2131_v32 = vsel %vm1244_vm0, %v2128_v19, %v2130_v20  ;;  %v13158_v53 = vld [vmem:[%s13097_s9 + $0x1c] sm:$0xff]  }
  0x22   : > { %v2129_v23 = vsel %vm1244_vm0, %v2127_v18, %v2128_v19  ;;  %v1245_v33 = vrot.slane %v11431_v24, 1  ;;  %v766_v34 = vshll.u32 %v12415_v22, 16  ;;  %v770_v35 = vshrl.u32 %v12415_v22, 16  ;;  %v13149_v43 = vld [vmem:[%s13097_s9 + $0x38] ss:$0 sps:$4 sm:$0x11]  }
  0x23   : > { %2217 = vrot.lane.b32.xlu0 %v2129_v23, %s13005_s20  ;;  %1587 = vrot.lane.b32.xlu1 %v13123_v15, %s13006_s22  ;;  %v1248_v37 = vrot.slane %v12418_v29, 1  ;;  %v759_v38 = vshrl.u32 %v13137_v28, 16  ;;  %v761_v39 = vshll.u32 %v13137_v28, 16  ;;  %v774_v40 = vshll.u32 %v12418_v29, 16  ;;  %v201_v44 = vld [vmem:[%s13097_s9 + $0x14] sm:$0xf] }
  0x24   : > { %3973 = vmatpush1.bf16.msra.mxu0 %v12456_v13  ;;  %v1247_v41 = vsel %vm1244_vm0, %v1245_v33, %v1246_v27  ;;  %v768_v42 = vrot.slane %v766_v34, 1  ;;  %v2601_v46 = vor.u32 %v2600_v31, %v2596_v30  ;;  %v202_v48 = vld [vmem:[%s13097_s9 + $0x18] sm:$0xf]  ;;  %v2607_v52 = vshrl.u32 %v13103_v4, 16  ;;  %v11166_v57 = vld [vmem:[%s13097_s9 + $0x2c] sm:$0xf] }
  0x25   : > { %3974 = vmatprep.subr.bf16.mxu0 %v19696_v0  ;;  %v763_v45 = vrot.slane %v761_v39, 1  ;;  %v1249_v49 = vsel %vm1244_vm0, %v1246_v27, %v1248_v37  ;;  %v776_v51 = vrot.slane %v774_v40, 1  ;;  %v2611_v55 = vshll.u32 %v13149_v43, 16  ;;  %v11252_v58 = vld [vmem:[%s13097_s9 + $0x28] sm:$0xe]  ;;  %v13171_v62 = vld [vmem:[%s13097_s9 + $0x30] sm:$0xff]  }
  0x26   : > { %v772_v50 = vor.u32 %v770_v35, %v768_v42  ;;  %v13161_v56 = vcombine.low %v201_v44, %v202_v48  ;;  %v2606_v60 = vsel %vm757_vm1, %v2601_v46, %v2605_v47  ;;  %v11273_v63 = vld [vmem:[%s13097_s9 + $0x3c] sm:$0xf]  ;;  %v2609_v2 = vor.u32 %v2607_v52, %v2605_v47  ;;  %v288_v7 = vld [vmem:[%s13097_s9 + $0x14] sm:$0xe]  ;;  %v13180_v8 = vld [vmem:[%s13097_s9 + $0x40] sm:$0xf] }
  0x27   : > { %2219 = vrot.lane.b32.xlu0 %v2131_v32, %s13005_s20  ;;  %1335 = vrot.lane.b32.xlu1 %v1247_v41, %s13004_s12  ;;  %v764_v54 = vor.u32 %v763_v45, %v759_v38  ;;  %v786_v5 = vshll.u32 %v13158_v53, 16  ;;  %v2613_v9 = vrot.slane %v2611_v55, 1  ;;  %v11504_v12 = vcombine.low %v11252_v58, %v11166_v57  ;;  %v13188_v22 = vld [vmem:[%s13097_s9 + $0x44] sm:$0xff]   ;;  %v206_v40 = vld [vmem:[%s13097_s9 + $0x2c] sm:$0xf]  ;;  %s19506_s30 = scalar_lea.vmem [#allocation3], %s19476_s29 }
  0x28   : > { %3975 = vmatpush1.bf16.msra.mxu0 %v12459_v36  ;;  %v781_v61 = vshll.u32 %v13161_v56, 16  ;;  %v777_v1 = vsel %vm757_vm1, %v772_v50, %v776_v51  ;;  %v779_v3 = vshrl.u32 %v13161_v56, 16  ;;  %v11523_v13 = vcombine.low %v11273_v63, %v13180_v8  ;;  %v12429_v23 = vld [vmem:[%s13097_s9 + $0x24] ss:$0 sps:$4 sm:$0x11]   ;;  %v13224_v52 = vld [vmem:[%s13097_s9 + $0x30] sm:$0xff]  }
  0x29   : > { %3976 = vmatprep.subr.bf16.mxu0 %v19696_v0  ;;  %v769_v59 = vsel %vm757_vm1, %v764_v54, %v768_v42  ;;  %v788_v16 = vrot.slane %v786_v5, 1  ;;  %v11432_v17 = vcombine.low %v288_v7, %v202_v48  ;;  %v2614_v18 = vsel %vm757_vm1, %v2609_v2, %v2613_v9  ;;  %v11165_v32 = vld [vmem:[%s13097_s9 + $0x28] sm:$0xf]  ;;  %v12430_v36 = vld [vmem:[%s13097_s9 + $0x38] ss:$0 sps:$4 sm:$0x11]  }
  0x2a   : > { %v783_v11 = vrot.slane %v781_v61, 1  ;;  %v2132_v19 = vrot.slane %v11504_v12, 1  ;;  %v2133_v20 = vrot.slane %v13171_v62, 1  ;;  %v2618_v21 = vshll.u32 %v11523_v13, 16  ;;  %v205_v39 = vld [vmem:[%s13097_s9 + $0x28] sm:$0xf] }
  0x2b   : > { %1337 = vrot.lane.b32.xlu1 %v1249_v49, %s13004_s12  ;;  %1118 = vrot.lane.b32.xlu0 %v769_v59, %s13005_s20  ;;  %v1250_v25 = vrot.slane %v11432_v17, 1  ;;  %v1251_v26 = vrot.slane %v13158_v53, 1  ;;  %v2616_v29 = vshrl.u32 %v11523_v13, 16  ;;  %v2623_v31 = vshll.u32 %v13188_v22, 16  ;;  %v12460_v42 = vld [vmem:[%s19692_s1 + $0x28] sm:$0xff]   ;;  %s13008_s7 = smov [#allocation3]  }
  0x2c   : > { %v784_v14 = vor.u32 %v783_v11, %v779_v3  ;;  %v2134_v27 = vsel %vm1244_vm0, %v2132_v19, %v2133_v20  ;;  %v2620_v30 = vrot.slane %v2618_v21, 1  ;;  %v790_v34 = vshrl.u32 %v13158_v53, 16  ;;  %v13214_v46 = vld [vmem:[%s13097_s9 + $0x4c] ss:$0 sps:$4 sm:$0x11]   ;;  %3977 = vmatpush1.bf16.msra.mxu0 %v12460_v42  ;;  %v13243_v9 = vld [vmem:[%s13097_s9 + $0x44] sm:$0xff]  }
  0x2d   : > { %v1252_v33 = vsel %vm1244_vm0, %v1250_v25, %v1251_v26  ;;  %v794_v35 = vshll.u32 %v12429_v23, 16  ;;  %v2625_v38 = vrot.slane %v2623_v31, 1  ;;  %v13207_v41 = vcombine.low %v11165_v32, %v11166_v57  ;;  %3978 = vmatprep.subr.bf16.mxu0 %v19696_v0  ;;  %v11170_v57 = vld [vmem:[%s13097_s9 + $0x40] sm:$0xf]  ;;  %v11253_v59 = vld [vmem:[%s13097_s9 + $0x3c] sm:$0xe] }
  0x2e   : > { %v789_v24 = vsel %vm757_vm1, %v784_v14, %v788_v16  ;;  %v2621_v37 = vor.u32 %v2620_v30, %v2616_v29  ;;  %v792_v44 = vor.u32 %v790_v34, %v788_v16  ;;  %v13216_v47 = vcombine.low %v205_v39, %v206_v40  ;;  %v13235_v61 = vld [vmem:[%s13097_s9 + $0x54] sm:$0xf]  ;;  %v289_v12 = vld [vmem:[%s13097_s9 + $0x28] sm:$0xe]  ;;  %v13248_v14 = vld [vmem:[%s13097_s9 + $0x58] sm:$0xff]   ;;  %s12943_s8 = sshll.u32 %s13008_s7, 4  ;;  %s12944_s8 = int_to_ptr.vmem [resolvable:$false] %s12943_s8 }
  0x2f   : > { %1120 = vrot.lane.b32.xlu1 %v777_v1, %s13005_s20  ;;  %2955 = vrot.lane.b32.xlu0 %v2606_v60, %s13006_s22  ;;  %v796_v45 = vrot.slane %v794_v35, 1  ;;  %v2135_v49 = vrot.slane %v12430_v36, 1  ;;  %v1253_v50 = vrot.slane %v12429_v23, 1  ;;  %v2627_v51 = vshrl.u32 %v13188_v22, 16  ;;  %v11277_v60 = vld [vmem:[%s13097_s9 + $0x50] sm:$0xf] }
  0x30   : > { %v2626_v48 = vsel %vm757_vm1, %v2621_v37, %v2625_v38  ;;  %v2631_v54 = vshll.u32 %v13214_v46, 16  ;;  %v801_v55 = vshll.u32 %v13216_v47, 16  ;;  %v799_v1 = vshrl.u32 %v13216_v47, 16  ;;  %v12462_v16 = vld [vmem:[%s19692_s1 + $0x30] sm:$0xff]   ;;  %v11169_v34 = vld [vmem:[%s13097_s9 + $0x3c] sm:$0xf] }
  0x31   : > { %v797_v53 = vsel %vm757_vm1, %v792_v44, %v796_v45  ;;  %v2136_v58 = vsel %vm1244_vm0, %v2133_v20, %v2135_v49  ;;  %v1254_v63 = vsel %vm1244_vm0, %v1251_v26, %v1253_v50  ;;  %v806_v3 = vshll.u32 %v13224_v52, 16  ;;  %3979 = vmatpush1.bf16.msra.mxu0 %v12462_v16  ;;  %v12441_v26 = vld [vmem:[%s13097_s9 + $0x38] ss:$0 sps:$4 sm:$0x11]   ;;  %v209_v39 = vld [vmem:[%s13097_s9 + $0x3c] sm:$0xf] }
  0x32   : > { %v803_v2 = vrot.slane %v801_v55, 1  ;;  %v2629_v5 = vor.u32 %v2627_v51, %v2625_v38  ;;  %v2633_v7 = vrot.slane %v2631_v54, 1  ;;  %v11505_v11 = vcombine.low %v11253_v59, %v11170_v57  ;;  %3980 = vmatprep.subr.bf16.mxu0 %v19696_v0  ;;  %v12442_v38 = vld [vmem:[%s13097_s9 + $0x4c] ss:$0 sps:$4 sm:$0x11]   ;;  %v12477_v16 = vld [vmem:[%s19692_s1 + $0x50] sm:$0xff]  }
  0x33   : > { %1589 = vrot.lane.b32.xlu1 %v13116_v10, %s13006_s22  ;;  %2957 = vrot.lane.b32.xlu0 %v2614_v18, %s13006_s22  ;;  %v808_v18 = vrot.slane %v806_v3, 1  ;;  %v11433_v19 = vcombine.low %v289_v12, %v206_v40  ;;  %v2138_v23 = vrot.slane %v13243_v9, 1  ;;  %v2643_v25 = vshll.u32 %v13248_v14, 16  ;;  %v12467_v40 = vld [vmem:[%s19692_s1 + $0x38] sm:$0xff]   ;;  %v13278_v44 = vld [vmem:[%s13097_s9 + $0x40] sm:$0xf] }
  0x34   : > { %v804_v17 = vor.u32 %v803_v2, %v799_v1  ;;  %v2634_v20 = vsel %vm757_vm1, %v2629_v5, %v2633_v7  ;;  %v2137_v21 = vrot.slane %v11505_v11, 1  ;;  %v1256_v30 = vrot.slane %v13224_v52, 1  ;;  %v13289_v51 = vld [vmem:[%s13097_s9 + $0x60] ss:$0 sps:$4 sm:$0x11]   ;;  %s12945_s10 = scalar_lea.vmem %s12944_s8, 864 }
  0x35   : > { %v1255_v29 = vrot.slane %v11433_v19, 1  ;;  %v2645_v35 = vrot.slane %v2643_v25, 1  ;;  %v814_v36 = vshll.u32 %v12441_v26, 16  ;;  %3981 = vmatpush1.bf16.msra.mxu0 %v12467_v40  ;;  %v13281_v45 = vcombine.low %v11169_v34, %v11170_v57  ;;  %v13312_v3 = vld [vmem:[%s13097_s9 + $0x54] sm:$0xf]  ;;  %v13331_v25 = vld [vmem:[%s13097_s9 + $0x58] sm:$0xff]  }
  0x36   : > { %v2139_v31 = vsel %vm1244_vm0, %v2137_v21, %v2138_v23  ;;  %3982 = vmatprep.subr.bf16.mxu0 %v19696_v0  ;;  %v2140_v54 = vrot.slane %v12442_v38, 1  ;;  %v1714_v55 = vshrl.u32 %v13123_v15, 16  ;;  %v1716_v57 = vshll.u32 %v13123_v15, 16  ;;  %v11254_v5 = vld [vmem:[%s13097_s9 + $0x50] sm:$0xe] }
  0x37   : > { %1122 = vrot.lane.b32.xlu1 %v789_v24, %s13005_s20  ;;  %2221 = vrot.lane.b32.xlu0 %v2134_v27, %s13005_s20  ;;  %v809_v27 = vsel %vm757_vm1, %v804_v17, %v808_v18  ;;  %v1257_v37 = vsel %vm1244_vm0, %v1255_v29, %v1256_v30  ;;  %v816_v50 = vrot.slane %v814_v36, 1  ;;  %v2647_v59 = vshrl.u32 %v13248_v14, 16  ;;  %v11281_v11 = vld [vmem:[%s13097_s9 + $0x64] sm:$0xf]  ;;  %v13318_v12 = vld [vmem:[%s13097_s9 + $0x68] sm:$0xf] }
  0x38   : > { %v2651_v1 = vshll.u32 %v13289_v51, 16  ;;  %v2141_v7 = vsel %vm1244_vm0, %v2138_v23, %v2140_v54  ;;  %v290_v21 = vld [vmem:[%s13097_s9 + $0x3c] sm:$0xe]  ;;  %4694 = vst.msk [vmem:[#allocation2 + $0x17c] sm:$0xf] %vm4687_vm7, %v19696_v0 }
  0x39   : > { %v2649_v23 = vor.u32 %v2647_v59, %v2645_v35  ;;  %v12478_v29 = vld [vmem:[%s19692_s1 + $0x58] sm:$0xff]   ;;  %v12485_v59 = vld [vmem:[%s19692_s1 + $0x68] sm:$0xff]   ;;  %4695 = vst.msk [vmem:[#allocation2 + $0x180] sm:$0xf] %vm4687_vm7, %v19696_v0  ;;  %4696 = vst.msk [vmem:[#allocation2 + $0x184] sm:$0xf] %vm4687_vm7, %v19696_v0 }
  0x3a   : > { %4697 = vst.msk [vmem:[#allocation2 + $0x188] sm:$0xf] %vm4687_vm7, %v19696_v0  ;;  %4698 = vst.msk [vmem:[#allocation2 + $0x18c] sm:$0xf] %vm4687_vm7, %v19696_v0  ;;  %vm5520_vm15 = vsmask.f32 1280 }
  0x3b   : > { %1339 = vrot.lane.b32.xlu1 %v1252_v33, %s13004_s12  ;;  %2473 = vrot.lane.b32.xlu0 %v11523_v13, %s13004_s12  ;;  %v11525_v13 = vcombine.low %v11277_v60, %v13235_v61  ;;  %v13301_v60 = vld [vmem:[%s13097_s9 + $0x44] sm:$0xff]   ;;  %vm15455_vm6 = vmand %vm5519_vm14, %vm5520_vm15 }
  0x3c   : > { %v826_v17 = vshll.u32 %v13301_v60, 16 }
  0x3d   : > { %v2638_v24 = vshll.u32 %v11525_v13, 16  ;;  %v2636_v32 = vshrl.u32 %v11525_v13, 16 }
  0x3f   : > { %1591 = vrot.lane.b32.xlu1 %v13207_v41, %s13006_s22  ;;  %2959 = vrot.lane.b32.xlu0 %v2626_v48, %s13006_s22  ;;  %v2640_v33 = vrot.slane %v2638_v24, 1  ;;  %v12471_v48 = vld [vmem:[%s19692_s1 + $0x40] sm:$0xff]   ;;  %v2653_v24 = vrot.slane %v2651_v1, 1  ;;  %v12491_v1 = vld [vmem:[%s19692_s1 + $0x88] sm:$0xff]  }
  0x40   : > { %3983 = vmatpush1.bf16.msra.mxu0 %v12471_v48 }
  0x41   : > { %v2641_v42 = vor.u32 %v2640_v33, %v2636_v32  ;;  %3984 = vmatprep.subr.bf16.mxu0 %v19696_v0  ;;  %v11434_v32 = vcombine.low %v290_v21, %v13278_v44  ;;  %v13342_v33 = vld [vmem:[%s13097_s9 + $0x6c] sm:$0xff]   ;;  %v2654_v36 = vsel %vm757_vm1, %v2649_v23, %v2653_v24  ;;  %v13404_v21 = vld [vmem:[%s13097_s9 + $0x74] ss:$0 sps:$4 sm:$0x11]   ;;  %v11359_v23 = vld [vmem:[%s13097_s9 + $0x28] sm:$0xe] }
  0x42   : > { %v2663_v48 = vshll.u32 %v13342_v33, 16  ;;  %v3082_v24 = vrot.slane %v13103_v4, 1  ;;  %v12494_v4 = vld [vmem:[%s19692_s1 + $0x78] sm:$0xff]  }
  0x43   : > { %1124 = vrot.lane.b32.xlu1 %v797_v53, %s13005_s20  ;;  %2223 = vrot.lane.b32.xlu0 %v2136_v58, %s13005_s20  ;;  %v2646_v53 = vsel %vm757_vm1, %v2641_v42, %v2645_v35  ;;  %v1258_v58 = vrot.slane %v12441_v26, 1  ;;  %v11506_v26 = vcombine.low %v11254_v5, %v13312_v3  ;;  %v828_v35 = vrot.slane %v826_v17, 1  ;;  %v12490_v17 = vld [vmem:[%s19692_s1 + $0x70] sm:$0xff]  }
  0x44   : > { %v1260_v42 = vrot.slane %v11434_v32, 1  ;;  %v2665_v5 = vrot.slane %v2663_v48, 1  ;;  %v11178_v48 = vld [vmem:[%s13097_s9 + $0x68] sm:$0xf] }
  0x47   : > { %1341 = vrot.lane.b32.xlu1 %v1254_v63, %s13004_s12  ;;  %2475 = vrot.lane.b32.xlu0 %v13188_v22, %s13004_s12  ;;  %v12474_v63 = vld [vmem:[%s19692_s1 + $0x48] sm:$0xff]  }
  0x48   : > { %3985 = vmatpush1.bf16.msra.mxu0 %v12474_v63  ;;  %v830_v63 = vshrl.u32 %v13301_v60, 16 }
  0x49   : > { %3986 = vmatprep.subr.bf16.mxu0 %v19696_v0 }
  0x4b   : > { %1593 = vrot.lane.b32.xlu1 %v13171_v62, %s13006_s22  ;;  %2961 = vrot.lane.b32.xlu0 %v2634_v20, %s13006_s22  ;;  %v810_v62 = vshrl.u32 %v13224_v52, 16  ;;  %v13292_v52 = vcombine.low %v209_v39, %v13278_v44  ;;  %v12480_v39 = vld [vmem:[%s19692_s1 + $0x60] sm:$0xff]   ;;  %v1261_v44 = vrot.slane %v13301_v60, 1 }
  0x4c   : > { %3987 = vmatpush1.bf16.msra.mxu0 %v12477_v16  ;;  %v13393_v16 = vld [vmem:[%s13097_s9 + $0x54] sm:$0xf] }
  0x4d   : > { %v812_v49 = vor.u32 %v810_v62, %v808_v18  ;;  %v821_v2 = vshll.u32 %v13292_v52, 16  ;;  %v1259_v18 = vsel %vm1244_vm0, %v1256_v30, %v1258_v58  ;;  %v819_v19 = vshrl.u32 %v13292_v52, 16  ;;  %3988 = vmatprep.subr.bf16.mxu0 %v19696_v0  ;;  %v11173_v58 = vld [vmem:[%s13097_s9 + $0x50] sm:$0xf] }
  0x4f   : > { %1126 = vrot.lane.b32.xlu1 %v809_v27, %s13005_s20  ;;  %2225 = vrot.lane.b32.xlu0 %v2139_v31, %s13005_s20  ;;  %v817_v15 = vsel %vm757_vm1, %v812_v49, %v816_v50  ;;  %v823_v20 = vrot.slane %v821_v2, 1  ;;  %v11527_v27 = vcombine.low %v11281_v11, %v13318_v12  ;;  %v1721_v31 = vshll.u32 %v13116_v10, 16  ;;  %v13366_v50 = vld [vmem:[%s13097_s9 + $0x4c] ss:$0 sps:$4 sm:$0x11]  }
  0x50   : > { %v2142_v10 = vrot.slane %v11506_v26, 1  ;;  %3989 = vmatpush1.bf16.msra.mxu0 %v12478_v29  ;;  %v1262_v2 = vsel %vm1244_vm0, %v1260_v42, %v1261_v44  ;;  %v213_v11 = vld [vmem:[%s13097_s9 + $0x50] sm:$0xf] }
  0x51   : > { %v824_v34 = vor.u32 %v823_v20, %v819_v19  ;;  %v13347_v62 = vrot.slane %v1721_v31, 1  ;;  %v2658_v38 = vshll.u32 %v11527_v27, 16  ;;  %3990 = vmatprep.subr.bf16.mxu0 %v19696_v0  ;;  %v2656_v54 = vshrl.u32 %v11527_v27, 16 }
  0x52   : > { %v13401_v19 = vcombine.low %v11173_v58, %v13312_v3  ;;  %v832_v20 = vor.u32 %v830_v63, %v828_v35  ;;  %v13411_v29 = vcombine.low %v213_v11, %v13393_v16  ;;  %v3084_v3 = vrot.slane %v13149_v43, 1 }
  0x53   : > { %1343 = vrot.lane.b32.xlu1 %v1257_v37, %s13004_s12  ;;  %2477 = vrot.lane.b32.xlu0 %v11525_v13, %s13004_s12  ;;  %v1718_v13 = vrot.slane %v1716_v57, 1  ;;  %v2143_v37 = vrot.slane %v13331_v25, 1  ;;  %v829_v49 = vsel %vm757_vm1, %v824_v34, %v828_v35  ;;  %v11360_v57 = vld [vmem:[%s13097_s9 + $0x3c] sm:$0xe]  ;;  %v2667_v43 = vshrl.u32 %v13342_v33, 16 }
  0x54   : > { %3991 = vmatpush1.bf16.msra.mxu0 %v12480_v39  ;;  %v3085_v34 = vsel %vm1244_vm0, %v3082_v24, %v3084_v3 }
  0x55   : > { %v1719_v30 = vor.u32 %v1718_v13, %v1714_v55  ;;  %v2660_v55 = vrot.slane %v2658_v38, 1  ;;  %3992 = vmatprep.subr.bf16.mxu0 %v19696_v0  ;;  %v841_v38 = vshll.u32 %v13411_v29, 16 }
  0x57   : > { %1595 = vrot.lane.b32.xlu1 %v13281_v45, %s13006_s22  ;;  %2963 = vrot.lane.b32.xlu0 %v2646_v53, %s13006_s22  ;;  %v13356_v40 = vsel %vm757_vm1, %v1719_v30, %v13347_v62  ;;  %v12486_v53 = vld [vmem:[%s19692_s1 + $0x80] sm:$0xff]   ;;  %v2661_v13 = vor.u32 %v2660_v55, %v2656_v54  ;;  %v3087_v54 = vrot.slane %v13188_v22, 1  ;;  %v839_v55 = vshrl.u32 %v13411_v29, 16  ;;  %v11361_v22 = vld [vmem:[%s13097_s9 + $0x50] sm:$0xe] }
  0x58   : > { %12204 = vmatprep.subr.bf16.mxu1 %v12486_v53  ;;  %3993 = vmatpush1.bf16.msra.mxu0 %v12485_v59  ;;  %v3089_v59 = vrot.slane %v13214_v46, 1 }
  0x59   : > { %12205 = vmatpush3.bf16.msra.mxu1 %v12486_v53  ;;  %3994 = vmatprep.subr.bf16.mxu0 %v19696_v0  ;;  %v2666_v31 = vsel %vm757_vm1, %v2661_v13, %v2665_v5  ;;  %v13442_v53 = vld [vmem:[%s13097_s9 + $0x7c] sm:$0xf] }
  0x5a   : > { %12206 = vmatprep.subr.bf16.mxu1 %v12491_v1 }
  0x5b   : > { %1128 = vrot.lane.b32.xlu1 %v817_v15, %s13005_s20  ;;  %2227 = vrot.lane.b32.xlu0 %v2141_v7, %s13005_s20  ;;  %v12458_v15 = vld [vmem:[%s13097_s9 + $0x60] ss:$0 sps:$4 sm:$0x11]   ;;  %v834_v7 = vshll.u32 %v13366_v50, 16 }
  0x5c   : > { %v2145_v30 = vrot.slane %v12458_v15, 1  ;;  %3995 = vmatpush1.bf16.msra.mxu0 %v12490_v17  ;;  %v13455_v15 = vld [vmem:[%s13097_s9 + $0x6c] sm:$0xff]  }
  0x5d   : > { %v836_v26 = vrot.slane %v834_v7, 1  ;;  %12207 = vmatpush3.bf16.msra.mxu1 %v12491_v1  ;;  %3996 = vmatprep.subr.bf16.mxu0 %v19696_v0  ;;  %v291_v1 = vld [vmem:[%s13097_s9 + $0x50] sm:$0xe]  ;;  %v3090_v7 = vsel %vm1244_vm0, %v3087_v54, %v3089_v59 }
  0x5e   : > { %9407 = vmatprep.subr.bf16.mxu1 %v19696_v0  ;;  %v2146_v42 = vsel %vm1244_vm0, %v2143_v37, %v2145_v30  ;;  %v11435_v13 = vcombine.low %v291_v1, %v13393_v16  ;;  %v13517_v1 = vld [vmem:[%s13097_s9 + $0x6c] sm:$0xff]  }
  0x5f   : > { %1345 = vrot.lane.b32.xlu1 %v1259_v18, %s13004_s12  ;;  %2479 = vrot.lane.b32.xlu0 %v13248_v14, %s13004_s12  ;;  %v11576_v18 = vcombine.low %v11360_v57, %v13180_v8  ;;  %v11575_v8 = vcombine.low %v11359_v23, %v13107_v6  ;;  %v1263_v6 = vrot.slane %v13366_v50, 1  ;;  %v837_v35 = vsel %vm757_vm1, %v832_v20, %v836_v26  ;;  %v11285_v50 = vld [vmem:[%s13097_s9 + $0x78] sm:$0xf]  ;;  %v12475_v26 = vld [vmem:[%s13097_s9 + $0x60] ss:$0 sps:$4 sm:$0x11]  }
  0x60   : > { %3997 = vmatpush1.bf16.msra.mxu0 %v12494_v4  ;;  %v843_v57 = vrot.slane %v841_v38, 1  ;;  %v2148_v20 = vrot.slane %v13455_v15, 1  ;;  %v1265_v3 = vrot.slane %v11435_v13, 1 }
  0x61   : > { %v3086_v32 = vrot.slane %v11576_v18, 1 }
  0x62   : > { %v844_v46 = vor.u32 %v843_v57, %v839_v55  ;;  %v11362_v57 = vld [vmem:[%s13097_s9 + $0x64] sm:$0xe] }
  0x63   : > { %1597 = vrot.lane.b32.xlu1 %v13243_v9, %s13006_s22  ;;  %2965 = vrot.lane.b32.xlu0 %v2654_v36, %s13006_s22  ;;  %v2144_v9 = vsel %vm1244_vm0, %v2142_v10, %v2143_v37  ;;  %v2671_v36 = vshll.u32 %v13404_v21, 16  ;;  %v13430_v10 = vld [vmem:[%s13097_s9 + $0x58] sm:$0xff]   ;;  %v2669_v37 = vor.u32 %v2667_v43, %v2665_v5  ;;  %v13464_v5 = vld [vmem:[%s13097_s9 + $0x80] sm:$0xff]   ;;  %v854_v43 = vshll.u32 %v12475_v26, 16 }
  0x64   : > { %v846_v58 = vshll.u32 %v13430_v10, 16  ;;  %v11578_v13 = vcombine.low %v11362_v57, %v13318_v12  ;;  %v11363_v57 = vld [vmem:[%s13097_s9 + $0x78] sm:$0xe] }
  0x65   : > { %v2673_v63 = vrot.slane %v2671_v36, 1  ;;  %v217_v36 = vld [vmem:[%s13097_s9 + $0x64] sm:$0xf] }
  0x66   : > { %v848_v11 = vrot.slane %v846_v58, 1  ;;  %v2687_v58 = vshrl.u32 %v13464_v5, 16 }
  0x67   : > { %1130 = vrot.lane.b32.xlu1 %v829_v49, %s13005_s20  ;;  %2229 = vrot.lane.b32.xlu0 %v2144_v9, %s13005_s20  ;;  %v11255_v49 = vld [vmem:[%s13097_s9 + $0x64] sm:$0xe]  ;;  %v1264_v9 = vsel %vm1244_vm0, %v1261_v44, %v1263_v6  ;;  %v11529_v44 = vcombine.low %v11285_v50, %v13442_v53  ;;  %v2674_v17 = vsel %vm757_vm1, %v2669_v37, %v2673_v63  ;;  %v850_v6 = vshrl.u32 %v13430_v10, 16  ;;  %v13497_v50 = vld [vmem:[%s13097_s9 + $0x88] ss:$0 sps:$4 sm:$0x11]  }
  0x68   : > { %v11507_v60 = vcombine.low %v11255_v49, %v11178_v48  ;;  %v849_v16 = vsel %vm757_vm1, %v844_v46, %v848_v11  ;;  %v856_v37 = vrot.slane %v854_v43, 1  ;;  %v2691_v59 = vshll.u32 %v13497_v50, 16  ;;  %v11289_v46 = vld [vmem:[%s13097_s9 + $0x8c] sm:$0xf] }
  0x69   : > { %v2678_v23 = vshll.u32 %v11529_v44, 16  ;;  %v2676_v30 = vshrl.u32 %v11529_v44, 16 }
  0x6a   : > { %v2147_v18 = vrot.slane %v11507_v60, 1  ;;  %v1268_v60 = vrot.slane %v12475_v26, 1  ;;  %v866_v26 = vshll.u32 %v13517_v1, 16 }
  0x6b   : > { %1347 = vrot.lane.b32.xlu1 %v1262_v2, %s13004_s12  ;;  %2481 = vrot.lane.b32.xlu0 %v11527_v27, %s13004_s12  ;;  %v3081_v27 = vrot.slane %v11575_v8, 1  ;;  %v3088_v2 = vsel %vm1244_vm0, %v3086_v32, %v3087_v54  ;;  %v2683_v8 = vshll.u32 %v13464_v5, 16  ;;  %v2680_v4 = vrot.slane %v2678_v23, 1  ;;  %v11177_v32 = vld [vmem:[%s13097_s9 + $0x64] sm:$0xf] }
  0x6c   : > { %v13494_v49 = vcombine.low %v11177_v32, %v11178_v48 }
  0x6d   : > { %v3083_v39 = vsel %vm1244_vm0, %v3081_v27, %v3082_v24  ;;  %v11577_v24 = vcombine.low %v11361_v22, %v13235_v61  ;;  %v2149_v61 = vsel %vm1244_vm0, %v2147_v18, %v2148_v20  ;;  %v2681_v38 = vor.u32 %v2680_v4, %v2676_v30  ;;  %v13522_v22 = vld [vmem:[%s13097_s9 + $0x7c] sm:$0xf] }
  0x6e   : > { %12208 = vmatprep.mubr.msk.bf16.mxu1 %vm3171_vm2, %v3083_v39  ;;  %v13490_v39 = vld [vmem:[%s13097_s9 + $0x68] sm:$0xf]  ;;  %v2693_v18 = vrot.slane %v2691_v59, 1 }
  0x6f   : > { %1599 = vrot.lane.b32.xlu1 %v13401_v19, %s13006_s22  ;;  %2967 = vrot.lane.b32.xlu0 %v2666_v31, %s13006_s22  ;;  %v1266_v31 = vrot.slane %v13430_v10, 1  ;;  %v3091_v27 = vrot.slane %v11577_v24, 1  ;;  %v3094_v10 = vrot.slane %v13289_v51, 1  ;;  %v13502_v54 = vcombine.low %v217_v36, %v13490_v39 }
  0x70   : > { %12209 = vmatmul.mubr.msk.bf16.vlgmr.msra.gmra.mrb[0].mxu1 %vm3171_vm2, %v3085_v34  ;;  %v12476_v34 = vld [vmem:[%s13097_s9 + $0x74] ss:$0 sps:$4 sm:$0x11]   ;;  %v3097_v36 = vrot.slane %v13342_v33, 1 }
  0x71   : > { %12212 = vmatprep.mubr.msk.bf16.mxu1 %vm3171_vm2, %v3088_v2  ;;  %v2150_v48 = vrot.slane %v12476_v34, 1  ;;  %v1269_v23 = vsel %vm1244_vm0, %v1266_v31, %v1268_v60  ;;  %v859_v24 = vshrl.u32 %v13502_v54, 16  ;;  %v12822_v60 = vld [vmem:[%s13097_s9 + $0x1c] sm:$0xff]  }
  0x73   : > { %1132 = vrot.lane.b32.xlu1 %v837_v35, %s13005_s20  ;;  %2231 = vrot.lane.b32.xlu0 %v2146_v42, %s13005_s20  ;;  %v1267_v35 = vsel %vm1244_vm0, %v1265_v3, %v1266_v31  ;;  %v3092_v42 = vrot.slane %v13248_v14, 1  ;;  %v2151_v2 = vsel %vm1244_vm0, %v2148_v20, %v2150_v48  ;;  %v292_v3 = vld [vmem:[%s13097_s9 + $0x64] sm:$0xe] }
  0x75   : > { %v3093_v55 = vsel %vm1244_vm0, %v3091_v27, %v3092_v42  ;;  %v3095_v51 = vsel %vm1244_vm0, %v3092_v42, %v3094_v10  ;;  %v868_v27 = vrot.slane %v866_v26, 1  ;;  %v13559_v42 = vld [vmem:[%s13097_s9 + $0x74] ss:$0 sps:$4 sm:$0x11]   ;;  %v221_v26 = vld [vmem:[%s13097_s9 + $0x78] sm:$0xf] }
  0x77   : > { %1349 = vrot.lane.b32.xlu1 %v1264_v9, %s13004_s12  ;;  %2483 = vrot.lane.b32.xlu0 %v13342_v33, %s13004_s12  ;;  %v852_v9 = vor.u32 %v850_v6, %v848_v11  ;;  %v13527_v11 = vld [vmem:[%s13097_s9 + $0x90] sm:$0xf]  ;;  %v1271_v33 = vrot.slane %v13517_v1, 1 }
  0x78   : > { %12213 = vmatmul.mubr.msk.bf16.gmra.mrb[4].mxu1 %vm3171_vm2, %v3090_v7  ;;  %v11256_v7 = vld [vmem:[%s13097_s9 + $0x78] sm:$0xe]  ;;  %v11531_v12 = vcombine.low %v11289_v46, %v13527_v11  ;;  %v874_v46 = vshll.u32 %v13559_v42, 16 }
  0x79   : > { %12216 = vmatprep.mubr.msk.bf16.mxu1 %vm3171_vm2, %v3093_v55  ;;  %v857_v63 = vsel %vm757_vm1, %v852_v9, %v856_v37 }
  0x7a   : > { %v2698_v34 = vshll.u32 %v11531_v12, 16 }
  0x7b   : > { %1601 = vrot.lane.b32.xlu1 %v13331_v25, %s13006_s22  ;;  %2969 = vrot.lane.b32.xlu0 %v2674_v17, %s13006_s22  ;;  %v2685_v25 = vrot.slane %v2683_v8, 1  ;;  %v13536_v8 = vld [vmem:[%s13097_s9 + $0x80] sm:$0xff]  }
  0x7c   : > { %v2153_v32 = vrot.slane %v13536_v8, 1  ;;  %v2700_v48 = vrot.slane %v2698_v34, 1 }
  0x7d   : > { %v2686_v14 = vsel %vm757_vm1, %v2681_v38, %v2685_v25  ;;  %v2689_v17 = vor.u32 %v2687_v58, %v2685_v25  ;;  %v11436_v25 = vcombine.low %v292_v3, %v13490_v39  ;;  %v3099_v38 = vrot.slane %v13404_v21, 1  ;;  %v12821_v58 = vld [vmem:[%s13097_s9 + $0x24] ss:$0 sps:$4 sm:$0x11]  }
  0x7e   : > { %v1729_v59 = vshll.u32 %v12821_v58, 16  ;;  %v11293_v58 = vld [vmem:[%s13097_s9 + $0xa0] sm:$0xf] }
  0x7f   : > { %1134 = vrot.lane.b32.xlu1 %v849_v16, %s13005_s20  ;;  %2233 = vrot.lane.b32.xlu0 %v2149_v61, %s13005_s20  ;;  %v11508_v16 = vcombine.low %v11256_v7, %v13522_v22  ;;  %v3096_v61 = vrot.slane %v11578_v13, 1  ;;  %v2694_v31 = vsel %vm757_vm1, %v2689_v17, %v2693_v18  ;;  %v3100_v39 = vsel %vm1244_vm0, %v3097_v36, %v3099_v38  ;;  %v12497_v13 = vld [vmem:[%s13097_s9 + $0x88] ss:$0 sps:$4 sm:$0x11]  }
  0x80   : > { %12217 = vmatmul.mubr.msk.bf16.gmra.mrb[8].mxu1 %vm3171_vm2, %v3095_v51  ;;  %v1270_v37 = vrot.slane %v11436_v25, 1  ;;  %v870_v7 = vshrl.u32 %v13517_v1, 16  ;;  %v11579_v17 = vcombine.low %v11363_v57, %v13442_v53  ;;  %v1731_v3 = vrot.slane %v1729_v59, 1  ;;  %v13598_v53 = vld [vmem:[%s13097_s9 + $0x9c] ss:$0 sps:$4 sm:$0x11]  }
  0x81   : > { %v2152_v43 = vrot.slane %v11508_v16, 1  ;;  %v3098_v10 = vsel %vm1244_vm0, %v3096_v61, %v3097_v36  ;;  %v13589_v16 = vld [vmem:[%s13097_s9 + $0x7c] sm:$0xf]  ;;  %v876_v25 = vrot.slane %v874_v46, 1  ;;  %v11257_v57 = vld [vmem:[%s13097_s9 + $0x8c] sm:$0xe] }
  0x82   : > { %12220 = vmatprep.mubr.msk.bf16.mxu1 %vm3171_vm2, %v3098_v10  ;;  %v3101_v34 = vrot.slane %v11579_v17, 1  ;;  %v2155_v10 = vrot.slane %v12497_v13, 1  ;;  %v11364_v46 = vld [vmem:[%s13097_s9 + $0x8c] sm:$0xe] }
  0x83   : > { %1351 = vrot.lane.b32.xlu1 %v1267_v35, %s13004_s12  ;;  %2485 = vrot.lane.b32.xlu0 %v11529_v44, %s13004_s12  ;;  %v861_v44 = vshll.u32 %v13502_v54, 16  ;;  %v13552_v35 = vld [vmem:[%s13097_s9 + $0x94] sm:$0xff]   ;;  %v2154_v55 = vsel %vm1244_vm0, %v2152_v43, %v2153_v32  ;;  %v13601_v43 = vcombine.low %v221_v26, %v13589_v16 }
  0x84   : > { %v2703_v51 = vshll.u32 %v13552_v35, 16 }
  0x85   : > { %v863_v20 = vrot.slane %v861_v44, 1  ;;  %v1725_v44 = vshrl.u32 %v12822_v60, 16 }
  0x87   : > { %1603 = vrot.lane.b32.xlu1 %v13494_v49, %s13006_s22  ;;  %2971 = vrot.lane.b32.xlu0 %v2686_v14, %s13006_s22  ;;  %v864_v4 = vor.u32 %v863_v20, %v859_v24  ;;  %v2696_v14 = vshrl.u32 %v11531_v12, 16  ;;  %v2705_v20 = vrot.slane %v2703_v51, 1 }
  0x88   : > { %12221 = vmatmul.mubr.msk.bf16.gmra.mrb[12].mxu1 %vm3171_vm2, %v3100_v39 }
  0x89   : > { %v869_v9 = vsel %vm757_vm1, %v864_v4, %v868_v27  ;;  %v2701_v24 = vor.u32 %v2700_v48, %v2696_v14  ;;  %v872_v4 = vor.u32 %v870_v7, %v868_v27  ;;  %v2707_v27 = vshrl.u32 %v13552_v35, 16  ;;  %v13626_v48 = vld [vmem:[%s13097_s9 + $0x90] sm:$0xf] }
  0x8a   : > { %v3104_v14 = vrot.slane %v13497_v50, 1  ;;  %v1734_v7 = vshrl.u32 %v13207_v41, 16 }
  0x8b   : > { %1136 = vrot.lane.b32.xlu1 %v857_v63, %s13005_s20  ;;  %2235 = vrot.lane.b32.xlu0 %v2151_v2, %s13005_s20  ;;  %v11181_v63 = vld [vmem:[%s13097_s9 + $0x78] sm:$0xf]  ;;  %v1272_v2 = vsel %vm1244_vm0, %v1270_v37, %v1271_v33  ;;  %v2706_v38 = vsel %vm757_vm1, %v2701_v24, %v2705_v20  ;;  %v13616_v37 = vld [vmem:[%s13097_s9 + $0x80] sm:$0xff]   ;;  %v2709_v26 = vor.u32 %v2707_v27, %v2705_v20 }
  0x8c   : > { %v13593_v61 = vcombine.low %v11181_v63, %v13522_v22  ;;  %v1736_v22 = vshll.u32 %v13207_v41, 16  ;;  %v886_v17 = vshll.u32 %v13616_v37, 16 }
  0x8e   : > { %v1738_v1 = vrot.slane %v1736_v22, 1  ;;  %v13677_v22 = vrot.slane %v886_v17, 1 }
  0x8f   : > { %1353 = vrot.lane.b32.xlu1 %v1269_v23, %s13004_s12  ;;  %v13542_v30 = vpop.permute.xlu0 %2471  ;;  %2487 = vrot.lane.b32.xlu0 %v13464_v5, %s13004_s12 }
  0x91   : > { %v13549_v6 = vpop.permute.xlu1 %2469 }
  0x93   : > { %1605 = vrot.lane.b32.xlu1 %v13455_v15, %s13006_s22  ;;  %2973 = vrot.lane.b32.xlu0 %v2694_v31, %s13006_s22  ;;  %v1727_v31 = vor.u32 %v1725_v44, %v13347_v62 }
  0x95   : > { %v2218_v21 = vpop.permute.xlu0 %2217  ;;  %v13567_v15 = vpop.permute.xlu1 %1587 }
  0x96   : > { %v3428_v39 = vsel %vm3171_vm2, %v13356_v40, %v2218_v21  ;;  %v877_v40 = vsel %vm757_vm1, %v872_v4, %v876_v25  ;;  %v2711_v21 = vshll.u32 %v13598_v53, 16  ;;  %v11509_v4 = vcombine.low %v11257_v57, %v13626_v48  ;;  %v293_v25 = vld [vmem:[%s13097_s9 + $0x78] sm:$0xe]  ;;  %v13692_v57 = vld [vmem:[%s13097_s9 + $0x88] ss:$0 sps:$4 sm:$0x11]  }
  0x97   : > { %1138 = vrot.lane.b32.xlu1 %v869_v9, %s13005_s20  ;;  %2237 = vrot.lane.b32.xlu0 %v2154_v55, %s13005_s20  ;;  %v3102_v55 = vrot.slane %v13464_v5, 1  ;;  %v2156_v5 = vsel %vm1244_vm0, %v2153_v32, %v2155_v10  ;;  %v3535_v44 = vsel %vm3244_vm3, %v3428_v39, %v13549_v6  ;;  %v13668_v10 = vld [vmem:[%s13097_s9 + $0x30] sm:$0xff]  }
  0x98   : > { %v1741_v20 = vshll.u32 %v13668_v10, 16  ;;  %v1745_v17 = vshrl.u32 %v13668_v10, 16  ;;  %v12509_v10 = vld [vmem:[%s13097_s9 + $0x9c] ss:$0 sps:$4 sm:$0x11]  }
  0x99   : > { %v2220_v18 = vpop.permute.xlu0 %2219  ;;  %v1336_v23 = vpop.permute.xlu1 %1335  ;;  %v3103_v59 = vsel %vm1244_vm0, %v3101_v34, %v3102_v55  ;;  %v3105_v63 = vsel %vm1244_vm0, %v3102_v55, %v3104_v14  ;;  %v11580_v34 = vcombine.low %v11364_v46, %v13527_v11  ;;  %v2157_v55 = vrot.slane %v11509_v4, 1 }
  0x9a   : > { %12224 = vmatprep.mubr.msk.bf16.mxu1 %vm3171_vm2, %v3103_v59  ;;  %v3109_v4 = vrot.slane %v13598_v53, 1 }
  0x9b   : > { %1355 = vrot.lane.b32.xlu1 %v1272_v2, %s13004_s12  ;;  %2489 = vrot.lane.b32.xlu0 %v11531_v12, %s13004_s12  ;;  %v1273_v12 = vrot.slane %v13559_v42, 1  ;;  %v1732_v42 = vsel %vm757_vm1, %v1727_v31, %v1731_v3  ;;  %v13639_v2 = vld [vmem:[%s13097_s9 + $0xa4] sm:$0xf]  ;;  %v2713_v3 = vrot.slane %v2711_v21, 1  ;;  %v13657_v31 = vld [vmem:[%s13097_s9 + $0x94] sm:$0xff]   ;;  %v3106_v21 = vrot.slane %v11580_v34, 1 }
  0x9c   : > { %v3431_v32 = vsel %vm3171_vm2, %v1732_v42, %v2220_v18  ;;  %12225 = vmatmul.mubr.msk.bf16.gmra.mrb[16].mxu1 %vm3171_vm2, %v3105_v63  ;;  %v879_v18 = vshrl.u32 %v13601_v43, 16  ;;  %v2158_v14 = vrot.slane %v13657_v31, 1  ;;  %v11365_v34 = vld [vmem:[%s13097_s9 + $0xa0] sm:$0xe] }
  0x9d   : > { %v13603_v36 = vpop.permute.xlu1 %1337  ;;  %v1119_v62 = vpop.permute.xlu0 %1118  ;;  %v1274_v41 = vsel %vm1244_vm0, %v1271_v33, %v1273_v12  ;;  %v12824_v12 = vld [vmem:[%s13097_s9 + $0x8] sm:$0xff]  }
  0x9e   : > { %v3173_v9 = vsel %vm3171_vm2, %v13137_v28, %v1119_v62  ;;  %v881_v28 = vshll.u32 %v13601_v43, 16 }
  0x9f   : > { %1607 = vrot.lane.b32.xlu1 %v13593_v61, %s13006_s22  ;;  %2975 = vrot.lane.b32.xlu0 %v2706_v38, %s13006_s22  ;;  %v3246_v50 = vsel %vm3244_vm3, %v3173_v9, %v1336_v23  ;;  %v3537_v38 = vsel %vm3244_vm3, %v3431_v32, %v13542_v30  ;;  %v11437_v30 = vcombine.low %v293_v25, %v13589_v16  ;;  %v3107_v32 = vrot.slane %v13552_v35, 1 }
  0xa0   : > { %v3319_v6 = vsel %vm3317_vm4, %v3246_v50, %v13567_v15  ;;  %v883_v23 = vrot.slane %v881_v28, 1  ;;  %v13662_v15 = vcombine.low %v11293_v58, %v13639_v2  ;;  %v2714_v9 = vsel %vm757_vm1, %v2709_v26, %v2713_v3  ;;  %v225_v26 = vld [vmem:[%s13097_s9 + $0x8c] sm:$0xf]  ;;  %v13719_v3 = vld [vmem:[%s13097_s9 + $0x90] sm:$0xf] }
  0xa1   : > { %v1121_v51 = vpop.permute.xlu1 %1120  ;;  %v2956_v60 = vpop.permute.xlu0 %2955  ;;  %v1739_v28 = vor.u32 %v1738_v1, %v1734_v7  ;;  %v1276_v50 = vrot.slane %v13616_v37, 1  ;;  %v1275_v63 = vrot.slane %v11437_v30, 1  ;;  %v3110_v30 = vsel %vm1244_vm0, %v3107_v32, %v3109_v4  ;;  %v12826_v4 = vld [vmem:[%s13097_s9 + $0x1c] sm:$0xff]  }
  0xa2   : > { %v3607_v13 = vsel %vm3317_vm4, %v3535_v44, %v2956_v60  ;;  %v3175_v27 = vsel %vm3171_vm2, %v12824_v12, %v1121_v51  ;;  %v884_v11 = vor.u32 %v883_v23, %v879_v18  ;;  %v2718_v42 = vshll.u32 %v13662_v15, 16 }
  0xa3   : > { %1140 = vrot.lane.b32.xlu1 %v877_v40, %s13005_s20  ;;  %2239 = vrot.lane.b32.xlu0 %v2156_v5, %s13005_s20  ;;  %v13684_v40 = vld [vmem:[%s13097_s9 + $0xa8] sm:$0xff]   ;;  %v1743_v51 = vrot.slane %v1741_v20, 1  ;;  %v3248_v16 = vsel %vm3244_vm3, %v3175_v27, %v13603_v36  ;;  %v2716_v60 = vshrl.u32 %v13662_v15, 16  ;;  %v2159_v36 = vsel %vm1244_vm0, %v2157_v55, %v2158_v14  ;;  %v12825_v27 = vld [vmem:[%s13097_s9 + $0x38] ss:$0 sps:$4 sm:$0x11]  }
  0xa4   : > { %3998 = vmatprep.mubr.bf16.mxu0 %v3607_v13  ;;  %v889_v59 = vsel %vm757_vm1, %v884_v11, %v13677_v22  ;;  %v2720_v44 = vrot.slane %v2718_v42, 1  ;;  %v2723_v7 = vshll.u32 %v13684_v40, 16  ;;  %v3108_v18 = vsel %vm1244_vm0, %v3106_v21, %v3107_v32 }
  0xa5   : > { %3999 = vmatmul.mubr.bf16.vlgmr.msra.gmra.mrb[0].mxu0 %v3319_v6  ;;  %v1590_v24 = vpop.permute.xlu1 %1589  ;;  %v2958_v33 = vpop.permute.xlu0 %2957  ;;  %v1744_v46 = vsel %vm757_vm1, %v1739_v28, %v1743_v51  ;;  %v11185_v6 = vld [vmem:[%s13097_s9 + $0x8c] sm:$0xf]  ;;  %12228 = vmatprep.mubr.msk.bf16.mxu1 %vm3171_vm2, %v3108_v18  ;;  %v1749_v11 = vshll.u32 %v12825_v27, 16  ;;  %v13740_v55 = vcombine.low %v225_v26, %v13719_v3  ;;  %v1756_v28 = vshll.u32 %v13281_v45, 16  ;;  %v11297_v18 = vld [vmem:[%s13097_s9 + $0xb4] sm:$0xf] }
  0xa6   : > { %v3610_v62 = vsel %vm3317_vm4, %v3537_v38, %v2958_v33  ;;  %v3322_v58 = vsel %vm3317_vm4, %v3248_v16, %v1590_v24  ;;  %v894_v24 = vshll.u32 %v13692_v57, 16  ;;  %v2721_v33 = vor.u32 %v2720_v44, %v2716_v60  ;;  %12229 = vmatmul.mubr.msk.bf16.gmra.mrb[20].mxu1 %vm3171_vm2, %v3110_v30  ;;  %v13796_v30 = vld [vmem:[%s13097_s9 + $0x44] sm:$0xff]  }
  0xa7   : > { %1357 = vrot.lane.b32.xlu1 %v1274_v41, %s13004_s12  ;;  %2491 = vrot.lane.b32.xlu0 %v13552_v35, %s13004_s12  ;;  %v890_v41 = vshrl.u32 %v13616_v37, 16  ;;  %v1277_v35 = vsel %vm1244_vm0, %v1275_v63, %v1276_v50  ;;  %v2725_v38 = vrot.slane %v2723_v7, 1  ;;  %v1747_v63 = vor.u32 %v1745_v17, %v1743_v51  ;;  %v11258_v17 = vld [vmem:[%s13097_s9 + $0xa0] sm:$0xe] }
  0xa8   : > { %4006 = vmatprep.mubr.bf16.mxu0 %v3610_v62  ;;  %v896_v21 = vrot.slane %v894_v24, 1  ;;  %v901_v44 = vshll.u32 %v13740_v55, 16  ;;  %v1758_v7 = vrot.slane %v1756_v28, 1 }
  0xa9   : > { %v1123_v39 = vpop.permute.xlu1 %1122  ;;  %v2222_v5 = vpop.permute.xlu0 %2221  ;;  %v892_v42 = vor.u32 %v890_v41, %v13677_v22  ;;  %v2726_v16 = vsel %vm757_vm1, %v2721_v33, %v2725_v38  ;;  %v1278_v22 = vrot.slane %v13692_v57, 1  ;;  %v294_v33 = vld [vmem:[%s13097_s9 + $0x8c] sm:$0xe] }
  0xaa   : > { %v3177_v23 = vsel %vm3171_vm2, %v13161_v56, %v1123_v39  ;;  %v3434_v25 = vsel %vm3171_vm2, %v1744_v46, %v2222_v5  ;;  %v13734_v39 = vcombine.low %v11185_v6, %v13626_v48  ;;  %v11581_v48 = vcombine.low %v11365_v34, %v13639_v2 }
  0xab   : > { %1609 = vrot.lane.b32.xlu1 %v13536_v8, %s13006_s22  ;;  %2977 = vrot.lane.b32.xlu0 %v2714_v9, %s13006_s22  ;;  %v13737_v9 = vld [vmem:[%s13097_s9 + $0xb0] ss:$0 sps:$4 sm:$0x11]   ;;  %v2727_v2 = vshrl.u32 %v13684_v40, 16  ;;  %v897_v51 = vsel %vm757_vm1, %v892_v42, %v896_v21  ;;  %v11438_v28 = vcombine.low %v294_v33, %v13719_v3 }
  0xac   : > { %v3111_v32 = vrot.slane %v11581_v48, 1  ;;  %v3114_v42 = vrot.slane %v13737_v9, 1 }
  0xad   : > { %4007 = vmatmul.mubr.bf16.gmra.mrb[4].mxu0 %v3322_v58  ;;  %v1340_v8 = vpop.permute.xlu1 %1339  ;;  %v2474_v13 = vpop.permute.xlu0 %2473  ;;  %v2160_v58 = vrot.slane %v12509_v10, 1  ;;  %v2729_v24 = vor.u32 %v2727_v2, %v2725_v38  ;;  %v13787_v10 = vld [vmem:[%s13097_s9 + $0xa8] sm:$0xff]  }
  0xae   : > { %v3250_v56 = vsel %vm3244_vm3, %v3177_v23, %v1340_v8  ;;  %v3539_v20 = vsel %vm3244_vm3, %v3434_v25, %v2474_v13  ;;  %v2731_v8 = vshll.u32 %v13737_v9, 16  ;;  %v13765_v13 = vld [vmem:[%s13097_s9 + $0xa4] sm:$0xf]  ;;  %v13771_v23 = vld [vmem:[%s13097_s9 + $0xb8] sm:$0xf]  ;;  %v2163_v3 = vrot.slane %v13787_v10, 1 }
  0xaf   : > { %1142 = vrot.lane.b32.xlu1 %v889_v59, %s13005_s20  ;;  %2241 = vrot.lane.b32.xlu0 %v2159_v36, %s13005_s20  ;;  %v1754_v59 = vshrl.u32 %v13281_v45, 16  ;;  %v13756_v36 = vld [vmem:[%s13097_s9 + $0x94] sm:$0xff]   ;;  %v2161_v57 = vsel %vm1244_vm0, %v2158_v14, %v2160_v58  ;;  %v11510_v34 = vcombine.low %v11258_v17, %v13765_v13  ;;  %v13807_v58 = vld [vmem:[%s13097_s9 + $0xbc] sm:$0xff]  }
  0xb0   : > { %v2733_v26 = vrot.slane %v2731_v8, 1  ;;  %v906_v14 = vshll.u32 %v13756_v36, 16  ;;  %v2743_v45 = vshll.u32 %v13807_v58, 16 }
  0xb1   : > { %v1592_v1 = vpop.permute.xlu1 %1591  ;;  %v2960_v62 = vpop.permute.xlu0 %2959 }
  0xb2   : > { %v3325_v12 = vsel %vm3317_vm4, %v3250_v56, %v1592_v1  ;;  %v3613_v53 = vsel %vm3317_vm4, %v3539_v20, %v2960_v62  ;;  %v899_v56 = vshrl.u32 %v13740_v55, 16  ;;  %v903_v1 = vrot.slane %v901_v44, 1  ;;  %v11366_v44 = vld [vmem:[%s13097_s9 + $0xb4] sm:$0xe] }
  0xb3   : > { %1359 = vrot.lane.b32.xlu1 %v1277_v35, %s13004_s12  ;;  %2493 = vrot.lane.b32.xlu0 %v13662_v15, %s13004_s12  ;;  %v1751_v15 = vrot.slane %v1749_v11, 1  ;;  %v1279_v35 = vsel %vm1244_vm0, %v1276_v50, %v1278_v22  ;;  %v13790_v20 = vcombine.low %v11297_v18, %v13771_v23  ;;  %v3112_v62 = vrot.slane %v13684_v40, 1 }
  0xb4   : > { %4013 = vmatprep.mubr.bf16.mxu0 %v3613_v53  ;;  %v1761_v53 = vshll.u32 %v13796_v30, 16 }
  0xb5   : > { %4014 = vmatmul.mubr.bf16.gmra.mrb[8].mxu0 %v3325_v12  ;;  %v1125_v5 = vpop.permute.xlu1 %1124  ;;  %v2224_v60 = vpop.permute.xlu0 %2223  ;;  %v1752_v6 = vsel %vm757_vm1, %v1747_v63, %v1751_v15  ;;  %v3113_v48 = vsel %vm1244_vm0, %v3111_v32, %v3112_v62  ;;  %v3115_v63 = vsel %vm1244_vm0, %v3112_v62, %v3114_v42  ;;  %v2734_v15 = vsel %vm757_vm1, %v2729_v24, %v2733_v26  ;;  %v11189_v24 = vld [vmem:[%s13097_s9 + $0xa0] sm:$0xf] }
  0xb6   : > { %v3179_v25 = vsel %vm3171_vm2, %v12826_v4, %v1125_v5  ;;  %v3437_v37 = vsel %vm3171_vm2, %v1752_v6, %v2224_v60  ;;  %v904_v5 = vor.u32 %v903_v1, %v899_v56  ;;  %v2162_v60 = vrot.slane %v11510_v34, 1  ;;  %12232 = vmatprep.mubr.msk.bf16.mxu1 %vm3171_vm2, %v3113_v48  ;;  %v229_v26 = vld [vmem:[%s13097_s9 + $0xa0] sm:$0xf]  ;;  %v12521_v1 = vld [vmem:[%s13097_s9 + $0xb0] ss:$0 sps:$4 sm:$0x11]  }
  0xb7   : > { %1611 = vrot.lane.b32.xlu1 %v13734_v39, %s13006_s22  ;;  %2979 = vrot.lane.b32.xlu0 %v2726_v16, %s13006_s22  ;;  %v908_v16 = vrot.slane %v906_v14, 1  ;;  %v2738_v22 = vshll.u32 %v13790_v20, 16  ;;  %v1763_v2 = vrot.slane %v1761_v53, 1  ;;  %v1281_v32 = vrot.slane %v13756_v36, 1 }
  0xb8   : > { %12233 = vmatmul.mubr.msk.bf16.gmra.mrb[24].mxu1 %vm3171_vm2, %v3115_v63  ;;  %v2745_v4 = vrot.slane %v2743_v45, 1 }
  0xb9   : > { %v1342_v46 = vpop.permute.xlu1 %1341  ;;  %v2476_v41 = vpop.permute.xlu0 %2475  ;;  %v2740_v17 = vrot.slane %v2738_v22, 1 }
  0xba   : > { %v3252_v50 = vsel %vm3244_vm3, %v3179_v25, %v1342_v46  ;;  %v3541_v12 = vsel %vm3244_vm3, %v3437_v37, %v2476_v41  ;;  %v909_v46 = vsel %vm757_vm1, %v904_v5, %v908_v16  ;;  %v910_v25 = vshrl.u32 %v13756_v36, 16 }
  0xbb   : > { %1144 = vrot.lane.b32.xlu1 %v897_v51, %s13005_s20  ;;  %2243 = vrot.lane.b32.xlu0 %v2161_v57, %s13005_s20  ;;  %v1280_v51 = vrot.slane %v11438_v28, 1  ;;  %v2164_v57 = vsel %vm1244_vm0, %v2162_v60, %v2163_v3  ;;  %v13860_v28 = vcombine.low %v11189_v24, %v13765_v13  ;;  %v3117_v60 = vrot.slane %v13807_v58, 1  ;;  %v11302_v24 = vld [vmem:[%s13097_s9 + $0xcc] sm:$0xf] }
  0xbc   : > { %v912_v48 = vor.u32 %v910_v25, %v908_v16 }
  0xbd   : > { %v1594_v38 = vpop.permute.xlu1 %1593  ;;  %v2962_v27 = vpop.permute.xlu0 %2961  ;;  %v1282_v18 = vsel %vm1244_vm0, %v1280_v51, %v1281_v32 }
  0xbe   : > { %v3328_v11 = vsel %vm3317_vm4, %v3252_v50, %v1594_v38  ;;  %v3616_v21 = vsel %vm3317_vm4, %v3541_v12, %v2962_v27  ;;  %v13848_v50 = vld [vmem:[%s13097_s9 + $0xc4] ss:$0 sps:$4 sm:$0x11]   ;;  %v1765_v27 = vshrl.u32 %v13796_v30, 16 }
  0xbf   : > { %1361 = vrot.lane.b32.xlu1 %v1279_v35, %s13004_s12  ;;  %2495 = vrot.lane.b32.xlu0 %v13684_v40, %s13004_s12  ;;  %v1759_v40 = vor.u32 %v1758_v7, %v1754_v59  ;;  %v13825_v59 = vld [vmem:[%s13097_s9 + $0x9c] ss:$0 sps:$4 sm:$0x11]   ;;  %v11582_v35 = vcombine.low %v11366_v44, %v13771_v23  ;;  %v13851_v38 = vld [vmem:[%s13097_s9 + $0xa4] sm:$0xf]  ;;  %v3119_v13 = vrot.slane %v13848_v50, 1 }
  0xc0   : > { %4021 = vmatprep.mubr.bf16.mxu0 %v3616_v21  ;;  %v914_v56 = vshll.u32 %v13825_v59, 16  ;;  %v13865_v63 = vcombine.low %v229_v26, %v13851_v38  ;;  %v1767_v22 = vor.u32 %v1765_v27, %v1763_v2  ;;  %v1283_v16 = vrot.slane %v13825_v59, 1  ;;  %v13875_v44 = vld [vmem:[%s13097_s9 + $0xa8] sm:$0xff]  }
  0xc1   : > { %4022 = vmatmul.mubr.bf16.gmra.mrb[12].mxu0 %v3328_v11  ;;  %v1127_v9 = vpop.permute.xlu1 %1126  ;;  %v2226_v8 = vpop.permute.xlu0 %2225  ;;  %v1764_v6 = vsel %vm757_vm1, %v1759_v40, %v1763_v2  ;;  %v12828_v11 = vld [vmem:[%s13097_s9 + $0x4c] ss:$0 sps:$4 sm:$0x11]   ;;  %v3116_v42 = vrot.slane %v11582_v35, 1  ;;  %v2751_v45 = vshll.u32 %v13848_v50, 16  ;;  %v1774_v26 = vshrl.u32 %v13401_v19, 16 }
  0xc2   : > { %v3181_v14 = vsel %vm3171_vm2, %v13216_v47, %v1127_v9  ;;  %v3440_v34 = vsel %vm3171_vm2, %v1764_v6, %v2226_v8  ;;  %v1769_v53 = vshll.u32 %v12828_v11, 16  ;;  %v916_v5 = vrot.slane %v914_v56, 1  ;;  %19785 = vst [vmem:[#allocation6_spill] sm:$0xff] %v13865_v63  ;;  %v11301_v35 = vld [vmem:[%s13097_s9 + $0xc8] sm:$0xf]  ;;  %v13903_v56 = vld [vmem:[%s13097_s9 + $0xbc] sm:$0xff]  }
  0xc3   : > { %1613 = vrot.lane.b32.xlu1 %v13657_v31, %s13006_s22  ;;  %2981 = vrot.lane.b32.xlu0 %v2734_v15, %s13006_s22  ;;  %v2736_v31 = vshrl.u32 %v13790_v20, 16  ;;  %v2165_v15 = vrot.slane %v12521_v1, 1  ;;  %v2747_v8 = vshrl.u32 %v13807_v58, 16  ;;  %v3118_v51 = vsel %vm1244_vm0, %v3116_v42, %v3117_v60  ;;  %v12829_v1 = vld [vmem:[%s13097_s9 + $0x30] sm:$0xff]  }
  0xc4   : > { %v1771_v40 = vrot.slane %v1769_v53, 1  ;;  %v917_v2 = vsel %vm757_vm1, %v912_v48, %v916_v5  ;;  %12236 = vmatprep.mubr.msk.bf16.mxu1 %vm3171_vm2, %v3118_v51  ;;  %v1776_v6 = vshll.u32 %v13401_v19, 16  ;;  %v926_v25 = vshll.u32 %v13875_v44, 16  ;;  %v13918_v53 = vld [vmem:[%s13097_s9 + $0x58] sm:$0xff]  }
  0xc5   : > { %v1344_v7 = vpop.permute.xlu1 %1343  ;;  %v2478_v41 = vpop.permute.xlu0 %2477  ;;  %v2741_v23 = vor.u32 %v2740_v17, %v2736_v31  ;;  %v13888_v31 = vld [vmem:[%s13097_s9 + $0xb8] sm:$0xf]  ;;  %v11259_v17 = vld [vmem:[%s13097_s9 + $0xb4] sm:$0xe]  ;;  %v2753_v50 = vrot.slane %v2751_v45, 1  ;;  %v1781_v42 = vshll.u32 %v13918_v53, 16 }
  0xc6   : > { %v3254_v33 = vsel %vm3244_vm3, %v3181_v14, %v1344_v7  ;;  %v3543_v47 = vsel %vm3244_vm3, %v3440_v34, %v2478_v41  ;;  %v921_v7 = vshll.u32 %v13865_v63, 16  ;;  %v1772_v41 = vsel %vm757_vm1, %v1767_v22, %v1771_v40 }
  0xc7   : > { %1146 = vrot.lane.b32.xlu1 %v909_v46, %s13005_s20  ;;  %2245 = vrot.lane.b32.xlu0 %v2164_v57, %s13005_s20  ;;  %v2746_v9 = vsel %vm757_vm1, %v2741_v23, %v2745_v4  ;;  %v3120_v46 = vsel %vm1244_vm0, %v3117_v60, %v3119_v13  ;;  %v2166_v57 = vsel %vm1244_vm0, %v2163_v3, %v2165_v15  ;;  %v295_v23 = vld [vmem:[%s13097_s9 + $0xa0] sm:$0xe]  ;;  %v2168_v48 = vrot.slane %v13903_v56, 1 }
  0xc8   : > { %12237 = vmatmul.mubr.msk.bf16.gmra.mrb[28].mxu1 %vm3171_vm2, %v3120_v46  ;;  %v1284_v3 = vsel %vm1244_vm0, %v1281_v32, %v1283_v16  ;;  %v2749_v14 = vor.u32 %v2747_v8, %v2745_v4  ;;  %v923_v19 = vrot.slane %v921_v7, 1  ;;  %v11439_v5 = vcombine.low %v295_v23, %v13851_v38  ;;  %v11367_v16 = vld [vmem:[%s13097_s9 + $0xc8] sm:$0xe]  ;;  %v13937_v46 = vld [vmem:[%s13097_s9 + $0xb0] ss:$0 sps:$4 sm:$0x11]  }
  0xc9   : > { %v1596_v37 = vpop.permute.xlu1 %1595  ;;  %v2964_v62 = vpop.permute.xlu0 %2963  ;;  %v928_v15 = vrot.slane %v926_v25, 1  ;;  %v1783_v8 = vrot.slane %v1781_v42, 1  ;;  %v12532_v25 = vld [vmem:[%s13097_s9 + $0xc4] ss:$0 sps:$4 sm:$0x11]   ;;  %v1785_v42 = vshrl.u32 %v13918_v53, 16 }
  0xca   : > { %v3331_v12 = vsel %vm3317_vm4, %v3254_v33, %v1596_v37  ;;  %v3619_v21 = vsel %vm3317_vm4, %v3543_v47, %v2964_v62  ;;  %v919_v33 = vshrl.u32 %v13865_v63, 16  ;;  %v11511_v37 = vcombine.low %v11259_v17, %v13888_v31  ;;  %v233_v23 = vld [vmem:[%s13097_s9 + $0xb4] sm:$0xf] }
  0xcb   : > { %1363 = vrot.lane.b32.xlu1 %v1282_v18, %s13004_s12  ;;  %2497 = vrot.lane.b32.xlu0 %v13790_v20, %s13004_s12  ;;  %v13913_v47 = vcombine.low %v11301_v35, %v11302_v24  ;;  %v1778_v62 = vrot.slane %v1776_v6, 1  ;;  %v2754_v22 = vsel %vm757_vm1, %v2749_v14, %v2753_v50  ;;  %v930_v14 = vshrl.u32 %v13875_v44, 16 }
  0xcc   : > { %4028 = vmatprep.mubr.bf16.mxu0 %v3619_v21  ;;  %v2167_v60 = vrot.slane %v11511_v37, 1  ;;  %v934_v37 = vshll.u32 %v13937_v46, 16 }
  0xcd   : > { %4029 = vmatmul.mubr.bf16.gmra.mrb[16].mxu0 %v3331_v12  ;;  %v1129_v30 = vpop.permute.xlu1 %1128  ;;  %v2228_v20 = vpop.permute.xlu0 %2227  ;;  %v2758_v40 = vshll.u32 %v13913_v47, 16  ;;  %v1779_v38 = vor.u32 %v1778_v62, %v1774_v26  ;;  %v2756_v6 = vshrl.u32 %v13913_v47, 16 }
  0xce   : > { %v3183_v34 = vsel %vm3171_vm2, %v12829_v1, %v1129_v30  ;;  %v3443_v36 = vsel %vm3171_vm2, %v1772_v41, %v2228_v20  ;;  %v13926_v30 = vld [vmem:[%s13097_s9 + $0xd0] sm:$0xff]   ;;  %v13933_v20 = vld [vmem:[%s13097_s9 + $0xd8] ss:$0 sps:$4 sm:$0x11]   ;;  %v2169_v7 = vsel %vm1244_vm0, %v2167_v60, %v2168_v48 }
  0xcf   : > { %1615 = vrot.lane.b32.xlu1 %v13860_v28, %s13006_s22  ;;  %2983 = vrot.lane.b32.xlu0 %v2746_v9, %s13006_s22  ;;  %v924_v9 = vor.u32 %v923_v19, %v919_v33  ;;  %v3122_v41 = vrot.slane %v13926_v30, 1  ;;  %v1784_v35 = vsel %vm757_vm1, %v1779_v38, %v1783_v8  ;;  %v11193_v33 = vld [vmem:[%s13097_s9 + $0xb4] sm:$0xf]  ;;  %v2170_v38 = vrot.slane %v12532_v25, 1 }
  0xd0   : > { %v13980_v60 = vcombine.low %v11193_v33, %v13888_v31  ;;  %v14017_v25 = vld [vmem:[%s13097_s9 + $0xd0] sm:$0xff]  }
  0xd1   : > { %v1346_v59 = vpop.permute.xlu1 %1345  ;;  %v2480_v18 = vpop.permute.xlu0 %2479  ;;  %v929_v45 = vsel %vm757_vm1, %v924_v9, %v928_v15 }
  0xd2   : > { %v3256_v32 = vsel %vm3244_vm3, %v3183_v34, %v1346_v59  ;;  %v3545_v12 = vsel %vm3244_vm3, %v3443_v36, %v2480_v18  ;;  %v2763_v59 = vshll.u32 %v13926_v30, 16  ;;  %v3124_v18 = vrot.slane %v13933_v20, 1 }
  0xd3   : > { %1148 = vrot.lane.b32.xlu1 %v917_v2, %s13005_s20  ;;  %2247 = vrot.lane.b32.xlu0 %v2166_v57, %s13005_s20  ;;  %v1286_v2 = vrot.slane %v13875_v44, 1  ;;  %v11583_v57 = vcombine.low %v11367_v16, %v11302_v24 }
  0xd4   : > { %v3125_v1 = vsel %vm1244_vm0, %v3122_v41, %v3124_v18  ;;  %v2765_v19 = vrot.slane %v2763_v59, 1  ;;  %v13997_v59 = vld [vmem:[%s13097_s9 + $0xcc] sm:$0xf] }
  0xd5   : > { %v1598_v4 = vpop.permute.xlu1 %1597  ;;  %v2966_v27 = vpop.permute.xlu0 %2965 }
  0xd6   : > { %v3334_v11 = vsel %vm3317_vm4, %v3256_v32, %v1598_v4  ;;  %v3622_v21 = vsel %vm3317_vm4, %v3545_v12, %v2966_v27  ;;  %v13969_v12 = vld [vmem:[%s13097_s9 + $0xb8] sm:$0xf] }
  0xd7   : > { %1365 = vrot.lane.b32.xlu1 %v1284_v3, %s13004_s12  ;;  %2499 = vrot.lane.b32.xlu0 %v13807_v58, %s13004_s12  ;;  %v1285_v58 = vrot.slane %v11439_v5, 1  ;;  %v3121_v3 = vrot.slane %v11583_v57, 1  ;;  %v13985_v53 = vcombine.low %v233_v23, %v13969_v12  ;;  %v2771_v57 = vshll.u32 %v13933_v20, 16 }
  0xd8   : > { %4036 = vmatprep.mubr.bf16.mxu0 %v3622_v21  ;;  %v12831_v21 = vld [vmem:[%s13097_s9 + $0x60] ss:$0 sps:$4 sm:$0x11]  }
  0xd9   : > { %4037 = vmatmul.mubr.bf16.gmra.mrb[20].mxu0 %v3334_v11  ;;  %v1131_v13 = vpop.permute.xlu1 %1130  ;;  %v2230_v51 = vpop.permute.xlu0 %2229  ;;  %v1287_v24 = vsel %vm1244_vm0, %v1285_v58, %v1286_v2  ;;  %v3123_v36 = vsel %vm1244_vm0, %v3121_v3, %v3122_v41  ;;  %v1789_v5 = vshll.u32 %v12831_v21, 16  ;;  %19786 = vst [vmem:[#allocation7_spill] sm:$0xff] %v13985_v53  ;;  %v1794_v41 = vshrl.u32 %v13494_v49, 16  ;;  %v11306_v3 = vld [vmem:[%s13097_s9 + $0xe0] sm:$0xf] }
  0xda   : > { %v3185_v34 = vsel %vm3171_vm2, %v13292_v52, %v1131_v13  ;;  %v3446_v32 = vsel %vm3171_vm2, %v1784_v35, %v2230_v51  ;;  %12240 = vmatprep.mubr.msk.bf16.mxu1 %vm3171_vm2, %v3123_v36  ;;  %v932_v13 = vor.u32 %v930_v14, %v928_v15  ;;  %v1787_v51 = vor.u32 %v1785_v42, %v1783_v8  ;;  %v296_v36 = vld [vmem:[%s13097_s9 + $0xb4] sm:$0xe]  ;;  %v14037_v42 = vld [vmem:[%s13097_s9 + $0xe4] sm:$0xff]   ;;  %v14040_v21 = vld [vmem:[%s13097_s9 + $0xec] ss:$0 sps:$4 sm:$0x11]  }
  0xdb   : > { %1617 = vrot.lane.b32.xlu1 %v13787_v10, %s13006_s22  ;;  %2985 = vrot.lane.b32.xlu0 %v2754_v22, %s13006_s22  ;;  %v2760_v10 = vrot.slane %v2758_v40, 1  ;;  %v936_v22 = vrot.slane %v934_v37, 1  ;;  %v1791_v31 = vrot.slane %v1789_v5, 1  ;;  %v2767_v15 = vshrl.u32 %v13926_v30, 16 }
  0xdc   : > { %12241 = vmatmul.mubr.msk.bf16.gmra.mrb[32].mxu1 %vm3171_vm2, %v3125_v1  ;;  %v2773_v23 = vrot.slane %v2771_v57, 1 }
  0xdd   : > { %v1348_v17 = vpop.permute.xlu1 %1347  ;;  %v2482_v26 = vpop.permute.xlu0 %2481  ;;  %v2761_v62 = vor.u32 %v2760_v10, %v2756_v6  ;;  %v937_v8 = vsel %vm757_vm1, %v932_v13, %v936_v22  ;;  %v11260_v10 = vld [vmem:[%s13097_s9 + $0xc8] sm:$0xe]  ;;  %v1792_v18 = vsel %vm757_vm1, %v1787_v51, %v1791_v31  ;;  %v2769_v14 = vor.u32 %v2767_v15, %v2765_v19 }
  0xde   : > { %v3258_v4 = vsel %vm3244_vm3, %v3185_v34, %v1348_v17  ;;  %v3547_v52 = vsel %vm3244_vm3, %v3446_v32, %v2482_v26  ;;  %v941_v17 = vshll.u32 %v13985_v53, 16  ;;  %v11305_v26 = vld [vmem:[%s13097_s9 + $0xdc] sm:$0xf]  ;;  %v939_v34 = vshrl.u32 %v13985_v53, 16  ;;  %v14555_v53 = vld [vmem:[%s13097_s9 + $0x130] sm:$0xf] }
  0xdf   : > { %1150 = vrot.lane.b32.xlu1 %v929_v45, %s13005_s20  ;;  %2249 = vrot.lane.b32.xlu0 %v2169_v7, %s13005_s20  ;;  %v2766_v16 = vsel %vm757_vm1, %v2761_v62, %v2765_v19  ;;  %v1796_v45 = vshll.u32 %v13494_v49, 16  ;;  %v13994_v7 = vld [vmem:[%s13097_s9 + $0xbc] sm:$0xff]   ;;  %v12832_v49 = vld [vmem:[%s13097_s9 + $0x44] sm:$0xff]   ;;  %v11512_v44 = vcombine.low %v11260_v10, %v13997_v59  ;;  %v14027_v32 = vcombine.low %v11305_v26, %v11306_v3 }
  0xe0   : > { %v943_v33 = vrot.slane %v941_v17, 1  ;;  %v2173_v22 = vrot.slane %v14017_v25, 1  ;;  %v3127_v51 = vrot.slane %v14037_v42, 1  ;;  %v3129_v15 = vrot.slane %v14040_v21, 1 }
  0xe1   : > { %v1600_v50 = vpop.permute.xlu1 %1599  ;;  %v2968_v27 = vpop.permute.xlu0 %2967  ;;  %v2776_v26 = vshrl.u32 %v14027_v32, 16 }
  0xe2   : > { %v3337_v11 = vsel %vm3317_vm4, %v3258_v4, %v1600_v50  ;;  %v3625_v9 = vsel %vm3317_vm4, %v3547_v52, %v2968_v27  ;;  %v11368_v4 = vld [vmem:[%s13097_s9 + $0xdc] sm:$0xe]  ;;  %v14033_v27 = vld [vmem:[%s13097_s9 + $0x6c] sm:$0xff]   ;;  %v3130_v10 = vsel %vm1244_vm0, %v3127_v51, %v3129_v15 }
  0xe3   : > { %1367 = vrot.lane.b32.xlu1 %v1287_v24, %s13004_s12  ;;  %2501 = vrot.lane.b32.xlu0 %v13913_v47, %s13004_s12  ;;  %v1288_v47 = vrot.slane %v13937_v46, 1  ;;  %v2171_v46 = vsel %vm1244_vm0, %v2168_v48, %v2170_v38  ;;  %v1798_v24 = vrot.slane %v1796_v45, 1  ;;  %v946_v48 = vshll.u32 %v13994_v7, 16 }
  0xe4   : > { %4043 = vmatprep.mubr.bf16.mxu0 %v3625_v9  ;;  %v11584_v5 = vcombine.low %v11368_v4, %v11306_v3  ;;  %v2172_v45 = vrot.slane %v11512_v44, 1  ;;  %v950_v44 = vshrl.u32 %v13994_v7, 16 }
  0xe5   : > { %4044 = vmatmul.mubr.bf16.gmra.mrb[24].mxu0 %v3337_v11  ;;  %v1133_v40 = vpop.permute.xlu1 %1132  ;;  %v2232_v58 = vpop.permute.xlu0 %2231  ;;  %v1289_v20 = vsel %vm1244_vm0, %v1286_v2, %v1288_v47  ;;  %v1801_v11 = vshll.u32 %v14033_v27, 16  ;;  %v14044_v13 = vrot.slane %v946_v48, 1  ;;  %v2778_v47 = vshll.u32 %v14027_v32, 16 }
  0xe6   : > { %v3187_v1 = vsel %vm3171_vm2, %v12832_v49, %v1133_v40  ;;  %v3449_v2 = vsel %vm3171_vm2, %v1792_v18, %v2232_v58  ;;  %v944_v40 = vor.u32 %v943_v33, %v939_v34  ;;  %v3126_v38 = vrot.slane %v11584_v5, 1  ;;  %v11197_v34 = vld [vmem:[%s13097_s9 + $0xc8] sm:$0xf] }
  0xe7   : > { %1619 = vrot.lane.b32.xlu1 %v13980_v60, %s13006_s22  ;;  %2987 = vrot.lane.b32.xlu0 %v2766_v16, %s13006_s22  ;;  %v11440_v16 = vcombine.low %v296_v36, %v13969_v12  ;;  %v2774_v58 = vsel %vm757_vm1, %v2769_v14, %v2773_v23  ;;  %v1803_v57 = vrot.slane %v1801_v11, 1  ;;  %v2174_v3 = vsel %vm1244_vm0, %v2172_v45, %v2173_v22 }
  0xe8   : > { %v3128_v12 = vsel %vm1244_vm0, %v3126_v38, %v3127_v51  ;;  %v1814_v14 = vshrl.u32 %v13593_v61, 16  ;;  %v1834_v33 = vshrl.u32 %v13734_v39, 16  ;;  %v1805_v38 = vshrl.u32 %v14033_v27, 16  ;;  %v12834_v51 = vld [vmem:[%s13097_s9 + $0x74] ss:$0 sps:$4 sm:$0x11]  }
  0xe9   : > { %v1350_v6 = vpop.permute.xlu1 %1349  ;;  %v2484_v35 = vpop.permute.xlu0 %2483  ;;  %12244 = vmatprep.mubr.msk.bf16.mxu1 %vm3171_vm2, %v3128_v12  ;;  %v1290_v18 = vrot.slane %v11440_v16, 1  ;;  %v14107_v45 = vcombine.low %v11197_v34, %v13997_v59 }
  0xea   : > { %v3260_v19 = vsel %vm3244_vm3, %v3187_v1, %v1350_v6  ;;  %v3549_v50 = vsel %vm3244_vm3, %v3449_v2, %v2484_v35  ;;  %v14056_v6 = vld [vmem:[%s13097_s9 + $0xc4] ss:$0 sps:$4 sm:$0x11]   ;;  %v1291_v35 = vrot.slane %v13994_v7, 1  ;;  %12245 = vmatmul.mubr.msk.bf16.gmra.mrb[36].mxu1 %vm3171_vm2, %v3130_v10 }
  0xeb   : > { %1152 = vrot.lane.b32.xlu1 %v937_v8, %s13005_s20  ;;  %2251 = vrot.lane.b32.xlu0 %v2171_v46, %s13005_s20  ;;  %v1816_v8 = vshll.u32 %v13593_v61, 16  ;;  %v1836_v46 = vshll.u32 %v13734_v39, 16  ;;  %v14083_v2 = vld [vmem:[%s13097_s9 + $0xd8] ss:$0 sps:$4 sm:$0x11]   ;;  %v954_v4 = vshll.u32 %v14056_v6, 16 }
  0xec   : > { %v1292_v36 = vsel %vm1244_vm0, %v1290_v18, %v1291_v35  ;;  %v2175_v59 = vrot.slane %v14083_v2, 1  ;;  %v1293_v10 = vrot.slane %v14056_v6, 1  ;;  %v14127_v18 = vld [vmem:[%s13097_s9 + $0xe0] sm:$0xf]  ;;  %v2791_v6 = vshll.u32 %v14040_v21, 16 }
  0xed   : > { %v1602_v37 = vpop.permute.xlu1 %1601  ;;  %v2970_v62 = vpop.permute.xlu0 %2969  ;;  %v14075_v48 = vrot.slane %v1816_v8, 1  ;;  %v956_v15 = vrot.slane %v954_v4, 1  ;;  %v14174_v4 = vld [vmem:[%s13097_s9 + $0xe4] sm:$0xff]  }
  0xee   : > { %v3340_v52 = vsel %vm3317_vm4, %v3260_v19, %v1602_v37  ;;  %v3628_v9 = vsel %vm3317_vm4, %v3549_v50, %v2970_v62  ;;  %v237_v19 = vld [vmem:[%s13097_s9 + $0xc8] sm:$0xf]  ;;  %v14086_v37 = vrot.slane %v1836_v46, 1  ;;  %v2176_v34 = vsel %vm1244_vm0, %v2173_v22, %v2175_v59 }
  0xef   : > { %1369 = vrot.lane.b32.xlu1 %v1289_v20, %s13004_s12  ;;  %2503 = vrot.lane.b32.xlu0 %v13926_v30, %s13004_s12  ;;  %v1799_v30 = vor.u32 %v1798_v24, %v1794_v41  ;;  %v949_v41 = vsel %vm757_vm1, %v944_v40, %v14044_v13  ;;  %v2780_v24 = vrot.slane %v2778_v47, 1  ;;  %v2783_v20 = vshll.u32 %v14037_v42, 16 }
  0xf0   : > { %4051 = vmatprep.mubr.bf16.mxu0 %v3628_v9  ;;  %v14098_v9 = vld [vmem:[%s13097_s9 + $0xcc] sm:$0xf]  ;;  %v952_v47 = vor.u32 %v950_v44, %v14044_v13  ;;  %v19788_v13 = vmov 0  ;;  %v11310_v44 = vld [vmem:[%s13097_s9 + $0xf4] sm:$0xf] }
  0xf1   : > { %4052 = vmatmul.mubr.bf16.gmra.mrb[28].mxu0 %v3340_v52  ;;  %v1135_v31 = vpop.permute.xlu1 %1134  ;;  %v2234_v17 = vpop.permute.xlu0 %2233  ;;  %v1804_v49 = vsel %vm757_vm1, %v1799_v30, %v1803_v57  ;;  %v2781_v11 = vor.u32 %v2780_v24, %v2776_v26  ;;  %v2785_v5 = vrot.slane %v2783_v20, 1  ;;  %v14113_v27 = vcombine.low %v237_v19, %v14098_v9  ;;  %v11261_v20 = vld [vmem:[%s13097_s9 + $0xdc] sm:$0xe] }
  0xf2   : > { %v3189_v23 = vsel %vm3171_vm2, %v13411_v29, %v1135_v31  ;;  %v3452_v50 = vsel %vm3171_vm2, %v1804_v49, %v2234_v17  ;;  %v1809_v31 = vshll.u32 %v12834_v51, 16  ;;  %v19789_v13 = vsel %vm14118_vm8, 4294967295, %v19788_v13  ;;  %v11309_v49 = vld [vmem:[%s13097_s9 + $0xf0] sm:$0xf]  ;;  %v297_v51 = vld [vmem:[%s13097_s9 + $0xc8] sm:$0xe] }
  0xf3   : > { %1621 = vrot.lane.b32.xlu1 %v13903_v56, %s13006_s22  ;;  %2989 = vrot.lane.b32.xlu0 %v2774_v58, %s13006_s22  ;;  %19787 = vst [vmem:[#allocation8_spill] sm:$0xff] %v14113_v27  ;;  %v2786_v30 = vsel %vm757_vm1, %v2781_v11, %v2785_v5  ;;  %19790 = vst [vmem:[#allocation9_spill] sm:$0xff] %v19789_v13  ;;  %v1807_v17 = vor.u32 %v1805_v38, %v1803_v57  ;;  %v2787_v57 = vshrl.u32 %v14037_v42, 16  ;;  %v12836_v11 = vld [vmem:[%s13097_s9 + $0x58] sm:$0xff]  }
  0xf4   : > { %v1811_v12 = vrot.slane %v1809_v31, 1  ;;  %v961_v24 = vshll.u32 %v14113_v27, 16  ;;  %v1294_v19 = vsel %vm1244_vm0, %v1291_v35, %v1293_v10  ;;  %v959_v35 = vshrl.u32 %v14113_v27, 16  ;;  %v11321_v27 = vld [vmem:[%s13097_s9 + $0x12c] sm:$0xf]  ;;  %v14907_v13 = vld [vmem:[%s13097_s9 + $0x15c] sm:$0xff]  }
  0xf5   : > { %v1352_v56 = vpop.permute.xlu1 %1351  ;;  %v2486_v1 = vpop.permute.xlu0 %2485 }
  0xf6   : > { %v3262_v62 = vsel %vm3244_vm3, %v3189_v23, %v1352_v56  ;;  %v3551_v40 = vsel %vm3244_vm3, %v3452_v50, %v2486_v1  ;;  %v1856_v56 = vshll.u32 %v13860_v28, 16  ;;  %v1812_v21 = vsel %vm757_vm1, %v1807_v17, %v1811_v12  ;;  %v14170_v23 = vld [vmem:[%s13097_s9 + $0x80] sm:$0xff]  }
  0xf7   : > { %1154 = vrot.lane.b32.xlu1 %v949_v41, %s13005_s20  ;;  %2253 = vrot.lane.b32.xlu0 %v2174_v3, %s13005_s20  ;;  %v14124_v41 = vld [vmem:[%s13097_s9 + $0xd0] sm:$0xff]   ;;  %v957_v3 = vsel %vm757_vm1, %v952_v47, %v956_v15  ;;  %v2789_v50 = vor.u32 %v2787_v57, %v2785_v5 }
  0xf8   : > { %v966_v22 = vshll.u32 %v14124_v41, 16 }
  0xf9   : > { %v1604_v52 = vpop.permute.xlu1 %1603  ;;  %v2972_v29 = vpop.permute.xlu0 %2971 }
  0xfa   : > { %v3343_v16 = vsel %vm3317_vm4, %v3262_v62, %v1604_v52  ;;  %v3631_v58 = vsel %vm3317_vm4, %v3551_v40, %v2972_v29  ;;  %v2793_v62 = vrot.slane %v2791_v6, 1  ;;  %v11513_v52 = vcombine.low %v11261_v20, %v14127_v18 }
  0xfb   : > { %1371 = vrot.lane.b32.xlu1 %v1292_v36, %s13004_s12  ;;  %2505 = vrot.lane.b32.xlu0 %v14027_v32, %s13004_s12  ;;  %v4705_v32 = vld [vmem:[#allocation2 + $0x14] sm:$0x1]  ;;  %v1821_v36 = vshll.u32 %v14170_v23, 16  ;;  %v963_v40 = vrot.slane %v961_v24, 1  ;;  %v14183_v29 = vcombine.low %v11309_v49, %v11310_v44  ;;  %v14196_v17 = vrot.slane %v966_v22, 1 }
  0xfc   : > { %4058 = vmatprep.mubr.bf16.mxu0 %v3631_v58  ;;  %v4706_v26 = vsel %vm14118_vm8, 0, %v4705_v32  ;;  %v2794_v32 = vsel %vm757_vm1, %v2789_v50, %v2793_v62  ;;  %v2177_v12 = vrot.slane %v11513_v52, 1  ;;  %v11441_v6 = vcombine.low %v297_v51, %v14098_v9  ;;  %v14229_v22 = vld [vmem:[%s13097_s9 + $0xe0] sm:$0xf] }
  0xfd   : > { %4059 = vmatmul.mubr.bf16.gmra.mrb[32].mxu0 %v3343_v16  ;;  %v1137_v8 = vpop.permute.xlu1 %1136  ;;  %v2236_v46 = vpop.permute.xlu0 %2235  ;;  %4707 = vst [vmem:[#allocation2 + $0x14] sm:$0x1] %v4706_v26  ;;  %v14190_v15 = vrot.slane %v1821_v36, 1  ;;  %v11369_v26 = vld [vmem:[%s13097_s9 + $0xf0] sm:$0xe]  ;;  %v964_v57 = vor.u32 %v963_v40, %v959_v35  ;;  %v1819_v9 = vor.u32 %v14075_v48, %v1814_v14 }
  0xfe   : > { %v3191_v7 = vsel %vm3171_vm2, %v12836_v11, %v1137_v8  ;;  %v3455_v16 = vsel %vm3171_vm2, %v1812_v21, %v2236_v46  ;;  %v2178_v8 = vrot.slane %v14174_v4, 1  ;;  %v14199_v46 = vld [vmem:[%s13097_s9 + $0xf8] sm:$0xff]   ;;  %v11585_v20 = vcombine.low %v11369_v26, %v11310_v44 }
  0xff   : > { %1623 = vrot.lane.b32.xlu1 %v14107_v45, %s13006_s22  ;;  %2991 = vrot.lane.b32.xlu0 %v2786_v30, %s13006_s22  ;;  %v4768_v30 = vld [vmem:[#allocation2 + $0x1c] sm:$0x2]  ;;  %v14222_v36 = vld [vmem:[%s13097_s9 + $0xd8] ss:$0 sps:$4 sm:$0x11]   ;;  %v969_v61 = vsel %vm757_vm1, %v964_v57, %v14196_v17  ;;  %v1295_v52 = vrot.slane %v11441_v6, 1 }
 0x100   : > { %v4769_v24 = vsel %vm14201_vm11, 0, %v4768_v30  ;;  %v241_v44 = vld [vmem:[%s13097_s9 + $0xdc] sm:$0xf]  ;;  %v3131_v50 = vrot.slane %v11585_v20, 1  ;;  %v2803_v40 = vshll.u32 %v14199_v46, 16  ;;  %v974_v57 = vshll.u32 %v14222_v36, 16 }
 0x101   : > { %v1354_v1 = vpop.permute.xlu1 %1353  ;;  %v2488_v2 = vpop.permute.xlu0 %2487  ;;  %4770 = vst [vmem:[#allocation2 + $0x1c] sm:$0x2] %v4769_v24  ;;  %v14268_v6 = vld [vmem:[%s13097_s9 + $0xf4] sm:$0xf]  ;;  %v11262_v24 = vld [vmem:[%s13097_s9 + $0xf0] sm:$0xe] }
 0x102   : > { %v3264_v38 = vsel %vm3244_vm3, %v3191_v7, %v1354_v1  ;;  %v3553_v31 = vsel %vm3244_vm3, %v3455_v16, %v2488_v2  ;;  %v1296_v1 = vrot.slane %v14124_v41, 1  ;;  %v3132_v2 = vrot.slane %v14199_v46, 1 }
 0x103   : > { %1156 = vrot.lane.b32.xlu1 %v957_v3, %s13005_s20  ;;  %2255 = vrot.lane.b32.xlu0 %v2176_v34, %s13005_s20  ;;  %v14210_v3 = vld [vmem:[%s13097_s9 + $0x100] ss:$0 sps:$4 sm:$0x11]   ;;  %v12837_v34 = vld [vmem:[%s13097_s9 + $0x88] ss:$0 sps:$4 sm:$0x11]   ;;  %v2179_v7 = vsel %vm1244_vm0, %v2177_v12, %v2178_v8 }
 0x104   : > { %v1829_v21 = vshll.u32 %v12837_v34, 16  ;;  %v3134_v62 = vrot.slane %v14210_v3, 1  ;;  %v3133_v14 = vsel %vm1244_vm0, %v3131_v50, %v3132_v2  ;;  %v1297_v26 = vsel %vm1244_vm0, %v1295_v52, %v1296_v1 }
 0x105   : > { %v1606_v5 = vpop.permute.xlu1 %1605  ;;  %v2974_v58 = vpop.permute.xlu0 %2973  ;;  %12248 = vmatprep.mubr.msk.bf16.mxu1 %vm3171_vm2, %v3133_v14  ;;  %v2807_v50 = vshrl.u32 %v14199_v46, 16  ;;  %v14287_v14 = vld [vmem:[%s13097_s9 + $0xf8] sm:$0xff]  }
 0x106   : > { %v3346_v47 = vsel %vm3317_vm4, %v3264_v38, %v1606_v5  ;;  %v3634_v59 = vsel %vm3317_vm4, %v3553_v31, %v2974_v58  ;;  %v3135_v48 = vsel %vm1244_vm0, %v3132_v2, %v3134_v62  ;;  %v14245_v38 = vrot.slane %v1856_v56, 1  ;;  %v11201_v31 = vld [vmem:[%s13097_s9 + $0xdc] sm:$0xf]  ;;  %v4708_v58 = vld [vmem:[#allocation2 + $0x28] sm:$0x1] }
 0x107   : > { %1373 = vrot.lane.b32.xlu1 %v1294_v19, %s13004_s12  ;;  %2507 = vrot.lane.b32.xlu0 %v14037_v42, %s13004_s12  ;;  %v2798_v42 = vshll.u32 %v14183_v29, 16  ;;  %v1824_v5 = vsel %vm757_vm1, %v1819_v9, %v14190_v15  ;;  %v1831_v30 = vrot.slane %v1829_v21, 1  ;;  %v14255_v56 = vcombine.low %v241_v44, %v14229_v22 }
 0x108   : > { %4066 = vmatprep.mubr.bf16.mxu0 %v3634_v59  ;;  %12249 = vmatmul.mubr.msk.bf16.gmra.mrb[40].mxu1 %vm3171_vm2, %v3135_v48  ;;  %v12554_v59 = vld [vmem:[%s13097_s9 + $0xec] ss:$0 sps:$4 sm:$0x11]   ;;  %v2805_v21 = vrot.slane %v2803_v40, 1  ;;  %v2811_v62 = vshll.u32 %v14210_v3, 16  ;;  %v11514_v48 = vcombine.low %v11262_v24, %v14268_v6 }
 0x109   : > { %4067 = vmatmul.mubr.bf16.gmra.mrb[36].mxu0 %v3346_v47  ;;  %v1139_v49 = vpop.permute.xlu1 %1138  ;;  %v2238_v19 = vpop.permute.xlu0 %2237  ;;  %v2800_v35 = vrot.slane %v2798_v42, 1  ;;  %v1825_v47 = vshrl.u32 %v14170_v23, 16  ;;  %19793 = vst [vmem:[#allocation10_spill] sm:$0xff] %v14255_v56  ;;  %v970_v23 = vshrl.u32 %v14124_v41, 16  ;;  %v14274_v42 = vld [vmem:[%s13097_s9 + $0xe4] sm:$0xff]   ;;  %v981_v52 = vshll.u32 %v14255_v56, 16 }
 0x10a   : > { %v3193_v12 = vsel %vm3171_vm2, %v13502_v54, %v1139_v49  ;;  %v3458_v20 = vsel %vm3171_vm2, %v1824_v5, %v2238_v19  ;;  %v14297_v40 = vld [vmem:[%s13097_s9 + $0x10c] sm:$0xff]  }
 0x10b   : > { %1625 = vrot.lane.b32.xlu1 %v14017_v25, %s13006_s22  ;;  %2993 = vrot.lane.b32.xlu0 %v2794_v32, %s13006_s22  ;;  %v2796_v25 = vshrl.u32 %v14183_v29, 16  ;;  %v4709_v32 = vsel %vm14118_vm8, 0, %v4708_v58  ;;  %v1827_v3 = vor.u32 %v1825_v47, %v14190_v15  ;;  %v14302_v58 = vld [vmem:[%s13097_s9 + $0x94] sm:$0xff]   ;;  %v2809_v47 = vor.u32 %v2807_v50, %v2805_v21 }
 0x10c   : > { %4710 = vst [vmem:[#allocation2 + $0x28] sm:$0x1] %v4709_v32  ;;  %v2813_v32 = vrot.slane %v2811_v62, 1  ;;  %v14335_v50 = vor.u32 %v14086_v37, %v1834_v33  ;;  %v14344_v62 = vld [vmem:[%s13097_s9 + $0x100] ss:$0 sps:$4 sm:$0x11]  }
 0x10d   : > { %v1356_v11 = vpop.permute.xlu1 %1355  ;;  %v2490_v51 = vpop.permute.xlu0 %2489  ;;  %v2801_v49 = vor.u32 %v2800_v35, %v2796_v25  ;;  %v976_v25 = vrot.slane %v974_v57, 1  ;;  %v11313_v35 = vld [vmem:[%s13097_s9 + $0x104] sm:$0xf]  ;;  %v1832_v57 = vsel %vm757_vm1, %v1827_v3, %v1831_v30  ;;  %v19699_v37 = vrot.slane %v14274_v42, 1 }
 0x10e   : > { %v3266_v34 = vsel %vm3244_vm3, %v3193_v12, %v1356_v11  ;;  %v3555_v2 = vsel %vm3244_vm3, %v3458_v20, %v2490_v51  ;;  %v298_v11 = vld [vmem:[%s13097_s9 + $0xdc] sm:$0xe]  ;;  %v979_v12 = vshrl.u32 %v14255_v56, 16  ;;  %v14338_v41 = vsel %vm757_vm1, %v2809_v47, %v2813_v32 }
 0x10f   : > { %1158 = vrot.lane.b32.xlu1 %v969_v61, %s13005_s20  ;;  %2257 = vrot.lane.b32.xlu0 %v2179_v7, %s13005_s20  ;;  %v14283_v61 = vcombine.low %v11201_v31, %v14127_v18  ;;  %v972_v7 = vor.u32 %v970_v23, %v14196_v17  ;;  %v2180_v18 = vrot.slane %v12554_v59, 1  ;;  %v2806_v51 = vsel %vm757_vm1, %v2801_v49, %v2805_v21  ;;  %v14307_v59 = vld [vmem:[%s13097_s9 + $0x108] sm:$0xf] }
 0x110   : > { %v1298_v31 = vrot.slane %v14222_v36, 1  ;;  %v986_v17 = vshll.u32 %v14274_v42, 16  ;;  %v2182_v36 = vrot.slane %v11514_v48, 1  ;;  %v19698_v23 = vrot.slane %v14287_v14, 1  ;;  %v245_v48 = vld [vmem:[%s13097_s9 + $0xf0] sm:$0xf] }
 0x111   : > { %v1608_v54 = vpop.permute.xlu1 %1607  ;;  %v2976_v9 = vpop.permute.xlu0 %2975  ;;  %v977_v24 = vsel %vm757_vm1, %v972_v7, %v976_v25  ;;  %v11442_v20 = vcombine.low %v298_v11, %v14229_v22  ;;  %v2181_v21 = vsel %vm1244_vm0, %v2178_v8, %v2180_v18  ;;  %v14358_v11 = vld [vmem:[%s13097_s9 + $0xf4] sm:$0xf]  ;;  %v12840_v7 = vld [vmem:[%s13097_s9 + $0x6c] sm:$0xff]  }
 0x112   : > { %v3349_v44 = vsel %vm3317_vm4, %v3266_v34, %v1608_v54  ;;  %v3637_v19 = vsel %vm3317_vm4, %v3555_v2, %v2976_v9  ;;  %v12839_v34 = vld [vmem:[%s13097_s9 + $0x9c] ss:$0 sps:$4 sm:$0x11]   ;;  %v1299_v2 = vsel %vm1244_vm0, %v1296_v1, %v1298_v31  ;;  %v14327_v9 = vcombine.low %v11313_v35, %v14307_v59 }
 0x113   : > { %1375 = vrot.lane.b32.xlu1 %v1297_v26, %s13004_s12  ;;  %2509 = vrot.lane.b32.xlu0 %v14183_v29, %s13004_s12  ;;  %v1841_v29 = vshll.u32 %v14302_v58, 16  ;;  %v983_v26 = vrot.slane %v981_v52, 1  ;;  %v1849_v54 = vshll.u32 %v12839_v34, 16  ;;  %v14340_v8 = vrot.slane %v986_v17, 1  ;;  %v4771_v52 = vld [vmem:[#allocation2 + $0x30] sm:$0x2] }
 0x114   : > { %4073 = vmatprep.mubr.bf16.mxu0 %v3637_v19  ;;  %v2823_v1 = vshll.u32 %v14297_v40, 16  ;;  %v14347_v19 = vld [vmem:[%s13097_s9 + $0x114] ss:$0 sps:$4 sm:$0x11]   ;;  %v14353_v33 = vsel %vm1244_vm0, %v2182_v36, %v19698_v23  ;;  %v4772_v3 = vsel %vm14201_vm11, 0, %v4771_v52  ;;  %v14365_v18 = vrot.slane %v11442_v20, 1 }
 0x115   : > { %4074 = vmatmul.mubr.bf16.gmra.mrb[40].mxu0 %v3349_v44  ;;  %v1141_v5 = vpop.permute.xlu1 %1140  ;;  %v2240_v15 = vpop.permute.xlu0 %2239  ;;  %v14324_v30 = vrot.slane %v1841_v29, 1  ;;  %v14330_v44 = vld [vmem:[%s13097_s9 + $0xec] ss:$0 sps:$4 sm:$0x11]   ;;  %v984_v39 = vor.u32 %v983_v26, %v979_v12  ;;  %v1845_v35 = vshrl.u32 %v14302_v58, 16  ;;  %v14371_v31 = vld [vmem:[%s13097_s9 + $0xf8] sm:$0xff]  }
 0x116   : > { %v3195_v25 = vsel %vm3171_vm2, %v12840_v7, %v1141_v5  ;;  %v14374_v29 = vld [vmem:[%s13097_s9 + $0x108] sm:$0xf]  ;;  %4773 = vst [vmem:[#allocation2 + $0x30] sm:$0x2] %v4772_v3  ;;  %v3461_v47 = vsel %vm3171_vm2, %v1832_v57, %v2240_v15  ;;  %v2816_v17 = vshrl.u32 %v14327_v9, 16  ;;  %v2818_v12 = vshll.u32 %v14327_v9, 16 }
 0x117   : > { %1627 = vrot.lane.b32.xlu1 %v14283_v61, %s13006_s22  ;;  %2995 = vrot.lane.b32.xlu0 %v2806_v51, %s13006_s22  ;;  %v14368_v51 = vrot.slane %v1849_v54, 1  ;;  %v11263_v26 = vld [vmem:[%s13097_s9 + $0x104] sm:$0xe]  ;;  %v14383_v34 = vrot.slane %v2823_v1, 1  ;;  %v14386_v15 = vcombine.low %v245_v48, %v14358_v11  ;;  %v299_v57 = vld [vmem:[%s13097_s9 + $0xf0] sm:$0xe]  ;;  %v1302_v58 = vsel %vm1244_vm0, %v14365_v18, %v19699_v37 }
 0x118   : > { %v11370_v54 = vld [vmem:[%s13097_s9 + $0x104] sm:$0xe]  ;;  %v994_v52 = vshll.u32 %v14330_v44, 16  ;;  %v11317_v3 = vld [vmem:[%s13097_s9 + $0x118] sm:$0xf]  ;;  %v3139_v23 = vrot.slane %v14347_v19, 1 }
 0x119   : > { %v1358_v49 = vpop.permute.xlu1 %1357  ;;  %v2492_v22 = vpop.permute.xlu0 %2491  ;;  %19794 = vst [vmem:[#allocation11_spill] sm:$0xff] %v14386_v15  ;;  %v14399_v7 = vld [vmem:[%s13097_s9 + $0x11c] sm:$0xf]  ;;  %v11586_v1 = vcombine.low %v11370_v54, %v14307_v59  ;;  %v11515_v59 = vcombine.low %v11263_v26, %v14374_v29  ;;  %v1001_v16 = vshll.u32 %v14386_v15, 16  ;;  %v11443_v26 = vcombine.low %v299_v57, %v14358_v11  ;;  %v11264_v48 = vld [vmem:[%s13097_s9 + $0x118] sm:$0xe] }
 0x11a   : > { %v3268_v32 = vsel %vm3244_vm3, %v3195_v25, %v1358_v49  ;;  %v3557_v36 = vsel %vm3244_vm3, %v3461_v47, %v2492_v22  ;;  %v14395_v22 = vld [vmem:[%s13097_s9 + $0x10c] sm:$0xff]   ;;  %v2831_v47 = vshll.u32 %v14347_v19, 16  ;;  %v14432_v19 = vcombine.low %v11317_v3, %v14399_v7  ;;  %v14496_v37 = vld [vmem:[%s13097_s9 + $0x11c] sm:$0xf] }
 0x11b   : > { %1160 = vrot.lane.b32.xlu1 %v977_v24, %s13005_s20  ;;  %2259 = vrot.lane.b32.xlu0 %v2181_v21, %s13005_s20  ;;  %v990_v21 = vshrl.u32 %v14274_v42, 16  ;;  %v1844_v3 = vsel %vm757_vm1, %v14335_v50, %v14324_v30  ;;  %v12842_v18 = vld [vmem:[%s13097_s9 + $0xb0] ss:$0 sps:$4 sm:$0x11]   ;;  %v14485_v50 = vld [vmem:[%s13097_s9 + $0x108] sm:$0xf] }
 0x11c   : > { %v14429_v0 = vrot.slane %v2831_v47, 1  ;;  %v4711_v47 = vld [vmem:[#allocation2 + $0x3c] sm:$0x1]  ;;  %19795 = vst [vmem:[#allocation12_spill] sm:$0xff] %v14496_v37 }
 0x11d   : > { %v1610_v5 = vpop.permute.xlu1 %1609  ;;  %v2978_v24 = vpop.permute.xlu0 %2977 }
 0x11e   : > { %v3352_v20 = vsel %vm3317_vm4, %v3268_v32, %v1610_v5  ;;  %v3640_v49 = vsel %vm3317_vm4, %v3557_v36, %v2978_v24  ;;  %v1006_v32 = vshll.u32 %v14371_v31, 16  ;;  %v989_v36 = vsel %vm757_vm1, %v984_v39, %v14340_v8 }
 0x11f   : > { %1377 = vrot.lane.b32.xlu1 %v1299_v2, %s13004_s12  ;;  %2511 = vrot.lane.b32.xlu0 %v14199_v46, %s13004_s12  ;;  %v14406_v2 = vld [vmem:[%s13097_s9 + $0xa8] sm:$0xff]   ;;  %v3136_v24 = vrot.slane %v11586_v1, 1  ;;  %v3137_v46 = vrot.slane %v14297_v40, 1 }
 0x120   : > { %4081 = vmatprep.mubr.bf16.mxu0 %v3640_v49  ;;  %v1861_v25 = vshll.u32 %v14406_v2, 16  ;;  %v2820_v49 = vrot.slane %v2818_v12, 1 }
 0x121   : > { %4082 = vmatmul.mubr.bf16.gmra.mrb[44].mxu0 %v3352_v20  ;;  %v1143_v5 = vpop.permute.xlu1 %1142  ;;  %v2242_v54 = vpop.permute.xlu0 %2241  ;;  %v14420_v20 = vrot.slane %v994_v52, 1  ;;  %v3138_v1 = vsel %vm1244_vm0, %v3136_v24, %v3137_v46  ;;  %v3140_v11 = vsel %vm1244_vm0, %v3137_v46, %v3139_v23  ;;  %v14440_v24 = vrot.slane %v1006_v32, 1  ;;  %v11205_v32 = vld [vmem:[%s13097_s9 + $0xf0] sm:$0xf] }
 0x122   : > { %v14427_v12 = vrot.slane %v1861_v25, 1  ;;  %12252 = vmatprep.mubr.msk.bf16.mxu1 %vm3171_vm2, %v3138_v1  ;;  %v1847_v23 = vor.u32 %v1845_v35, %v14324_v30  ;;  %v14453_v46 = vrot.slane %v1001_v16, 1  ;;  %v2821_v30 = vor.u32 %v2820_v49, %v2816_v17  ;;  %v249_v35 = vld [vmem:[%s13097_s9 + $0x104] sm:$0xf]  ;;  %v14491_v52 = vld [vmem:[%s13097_s9 + $0x10c] sm:$0xff]  }
 0x123   : > { %1629 = vrot.lane.b32.xlu1 %v14174_v4, %s13006_s22  ;;  %2997 = vrot.lane.b32.xlu0 %v14338_v41, %s13006_s22  ;;  %v14435_v4 = vld [vmem:[%s13097_s9 + $0x120] sm:$0xff]   ;;  %v14442_v41 = vrot.slane %v11515_v59, 1  ;;  %v14467_v16 = vrot.slane %v11443_v26, 1  ;;  %v1869_v25 = vshll.u32 %v12842_v18, 16  ;;  %v2838_v17 = vshll.u32 %v14432_v19, 16 }
 0x124   : > { %12253 = vmatmul.mubr.msk.bf16.gmra.mrb[44].mxu1 %vm3171_vm2, %v3140_v11  ;;  %v14456_v59 = vld [vmem:[%s13097_s9 + $0x100] ss:$0 sps:$4 sm:$0x11]   ;;  %v4712_v11 = vsel %vm14118_vm8, 0, %v4711_v47  ;;  %v3197_v47 = vsel %vm3171_vm2, %v13601_v43, %v1143_v5 }
 0x125   : > { %v1360_v57 = vpop.permute.xlu1 %1359  ;;  %v2494_v1 = vpop.permute.xlu0 %2493  ;;  %4713 = vst [vmem:[#allocation2 + $0x3c] sm:$0x1] %v4712_v11  ;;  %v14479_v49 = vld [vmem:[%s13097_s9 + $0x114] ss:$0 sps:$4 sm:$0x11]   ;;  %v3464_v11 = vsel %vm3171_vm2, %v1844_v3, %v2242_v54  ;;  %v14504_v3 = vcombine.low %v11205_v32, %v14268_v6 }
 0x126   : > { %v14482_v26 = vld [vmem:[%s13097_s9 + $0x128] ss:$0 sps:$4 sm:$0x11]   ;;  %v3270_v43 = vsel %vm3244_vm3, %v3197_v47, %v1360_v57  ;;  %v1852_v57 = vsel %vm757_vm1, %v1847_v23, %v14368_v51  ;;  %v14516_v51 = vcombine.low %v249_v35, %v14485_v50  ;;  %v14518_v23 = vrot.slane %v1869_v25, 1 }
 0x127   : > { %1162 = vrot.lane.b32.xlu1 %v989_v36, %s13005_s20  ;;  %2261 = vrot.lane.b32.xlu0 %v14353_v33, %s13005_s20  ;;  %v2843_v33 = vshll.u32 %v14435_v4, 16  ;;  %v3559_v36 = vsel %vm3244_vm3, %v3464_v11, %v2494_v1  ;;  %19796 = vst [vmem:[#allocation13_spill] sm:$0xff] %v14504_v3  ;;  %v992_v1 = vor.u32 %v990_v21, %v14340_v8  ;;  %v14520_v8 = vrot.slane %v2838_v17, 1  ;;  %v14524_v21 = vld [vmem:[%s13097_s9 + $0xbc] sm:$0xff]  }
 0x128   : > { %19797 = vst [vmem:[#allocation14_spill] sm:$0xff] %v14516_v51  ;;  %v1881_v32 = vshll.u32 %v14524_v21, 16  ;;  %v2851_v25 = vshll.u32 %v14482_v26, 16  ;;  %v19798_v35 = vrot.slane %v14344_v62, 1  ;;  %v19799_v47 = vrot.slane %v14287_v14, 1 }
 0x129   : > { %v1612_v5 = vpop.permute.xlu1 %1611  ;;  %v2980_v18 = vpop.permute.xlu0 %2979  ;;  %v14527_v11 = vrot.slane %v2843_v33, 1  ;;  %v1026_v33 = vshll.u32 %v14491_v52, 16 }
 0x12a   : > { %v3355_v39 = vsel %vm3317_vm4, %v3270_v43, %v1612_v5  ;;  %v3643_v54 = vsel %vm3317_vm4, %v3559_v36, %v2980_v18  ;;  %v1014_v36 = vshll.u32 %v14456_v59, 16  ;;  %v300_v43 = vld [vmem:[%s13097_s9 + $0x104] sm:$0xe]  ;;  %v2186_v17 = vsel %vm1244_vm0, %v19799_v47, %v19798_v35 }
 0x12b   : > { %1379 = vrot.lane.b32.xlu1 %v1302_v58, %s13004_s12  ;;  %2513 = vrot.lane.b32.xlu0 %v14327_v9, %s13004_s12  ;;  %v2826_v58 = vsel %vm757_vm1, %v2821_v30, %v14383_v34  ;;  %v1876_v9 = vshll.u32 %v13980_v60, 16  ;;  %v14539_v18 = vld [vmem:[%s13097_s9 + $0x120] sm:$0xff]   ;;  %v1021_v5 = vshll.u32 %v14516_v51, 16  ;;  %v19802_v35 = vrot.slane %v14274_v42, 1 }
 0x12c   : > { %4088 = vmatprep.mubr.bf16.mxu0 %v3643_v54  ;;  %v11516_v54 = vcombine.low %v11264_v48, %v14496_v37  ;;  %v14550_v56 = vrot.slane %v1014_v36, 1  ;;  %v19801_v36 = vrot.slane %v14330_v44, 1  ;;  %v12844_v44 = vld [vmem:[%s13097_s9 + $0xc4] ss:$0 sps:$4 sm:$0x11]  }
 0x12d   : > { %4089 = vmatmul.mubr.bf16.gmra.mrb[48].mxu0 %v3355_v39  ;;  %v1145_v6 = vpop.permute.xlu1 %1144  ;;  %v2244_v30 = vpop.permute.xlu0 %2243  ;;  %v997_v39 = vsel %vm757_vm1, %v992_v1, %v14420_v20  ;;  %v11444_v20 = vcombine.low %v300_v43, %v14485_v50  ;;  %v14564_v1 = vld [vmem:[%s13097_s9 + $0x134] sm:$0xff]   ;;  %v14578_v50 = vrot.slane %v1026_v33, 1  ;;  %v1889_v42 = vshll.u32 %v12844_v44, 16 }
 0x12e   : > { %v1304_v63 = vsel %vm1244_vm0, %v19802_v35, %v19801_v36  ;;  %v14580_v43 = vrot.slane %v11516_v54, 1  ;;  %v12845_v35 = vld [vmem:[%s13097_s9 + $0x80] sm:$0xff]   ;;  %v14592_v33 = vcombine.low %v11321_v27, %v14555_v53  ;;  %v14595_v54 = vld [vmem:[%s13097_s9 + $0x114] ss:$0 sps:$4 sm:$0x11]   ;;  %v19806_v27 = vshrl.u32 %v14386_v15, 16 }
 0x12f   : > { %1631 = vrot.lane.b32.xlu1 %v14504_v3, %s13006_s22  ;;  %2999 = vrot.lane.b32.xlu0 %v2826_v58, %s13006_s22  ;;  %v14557_v3 = vrot.slane %v1876_v9, 1  ;;  %v14559_v58 = vrot.slane %v1881_v32, 1  ;;  %v19803_v9 = vshrl.u32 %v14297_v40, 16  ;;  %v14574_v32 = vrot.slane %v2851_v25, 1  ;;  %19805 = vst [vmem:[#allocation17_spill] sm:$0xff] %v14595_v54 }
 0x130   : > { %19804 = vst [vmem:[#allocation16_spill] sm:$0xff] %v14580_v43  ;;  %v14588_v25 = vrot.slane %v1021_v5, 1  ;;  %v1004_v62 = vor.u32 %v14453_v46, %v19806_v27  ;;  %v14609_v43 = vld [vmem:[%s13097_s9 + $0x128] ss:$0 sps:$4 sm:$0x11]  }
 0x131   : > { %v1362_v48 = vpop.permute.xlu1 %1361  ;;  %19800 = vst [vmem:[#allocation15_spill] sm:$0xff] %v14559_v58  ;;  %v2496_v47 = vpop.permute.xlu0 %2495  ;;  %v2829_v37 = vor.u32 %v19803_v9, %v14383_v34  ;;  %v4774_v58 = vld [vmem:[#allocation2 + $0x44] sm:$0x2]  ;;  %v3199_v34 = vsel %vm3171_vm2, %v12845_v35, %v1145_v6  ;;  %v3467_v9 = vsel %vm3171_vm2, %v1852_v57, %v2244_v30  ;;  %v14599_v6 = vrot.slane %v11444_v20, 1  ;;  %v11371_v57 = vld [vmem:[%s13097_s9 + $0x118] sm:$0xe] }
 0x132   : > { %v4775_v36 = vsel %vm14201_vm11, 0, %v4774_v58  ;;  %v3272_v58 = vsel %vm3244_vm3, %v3199_v34, %v1362_v48  ;;  %v3561_v5 = vsel %vm3244_vm3, %v3467_v9, %v2496_v47  ;;  %v14615_v20 = vrot.slane %v1889_v42, 1  ;;  %v14682_v46 = vld [vmem:[%s13097_s9 + $0x144] sm:$0xf]  ;;  %v11265_v15 = vld [vmem:[%s13097_s9 + $0x12c] sm:$0xe] }
 0x133   : > { %1164 = vrot.lane.b32.xlu1 %v997_v39, %s13005_s20  ;;  %2263 = vrot.lane.b32.xlu0 %v2186_v17, %s13005_s20  ;;  %4776 = vst [vmem:[#allocation2 + $0x44] sm:$0x2] %v4775_v36  ;;  %v2863_v36 = vshll.u32 %v14564_v1, 16  ;;  %v11587_v47 = vcombine.low %v11371_v57, %v14399_v7  ;;  %v2858_v34 = vshll.u32 %v14592_v33, 16  ;;  %v1034_v9 = vshll.u32 %v14595_v54, 16  ;;  %19811 = vst [vmem:[#allocation20_spill] sm:$0xff] %v14682_v46 }
 0x134   : > { %v301_v54 = vld [vmem:[%s13097_s9 + $0x118] sm:$0xe] }
 0x135   : > { %v1614_v44 = vpop.permute.xlu1 %1613  ;;  %v2982_v35 = vpop.permute.xlu0 %2981  ;;  %v14630_v27 = vrot.slane %v2863_v36, 1  ;;  %v14645_v36 = vld [vmem:[%s13097_s9 + $0x13c] ss:$0 sps:$4 sm:$0x11]  }
 0x136   : > { %v3358_v39 = vsel %vm3317_vm4, %v3272_v58, %v1614_v44  ;;  %v3646_v30 = vsel %vm3317_vm4, %v3561_v5, %v2982_v35  ;;  %v19807_v58 = vshrl.u32 %v13860_v28, 16  ;;  %v3141_v44 = vrot.slane %v11587_v47, 1  ;;  %v253_v47 = vld [vmem:[%s13097_s9 + $0x118] sm:$0xf] }
 0x137   : > { %1381 = vrot.lane.b32.xlu1 %v1304_v63, %s13004_s12  ;;  %2515 = vrot.lane.b32.xlu0 %v14297_v40, %s13004_s12  ;;  %v1896_v63 = vshll.u32 %v14107_v45, 16  ;;  %v2834_v40 = vsel %vm757_vm1, %v2829_v37, %v14429_v0  ;;  %v3142_v5 = vrot.slane %v14435_v4, 1  ;;  %v1009_v28 = vsel %vm757_vm1, %v1004_v62, %v14440_v24  ;;  %v11209_v37 = vld [vmem:[%s13097_s9 + $0x104] sm:$0xf] }
 0x138   : > { %4096 = vmatprep.mubr.bf16.mxu0 %v3646_v30  ;;  %v1859_v7 = vor.u32 %v14245_v38, %v19807_v58  ;;  %v3144_v30 = vrot.slane %v14482_v26, 1  ;;  %v19808_v0 = vrot.slane %v14395_v22, 1  ;;  %v14649_v58 = vld [vmem:[%s13097_s9 + $0x11c] sm:$0xf]  ;;  %v14655_v62 = vrot.slane %v1034_v9, 1 }
 0x139   : > { %4097 = vmatmul.mubr.bf16.gmra.mrb[52].mxu0 %v3358_v39  ;;  %v1147_v42 = vpop.permute.xlu1 %1146  ;;  %v2246_v35 = vpop.permute.xlu0 %2245  ;;  %v3143_v26 = vsel %vm1244_vm0, %v3141_v44, %v3142_v5  ;;  %v14661_v57 = vrot.slane %v1896_v63, 1  ;;  %v14664_v44 = vld [vmem:[%s13097_s9 + $0xd0] sm:$0xff]   ;;  %v14675_v63 = vld [vmem:[%s13097_s9 + $0x120] sm:$0xff]  }
 0x13a   : > { %v2189_v38 = vsel %vm1244_vm0, %v14442_v41, %v19808_v0  ;;  %19809 = vst [vmem:[#allocation18_spill] sm:$0xff] %v14655_v62  ;;  %12256 = vmatprep.mubr.msk.bf16.mxu1 %vm3171_vm2, %v3143_v26  ;;  %v3145_v41 = vsel %vm1244_vm0, %v3142_v5, %v3144_v30  ;;  %v1864_v26 = vsel %vm757_vm1, %v1859_v7, %v14427_v12  ;;  %v11325_v9 = vld [vmem:[%s13097_s9 + $0x140] sm:$0xf]  ;;  %v2871_v62 = vshll.u32 %v14645_v36, 16 }
 0x13b   : > { %1633 = vrot.lane.b32.xlu1 %v14287_v14, %s13006_s22  ;;  %3001 = vrot.lane.b32.xlu0 %v2834_v40, %s13006_s22  ;;  %v14653_v14 = vrot.slane %v2858_v34, 1  ;;  %v1901_v34 = vshll.u32 %v14664_v44, 16  ;;  %v4714_v40 = vld [vmem:[#allocation2 + $0x50] sm:$0x1]  ;;  %v14672_v30 = vcombine.low %v253_v47, %v14649_v58  ;;  %v3201_v7 = vsel %vm3171_vm2, %v13740_v55, %v1147_v42 }
 0x13c   : > { %12257 = vmatmul.mubr.msk.bf16.gmra.mrb[48].mxu1 %vm3171_vm2, %v3145_v41  ;;  %v4715_v39 = vsel %vm14118_vm8, 0, %v4714_v40  ;;  %v4702_v41 = vld [vmem:[#allocation2] sm:$0x1]  ;;  %v19812_v47 = vrot.slane %v14371_v31, 1  ;;  %v14692_v40 = vcombine.low %v11209_v37, %v14374_v29  ;;  %v3470_v55 = vsel %vm3171_vm2, %v1864_v26, %v2246_v35 }
 0x13d   : > { %v1364_v0 = vpop.permute.xlu1 %1363  ;;  %v2498_v5 = vpop.permute.xlu0 %2497  ;;  %19810 = vst [vmem:[#allocation19_spill] sm:$0xff] %v14672_v30  ;;  %4716 = vst [vmem:[#allocation2 + $0x50] sm:$0x1] %v4715_v39  ;;  %v14698_v39 = vld [vmem:[%s13097_s9 + $0x130] sm:$0xf]  ;;  %v14714_v35 = vcombine.low %v11325_v9, %v14682_v46  ;;  %v19815_v9 = vshrl.u32 %v14371_v31, 16 }
 0x13e   : > { %v1307_v17 = vsel %vm1244_vm0, %v14467_v16, %v19812_v47  ;;  %19813 = vst [vmem:[#allocation21_spill] sm:$0xff] %v14692_v40  ;;  %v3274_v42 = vsel %vm3244_vm3, %v3201_v7, %v1364_v0  ;;  %v4703_v16 = vsel %vm14118_vm8, 0, %v4702_v41  ;;  %v3563_v29 = vsel %vm3244_vm3, %v3470_v55, %v2498_v5  ;;  %v4765_v0 = vld [vmem:[#allocation2 + $0x8] sm:$0x2] }
 0x13f   : > { %1166 = vrot.lane.b32.xlu1 %v1009_v28, %s13005_s20  ;;  %2265 = vrot.lane.b32.xlu0 %v2189_v38, %s13005_s20  ;;  %v19814_v28 = vshrl.u32 %v14432_v19, 16  ;;  %4704 = vst [vmem:[#allocation2] sm:$0x1] %v4703_v16  ;;  %v1046_v41 = vshll.u32 %v14675_v63, 16  ;;  %v11517_v5 = vcombine.low %v11265_v15, %v14698_v39  ;;  %v4766_v7 = vsel %vm14201_vm11, 0, %v4765_v0 }
 0x140   : > { %v1012_v55 = vor.u32 %v19815_v9, %v14440_v24  ;;  %4767 = vst [vmem:[#allocation2 + $0x8] sm:$0x2] %v4766_v7  ;;  %v19816_v16 = vshrl.u32 %v14406_v2, 16  ;;  %v2878_v2 = vshll.u32 %v14714_v35, 16 }
 0x141   : > { %v2841_v48 = vor.u32 %v14520_v8, %v19814_v28  ;;  %v1616_v38 = vpop.permute.xlu1 %1615  ;;  %v2984_v37 = vpop.permute.xlu0 %2983  ;;  %v1041_v8 = vshll.u32 %v14672_v30, 16  ;;  %v14711_v28 = vld [vmem:[%s13097_s9 + $0x134] sm:$0xff]   ;;  %v14794_v46 = vld [vmem:[%s13097_s9 + $0x150] ss:$0 sps:$4 sm:$0x11]  }
 0x142   : > { %v3361_v47 = vsel %vm3317_vm4, %v3274_v42, %v1616_v38  ;;  %v3649_v26 = vsel %vm3317_vm4, %v3563_v29, %v2984_v37  ;;  %v14727_v42 = vrot.slane %v1901_v34, 1  ;;  %v14731_v38 = vld [vmem:[%s13097_s9 + $0x148] sm:$0xff]   ;;  %v1867_v29 = vor.u32 %v19816_v16, %v14427_v12  ;;  %19825 = vst [vmem:[#allocation25_spill] sm:$0xff] %v14794_v46 }
 0x143   : > { %1383 = vrot.lane.b32.xlu1 %v1307_v17, %s13004_s12  ;;  %2517 = vrot.lane.b32.xlu0 %v14432_v19, %s13004_s12  ;;  %v11445_v17 = vcombine.low %v301_v54, %v14649_v58  ;;  %v2846_v19 = vsel %vm757_vm1, %v2841_v48, %v14527_v11  ;;  %v14738_v37 = vrot.slane %v2871_v62, 1  ;;  %v14740_v0 = vpop.f32.mrb[0].mxu1  ;;  %v14743_v54 = vrot.slane %v1041_v8, 1  ;;  %v12847_v58 = vld [vmem:[%s13097_s9 + $0xd8] ss:$0 sps:$4 sm:$0x11]  }
 0x144   : > { %4103 = vmatprep.mubr.bf16.mxu0 %v3649_v26  ;;  %19817 = vst [vmem:[#allocation22_spill] sm:$0xff] %v14740_v0  ;;  %v14746_v26 = vpop.f32.mrb[1].mxu1  ;;  %v14751_v12 = vrot.slane %v1046_v41, 1  ;;  %v14753_v48 = vrot.slane %v11517_v5, 1  ;;  %v1017_v8 = vsel %vm757_vm1, %v1012_v55, %v14550_v56  ;;  %v2883_v16 = vshll.u32 %v14731_v38, 16 }
 0x145   : > { %4104 = vmatmul.mubr.bf16.gmra.mrb[56].mxu0 %v3361_v47  ;;  %v1149_v15 = vpop.permute.xlu1 %1148  ;;  %v2248_v24 = vpop.permute.xlu0 %2247  ;;  %v1909_v47 = vshll.u32 %v12847_v58, 16  ;;  %19818 = vst [vmem:[#allocation23_spill] sm:$0xff] %v14746_v26  ;;  %v14759_v9 = vrot.slane %v11445_v17, 1  ;;  %v14765_v34 = vld [vmem:[%s13097_s9 + $0x128] ss:$0 sps:$4 sm:$0x11]   ;;  %v1872_v0 = vsel %vm757_vm1, %v1867_v29, %v14518_v23 }
 0x146   : > { %v12211_v7 = vpop.f32.mrb[2].mxu1  ;;  %v19820_v5 = vrot.slane %v14479_v49, 1  ;;  %v19821_v62 = vrot.slane %v14395_v22, 1  ;;  %v14776_v17 = vld [vmem:[%s13097_s9 + $0x13c] ss:$0 sps:$4 sm:$0x11]  }
 0x147   : > { %1635 = vrot.lane.b32.xlu1 %v14692_v40, %s13006_s22  ;;  %3003 = vrot.lane.b32.xlu0 %v2846_v19, %s13006_s22  ;;  %v14762_v58 = vpop.f32.mrb[3].mxu1  ;;  %v14782_v49 = vrot.slane %v2878_v2, 1  ;;  %v4777_v26 = vld [vmem:[#allocation2 + $0x58] sm:$0x2]  ;;  %v19824_v55 = vshrl.u32 %v14435_v4, 16  ;;  %v1054_v2 = vshll.u32 %v14765_v34, 16 }
 0x148   : > { %19819 = vst [vmem:[#allocation24_spill] sm:$0xff] %v14762_v58  ;;  %v2191_v19 = vsel %vm1244_vm0, %v19821_v62, %v19820_v5  ;;  %v14780_v58 = vrot.slane %v1909_v47, 1  ;;  %v19822_v62 = vrot.slane %v14456_v59, 1  ;;  %v19823_v5 = vrot.slane %v14371_v31, 1  ;;  %v12848_v29 = vld [vmem:[%s13097_s9 + $0x94] sm:$0xff]  }
 0x149   : > { %v1366_v41 = vpop.permute.xlu1 %1365  ;;  %v2500_v40 = vpop.permute.xlu0 %2499  ;;  %v2849_v56 = vor.u32 %v19824_v55, %v14527_v11  ;;  %v4778_v23 = vsel %vm14201_vm11, 0, %v4777_v26  ;;  %v3203_v47 = vsel %vm3171_vm2, %v12848_v29, %v1149_v15  ;;  %v14801_v59 = vrot.slane %v2883_v16, 1  ;;  %v14814_v29 = vld [vmem:[%s13097_s9 + $0xe4] sm:$0xff]   ;;  %v14825_v31 = vld [vmem:[%s13097_s9 + $0x130] sm:$0xf] }
 0x14a   : > { %v1309_v7 = vsel %vm1244_vm0, %v19823_v5, %v19822_v62  ;;  %4779 = vst [vmem:[#allocation2 + $0x58] sm:$0x2] %v4778_v23  ;;  %v3473_v11 = vsel %vm3171_vm2, %v1872_v0, %v2248_v24  ;;  %v1916_v15 = vshll.u32 %v14283_v61, 16  ;;  %v1921_v23 = vshll.u32 %v14814_v29, 16  ;;  %v257_v24 = vld [vmem:[%s13097_s9 + $0x12c] sm:$0xf] }
 0x14b   : > { %1168 = vrot.lane.b32.xlu1 %v1017_v8, %s13005_s20  ;;  %2267 = vrot.lane.b32.xlu0 %v2191_v19, %s13005_s20  ;;  %v3276_v8 = vsel %vm3244_vm3, %v3203_v47, %v1366_v41  ;;  %v14809_v19 = vpop.f32.mrb[4].mxu1  ;;  %v3565_v16 = vsel %vm3244_vm3, %v3473_v11, %v2500_v40  ;;  %v11372_v41 = vld [vmem:[%s13097_s9 + $0x12c] sm:$0xe]  ;;  %v2891_v55 = vshll.u32 %v14794_v46, 16 }
 0x14c   : > { %19826 = vst [vmem:[#allocation26_spill] sm:$0xff] %v14809_v19  ;;  %v14817_v0 = vpop.f32.mrb[5].mxu1  ;;  %v11588_v11 = vcombine.low %v11372_v41, %v14555_v53  ;;  %v14833_v19 = vrot.slane %v1054_v2, 1  ;;  %v19830_v53 = vshrl.u32 %v13980_v60, 16  ;;  %v14852_v60 = vcombine.low %v257_v24, %v14825_v31  ;;  %v14867_v24 = vld [vmem:[%s13097_s9 + $0x134] sm:$0xff]  }
 0x14d   : > { %v1618_v26 = vpop.permute.xlu1 %1617  ;;  %v2986_v62 = vpop.permute.xlu0 %2985  ;;  %19827 = vst [vmem:[#allocation27_spill] sm:$0xff] %v14817_v0 }
 0x14e   : > { %v3364_v5 = vsel %vm3317_vm4, %v3276_v8, %v1618_v26  ;;  %v3652_v47 = vsel %vm3317_vm4, %v3565_v16, %v2986_v62  ;;  %v12215_v40 = vpop.f32.mrb[6].mxu1  ;;  %v19828_v8 = vshrl.u32 %v14516_v51, 16  ;;  %v1879_v41 = vor.u32 %v14557_v3, %v19830_v53  ;;  %v19836_v53 = vld [vmem:[#allocation16_spill] sm:$0xff] }
 0x14f   : > { %1385 = vrot.lane.b32.xlu1 %v1309_v7, %s13004_s12  ;;  %2519 = vrot.lane.b32.xlu0 %v14435_v4, %s13004_s12  ;;  %v14837_v62 = vpop.f32.mrb[7].mxu1  ;;  %v2854_v4 = vsel %vm757_vm1, %v2849_v56, %v14574_v32  ;;  %v19832_v7 = vshrl.u32 %v14524_v21, 16  ;;  %v14849_v51 = vrot.slane %v1916_v15, 1  ;;  %v3149_v3 = vrot.slane %v14645_v36, 1  ;;  %v11329_v36 = vld [vmem:[%s13097_s9 + $0x154] sm:$0xf] }
 0x150   : > { %4111 = vmatprep.mubr.bf16.mxu0 %v3652_v47  ;;  %v1024_v26 = vor.u32 %v14588_v25, %v19828_v8  ;;  %19829 = vst [vmem:[#allocation28_spill] sm:$0xff] %v14837_v62  ;;  %v3146_v47 = vrot.slane %v11588_v11, 1  ;;  %v3147_v25 = vrot.slane %v14564_v1, 1  ;;  %v19831_v8 = vld [vmem:[#allocation15_spill] sm:$0xff]  ;;  %v14857_v32 = vrot.slane %v1921_v23, 1 }
 0x151   : > { %4112 = vmatmul.mubr.bf16.gmra.mrb[60].mxu0 %v3364_v5  ;;  %v1151_v40 = vpop.permute.xlu1 %1150  ;;  %v2250_v2 = vpop.permute.xlu0 %2249  ;;  %v1887_v16 = vor.u32 %v19832_v7, %v19831_v8  ;;  %v11213_v5 = vld [vmem:[%s13097_s9 + $0x118] sm:$0xf]  ;;  %19833 = vst [vmem:[#allocation15_spill] sm:$0xff] %v14852_v60  ;;  %v14860_v11 = vrot.slane %v2891_v55, 1  ;;  %v19835_v55 = vrot.slane %v14539_v18, 1  ;;  %v1884_v62 = vsel %vm757_vm1, %v1879_v41, %v19831_v8 }
 0x152   : > { %v3148_v21 = vsel %vm1244_vm0, %v3146_v47, %v3147_v25  ;;  %v1029_v15 = vsel %vm757_vm1, %v1024_v26, %v14578_v50  ;;  %v14871_v7 = vld [vmem:[%s13097_s9 + $0x158] sm:$0xf]  ;;  %v11266_v26 = vld [vmem:[%s13097_s9 + $0x140] sm:$0xe]  ;;  %v4717_v56 = vld [vmem:[#allocation2 + $0x64] sm:$0x1] }
 0x153   : > { %1637 = vrot.lane.b32.xlu1 %v14395_v22, %s13006_s22  ;;  %3005 = vrot.lane.b32.xlu0 %v2854_v4, %s13006_s22  ;;  %19834 = vst [vmem:[#allocation29_spill] sm:$0xff] %v14871_v7  ;;  %v3150_v22 = vsel %vm1244_vm0, %v3147_v25, %v3149_v3  ;;  %v2194_v47 = vsel %vm1244_vm0, %v19836_v53, %v19835_v55  ;;  %v14880_v4 = vld [vmem:[%s13097_s9 + $0x144] sm:$0xf]  ;;  %v19837_v25 = vrot.slane %v14491_v52, 1  ;;  %v1061_v0 = vshll.u32 %v14852_v60, 16 }
 0x154   : > { %12260 = vmatprep.mubr.msk.bf16.mxu1 %vm3171_vm2, %v3148_v21  ;;  %v4718_v55 = vsel %vm14118_vm8, 0, %v4717_v56  ;;  %v14896_v53 = vsel %vm757_vm1, %v1887_v16, %v14615_v20  ;;  %v19840_v41 = vshrl.u32 %v14491_v52, 16  ;;  %v19841_v56 = vld [vmem:[#allocation6_spill] sm:$0xff]  ;;  %v19842_v20 = vshrl.u32 %v14592_v33, 16 }
 0x155   : > { %v1368_v23 = vpop.permute.xlu1 %1367  ;;  %12261 = vmatmul.mubr.msk.bf16.gmra.mrb[52].mxu1 %vm3171_vm2, %v3150_v22  ;;  %v2502_v21 = vpop.permute.xlu0 %2501  ;;  %v1312_v3 = vsel %vm1244_vm0, %v14599_v6, %v19837_v25  ;;  %v19838_v22 = vld [vmem:[#allocation12_spill] sm:$0xff]  ;;  %v302_v25 = vld [vmem:[%s13097_s9 + $0x12c] sm:$0xe]  ;;  %4719 = vst [vmem:[#allocation2 + $0x64] sm:$0x1] %v4718_v55 }
 0x156   : > { %v14899_v46 = vcombine.low %v11213_v5, %v19838_v22  ;;  %v1032_v8 = vor.u32 %v19840_v41, %v14578_v50  ;;  %v2861_v16 = vor.u32 %v14653_v14, %v19842_v20  ;;  %v19843_v5 = vshrl.u32 %v14107_v45, 16  ;;  %v14934_v14 = vld [vmem:[%s13097_s9 + $0x148] sm:$0xff]  }
 0x157   : > { %1170 = vrot.lane.b32.xlu1 %v1029_v15, %s13005_s20  ;;  %v3205_v15 = vsel %vm3171_vm2, %v19841_v56, %v1151_v40  ;;  %2269 = vrot.lane.b32.xlu0 %v2194_v47, %s13005_s20  ;;  %v14919_v22 = vcombine.low %v11329_v36, %v14871_v7  ;;  %v3476_v41 = vsel %vm3171_vm2, %v1884_v62, %v2250_v2  ;;  %v19844_v40 = vrot.slane %v14609_v43, 1  ;;  %v14937_v36 = vld [vmem:[%s13097_s9 + $0x13c] ss:$0 sps:$4 sm:$0x11]   ;;  %v14939_v62 = vpop.f32.mrb[8].mxu1 }
 0x158   : > { %19839 = vst [vmem:[#allocation16_spill] sm:$0xff] %v14899_v46  ;;  %v1899_v50 = vor.u32 %v14661_v57, %v19843_v5  ;;  %v3278_v55 = vsel %vm3244_vm3, %v3205_v15, %v1368_v23  ;;  %v19845_v47 = vrot.slane %v14539_v18, 1  ;;  %v19846_v45 = vshrl.u32 %v14564_v1, 16  ;;  %19847 = vst [vmem:[#allocation12_spill] sm:$0xff] %v14939_v62  ;;  %v14945_v5 = vpop.f32.mrb[9].mxu1 }
 0x159   : > { %v1620_v6 = vpop.permute.xlu1 %1619  ;;  %v3567_v2 = vsel %vm3244_vm3, %v3476_v41, %v2502_v21  ;;  %v2988_v43 = vpop.permute.xlu0 %2987  ;;  %v1066_v15 = vshll.u32 %v14867_v24, 16  ;;  %v11518_v20 = vcombine.low %v11266_v26, %v14880_v4  ;;  %19848 = vst [vmem:[#allocation6_spill] sm:$0xff] %v14945_v5  ;;  %v11446_v62 = vcombine.low %v302_v25, %v14825_v31  ;;  %v12850_v7 = vld [vmem:[%s13097_s9 + $0xec] ss:$0 sps:$4 sm:$0x11]  }
 0x15a   : > { %v14928_v56 = vsel %vm1244_vm0, %v19845_v47, %v19844_v40  ;;  %v2869_v57 = vor.u32 %v19846_v45, %v14630_v27  ;;  %v3367_v23 = vsel %vm3317_vm4, %v3278_v55, %v1620_v6  ;;  %v3655_v40 = vsel %vm3317_vm4, %v3567_v2, %v2988_v43  ;;  %v19849_v47 = vld [vmem:[#allocation18_spill] sm:$0xff]  ;;  %v14954_v41 = vld [vmem:[%s13097_s9 + $0x150] ss:$0 sps:$4 sm:$0x11]   ;;  %v12219_v6 = vpop.f32.mrb[10].mxu1 }
 0x15b   : > { %1387 = vrot.lane.b32.xlu1 %v1312_v3, %s13004_s12  ;;  %v1037_v45 = vsel %vm757_vm1, %v1032_v8, %v19849_v47  ;;  %v1929_v21 = vshll.u32 %v12850_v7, 16  ;;  %2521 = vrot.lane.b32.xlu0 %v14592_v33, %s13004_s12  ;;  %v2866_v26 = vsel %vm757_vm1, %v2861_v16, %v14630_v27  ;;  %v19850_v3 = vld [vmem:[#allocation17_spill] sm:$0xff]  ;;  %v19852_v2 = vrot.slane %v14491_v52, 1  ;;  %v14972_v25 = vpop.f32.mrb[11].mxu1 }
 0x15c   : > { %4118 = vmatprep.mubr.bf16.mxu0 %v3655_v40  ;;  %v19851_v55 = vrot.slane %v19850_v3, 1  ;;  %v14969_v31 = vsel %vm757_vm1, %v1899_v50, %v14727_v42  ;;  %v2898_v7 = vshll.u32 %v14919_v22, 16  ;;  %19853 = vst [vmem:[#allocation18_spill] sm:$0xff] %v14972_v25  ;;  %v14976_v27 = vsel %vm757_vm1, %v2869_v57, %v14738_v37 }
 0x15d   : > { %4119 = vmatmul.mubr.bf16.gmra.mrb[64].mxu0 %v3367_v23  ;;  %v1153_v33 = vpop.permute.xlu1 %1152  ;;  %v19854_v16 = vshrl.u32 %v14672_v30, 16  ;;  %v2903_v43 = vshll.u32 %v14907_v13, 16  ;;  %v1074_v40 = vshll.u32 %v14937_v36, 16  ;;  %v2252_v50 = vpop.permute.xlu0 %2251  ;;  %v19855_v47 = vshrl.u32 %v14664_v44, 16  ;;  %v19859_v30 = vld [vmem:[#allocation13_spill] sm:$0xff] }
 0x15e   : > { %v14965_v8 = vsel %vm1244_vm0, %v19852_v2, %v19851_v55  ;;  %v19856_v23 = vshrl.u32 %v14714_v35, 16  ;;  %v1063_v37 = vrot.slane %v1061_v0, 1  ;;  %v14989_v57 = vrot.slane %v11518_v20, 1 }
 0x15f   : > { %v1044_v52 = vor.u32 %v14743_v54, %v19854_v16  ;;  %v1907_v6 = vor.u32 %v19855_v47, %v14727_v42  ;;  %1639 = vrot.lane.b32.xlu1 %v14899_v46, %s13006_s22  ;;  %v14993_v54 = vrot.slane %v1066_v15, 1  ;;  %v14996_v2 = vrot.slane %v11446_v62, 1  ;;  %3007 = vrot.lane.b32.xlu0 %v2866_v26, %s13006_s22  ;;  %v11217_v47 = vld [vmem:[%s13097_s9 + $0x12c] sm:$0xf] }
 0x160   : > { %v2881_v3 = vor.u32 %v14782_v49, %v19856_v23  ;;  %v1925_v42 = vshrl.u32 %v14814_v29, 16  ;;  %v15001_v16 = vrot.slane %v1929_v21, 1  ;;  %v2896_v49 = vshrl.u32 %v14919_v22, 16  ;;  %v12851_v46 = vld [vmem:[%s13097_s9 + $0xa8] sm:$0xff]  }
 0x161   : > { %v2900_v0 = vrot.slane %v2898_v7, 1  ;;  %v1370_v20 = vpop.permute.xlu1 %1369  ;;  %v15005_v15 = vrot.slane %v2903_v43, 1  ;;  %v1070_v62 = vshrl.u32 %v14867_v24, 16  ;;  %v15008_v23 = vrot.slane %v1074_v40, 1  ;;  %v2504_v26 = vpop.permute.xlu0 %2503  ;;  %v4780_v40 = vld [vmem:[#allocation2 + $0x6c] sm:$0x2] }
 0x162   : > { %v19857_v29 = vrot.slane %v14711_v28, 1  ;;  %v19858_v7 = vshrl.u32 %v14675_v63, 16  ;;  %v1936_v25 = vshll.u32 %v19859_v30, 16  ;;  %v15025_v44 = vsel %vm757_vm1, %v1044_v52, %v14751_v12 }
 0x163   : > { %1172 = vrot.lane.b32.xlu1 %v1037_v45, %s13005_s20  ;;  %v19860_v5 = vrot.slane %v14675_v63, 1  ;;  %v4781_v43 = vsel %vm14201_vm11, 0, %v4780_v40  ;;  %v3207_v45 = vsel %vm3171_vm2, %v12851_v46, %v1153_v33  ;;  %2271 = vrot.lane.b32.xlu0 %v14928_v56, %s13005_s20  ;;  %v3479_v46 = vsel %vm3171_vm2, %v14896_v53, %v2252_v50  ;;  %v15079_v40 = vld [vmem:[%s13097_s9 + $0x16c] sm:$0xf] }
 0x164   : > { %v15015_v21 = vsel %vm1244_vm0, %v14753_v48, %v19857_v29  ;;  %v1052_v55 = vor.u32 %v19858_v7, %v14751_v12  ;;  %v261_v7 = vld [vmem:[%s13097_s9 + $0x140] sm:$0xf]  ;;  %v15043_v12 = vsel %vm757_vm1, %v1907_v6, %v14780_v58  ;;  %v15052_v29 = vld [vmem:[%s13097_s9 + $0x144] sm:$0xf]  ;;  %4782 = vst [vmem:[#allocation2 + $0x6c] sm:$0x2] %v4781_v43  ;;  %v3280_v56 = vsel %vm3244_vm3, %v3207_v45, %v1370_v20 }
 0x165   : > { %v15031_v48 = vsel %vm1244_vm0, %v14759_v9, %v19860_v5  ;;  %v15046_v9 = vcombine.low %v11217_v47, %v14698_v39  ;;  %v19862_v5 = vshrl.u32 %v14283_v61, 16  ;;  %v1622_v33 = vpop.permute.xlu1 %1621  ;;  %v15059_v58 = vsel %vm757_vm1, %v2881_v3, %v14801_v59  ;;  %v2990_v47 = vpop.permute.xlu0 %2989  ;;  %19866 = vst [vmem:[#allocation13_spill] sm:$0xff] %v15079_v40 }
 0x166   : > { %v19863_v61 = vshrl.u32 %v14731_v38, 16  ;;  %v3569_v6 = vsel %vm3244_vm3, %v3479_v46, %v2504_v26  ;;  %v3370_v43 = vsel %vm3317_vm4, %v3280_v56, %v1622_v33  ;;  %v15069_v53 = vsel %vm757_vm1, %v1052_v55, %v14833_v19  ;;  %v11373_v56 = vld [vmem:[%s13097_s9 + $0x140] sm:$0xe]  ;;  %v15108_v33 = vpop.f32.mrb[12].mxu1 }
 0x167   : > { %19861 = vst [vmem:[#allocation17_spill] sm:$0xff] %v15046_v9  ;;  %v1919_v52 = vor.u32 %v14849_v51, %v19862_v5  ;;  %v11333_v51 = vld [vmem:[%s13097_s9 + $0x168] sm:$0xf]  ;;  %v19864_v50 = vrot.slane %v14776_v17, 1  ;;  %v19865_v3 = vrot.slane %v14711_v28, 1  ;;  %1389 = vrot.lane.b32.xlu1 %v14965_v8, %s13004_s12  ;;  %v19867_v26 = vrot.slane %v14765_v34, 1  ;;  %2523 = vrot.lane.b32.xlu0 %v14564_v1, %s13004_s12 }
 0x168   : > { %v2889_v39 = vor.u32 %v19863_v61, %v14801_v59  ;;  %v3658_v59 = vsel %vm3317_vm4, %v3569_v6, %v2990_v47  ;;  %v19868_v45 = vrot.slane %v14675_v63, 1  ;;  %v19869_v17 = vshrl.u32 %v14852_v60, 16  ;;  %v11221_v5 = vld [vmem:[%s13097_s9 + $0x140] sm:$0xf]  ;;  %19871 = vst [vmem:[#allocation31_spill] sm:$0xff] %v15108_v33 }
 0x169   : > { %v15076_v20 = vsel %vm1244_vm0, %v19865_v3, %v19864_v50  ;;  %v15095_v46 = vcombine.low %v261_v7, %v15052_v29  ;;  %4126 = vmatprep.mubr.bf16.mxu0 %v3658_v59  ;;  %v15102_v34 = vsel %vm757_vm1, %v1919_v52, %v14857_v32  ;;  %v1927_v63 = vor.u32 %v1925_v42, %v14857_v32  ;;  %v19872_v7 = vld [vmem:[#allocation20_spill] sm:$0xff]  ;;  %v1155_v6 = vpop.permute.xlu1 %1154  ;;  %v2254_v42 = vpop.permute.xlu0 %2253 }
 0x16a   : > { %v15089_v19 = vsel %vm1244_vm0, %v19868_v45, %v19867_v26  ;;  %v1064_v55 = vor.u32 %v1063_v37, %v19869_v17  ;;  %v1938_v8 = vrot.slane %v1936_v25, 1  ;;  %v15106_v37 = vld [vmem:[%s13097_s9 + $0x164] ss:$0 sps:$4 sm:$0x11]   ;;  %v11589_v61 = vcombine.low %v11373_v56, %v19872_v7  ;;  %4127 = vmatmul.mubr.bf16.gmra.mrb[68].mxu0 %v3370_v43  ;;  %v15117_v50 = vld [vmem:[%s13097_s9 + $0xf8] sm:$0xff]   ;;  %v15120_v25 = vpop.f32.mrb[13].mxu1 }
 0x16b   : > { %19870 = vst [vmem:[#allocation30_spill] sm:$0xff] %v15095_v46  ;;  %v15113_v1 = vsel %vm757_vm1, %v2889_v39, %v14860_v11  ;;  %v2901_v47 = vor.u32 %v2900_v0, %v2896_v49  ;;  %v1072_v52 = vor.u32 %v1070_v62, %v14993_v54  ;;  %v1941_v32 = vshll.u32 %v15117_v50, 16  ;;  %19873 = vst [vmem:[#allocation20_spill] sm:$0xff] %v15120_v25  ;;  %v15124_v59 = vld [vmem:[%s13097_s9 + $0x158] sm:$0xf]  ;;  %v12223_v49 = vpop.f32.mrb[14].mxu1 }
 0x16c   : > { %v11267_v43 = vld [vmem:[%s13097_s9 + $0x154] sm:$0xe]  ;;  %v15128_v11 = vcombine.low %v11333_v51, %v15079_v40  ;;  %v3151_v0 = vrot.slane %v11589_v61, 1  ;;  %v3152_v62 = vrot.slane %v14731_v38, 1  ;;  %1641 = vrot.lane.b32.xlu1 %v14539_v18, %s13006_s22  ;;  %v15135_v39 = vsel %vm757_vm1, %v1064_v55, %v14993_v54  ;;  %v15144_v17 = vld [vmem:[%s13097_s9 + $0x148] sm:$0xff]   ;;  %v15147_v56 = vpop.f32.mrb[15].mxu1  ;;  %3009 = vrot.lane.b32.xlu0 %v14976_v27, %s13006_s22 }
 0x16d   : > { %v19875_v26 = vrot.slane %v14934_v14, 1  ;;  %v1081_v51 = vshll.u32 %v15095_v46, 16  ;;  %19876 = vst [vmem:[#allocation33_spill] sm:$0xff] %v15147_v56  ;;  %v19877_v7 = vld [vmem:[#allocation25_spill] sm:$0xff]  ;;  %v19878_v18 = vrot.slane %v14867_v24, 1  ;;  %v15163_v55 = vcombine.low %v11221_v5, %v14880_v4 }
 0x16e   : > { %19874 = vst [vmem:[#allocation32_spill] sm:$0xff] %v15128_v11  ;;  %v3154_v61 = vrot.slane %v19877_v7, 1  ;;  %v303_v49 = vld [vmem:[%s13097_s9 + $0x140] sm:$0xe]  ;;  %v1372_v7 = vpop.permute.xlu1 %1371  ;;  %v15169_v27 = vsel %vm757_vm1, %v2901_v47, %v15005_v15  ;;  %v15173_v3 = vsel %vm757_vm1, %v1072_v52, %v15008_v23  ;;  %v4720_v4 = vld [vmem:[#allocation2 + $0x78] sm:$0x1] }
 0x16f   : > { %v15141_v45 = vsel %vm1244_vm0, %v14989_v57, %v19875_v26  ;;  %v15156_v54 = vsel %vm1244_vm0, %v14996_v2, %v19878_v18  ;;  %v15160_v57 = vsel %vm757_vm1, %v1927_v63, %v15001_v16  ;;  %19879 = vst [vmem:[#allocation25_spill] sm:$0xff] %v15163_v55  ;;  %v3153_v26 = vsel %vm1244_vm0, %v3151_v0, %v3152_v62  ;;  %v2506_v0 = vpop.permute.xlu0 %2505  ;;  %v15188_v52 = vld [vmem:[%s13097_s9 + $0x170] sm:$0xff]   ;;  %v15219_v56 = vld [vmem:[#allocation2 + $0x24] ss:$0 sps:$4 sm:$0x11]  }
 0x170   : > { %v19880_v2 = vrot.slane %v14954_v41, 1  ;;  %v19881_v16 = vrot.slane %v14934_v14, 1  ;;  %12264 = vmatprep.mubr.msk.bf16.mxu1 %vm3171_vm2, %v3153_v26  ;;  %v3155_v5 = vsel %vm1244_vm0, %v3152_v62, %v3154_v61  ;;  %v19882_v47 = vshrl.u32 %v19859_v30, 16  ;;  %1174 = vrot.lane.b32.xlu1 %v15025_v44, %s13005_s20  ;;  %v19884_v26 = vld [vmem:[#allocation7_spill] sm:$0xff] }
 0x171   : > { %v2911_v23 = vshll.u32 %v15106_v37, 16  ;;  %v2918_v41 = vshll.u32 %v15128_v11, 16  ;;  %12265 = vmatmul.mubr.msk.bf16.gmra.mrb[56].mxu1 %vm3171_vm2, %v3155_v5  ;;  %v1943_v62 = vrot.slane %v1941_v32, 1  ;;  %v1079_v30 = vshrl.u32 %v15095_v46, 16  ;;  %2273 = vrot.lane.b32.xlu0 %v15015_v21, %s13005_s20  ;;  %v15204_v5 = vld [vmem:[%s13097_s9 + $0x15c] sm:$0xff]   ;;  %19886 = vst [vmem:[#allocation7_spill] sm:$0xff] %v15219_v56 }
 0x172   : > { %v15180_v63 = vsel %vm1244_vm0, %v19881_v16, %v19880_v2  ;;  %v1939_v18 = vor.u32 %v1938_v8, %v19882_v47  ;;  %v4721_v2 = vsel %vm14118_vm8, 0, %v4720_v4  ;;  %v1086_v8 = vshll.u32 %v15144_v17, 16  ;;  %19885 = vst [vmem:[#allocation9_spill] sm:$0xff] %v15204_v5  ;;  %v15209_v47 = vld [vmem:[%s13097_s9 + $0x150] ss:$0 sps:$4 sm:$0x11]  }
 0x173   : > { %v11519_v61 = vcombine.low %v11267_v43, %v15124_v59  ;;  %4722 = vst [vmem:[#allocation2 + $0x78] sm:$0x1] %v4721_v2  ;;  %v3209_v16 = vsel %vm3171_vm2, %v19884_v26, %v1155_v6  ;;  %v1083_v4 = vrot.slane %v1081_v51, 1  ;;  %v11447_v44 = vcombine.low %v303_v49, %v15052_v29  ;;  %v1624_v2 = vpop.permute.xlu1 %1623  ;;  %v12853_v6 = vld [vmem:[%s13097_s9 + $0x100] ss:$0 sps:$4 sm:$0x11]   ;;  %v2992_v33 = vpop.permute.xlu0 %2991 }
 0x174   : > { %v1945_v32 = vshrl.u32 %v15117_v50, 16  ;;  %v3482_v46 = vsel %vm3171_vm2, %v14969_v31, %v2254_v42  ;;  %v3282_v43 = vsel %vm3244_vm3, %v3209_v16, %v1372_v7  ;;  %v1949_v26 = vshll.u32 %v12853_v6, 16  ;;  %v15221_v25 = vld [vmem:[#allocation2 + $0x24] ss:$0 sps:$4 sm:$0x11]   ;;  %1391 = vrot.lane.b32.xlu1 %v15031_v48, %s13004_s12 }
 0x175   : > { %v2916_v21 = vshrl.u32 %v15128_v11, 16  ;;  %v3571_v51 = vsel %vm3244_vm3, %v3482_v46, %v2506_v0  ;;  %v3373_v29 = vsel %vm3317_vm4, %v3282_v43, %v1624_v2  ;;  %v2920_v49 = vrot.slane %v2918_v41, 1  ;;  %19887 = vst [vmem:[#allocation34_spill] sm:$0xff] %v15221_v25  ;;  %v12618_v16 = vld [vmem:[%s13097_s9 + $0x164] ss:$0 sps:$4 sm:$0x11]   ;;  %2525 = vrot.lane.b32.xlu0 %v14714_v35, %s13004_s12 }
 0x176   : > { %v2923_v50 = vshll.u32 %v15188_v52, 16  ;;  %v3661_v31 = vsel %vm3317_vm4, %v3571_v51, %v2992_v33  ;;  %v19888_v42 = vshrl.u32 %v14907_v13, 16  ;;  %v2913_v46 = vrot.slane %v2911_v23, 1 }
 0x177   : > { %v2207_v0 = vrot.slane %v11519_v61, 1  ;;  %4133 = vmatprep.mubr.bf16.mxu0 %v3661_v31  ;;  %v2208_v41 = vrot.slane %v15204_v5, 1  ;;  %v1090_v43 = vshrl.u32 %v15144_v17, 16  ;;  %v1094_v2 = vshll.u32 %v15209_v47, 16  ;;  %v1157_v33 = vpop.permute.xlu1 %1156  ;;  %v2256_v51 = vpop.permute.xlu0 %2255 }
 0x178   : > { %v2909_v7 = vor.u32 %v19888_v42, %v15005_v15  ;;  %v6239_v48 = vshll.u32 %v15221_v25, 16  ;;  %4134 = vmatmul.mubr.bf16.gmra.mrb[72].mxu0 %v3373_v29  ;;  %v1084_v6 = vor.u32 %v1083_v4, %v1079_v30  ;;  %v1088_v15 = vrot.slane %v1086_v8, 1  ;;  %v15239_v5 = vpop.f32.mrb[16].mxu1  ;;  %1643 = vrot.lane.b32.xlu1 %v15046_v9, %s13006_s22 }
 0x179   : > { %v1325_v23 = vrot.slane %v11447_v44, 1  ;;  %v1947_v42 = vor.u32 %v1945_v32, %v1943_v62  ;;  %v1951_v35 = vrot.slane %v1949_v26, 1  ;;  %v2921_v31 = vor.u32 %v2920_v49, %v2916_v21  ;;  %19889 = vst [vmem:[#allocation35_spill] sm:$0xff] %v15239_v5  ;;  %v11225_v44 = vld [vmem:[%s13097_s9 + $0x154] sm:$0xf]  ;;  %v15257_v26 = vpop.f32.mrb[17].mxu1  ;;  %3011 = vrot.lane.b32.xlu0 %v15059_v58, %s13006_s22 }
 0x17a   : > { %v15237_v11 = vrot.slane %v2923_v50, 1  ;;  %v19890_v29 = vrot.slane %v14937_v36, 1  ;;  %v19891_v40 = vrot.slane %v14867_v24, 1  ;;  %v15251_v8 = vsel %vm757_vm1, %v1939_v18, %v1943_v62  ;;  %19892 = vst [vmem:[#allocation36_spill] sm:$0xff] %v15257_v26  ;;  %v4000_v21 = vpop.f32.mrb[0].mxu0  ;;  %v12227_v62 = vpop.f32.mrb[18].mxu1 }
 0x17b   : > { %v15254_v4 = vsel %vm757_vm1, %v2909_v7, %v2913_v46  ;;  %v2210_v32 = vrot.slane %v12618_v16, 1  ;;  %v15262_v36 = vld [vmem:[%s19694_s3] ss:$0 sm:$0xff]  ;;  %v15267_v24 = vsel %vm1244_vm0, %v2207_v0, %v2208_v41  ;;  %v1096_v18 = vrot.slane %v1094_v2, 1  ;;  %v19893_v50 = vld [vmem:[#allocation23_spill] sm:$0xff]  ;;  %v4002_v46 = vpop.f32.mrb[1].mxu0  ;;  %v1374_v16 = vpop.permute.xlu1 %1373 }
 0x17c   : > { %v15248_v30 = vsel %vm1244_vm0, %v19891_v40, %v19890_v29  ;;  %v1092_v40 = vor.u32 %v1090_v43, %v1088_v15  ;;  %v4304_v7 = vadd.f32 %v19893_v50, %v4000_v21  ;;  %v15272_v29 = vsel %vm757_vm1, %v1084_v6, %v1088_v15  ;;  %v4003_v0 = vpop.f32.mrb[2].mxu0  ;;  %v2508_v43 = vpop.permute.xlu0 %2507  ;;  %v15293_v6 = vld [vmem:[%s13097_s9 + $0x178] ss:$0 sps:$4 sm:$0x11]   ;;  %v4783_v15 = vld [vmem:[#allocation2 + $0x80] sm:$0x2]  ;;  %1176 = vrot.lane.b32.xlu1 %v15069_v53, %s13005_s20 }
 0x17d   : > { %v15274_v61 = vrot.slane %v6239_v48, 1  ;;  %v19895_v2 = vrot.slane %v15144_v17, 1  ;;  %v15283_v21 = vsel %vm757_vm1, %v1947_v42, %v1951_v35  ;;  %v15286_v50 = vcombine.low %v11225_v44, %v15124_v59  ;;  %v19896_v58 = vld [vmem:[#allocation24_spill] sm:$0xff]  ;;  %v15302_v59 = vpop.f32.mrb[19].mxu1  ;;  %2275 = vrot.lane.b32.xlu0 %v15076_v20, %s13005_s20 }
 0x17e   : > { %v15290_v48 = vsel %vm757_vm1, %v2921_v31, %v15237_v11  ;;  %v4579_v46 = vadd.f32 %v15262_v36, %v4304_v7  ;;  %v4307_v49 = vadd.f32 %v19896_v58, %v4003_v0  ;;  %v15300_v42 = vsel %vm1244_vm0, %v2208_v41, %v2210_v32  ;;  %19898 = vst [vmem:[#allocation37_spill] sm:$0xff] %v15302_v59  ;;  %v12854_v31 = vld [vmem:[%s13097_s9 + $0xbc] sm:$0xff]   ;;  %v15315_v32 = vld [vmem:[#allocation2 + $0x38] ss:$0 sps:$4 sm:$0x11]  }
 0x17f   : > { %19894 = vst [vmem:[#allocation23_spill] sm:$0xff] %v15274_v61  ;;  %v15280_v62 = vsel %vm1244_vm0, %v1325_v23, %v19895_v2  ;;  %v4005_v23 = vpop.f32.mrb[3].mxu0  ;;  %19897 = vst [vmem:[#allocation24_spill] sm:$0xff] %v15300_v42  ;;  %v4784_v35 = vsel %vm14201_vm11, 0, %v4783_v15  ;;  %v3211_v44 = vsel %vm3171_vm2, %v12854_v31, %v1157_v33  ;;  %v15311_v7 = vsel %vm757_vm1, %v1092_v40, %v1096_v18  ;;  %v19899_v58 = vld [vmem:[#allocation21_spill] sm:$0xff] }
 0x180   : > { %v1328_v53 = vrot.slane %v15209_v47, 1  ;;  %v1956_v41 = vshll.u32 %v19899_v58, 16  ;;  %4785 = vst [vmem:[#allocation2 + $0x80] sm:$0x2] %v4784_v35  ;;  %v3485_v0 = vsel %vm3171_vm2, %v15043_v12, %v2256_v51  ;;  %v4633_v2 = vmax.f32 %v4579_v46, 0.0  ;;  %v1626_v23 = vpop.permute.xlu1 %1625  ;;  %v2994_v40 = vpop.permute.xlu0 %2993  ;;  %v15324_v47 = vld [vmem:[%s13097_s9 + $0x10c] sm:$0xff]   ;;  %1393 = vrot.lane.b32.xlu1 %v15089_v19, %s13004_s12 }
 0x181   : > { %v3284_v15 = vsel %vm3244_vm3, %v3211_v44, %v1374_v16  ;;  %v4580_v33 = vadd.f32 %v15262_v36, %v4307_v49  ;;  %v3573_v20 = vsel %vm3244_vm3, %v3485_v0, %v2508_v43  ;;  %v1961_v31 = vshll.u32 %v15324_v47, 16  ;;  %v15328_v61 = vld [vmem:[#allocation2 + $0x38] ss:$0 sps:$4 sm:$0x11]   ;;  %v4008_v43 = vpop.f32.mrb[4].mxu0  ;;  %2527 = vrot.lane.b32.xlu0 %v14731_v38, %s13004_s12 }
 0x182   : > { %v3376_v18 = vsel %vm3317_vm4, %v3284_v15, %v1626_v23  ;;  %v2931_v35 = vshll.u32 %v15293_v6, 16  ;;  %19900 = vst [vmem:[#allocation21_spill] sm:$0xff] %v15328_v61  ;;  %v12029_v12 = vpack.c.bf16 %v4633_v2, %v4633_v2  ;;  %v3664_v49 = vsel %vm3317_vm4, %v3573_v20, %v2994_v40  ;;  %v19903_v23 = vld [vmem:[#allocation22_spill] sm:$0xff]  ;;  %v4010_v20 = vpop.f32.mrb[5].mxu0 }
 0x183   : > { %v4634_v51 = vmax.f32 %v4580_v33, 0.0  ;;  %v1954_v16 = vshrl.u32 %v19899_v58, 16  ;;  %4141 = vmatprep.mubr.bf16.mxu0 %v3664_v49  ;;  %v19901_v46 = vrot.slane %v15144_v17, 1  ;;  %v1958_v0 = vrot.slane %v1956_v41, 1  ;;  %v11374_v49 = vld [vmem:[%s13097_s9 + $0x154] sm:$0xe] }
 0x184   : > { %v2927_v2 = vshrl.u32 %v15188_v52, 16  ;;  %v5008_v15 = vshrl.u32 %v12029_v12, 16  ;;  %v4312_v58 = vadd.f32 %v19903_v23, %v4008_v43  ;;  %4142 = vmatmul.mubr.bf16.gmra.mrb[76].mxu0 %v3376_v18  ;;  %v1159_v40 = vpop.permute.xlu1 %1158  ;;  %v5515_v17 = vld [vmem:[#allocation2 + $0x14] sm:$0xf]  ;;  %v2258_v41 = vpop.permute.xlu0 %2257  ;;  %v15348_v19 = vrot.slane %v2931_v35, 1  ;;  %v19904_v18 = vld [vmem:[#allocation29_spill] sm:$0xff]  ;;  %1645 = vrot.lane.b32.xlu1 %v14711_v28, %s13006_s22 }
 0x185   : > { %v15339_v44 = vsel %vm1244_vm0, %v19901_v46, %v1328_v53  ;;  %v12030_v33 = vpack.c.bf16 %v4634_v51, %v4634_v51  ;;  %v4011_v53 = vpop.f32.mrb[6].mxu0  ;;  %v15346_v46 = vrot.slane %v1961_v31, 1  ;;  %v265_v51 = vld [vmem:[%s13097_s9 + $0x154] sm:$0xf]  ;;  %v11590_v23 = vcombine.low %v11374_v49, %v19904_v18  ;;  %v15357_v31 = vld [vmem:[%s13097_s9 + $0x158] sm:$0xf]  ;;  %3013 = vrot.lane.b32.xlu0 %v15113_v1, %s13006_s22 }
 0x186   : > { %19902 = vst [vmem:[#allocation38_spill] sm:$0xff] %v15339_v44  ;;  %v5010_v20 = vrot.slane %v5008_v15, 7  ;;  %v5011_v38 = vshll.u32 %v12029_v12, 16  ;;  %v4581_v25 = vadd.f32 %v15262_v36, %v4312_v58  ;;  %v4012_v56 = vpop.f32.mrb[7].mxu0  ;;  %v15367_v15 = vor.u32 %v1958_v0, %v1954_v16  ;;  %v15376_v58 = vld [vmem:[%s13097_s9 + $0x168] sm:$0xe] }
 0x187   : > { %v5016_v5 = vshrl.u32 %v12030_v33, 16  ;;  %v15370_v12 = vor.u32 %v2927_v2, %v15237_v11  ;;  %v15373_v56 = vld [vmem:[%s13097_s9 + $0x16c] sm:$0xf]  ;;  %v3156_v28 = vrot.slane %v11590_v23, 1  ;;  %v3157_v49 = vrot.slane %v14907_v13, 1  ;;  %v15390_v23 = vpop.f32.mrb[20].mxu1 }
 0x188   : > { %v5013_v53 = vor.u32 %v5011_v38, %v5010_v20  ;;  %v5019_v43 = vshll.u32 %v12030_v33, 16  ;;  %v4635_v61 = vmax.f32 %v4581_v25, 0.0  ;;  %v1376_v1 = vpop.permute.xlu1 %1375  ;;  %v4723_v16 = vld [vmem:[#allocation2 + $0x8c] sm:$0x1]  ;;  %v2510_v0 = vpop.permute.xlu0 %2509  ;;  %v15388_v2 = vcombine.low %v265_v51, %v15357_v31  ;;  %19910 = vst [vmem:[#allocation29_spill] sm:$0xff] %v15390_v23  ;;  %1178 = vrot.lane.b32.xlu1 %v15135_v39, %s13005_s20  ;;  %v15415_v39 = vld [vmem:[%s13097_s9 + $0x15c] sm:$0xff]  }
 0x189   : > { %v15379_v18 = vrot.slane %v5016_v5, 7  ;;  %v4724_v5 = vsel %vm14118_vm8, 0, %v4723_v16  ;;  %v3158_v25 = vsel %vm1244_vm0, %v3156_v28, %v3157_v49  ;;  %v3159_v33 = vrot.slane %v15106_v37, 1  ;;  %v11337_v51 = vld [vmem:[%s13097_s9 + $0x17c] sm:$0xf]  ;;  %v15405_v9 = vpop.f32.mrb[21].mxu1  ;;  %2277 = vrot.lane.b32.xlu0 %v15141_v45, %s13005_s20 }
 0x18a   : > { %19909 = vst [vmem:[#allocation22_spill] sm:$0xff] %v15388_v2  ;;  %v5014_v38 = vrot.slane %v5010_v20, 4  ;;  %v5516_v59 = vsel %vm15361_vm5, %v5013_v53, %v5515_v17  ;;  %v12031_v44 = vpack.c.bf16 %v4635_v61, %v4635_v61  ;;  %v15403_v23 = vld [vmem:[%s13097_s9 + $0x180] sm:$0xf]  ;;  %19912 = vst [vmem:[#allocation40_spill] sm:$0xff] %v15405_v9  ;;  %12268 = vmatprep.mubr.msk.bf16.mxu1 %vm3171_vm2, %v3158_v25  ;;  %v19913_v37 = vld [vmem:[#allocation8_spill] sm:$0xff] }
 0x18b   : > { %v5021_v26 = vor.u32 %v5019_v43, %v15379_v18  ;;  %19911 = vst [vmem:[#allocation39_spill] sm:$0xff] %v15403_v23  ;;  %4725 = vst [vmem:[#allocation2 + $0x8c] sm:$0x1] %v4724_v5  ;;  %v3213_v20 = vsel %vm3171_vm2, %v19913_v37, %v1159_v40  ;;  %v3488_v17 = vsel %vm3171_vm2, %v15102_v34, %v2258_v41  ;;  %v4015_v61 = vpop.f32.mrb[8].mxu0  ;;  %v12231_v28 = vpop.f32.mrb[22].mxu1  ;;  %v19914_v34 = vld [vmem:[#allocation27_spill] sm:$0xff] }
 0x18c   : > { %5517 = vst [vmem:[#allocation2 + $0x14] sm:$0xf] %v5516_v59  ;;  %v11520_v43 = vcombine.low %v15376_v58, %v15373_v56  ;;  %v3160_v53 = vsel %vm1244_vm0, %v3157_v49, %v3159_v33  ;;  %v5025_v40 = vshrl.u32 %v12031_v44, 16  ;;  %v3286_v16 = vsel %vm3244_vm3, %v3213_v20, %v1376_v1  ;;  %v4017_v5 = vpop.f32.mrb[9].mxu0  ;;  %v1628_v25 = vpop.permute.xlu1 %1627  ;;  %v304_v45 = vld [vmem:[%s13097_s9 + $0x154] sm:$0xe]  ;;  %1395 = vrot.lane.b32.xlu1 %v15156_v54, %s13004_s12 }
 0x18d   : > { %v5022_v59 = vsel %vm15383_vm9, %v5014_v38, %v5021_v26  ;;  %v4319_v41 = vadd.f32 %v19914_v34, %v4015_v61  ;;  %12269 = vmatmul.mubr.msk.bf16.gmra.mrb[60].mxu1 %vm3171_vm2, %v3160_v53  ;;  %v5028_v58 = vshll.u32 %v12031_v44, 16  ;;  %v3575_v37 = vsel %vm3244_vm3, %v3488_v17, %v2510_v0  ;;  %v4018_v28 = vpop.f32.mrb[10].mxu0  ;;  %v2996_v49 = vpop.permute.xlu0 %2995  ;;  %v15430_v26 = vld [vmem:[%s13097_s9 + $0x170] sm:$0xff]   ;;  %v5522_v17 = vld [vmem:[#allocation2 + $0x1c] sm:$0x3]  ;;  %2529 = vrot.lane.b32.xlu0 %v14919_v22, %s13004_s12 }
 0x18e   : > { %5518 = vst.msk [vmem:[#allocation2 + $0x18] sm:$0xf] %vm4687_vm7, %v5022_v59  ;;  %v3379_v33 = vsel %vm3317_vm4, %v3286_v16, %v1628_v25  ;;  %v15433_v1 = vcombine.low %v11337_v51, %v15403_v23  ;;  %v5027_v38 = vrot.slane %v5025_v40, 7  ;;  %v19916_v61 = vld [vmem:[#allocation28_spill] sm:$0xff]  ;;  %v4020_v53 = vpop.f32.mrb[11].mxu0  ;;  %v3667_v44 = vsel %vm3317_vm4, %v3575_v37, %v2996_v49  ;;  %v15440_v0 = vpop.f32.mrb[23].mxu1 }
 0x18f   : > { %v4582_v20 = vadd.f32 %v15262_v36, %v4319_v41  ;;  %v4322_v34 = vadd.f32 %v19916_v61, %v4018_v28  ;;  %19917 = vst [vmem:[#allocation27_spill] sm:$0xff] %v15440_v0  ;;  %4148 = vmatprep.mubr.bf16.mxu0 %v3667_v44  ;;  %v15447_v51 = vsel %vm757_vm1, %v15367_v15, %v15346_v46  ;;  %v1101_v59 = vshll.u32 %v15388_v2, 16  ;;  %v15460_v37 = vld [vmem:[#allocation2 + $0x38] ss:$0 sps:$4 sm:$0x11]  }
 0x190   : > { %19915 = vst [vmem:[#allocation8_spill] sm:$0xff] %v15433_v1  ;;  %19918 = vst [vmem:[#allocation28_spill] sm:$0xff] %v15447_v51  ;;  %v1106_v40 = vshll.u32 %v15415_v39, 16  ;;  %v11448_v54 = vcombine.low %v304_v45, %v15357_v31  ;;  %v5023_v16 = vrot.slane %v15379_v18, 4  ;;  %v5030_v41 = vor.u32 %v5028_v58, %v5027_v38  ;;  %4149 = vmatmul.mubr.bf16.gmra.mrb[80].mxu0 %v3379_v33  ;;  %v1161_v25 = vpop.permute.xlu1 %1160  ;;  %v15467_v58 = vld [vmem:[%s13097_s9 + $0x184] sm:$0xff]  }
 0x191   : > { %v4636_v5 = vmax.f32 %v4582_v20, 0.0  ;;  %v4583_v15 = vadd.f32 %v15262_v36, %v4322_v34  ;;  %19921 = vst [vmem:[#allocation41_spill] sm:$0xff] %v15460_v37  ;;  %v2260_v28 = vpop.permute.xlu0 %2259  ;;  %v1099_v31 = vshrl.u32 %v15388_v2, 16  ;;  %v15463_v45 = vrot.slane %v11520_v43, 1  ;;  %1647 = vrot.lane.b32.xlu1 %v15163_v55, %s13006_s22  ;;  %3015 = vrot.lane.b32.xlu0 %v15169_v27, %s13006_s22  ;;  %v19923_v55 = vld [vmem:[#allocation26_spill] sm:$0xff] }
 0x192   : > { %v2938_v49 = vshll.u32 %v15433_v1, 16  ;;  %v5031_v38 = vsel %vm15383_vm9, %v5023_v16, %v5030_v41  ;;  %v1103_v34 = vrot.slane %v1101_v59, 1  ;;  %v15479_v53 = vrot.slane %v1106_v40, 1  ;;  %v12856_v44 = vld [vmem:[%s13097_s9 + $0x114] ss:$0 sps:$4 sm:$0x11]  }
 0x193   : > { %v12032_v20 = vpack.c.bf16 %v4636_v5, %v4636_v5  ;;  %v4637_v33 = vmax.f32 %v4583_v15, 0.0  ;;  %v5523_v43 = vsel %vm15455_vm6, %v5031_v38, %v5522_v17  ;;  %v1969_v18 = vshll.u32 %v12856_v44, 16  ;;  %v12655_v16 = vld [vmem:[%s19693_s2] sm:$0xff]   ;;  %v5525_v38 = vld [vmem:[#allocation2 + $0x28] sm:$0xf] }
 0x194   : > { %5524 = vst [vmem:[#allocation2 + $0x1c] sm:$0x3] %v5523_v43  ;;  %v1378_v15 = vpop.permute.xlu1 %1377  ;;  %v15485_v61 = vrot.slane %v11448_v54, 1  ;;  %v1965_v59 = vshrl.u32 %v15324_v47, 16  ;;  %v2936_v40 = vshrl.u32 %v15433_v1, 16  ;;  %v2940_v44 = vrot.slane %v2938_v49, 1  ;;  %9408 = vmatpush1.bf16.msra.mxu1 %v12655_v16 }
 0x195   : > { %v5033_v41 = vshrl.u32 %v12032_v20, 16  ;;  %v12033_v5 = vpack.c.bf16 %v4637_v33, %v4637_v33  ;;  %v2512_v27 = vpop.permute.xlu0 %2511  ;;  %v2943_v2 = vshll.u32 %v15467_v58, 16  ;;  %v5036_v0 = vshll.u32 %v12032_v20, 16  ;;  %v12857_v33 = vld [vmem:[%s13097_s9 + $0xd0] sm:$0xff]   ;;  %1180 = vrot.lane.b32.xlu1 %v15173_v3, %s13005_s20  ;;  %v4023_v1 = vpop.f32.mrb[12].mxu0  ;;  %2279 = vrot.lane.b32.xlu0 %v15180_v63, %s13005_s20  ;;  %v12656_v3 = vld [vmem:[%s19693_s2 + $0x8] sm:$0xff]  }
 0x196   : > { %v3215_v54 = vsel %vm3171_vm2, %v12857_v33, %v1161_v25  ;;  %v4786_v17 = vld [vmem:[#allocation2 + $0x94] sm:$0x2]  ;;  %v19922_v23 = vmov 0   ;;  %v3491_v47 = vsel %vm3171_vm2, %v15160_v57, %v2260_v28  ;;  %v1104_v20 = vor.u32 %v1103_v34, %v1099_v31  ;;  %v4025_v28 = vpop.f32.mrb[13].mxu0 }
 0x197   : > { %v5035_v43 = vrot.slane %v5033_v41, 7  ;;  %v5041_v9 = vshrl.u32 %v12033_v5, 16  ;;  %9409 = vmatprep.subr.bf16.mxu1 %v19922_v23  ;;  %v3288_v49 = vsel %vm3244_vm3, %v3215_v54, %v1378_v15  ;;  %v1971_v16 = vrot.slane %v1969_v18, 1  ;;  %v15502_v41 = vld [vmem:[%s13097_s9 + $0x164] ss:$0 sps:$4 sm:$0x11]  }
 0x198   : > { %v5044_v51 = vshll.u32 %v12033_v5, 16  ;;  %v4327_v57 = vadd.f32 %v19923_v55, %v4023_v1  ;;  %v1630_v15 = vpop.permute.xlu1 %1629  ;;  %v12627_v54 = vld [vmem:[%s13097_s9 + $0x178] ss:$0 sps:$4 sm:$0x11]   ;;  %v3577_v63 = vsel %vm3244_vm3, %v3491_v47, %v2512_v27  ;;  %v4026_v31 = vpop.f32.mrb[14].mxu0  ;;  %v15513_v42 = vrot.slane %v2943_v2, 1  ;;  %9410 = vmatpush1.bf16.msra.mxu1 %v12656_v3 }
 0x199   : > { %v5038_v25 = vor.u32 %v5036_v0, %v5035_v43  ;;  %v15507_v33 = vrot.slane %v5041_v9, 7  ;;  %v2998_v18 = vpop.permute.xlu0 %2997  ;;  %v3382_v34 = vsel %vm3317_vm4, %v3288_v49, %v1630_v15  ;;  %v4787_v0 = vsel %vm14201_vm11, 0, %v4786_v17  ;;  %v4027_v28 = vpop.f32.mrb[15].mxu0  ;;  %1397 = vrot.lane.b32.xlu1 %v15248_v30, %s13004_s12  ;;  %v11229_v27 = vld [vmem:[%s13097_s9 + $0x168] sm:$0xf]  ;;  %9411 = vmatprep.subr.bf16.mxu1 %v19922_v23 }
 0x19a   : > { %v5039_v9 = vrot.slane %v5035_v43, 4  ;;  %v4584_v5 = vadd.f32 %v15262_v36, %v4327_v57  ;;  %v15524_v47 = vpop.f32.mrb[24].mxu1  ;;  %4788 = vst [vmem:[#allocation2 + $0x94] sm:$0x2] %v4787_v0  ;;  %2531 = vrot.lane.b32.xlu0 %v14907_v13, %s13004_s12  ;;  %v3670_v2 = vsel %vm3317_vm4, %v3577_v63, %v2998_v18  ;;  %v2941_v17 = vor.u32 %v2940_v44, %v2936_v40  ;;  %v12658_v13 = vld [vmem:[%s19693_s2 + $0x10] sm:$0xff]  }
 0x19b   : > { %v5526_v55 = vsel %vm15361_vm5, %v5038_v25, %v5525_v38  ;;  %v5046_v1 = vor.u32 %v5044_v51, %v15507_v33  ;;  %19924 = vst [vmem:[#allocation26_spill] sm:$0xff] %v15524_v47  ;;  %v1967_v51 = vor.u32 %v1965_v59, %v15346_v46  ;;  %v1110_v38 = vshrl.u32 %v15415_v39, 16  ;;  %v15532_v43 = vpop.f32.mrb[25].mxu1  ;;  %4156 = vmatprep.mubr.bf16.mxu0 %v3670_v2  ;;  %v12913_v11 = vld [vmem:[#allocation2 + $0xd8] ss:$0 sps:$4 sm:$0x11]  }
 0x19c   : > { %5527 = vst [vmem:[#allocation2 + $0x28] sm:$0xf] %v5526_v55  ;;  %19925 = vst [vmem:[#allocation42_spill] sm:$0xff] %v15532_v43  ;;  %v4638_v49 = vmax.f32 %v4584_v5, 0.0  ;;  %v1163_v3 = vpop.permute.xlu1 %1162  ;;  %v1114_v25 = vshll.u32 %v15502_v41, 16  ;;  %v2215_v57 = vrot.slane %v12627_v54, 1  ;;  %4157 = vmatmul.mubr.bf16.gmra.mrb[84].mxu0 %v3382_v34  ;;  %v15544_v59 = vsel %vm757_vm1, %v15370_v12, %v15348_v19  ;;  %9412 = vmatpush1.bf16.msra.mxu1 %v12658_v13 }
 0x19d   : > { %v5047_v30 = vsel %vm15383_vm9, %v5039_v9, %v5046_v1  ;;  %v12235_v15 = vpop.f32.mrb[26].mxu1  ;;  %v2262_v46 = vpop.permute.xlu0 %2261  ;;  %v19926_v40 = vrot.slane %v15430_v26, 1  ;;  %v19927_v54 = vld [vmem:[#allocation16_spill] sm:$0xff]  ;;  %v19928_v31 = vshll.u32 %v15315_v32, 16  ;;  %1649 = vrot.lane.b32.xlu1 %v14934_v14, %s13006_s22  ;;  %v15563_v19 = vsel %vm757_vm1, %v1104_v20, %v15479_v53  ;;  %9413 = vmatprep.subr.bf16.mxu1 %v19922_v23 }
 0x19e   : > { %5528 = vst.msk [vmem:[#allocation2 + $0x2c] sm:$0xf] %vm4687_vm7, %v5047_v30  ;;  %v1976_v63 = vshll.u32 %v19927_v54, 16  ;;  %v15557_v0 = vpop.f32.mrb[27].mxu1  ;;  %v12034_v34 = vpack.c.bf16 %v4638_v49, %v4638_v49  ;;  %v19931_v12 = vrot.slane %v15415_v39, 1  ;;  %v19932_v9 = vshll.u32 %v15460_v37, 16  ;;  %3017 = vrot.lane.b32.xlu0 %v15254_v4, %s13006_s22 }
 0x19f   : > { %v15550_v44 = vsel %vm1244_vm0, %v15463_v45, %v19926_v40  ;;  %v15555_v18 = vrot.slane %v19928_v31, 1  ;;  %19930 = vst [vmem:[#allocation43_spill] sm:$0xff] %v15557_v0  ;;  %v15578_v14 = vsel %vm757_vm1, %v1967_v51, %v1971_v16  ;;  %v15581_v20 = vcombine.low %v11229_v27, %v15373_v56  ;;  %v12663_v4 = vld [vmem:[%s19693_s2 + $0x18] sm:$0xff]   ;;  %v4726_v30 = vld [vmem:[#allocation2 + $0xa0] sm:$0x1]  ;;  %v15630_v0 = vld [vmem:[#allocation2 + $0x8] sm:$0xff]  }
 0x1a0   : > { %v15569_v45 = vsel %vm1244_vm0, %v15485_v61, %v19931_v12  ;;  %v15573_v55 = vrot.slane %v19932_v9, 1  ;;  %v15585_v1 = vsel %vm757_vm1, %v2941_v17, %v15513_v42  ;;  %v15587_v61 = vld [vmem:[#allocation2 + $0x4] sm:$0xf]  ;;  %v5050_v16 = vshrl.u32 %v12034_v34, 16  ;;  %v1380_v28 = vpop.permute.xlu1 %1379  ;;  %v5644_v17 = vld [vmem:[#allocation2] sm:$0xf]  ;;  %9414 = vmatpush1.bf16.msra.mxu1 %v12663_v4 }
 0x1a1   : > { %19929 = vst [vmem:[#allocation16_spill] sm:$0xff] %v15555_v18  ;;  %v1112_v56 = vor.u32 %v1110_v38, %v15479_v53  ;;  %v1116_v27 = vrot.slane %v1114_v25, 1  ;;  %v19934_v2 = vmov %v19926_v40  ;;  %v2514_v49 = vpop.permute.xlu0 %2513  ;;  %v1333_v15 = vrot.slane %v15502_v41, 1  ;;  %1182 = vrot.lane.b32.xlu1 %v15272_v29, %s13005_s20  ;;  %v15607_v25 = vld [vmem:[%s13097_s9 + $0x120] sm:$0xff]   ;;  %v11375_v41 = vld [vmem:[%s13097_s9 + $0x168] sm:$0xe]  ;;  %9415 = vmatprep.subr.bf16.mxu1 %v19922_v23 }
 0x1a2   : > { %19933 = vst [vmem:[#allocation44_spill] sm:$0xff] %v15573_v55  ;;  %v15598_v51 = vsel %vm1244_vm0, %v19934_v2, %v2215_v57  ;;  %v1974_v13 = vshrl.u32 %v19927_v54, 16  ;;  %v1978_v40 = vrot.slane %v1976_v63, 1  ;;  %v4727_v31 = vsel %vm14118_vm8, 0, %v4726_v30  ;;  %v19935_v63 = vld [vmem:[#allocation10_spill] sm:$0xff]  ;;  %2281 = vrot.lane.b32.xlu0 %v15267_v24, %s13005_s20 }
 0x1a3   : > { %v5052_v53 = vrot.slane %v5050_v16, 7  ;;  %v5053_v38 = vshll.u32 %v12034_v34, 16  ;;  %v1981_v57 = vshll.u32 %v15607_v25, 16  ;;  %v2947_v12 = vshrl.u32 %v15467_v58, 16  ;;  %4728 = vst [vmem:[#allocation2 + $0xa0] sm:$0x1] %v4727_v31 }
 0x1a4   : > { %v5048_v54 = vrot.slane %v15507_v33, 4  ;;  %v3217_v9 = vsel %vm3171_vm2, %v19935_v63, %v1163_v3  ;;  %v3494_v34 = vsel %vm3171_vm2, %v15251_v8, %v2262_v46  ;;  %v4030_v16 = vpop.f32.mrb[16].mxu0  ;;  %v15620_v29 = vld [vmem:[%s13097_s9 + $0x18c] ss:$0 sps:$4 sm:$0x11]   ;;  %v15623_v2 = vcombine.low %v5644_v17, %v15587_v61  ;;  %v1632_v46 = vpop.permute.xlu1 %1631  ;;  %v19938_v17 = vld [vmem:[#allocation13_spill] sm:$0xff] }
 0x1a5   : > { %v5055_v4 = vor.u32 %v5053_v38, %v5052_v53  ;;  %v5529_v30 = vld [vmem:[#allocation2 + $0x30] sm:$0x3]  ;;  %v3290_v33 = vsel %vm3244_vm3, %v3217_v9, %v1380_v28  ;;  %v3579_v3 = vsel %vm3244_vm3, %v3494_v34, %v2514_v49  ;;  %v19937_v31 = vld [vmem:[#allocation6_spill] sm:$0xff]  ;;  %v4032_v8 = vpop.f32.mrb[17].mxu0  ;;  %v3000_v47 = vpop.permute.xlu0 %2999  ;;  %v11591_v43 = vcombine.low %v11375_v41, %v19938_v17  ;;  %1399 = vrot.lane.b32.xlu1 %v15280_v62, %s13004_s12 }
 0x1a6   : > { %19936 = vst [vmem:[#allocation10_spill] sm:$0xff] %v15623_v2  ;;  %v4334_v63 = vadd.f32 %v19937_v31, %v4030_v16  ;;  %v4033_v5 = vpop.f32.mrb[18].mxu0  ;;  %v3385_v24 = vsel %vm3317_vm4, %v3290_v33, %v1632_v46  ;;  %v3162_v55 = vrot.slane %v15188_v52, 1  ;;  %v3164_v53 = vrot.slane %v15293_v6, 1  ;;  %v12665_v28 = vld [vmem:[%s19693_s2 + $0x20] sm:$0xff]   ;;  %v19940_v31 = vld [vmem:[#allocation32_spill] sm:$0xff] }
 0x1a7   : > { %v5056_v49 = vsel %vm15383_vm9, %v5048_v54, %v5055_v4  ;;  %v19939_v9 = vld [vmem:[#allocation18_spill] sm:$0xff]  ;;  %v4035_v16 = vpop.f32.mrb[19].mxu0  ;;  %v3673_v41 = vsel %vm3317_vm4, %v3579_v3, %v3000_v47  ;;  %v5734_v33 = vld [vmem:[#allocation2] sm:$0xe]  ;;  %2533 = vrot.lane.b32.xlu0 %v19940_v31, %s13004_s12  ;;  %v15650_v54 = vsel %vm757_vm1, %v1112_v56, %v1116_v27  ;;  %v2951_v4 = vshll.u32 %v15620_v29, 16  ;;  %9416 = vmatpush1.bf16.msra.mxu1 %v12665_v28 }
 0x1a8   : > { %v4585_v38 = vadd.f32 %v15262_v36, %v4334_v63  ;;  %v4337_v34 = vadd.f32 %v19939_v9, %v4033_v5  ;;  %v5530_v6 = vsel %vm15455_vm6, %v5056_v49, %v5529_v30  ;;  %4163 = vmatprep.mubr.bf16.mxu0 %v3673_v41  ;;  %v6206_v5 = vshll.u32 %v15623_v2, 16  ;;  %v15654_v63 = vpop.f32.mrb[28].mxu1  ;;  %v1165_v3 = vpop.permute.xlu1 %1164  ;;  %v15664_v56 = vld [vmem:[#allocation2 + $0x4c] ss:$0 sps:$4 sm:$0x11]   ;;  %9417 = vmatprep.subr.bf16.mxu1 %v19922_v23 }
 0x1a9   : > { %19941 = vst [vmem:[#allocation6_spill] sm:$0xff] %v15654_v63  ;;  %5531 = vst [vmem:[#allocation2 + $0x30] sm:$0x3] %v5530_v6  ;;  %4164 = vmatmul.mubr.bf16.gmra.mrb[88].mxu0 %v3385_v24  ;;  %v19942_v30 = vrot.slane %v15415_v39, 1  ;;  %v15662_v46 = vor.u32 %v1978_v40, %v1974_v13  ;;  %v15666_v27 = vpop.f32.mrb[29].mxu1  ;;  %v12667_v17 = vld [vmem:[%s19693_s2 + $0x28] sm:$0xff]   ;;  %v2264_v49 = vpop.permute.xlu0 %2263  ;;  %v11756_v39 = vcombine.low %v5734_v33, %v15587_v61  ;;  %1651 = vrot.lane.b32.xlu1 %v15286_v50, %s13006_s22 }
 0x1aa   : > { %v4639_v62 = vmax.f32 %v4585_v38, 0.0  ;;  %v4586_v47 = vadd.f32 %v15262_v36, %v4337_v34  ;;  %19943 = vst [vmem:[#allocation13_spill] sm:$0xff] %v15666_v27  ;;  %v15671_v38 = vrot.slane %v1981_v57, 1  ;;  %v6211_v24 = vshll.u32 %v15630_v0, 16 }
 0x1ab   : > { %v15660_v8 = vsel %vm1244_vm0, %v19942_v30, %v1333_v15  ;;  %v12239_v15 = vpop.f32.mrb[30].mxu1  ;;  %v3161_v9 = vrot.slane %v11591_v43, 1  ;;  %v15679_v28 = vor.u32 %v2947_v12, %v15513_v42  ;;  %v3165_v57 = vsel %vm1244_vm0, %v3162_v55, %v3164_v53  ;;  %v15684_v16 = vld [vmem:[#allocation2 + $0x4c] ss:$0 sps:$4 sm:$0x11]   ;;  %3019 = vrot.lane.b32.xlu0 %v15290_v48, %s13006_s22  ;;  %9418 = vmatpush1.bf16.msra.mxu1 %v12667_v17  ;;  %v12860_v48 = vld [vmem:[%s13097_s9 + $0xe4] sm:$0xff]  }
 0x1ac   : > { %v12035_v13 = vpack.c.bf16 %v4639_v62, %v4639_v62  ;;  %v4640_v40 = vmax.f32 %v4586_v47, 0.0  ;;  %v15681_v34 = vpop.f32.mrb[31].mxu1  ;;  %v15688_v43 = vrot.slane %v2951_v4, 1  ;;  %v6204_v61 = vshrl.u32 %v15623_v2, 16  ;;  %v1382_v31 = vpop.permute.xlu1 %1381  ;;  %v12670_v4 = vld [vmem:[%s19693_s2 + $0x30] sm:$0xff]   ;;  %9419 = vmatprep.subr.bf16.mxu1 %v19922_v23 }
 0x1ad   : > { %19944 = vst [vmem:[#allocation18_spill] sm:$0xff] %v15681_v34  ;;  %v6208_v41 = vrot.slane %v6206_v5, 1  ;;  %v15691_v33 = vld [vmem:[#allocation2 + $0x10] ss:$0 sps:$4 sm:$0x11]   ;;  %v3163_v42 = vsel %vm1244_vm0, %v3161_v9, %v3162_v55  ;;  %v2516_v5 = vpop.permute.xlu0 %2515  ;;  %v15700_v62 = vrot.slane %v6211_v24, 1  ;;  %1184 = vrot.lane.b32.xlu1 %v15311_v7, %s13005_s20 }
 0x1ae   : > { %v5058_v12 = vshrl.u32 %v12035_v13, 16  ;;  %v12036_v6 = vpack.c.bf16 %v4640_v40, %v4640_v40  ;;  %12272 = vmatprep.mubr.msk.bf16.mxu1 %vm3171_vm2, %v3163_v42  ;;  %v15702_v47 = vrot.slane %v11756_v39, 1  ;;  %v1985_v55 = vshrl.u32 %v15607_v25, 16  ;;  %v12859_v30 = vld [vmem:[%s13097_s9 + $0x128] ss:$0 sps:$4 sm:$0x11]  }
 0x1af   : > { %v1989_v15 = vshll.u32 %v12859_v30, 16  ;;  %12273 = vmatmul.mubr.msk.bf16.gmra.mrb[64].mxu1 %vm3171_vm2, %v3165_v57  ;;  %v5061_v9 = vshll.u32 %v12035_v13, 16  ;;  %v5532_v40 = vld [vmem:[#allocation2 + $0x3c] sm:$0xf]  ;;  %v6215_v24 = vshrl.u32 %v15630_v0, 16  ;;  %v3219_v39 = vsel %vm3171_vm2, %v12860_v48, %v1165_v3  ;;  %v4038_v30 = vpop.f32.mrb[20].mxu0 }
 0x1b0   : > { %v5060_v17 = vrot.slane %v5058_v12, 7  ;;  %v5066_v42 = vshrl.u32 %v12036_v6, 16  ;;  %v3497_v25 = vsel %vm3171_vm2, %v15283_v21, %v2264_v49  ;;  %v19945_v57 = vld [vmem:[#allocation24_spill] sm:$0xff]  ;;  %v6209_v53 = vor.u32 %v6208_v41, %v6204_v61  ;;  %v4040_v27 = vpop.f32.mrb[21].mxu0  ;;  %v1634_v37 = vpop.permute.xlu1 %1633  ;;  %9420 = vmatpush1.bf16.msra.mxu1 %v12670_v4 }
 0x1b1   : > { %2283 = vrot.lane.b32.xlu0 %v19945_v57, %s13005_s20  ;;  %v6219_v13 = vshll.u32 %v15691_v33, 16  ;;  %v5069_v63 = vshll.u32 %v12036_v6, 16  ;;  %v19946_v7 = vld [vmem:[#allocation12_spill] sm:$0xff]  ;;  %v3292_v48 = vsel %vm3244_vm3, %v3219_v39, %v1382_v31  ;;  %v3581_v21 = vsel %vm3244_vm3, %v3497_v25, %v2516_v5  ;;  %v4041_v49 = vpop.f32.mrb[22].mxu0  ;;  %v3002_v18 = vpop.permute.xlu0 %3001  ;;  %v19947_v57 = vld [vmem:[#allocation17_spill] sm:$0xff]  ;;  %9421 = vmatprep.subr.bf16.mxu1 %v19922_v23  ;;  %v19948_v5 = vld [vmem:[#allocation38_spill] sm:$0xff] }
 0x1b2   : > { %v5063_v12 = vor.u32 %v5061_v9, %v5060_v17  ;;  %v15718_v2 = vrot.slane %v5066_v42, 7  ;;  %v4342_v34 = vadd.f32 %v19946_v7, %v4038_v30  ;;  %v5064_v3 = vrot.slane %v5060_v17, 4  ;;  %v12671_v41 = vld [vmem:[%s19693_s2 + $0x38] sm:$0xff]   ;;  %v4042_v31 = vpop.f32.mrb[23].mxu0  ;;  %1401 = vrot.lane.b32.xlu1 %v19948_v5, %s13004_s12 }
 0x1b3   : > { %v1996_v61 = vshll.u32 %v19947_v57, 16  ;;  %v3388_v17 = vsel %vm3317_vm4, %v3292_v48, %v1634_v37  ;;  %v15735_v9 = vld [vmem:[#allocation2 + $0x4c] ss:$0 sps:$4 sm:$0x11]   ;;  %v3676_v42 = vsel %vm3317_vm4, %v3581_v21, %v3002_v18  ;;  %v6217_v30 = vor.u32 %v6215_v24, %v15700_v62  ;;  %v15751_v7 = vld [vmem:[%s13097_s9 + $0x134] sm:$0xff]   ;;  %v19950_v21 = vld [vmem:[#allocation9_spill] sm:$0xff] }
 0x1b4   : > { %v5533_v27 = vsel %vm15361_vm5, %v5063_v12, %v5532_v40  ;;  %v5071_v6 = vor.u32 %v5069_v63, %v15718_v2  ;;  %v4587_v4 = vadd.f32 %v15262_v36, %v4342_v34  ;;  %v19738_v40 = vrot.slane %v15630_v0, 1  ;;  %4171 = vmatprep.mubr.bf16.mxu0 %v3676_v42  ;;  %v1167_v37 = vpop.permute.xlu1 %1166  ;;  %9422 = vmatpush1.bf16.msra.mxu1 %v12671_v41  ;;  %v15791_v5 = vld [vmem:[#allocation2 + $0x60] ss:$0 sps:$4 sm:$0x11]  }
 0x1b5   : > { %5534 = vst [vmem:[#allocation2 + $0x3c] sm:$0xf] %v5533_v27  ;;  %2535 = vrot.lane.b32.xlu0 %v15188_v52, %s13004_s12  ;;  %v1987_v63 = vor.u32 %v1985_v55, %v15671_v38  ;;  %v1991_v34 = vrot.slane %v1989_v15, 1  ;;  %v6221_v12 = vrot.slane %v6219_v13, 1  ;;  %v12673_v52 = vld [vmem:[%s19693_s2 + $0x40] sm:$0xff]   ;;  %4172 = vmatmul.mubr.bf16.gmra.mrb[92].mxu0 %v3388_v17  ;;  %v2266_v18 = vpop.permute.xlu0 %2265  ;;  %v1994_v55 = vshrl.u32 %v19947_v57, 16 }
 0x1b6   : > { %v5072_v39 = vsel %vm15383_vm9, %v5064_v3, %v5071_v6  ;;  %v4641_v25 = vmax.f32 %v4587_v4, 0.0  ;;  %v1998_v15 = vrot.slane %v1996_v61, 1  ;;  %v2001_v3 = vshll.u32 %v15751_v7, 16  ;;  %1653 = vrot.lane.b32.xlu1 %v19950_v21, %s13006_s22  ;;  %v4789_v57 = vld [vmem:[#allocation2 + $0xa8] sm:$0x2]  ;;  %9423 = vmatprep.subr.bf16.mxu1 %v19922_v23  ;;  %19952 = vst [vmem:[#allocation32_spill] sm:$0xff] %v15791_v5 }
 0x1b7   : > { %5535 = vst.msk [vmem:[#allocation2 + $0x40] sm:$0xf] %vm4687_vm7, %v5072_v39  ;;  %v19949_v48 = vshll.u32 %v15664_v56, 16  ;;  %v19951_v41 = vshll.u32 %v15684_v16, 16  ;;  %v15772_v56 = vsel %vm757_vm1, %v15662_v46, %v15671_v38  ;;  %v15777_v6 = vsel %vm757_vm1, %v15679_v28, %v15688_v43  ;;  %v19955_v21 = vld [vmem:[#allocation11_spill] sm:$0xff]  ;;  %v19958_v61 = vld [vmem:[#allocation20_spill] sm:$0xff] }
 0x1b8   : > { %v12037_v13 = vpack.c.bf16 %v4641_v25, %v4641_v25  ;;  %v15781_v4 = vsel %vm757_vm1, %v6209_v53, %v15700_v62  ;;  %v15787_v31 = vsel %vm1244_vm0, %v15702_v47, %v19738_v40  ;;  %v1384_v38 = vpop.permute.xlu1 %1383  ;;  %v15794_v17 = vsel %vm757_vm1, %v1987_v63, %v1991_v34  ;;  %9424 = vmatpush1.bf16.msra.mxu1 %v12673_v52  ;;  %v15800_v53 = vpop.f32.mrb[32].mxu1  ;;  %v4729_v62 = vld [vmem:[#allocation2 + $0xb4] sm:$0x1]  ;;  %v12678_v47 = vld [vmem:[%s19693_s2 + $0x48] sm:$0xff]  }
 0x1b9   : > { %v15756_v24 = vrot.slane %v19949_v48, 1  ;;  %v15763_v27 = vrot.slane %v19951_v41, 1  ;;  %3021 = vrot.lane.b32.xlu0 %v15544_v59, %s13006_s22  ;;  %v15789_v59 = vld [vmem:[#allocation2 + $0x60] ss:$0 sps:$4 sm:$0x11]   ;;  %v15797_v28 = vsel %vm757_vm1, %v6217_v30, %v6221_v12  ;;  %19953 = vst [vmem:[#allocation24_spill] sm:$0xff] %v15800_v53  ;;  %v2518_v42 = vpop.permute.xlu0 %2517  ;;  %v15805_v39 = vor.u32 %v1998_v15, %v1994_v55  ;;  %9425 = vmatprep.subr.bf16.mxu1 %v19922_v23 }
 0x1ba   : > { %v5075_v46 = vshrl.u32 %v12037_v13, 16  ;;  %v15807_v25 = vrot.slane %v2001_v3, 1  ;;  %v8095_v63 = vshll.u32 %v15789_v59, 16  ;;  %v4790_v34 = vsel %vm14201_vm11, 0, %v4789_v57  ;;  %v15812_v30 = vpop.f32.mrb[33].mxu1  ;;  %1186 = vrot.lane.b32.xlu1 %v15563_v19, %s13005_s20  ;;  %v4045_v57 = vpop.f32.mrb[24].mxu0 }
 0x1bb   : > { %19954 = vst [vmem:[#allocation12_spill] sm:$0xff] %v15812_v30  ;;  %v5078_v52 = vshll.u32 %v12037_v13, 16  ;;  %4791 = vst [vmem:[#allocation2 + $0xa8] sm:$0x2] %v4790_v34  ;;  %v4730_v55 = vsel %vm14118_vm8, 0, %v4729_v62  ;;  %v6299_v15 = vshll.u32 %v15791_v5, 16  ;;  %v3221_v41 = vsel %vm3171_vm2, %v19955_v21, %v1167_v37 }
 0x1bc   : > { %v5077_v12 = vrot.slane %v5075_v46, 7  ;;  %v5073_v3 = vrot.slane %v15718_v2, 4  ;;  %v5536_v48 = vld [vmem:[#allocation2 + $0x44] sm:$0x3]  ;;  %v2005_v13 = vshrl.u32 %v15751_v7, 16  ;;  %v19957_v62 = vld [vmem:[#allocation28_spill] sm:$0xff]  ;;  %v3294_v2 = vsel %vm3244_vm3, %v3221_v41, %v1384_v38  ;;  %v1636_v37 = vpop.permute.xlu1 %1635  ;;  %9426 = vmatpush1.bf16.msra.mxu1 %v12678_v47 }
 0x1bd   : > { %2285 = vrot.lane.b32.xlu0 %v15550_v44, %s13005_s20  ;;  %v19956_v19 = vld [vmem:[#allocation25_spill] sm:$0xff]  ;;  %4731 = vst [vmem:[#allocation2 + $0xb4] sm:$0x1] %v4730_v55  ;;  %v3500_v34 = vsel %vm3171_vm2, %v19957_v62, %v2266_v18  ;;  %v4349_v49 = vadd.f32 %v19958_v61, %v4045_v57  ;;  %v4047_v40 = vpop.f32.mrb[25].mxu0  ;;  %v3004_v53 = vpop.permute.xlu0 %3003  ;;  %v3391_v55 = vsel %vm3317_vm4, %v3294_v2, %v1636_v37 }
 0x1be   : > { %v2016_v59 = vshll.u32 %v19956_v19, 16  ;;  %v5080_v46 = vor.u32 %v5078_v52, %v5077_v12  ;;  %v15831_v21 = vld [vmem:[#allocation2 + $0x60] ss:$0 sps:$4 sm:$0x11]   ;;  %v11376_v44 = vld [vmem:[%s13097_s9 + $0x17c] sm:$0xe]  ;;  %v3583_v7 = vsel %vm3244_vm3, %v3500_v34, %v2518_v42  ;;  %9427 = vmatprep.subr.bf16.mxu1 %v19922_v23  ;;  %1403 = vrot.lane.b32.xlu1 %v15569_v45, %s13004_s12 }
 0x1bf   : > { %19959 = vst [vmem:[#allocation17_spill] sm:$0xff] %v15831_v21  ;;  %v4048_v43 = vpop.f32.mrb[26].mxu0  ;;  %v12862_v12 = vld [vmem:[%s13097_s9 + $0x13c] ss:$0 sps:$4 sm:$0x11]   ;;  %v2014_v18 = vshrl.u32 %v19956_v19, 16  ;;  %v4588_v38 = vadd.f32 %v15262_v36, %v4349_v49  ;;  %v3679_v57 = vsel %vm3317_vm4, %v3583_v7, %v3004_v53 }
 0x1c0   : > { %v2009_v52 = vshll.u32 %v12862_v12, 16  ;;  %v12680_v40 = vld [vmem:[%s19693_s2 + $0x50] sm:$0xff]   ;;  %v5081_v61 = vsel %vm15383_vm9, %v5073_v3, %v5080_v46  ;;  %v19960_v47 = vld [vmem:[#allocation33_spill] sm:$0xff]  ;;  %v4050_v41 = vpop.f32.mrb[27].mxu0  ;;  %v12243_v19 = vpop.f32.mrb[34].mxu1  ;;  %4178 = vmatprep.mubr.bf16.mxu0 %v3679_v57  ;;  %v2018_v2 = vrot.slane %v2016_v59, 1 }
 0x1c1   : > { %v4352_v42 = vadd.f32 %v19960_v47, %v4048_v43  ;;  %v5537_v62 = vsel %vm15455_vm6, %v5081_v61, %v5536_v48  ;;  %v19961_v34 = vld [vmem:[#allocation8_spill] sm:$0xff]  ;;  %v15854_v3 = vld [vmem:[%s13097_s9 + $0x148] sm:$0xff]   ;;  %v15857_v43 = vpop.f32.mrb[35].mxu1  ;;  %v4642_v45 = vmax.f32 %v4588_v38, 0.0  ;;  %4179 = vmatmul.mubr.bf16.gmra.mrb[96].mxu0 %v3391_v55  ;;  %v1169_v7 = vpop.permute.xlu1 %1168  ;;  %v19964_v48 = vrot.slane %v15691_v33, 1  ;;  %9428 = vmatpush1.bf16.msra.mxu1 %v12680_v40 }
 0x1c2   : > { %2537 = vrot.lane.b32.xlu0 %v19961_v34, %s13004_s12  ;;  %v2021_v49 = vshll.u32 %v15854_v3, 16  ;;  %19962 = vst [vmem:[#allocation38_spill] sm:$0xff] %v15857_v43  ;;  %v19963_v46 = vld [vmem:[#allocation39_spill] sm:$0xff]  ;;  %5538 = vst [vmem:[#allocation2 + $0x44] sm:$0x3] %v5537_v62  ;;  %v19965_v12 = vrot.slane %v15630_v0, 1  ;;  %v2268_v47 = vpop.permute.xlu0 %2267  ;;  %9429 = vmatprep.subr.bf16.mxu1 %v19922_v23  ;;  %v15899_v62 = vor.u32 %v2018_v2, %v2014_v18 }
 0x1c3   : > { %v11592_v37 = vcombine.low %v11376_v44, %v19963_v46  ;;  %v4589_v53 = vadd.f32 %v15262_v36, %v4352_v42  ;;  %v12682_v44 = vld [vmem:[%s19693_s2 + $0x58] sm:$0xff]   ;;  %v15872_v38 = vrot.slane %v8095_v63, 1  ;;  %v15875_v36 = vrot.slane %v6299_v15, 1  ;;  %v15878_v0 = vld [vmem:[#allocation2 + $0x24] ss:$0 sps:$4 sm:$0x11]   ;;  %1655 = vrot.lane.b32.xlu1 %v15581_v20, %s13006_s22 }
 0x1c4   : > { %v15866_v59 = vsel %vm1244_vm0, %v19965_v12, %v19964_v48  ;;  %v12038_v42 = vpack.c.bf16 %v4642_v45, %v4642_v45  ;;  %v15886_v63 = vsel %vm757_vm1, %v15805_v39, %v15807_v25  ;;  %v15888_v40 = vld [vmem:[#allocation2 + $0x18] sm:$0xf]  ;;  %v15891_v15 = vor.u32 %v2005_v13, %v15807_v25  ;;  %v15893_v57 = vld [vmem:[#allocation2 + $0x74] ss:$0 sps:$4 sm:$0x11]  }
 0x1c5   : > { %19966 = vst [vmem:[#allocation9_spill] sm:$0xff] %v15872_v38  ;;  %19967 = vst [vmem:[#allocation11_spill] sm:$0xff] %v15875_v36  ;;  %v4643_v41 = vmax.f32 %v4589_v53, 0.0  ;;  %v15897_v19 = vrot.slane %v2009_v52, 1  ;;  %v15901_v34 = vrot.slane %v2021_v49, 1  ;;  %v3166_v46 = vrot.slane %v11592_v37, 1  ;;  %v1386_v53 = vpop.permute.xlu1 %1385  ;;  %9430 = vmatpush1.bf16.msra.mxu1 %v12682_v44 }
 0x1c6   : > { %3023 = vrot.lane.b32.xlu0 %v15585_v1, %s13006_s22  ;;  %v5083_v39 = vshrl.u32 %v12038_v42, 16  ;;  %v5648_v48 = vld [vmem:[#allocation2 + $0x14] sm:$0xf]  ;;  %v3167_v13 = vrot.slane %v15467_v58, 1  ;;  %v12685_v1 = vld [vmem:[%s19693_s2 + $0x60] sm:$0xff]   ;;  %v2520_v18 = vpop.permute.xlu0 %2519  ;;  %v2025_v49 = vshrl.u32 %v15854_v3, 16  ;;  %9431 = vmatprep.subr.bf16.mxu1 %v19922_v23 }
 0x1c7   : > { %v12039_v45 = vpack.c.bf16 %v4643_v41, %v4643_v41  ;;  %v5539_v52 = vld [vmem:[#allocation2 + $0x50] sm:$0xf]  ;;  %v15909_v2 = vcombine.low %v5648_v48, %v15888_v40  ;;  %v3169_v41 = vrot.slane %v15620_v29, 1  ;;  %v5086_v61 = vshll.u32 %v12038_v42, 16  ;;  %v12866_v25 = vld [vmem:[%s13097_s9 + $0xf8] sm:$0xff]   ;;  %1188 = vrot.lane.b32.xlu1 %v15650_v54, %s13005_s20  ;;  %v15926_v3 = vld [vmem:[%s19693_s2 + $0x80] sm:$0xff]  }
 0x1c8   : > { %v12865_v37 = vld [vmem:[%s13097_s9 + $0x150] ss:$0 sps:$4 sm:$0x11]   ;;  %v5085_v33 = vrot.slane %v5083_v39, 7  ;;  %v3223_v55 = vsel %vm3171_vm2, %v12866_v25, %v1169_v7  ;;  %v15919_v43 = vld [vmem:[#allocation2 + $0x18] sm:$0xf]  ;;  %v3503_v29 = vsel %vm3171_vm2, %v15578_v14, %v2268_v47  ;;  %v3168_v54 = vsel %vm1244_vm0, %v3166_v46, %v3167_v13  ;;  %12280 = vmatprep.subr.bf16.mxu0 %v15926_v3 }
 0x1c9   : > { %19968 = vst [vmem:[#allocation25_spill] sm:$0xff] %v15909_v2  ;;  %v2029_v12 = vshll.u32 %v12865_v37, 16  ;;  %v5091_v44 = vshrl.u32 %v12039_v45, 16  ;;  %v15921_v48 = vld [vmem:[#allocation2 + $0x2c] sm:$0xf]  ;;  %v3296_v42 = vsel %vm3244_vm3, %v3223_v55, %v1386_v53  ;;  %v4053_v39 = vpop.f32.mrb[28].mxu0  ;;  %v3170_v7 = vsel %vm1244_vm0, %v3167_v13, %v3169_v41  ;;  %v1638_v14 = vpop.permute.xlu1 %1637  ;;  %12276 = vmatprep.mubr.msk.bf16.mxu1 %vm3171_vm2, %v3168_v54  ;;  %9432 = vmatpush1.bf16.msra.mxu1 %v12685_v1 }
 0x1ca   : > { %2287 = vrot.lane.b32.xlu0 %v15598_v51, %s13005_s20  ;;  %v15935_v25 = vld [vmem:[#allocation2 + $0x74] ss:$0 sps:$4 sm:$0x11]   ;;  %v5088_v37 = vor.u32 %v5086_v61, %v5085_v33  ;;  %v5094_v5 = vshll.u32 %v12039_v45, 16  ;;  %v4055_v38 = vpop.f32.mrb[29].mxu0  ;;  %v3585_v47 = vsel %vm3244_vm3, %v3503_v29, %v2520_v18  ;;  %v3006_v55 = vpop.permute.xlu0 %3005  ;;  %v3394_v46 = vsel %vm3317_vm4, %v3296_v42, %v1638_v14  ;;  %v15943_v53 = vld [vmem:[#allocation2 + $0x1c] sm:$0xff]   ;;  %12277 = vmatmul.mubr.msk.bf16.gmra.mrb[68].mxu1 %vm3171_vm2, %v3170_v7 }
 0x1cb   : > { %19969 = vst [vmem:[#allocation28_spill] sm:$0xff] %v15935_v25  ;;  %v15937_v30 = vrot.slane %v5091_v44, 7  ;;  %v19970_v36 = vld [vmem:[#allocation31_spill] sm:$0xff]  ;;  %v4056_v51 = vpop.f32.mrb[30].mxu0  ;;  %v2027_v61 = vor.u32 %v2025_v49, %v15901_v34  ;;  %v2031_v13 = vrot.slane %v2029_v12, 1  ;;  %9433 = vmatprep.subr.bf16.mxu1 %v19922_v23  ;;  %1405 = vrot.lane.b32.xlu1 %v15660_v8, %s13004_s12 }
 0x1cc   : > { %v4357_v21 = vadd.f32 %v19970_v36, %v4053_v39  ;;  %v12687_v38 = vld [vmem:[%s19693_s2 + $0x68] sm:$0xff]   ;;  %v5089_v36 = vrot.slane %v5085_v33, 4  ;;  %v5540_v45 = vsel %vm15361_vm5, %v5088_v37, %v5539_v52  ;;  %v15957_v18 = vld [vmem:[%s19694_s3] ss:$0 sm:$0xff]  ;;  %v4057_v12 = vpop.f32.mrb[31].mxu0  ;;  %12281 = vmatpush3.bf16.msra.mxu0 %v15926_v3  ;;  %v2036_v39 = vshll.u32 %v15286_v50, 16 }
 0x1cd   : > { %v5096_v1 = vor.u32 %v5094_v5, %v15937_v30  ;;  %v5842_v41 = vld [vmem:[#allocation2 + $0x14] sm:$0xe]  ;;  %v5861_v44 = vld [vmem:[#allocation2 + $0x28] sm:$0xf]  ;;  %5541 = vst [vmem:[#allocation2 + $0x50] sm:$0xf] %v5540_v45  ;;  %v3682_v5 = vsel %vm3317_vm4, %v3585_v47, %v3006_v55  ;;  %v1171_v42 = vpop.permute.xlu1 %1170  ;;  %9434 = vmatpush1.bf16.msra.mxu1 %v12687_v38  ;;  %v15986_v47 = vsel %vm757_vm1, %v15891_v15, %v15897_v19 }
 0x1ce   : > { %v4590_v49 = vadd.f32 %v15957_v18, %v4357_v21  ;;  %2539 = vrot.lane.b32.xlu0 %v15467_v58, %s13004_s12  ;;  %v11828_v33 = vcombine.low %v5842_v41, %v15919_v43  ;;  %v15968_v52 = vcombine.low %v5861_v44, %v15921_v48  ;;  %v6226_v21 = vshll.u32 %v15909_v2, 16  ;;  %4186 = vmatprep.mubr.bf16.mxu0 %v3682_v5  ;;  %v2270_v7 = vpop.permute.xlu0 %2269  ;;  %v15981_v14 = vld [vmem:[#allocation2 + $0x30] sm:$0xff]   ;;  %v5951_v55 = vld [vmem:[#allocation2 + $0x28] sm:$0xe]  ;;  %v4792_v45 = vld [vmem:[#allocation2 + $0xbc] sm:$0x2] }
 0x1cf   : > { %v5097_v8 = vsel %vm15383_vm9, %v5089_v36, %v5096_v1  ;;  %v19971_v58 = vshll.u32 %v15878_v0, 16  ;;  %4187 = vmatmul.mubr.bf16.gmra.mrb[100].mxu0 %v3394_v46  ;;  %v19741_v37 = vrot.slane %v15943_v53, 1  ;;  %v15991_v51 = vsel %vm757_vm1, %v15899_v62, %v15901_v34  ;;  %1657 = vrot.lane.b32.xlu1 %v15430_v26, %s13006_s22  ;;  %v15996_v46 = vld [vmem:[#allocation2 + $0x14] sm:$0xe]  ;;  %v16010_v1 = vld [vmem:[#allocation2 + $0x1c] sm:$0xff]   ;;  %v12689_v44 = vld [vmem:[%s19693_s2 + $0x88] sm:$0xff]  }
 0x1d0   : > { %v4644_v29 = vmax.f32 %v4590_v49, 0.0  ;;  %5542 = vst.msk [vmem:[#allocation2 + $0x54] sm:$0xf] %vm4687_vm7, %v5097_v8  ;;  %v15999_v36 = vsel %vm757_vm1, %v2027_v61, %v2031_v13  ;;  %v19972_v15 = vshll.u32 %v15893_v57, 16  ;;  %v11900_v62 = vcombine.low %v5951_v55, %v15921_v48  ;;  %9435 = vmatprep.subr.bf16.mxu1 %v19922_v23  ;;  %v16020_v41 = vld [vmem:[%s13097_s9 + $0x15c] sm:$0xff]   ;;  %v12690_v5 = vld [vmem:[%s19693_s2 + $0x70] sm:$0xff]   ;;  %12282 = vmatprep.subr.bf16.mxu0 %v12689_v44 }
 0x1d1   : > { %v15977_v54 = vrot.slane %v19971_v58, 1  ;;  %v7571_v34 = vrot.slane %v11828_v33, 1  ;;  %v8042_v26 = vshll.u32 %v15968_v52, 16  ;;  %v16012_v49 = vrot.slane %v6226_v21, 1  ;;  %v1388_v13 = vpop.permute.xlu1 %1387  ;;  %v16029_v33 = vpop.f32.mrb[36].mxu1  ;;  %v19975_v21 = vld [vmem:[#allocation14_spill] sm:$0xff]  ;;  %9436 = vmatpush1.bf16.msra.mxu1 %v12690_v5  ;;  %12283 = vmatpush3.bf16.msra.mxu0 %v12689_v44 }
 0x1d2   : > { %v12040_v38 = vpack.c.bf16 %v4644_v29, %v4644_v29  ;;  %v16003_v19 = vrot.slane %v19972_v15, 1  ;;  %3025 = vrot.lane.b32.xlu0 %v15777_v6, %s13006_s22  ;;  %v16017_v48 = vrot.slane %v2036_v39, 1  ;;  %19974 = vst [vmem:[#allocation33_spill] sm:$0xff] %v16029_v33  ;;  %v3225_v8 = vsel %vm3171_vm2, %v19975_v21, %v1171_v42  ;;  %v2522_v29 = vpop.permute.xlu0 %2521  ;;  %v16039_v15 = vpop.f32.mrb[37].mxu1  ;;  %9437 = vmatprep.subr.bf16.mxu1 %v19922_v23 }
 0x1d3   : > { %v7573_v39 = vsel %vm1244_vm0, %v7571_v34, %v19741_v37  ;;  %v8047_v58 = vshll.u32 %v15981_v14, 16  ;;  %v4793_v55 = vsel %vm14201_vm11, 0, %v4792_v45  ;;  %19976 = vst [vmem:[#allocation8_spill] sm:$0xff] %v16039_v15  ;;  %6563 = vrot.lane.b32.xlu1 %v15781_v4, %s13005_s20  ;;  %v8525_v61 = vrot.slane %v11900_v62, 1  ;;  %v4060_v37 = vpop.f32.mrb[32].mxu0  ;;  %v19977_v62 = vld [vmem:[#allocation36_spill] sm:$0xff] }
 0x1d4   : > { %19973 = vst [vmem:[#allocation20_spill] sm:$0xff] %v16003_v19  ;;  %v5100_v57 = vshrl.u32 %v12040_v38, 16  ;;  %v5103_v6 = vshll.u32 %v12040_v38, 16  ;;  %4794 = vst [vmem:[#allocation2 + $0xbc] sm:$0x2] %v4793_v55  ;;  %v3506_v34 = vsel %vm3171_vm2, %v15772_v56, %v2270_v7  ;;  %v3298_v21 = vsel %vm3244_vm3, %v3225_v8, %v1388_v13  ;;  %v4062_v42 = vpop.f32.mrb[33].mxu0 }
 0x1d5   : > { %v8044_v45 = vrot.slane %v8042_v26, 1  ;;  %v5098_v38 = vrot.slane %v15937_v30, 4  ;;  %v5543_v55 = vld [vmem:[#allocation2 + $0x58] sm:$0x3]  ;;  %v4364_v12 = vadd.f32 %v19977_v62, %v4060_v37  ;;  %v1640_v33 = vpop.permute.xlu1 %1639  ;;  %v19978_v15 = vrot.slane %v15981_v14, 1  ;;  %v4063_v26 = vpop.f32.mrb[34].mxu0 }
 0x1d6   : > { %v5102_v0 = vrot.slane %v5100_v57, 7  ;;  %7661 = vrot.lane.b32.xlu0 %v7573_v39, %s13005_s20  ;;  %v6231_v57 = vshll.u32 %v16010_v1, 16  ;;  %v3587_v7 = vsel %vm3244_vm3, %v3506_v34, %v2522_v29  ;;  %v3008_v13 = vpop.permute.xlu0 %3007  ;;  %v3397_v30 = vsel %vm3317_vm4, %v3298_v21, %v1640_v33  ;;  %v4065_v44 = vpop.f32.mrb[35].mxu0  ;;  %v5752_v29 = vld [vmem:[#allocation2 + $0x14] sm:$0xf] }
 0x1d7   : > { %v16054_v56 = vsel %vm1244_vm0, %v8525_v61, %v19978_v15  ;;  %v4591_v5 = vadd.f32 %v15957_v18, %v4364_v12  ;;  %v19980_v61 = vld [vmem:[#allocation37_spill] sm:$0xff]  ;;  %6779 = vrot.lane.b32.xlu1 %v15787_v31, %s13004_s12  ;;  %v3685_v23 = vsel %vm3317_vm4, %v3587_v7, %v3008_v13  ;;  %v12247_v39 = vpop.f32.mrb[38].mxu1  ;;  %v6224_v12 = vshrl.u32 %v15909_v2, 16  ;;  %v16078_v42 = vld [vmem:[#allocation2 + $0x2c] sm:$0xf]  ;;  %v16158_v2 = vld [vmem:[#allocation2 + $0x30] sm:$0xff]  }
 0x1d8   : > { %v5105_v4 = vor.u32 %v5103_v6, %v5102_v0  ;;  %19979 = vst [vmem:[#allocation39_spill] sm:$0xff] %v16054_v56  ;;  %v8040_v0 = vshrl.u32 %v15968_v52, 16  ;;  %v16060_v6 = vrot.slane %v8047_v58, 1  ;;  %v4367_v8 = vadd.f32 %v19980_v61, %v4063_v26  ;;  %4193 = vmatprep.mubr.bf16.mxu0 %v3685_v23  ;;  %v5652_v7 = vld [vmem:[#allocation2 + $0x28] sm:$0xf]  ;;  %v16110_v23 = vpop.f32.mrb[39].mxu1 }
 0x1d9   : > { %v16074_v58 = vcombine.low %v5752_v29, %v15919_v43  ;;  %v6695_v15 = vrot.slane %v16010_v1, 1  ;;  %v4645_v31 = vmax.f32 %v4591_v5, 0.0  ;;  %4194 = vmatmul.mubr.bf16.gmra.mrb[104].mxu0 %v3397_v30  ;;  %v1173_v21 = vpop.permute.xlu1 %1172  ;;  %v19981_v43 = vcombine.low %v15996_v46, %v15888_v40  ;;  %v4732_v46 = vld [vmem:[#allocation2 + $0xc8] sm:$0x1]  ;;  %19988 = vst [vmem:[#allocation14_spill] sm:$0xff] %v16110_v23  ;;  %v12695_v29 = vld [vmem:[%s19693_s2 + $0x78] sm:$0xff]  }
 0x1da   : > { %v5106_v37 = vsel %vm15383_vm9, %v5098_v38, %v5105_v4  ;;  %7913 = vrot.lane.b32.xlu0 %v15968_v52, %s13004_s12  ;;  %v4592_v34 = vadd.f32 %v15957_v18, %v4367_v8  ;;  %v8045_v38 = vor.u32 %v8044_v45, %v8040_v0  ;;  %v6233_v4 = vrot.slane %v6231_v57, 1  ;;  %9438 = vmatpush1.bf16.msra.mxu1 %v12695_v29 }
 0x1db   : > { %v5544_v33 = vsel %vm15455_vm6, %v5106_v37, %v5543_v55  ;;  %v2272_v55 = vpop.permute.xlu0 %2271  ;;  %v6229_v52 = vor.u32 %v16012_v49, %v6224_v12  ;;  %v6694_v62 = vrot.slane %v19981_v43, 1  ;;  %v19982_v26 = vshrl.u32 %v15286_v50, 16  ;;  %7031 = vrot.lane.b32.xlu1 %v16074_v58, %s13006_s22  ;;  %v19985_v50 = vld [vmem:[#allocation7_spill] sm:$0xff]  ;;  %12356 = vmatprep.subr.bf16.mxu1 %v15926_v3 }
 0x1dc   : > { %5545 = vst [vmem:[#allocation2 + $0x58] sm:$0x3] %v5544_v33  ;;  %v19983_v37 = vshll.u32 %v16020_v41, 16  ;;  %v12041_v30 = vpack.c.bf16 %v4645_v31, %v4645_v31  ;;  %v4646_v61 = vmax.f32 %v4592_v34, 0.0  ;;  %v8050_v49 = vsel %vm757_vm1, %v8045_v38, %v16060_v6  ;;  %v19989_v34 = vld [vmem:[#allocation34_spill] sm:$0xff] }
 0x1dd   : > { %v2039_v13 = vor.u32 %v16017_v48, %v19982_v26  ;;  %v16097_v40 = vcombine.low %v5652_v7, %v16078_v42  ;;  %v19986_v48 = vrot.slane %v19985_v50, 1  ;;  %v19987_v45 = vrot.slane %v15943_v53, 1  ;;  %v1390_v12 = vpop.permute.xlu1 %1389 }
 0x1de   : > { %v16090_v5 = vrot.slane %v19983_v37, 1  ;;  %8399 = vrot.lane.b32.xlu0 %v8050_v49, %s13006_s22  ;;  %v16106_v0 = vsel %vm1244_vm0, %v6694_v62, %v6695_v15  ;;  %v6235_v8 = vshrl.u32 %v16010_v1, 16  ;;  %v5108_v39 = vshrl.u32 %v12041_v30, 16  ;;  %v5546_v1 = vld [vmem:[#allocation2 + $0x64] sm:$0xf] }
 0x1df   : > { %19984 = vst [vmem:[#allocation31_spill] sm:$0xff] %v16097_v40  ;;  %v7575_v57 = vsel %vm1244_vm0, %v19987_v45, %v19986_v48  ;;  %v12042_v33 = vpack.c.bf16 %v4646_v61, %v4646_v61  ;;  %v16116_v31 = vsel %vm757_vm1, %v6229_v52, %v6233_v4  ;;  %v19990_v38 = vrot.slane %v19989_v34, 1  ;;  %v2524_v62 = vpop.permute.xlu0 %2523  ;;  %6565 = vrot.lane.b32.xlu1 %v15797_v28, %s13005_s20  ;;  %v5865_v48 = vld [vmem:[#allocation2 + $0x3c] sm:$0xf]  ;;  %v16136_v45 = vld [vmem:[#allocation2 + $0x40] sm:$0xf] }
 0x1e0   : > { %v8051_v7 = vshrl.u32 %v15981_v14, 16  ;;  %v16124_v26 = vor.u32 %v6235_v8, %v6233_v4  ;;  %v16128_v37 = vsel %vm757_vm1, %v2039_v13, %v16090_v5  ;;  %v4733_v52 = vsel %vm14118_vm8, 0, %v4732_v46  ;;  %v12869_v13 = vld [vmem:[%s13097_s9 + $0x10c] sm:$0xff]   ;;  %v4068_v8 = vpop.f32.mrb[36].mxu0 }
 0x1e1   : > { %v16121_v43 = vsel %vm1244_vm0, %v6695_v15, %v19990_v38  ;;  %v5110_v61 = vrot.slane %v5108_v39, 7  ;;  %v5111_v49 = vshll.u32 %v12041_v30, 16  ;;  %v5116_v50 = vshrl.u32 %v12042_v33, 16  ;;  %v16134_v15 = vld [vmem:[#allocation2 + $0x2c] sm:$0xf]  ;;  %v4070_v44 = vpop.f32.mrb[37].mxu0 }
 0x1e2   : > { %v6246_v4 = vshll.u32 %v16097_v40, 16  ;;  %4734 = vst [vmem:[#allocation2 + $0xc8] sm:$0x1] %v4733_v52  ;;  %v3227_v46 = vsel %vm3171_vm2, %v12869_v13, %v1173_v21  ;;  %v3509_v30 = vsel %vm3171_vm2, %v15794_v17, %v2272_v55  ;;  %7663 = vrot.lane.b32.xlu0 %v7575_v57, %s13005_s20  ;;  %v8053_v28 = vor.u32 %v8051_v7, %v16060_v6  ;;  %v19994_v21 = vld [vmem:[#allocation35_spill] sm:$0xff]  ;;  %v1642_v17 = vpop.permute.xlu1 %1641  ;;  %v4071_v7 = vpop.f32.mrb[38].mxu0 }
 0x1e3   : > { %v19991_v29 = vrot.slane %v15315_v32, 1  ;;  %v19992_v39 = vrot.slane %v15981_v14, 1  ;;  %v5113_v38 = vor.u32 %v5111_v49, %v5110_v61  ;;  %v16153_v3 = vrot.slane %v5116_v50, 7  ;;  %v3010_v32 = vpop.permute.xlu0 %3009  ;;  %v4072_v50 = vpop.f32.mrb[39].mxu0  ;;  %6781 = vrot.lane.b32.xlu1 %v15866_v59, %s13004_s12 }
 0x1e4   : > { %v5119_v52 = vshll.u32 %v12042_v33, 16  ;;  %v4372_v13 = vadd.f32 %v19994_v21, %v4068_v8  ;;  %v5114_v55 = vrot.slane %v5110_v61, 4  ;;  %v3300_v57 = vsel %vm3244_vm3, %v3227_v46, %v1390_v12  ;;  %v5736_v61 = vld [vmem:[#allocation2 + $0x28] sm:$0xe] }
 0x1e5   : > { %v16151_v34 = vsel %vm1244_vm0, %v19992_v39, %v19991_v29  ;;  %v3589_v6 = vsel %vm3244_vm3, %v3509_v30, %v2524_v62  ;;  %v16161_v29 = vcombine.low %v5865_v48, %v16136_v45  ;;  %v5547_v49 = vsel %vm15361_vm5, %v5113_v38, %v5546_v1  ;;  %v5843_v62 = vld [vmem:[#allocation2 + $0x28] sm:$0xe]  ;;  %v16177_v38 = vld [vmem:[#allocation2 + $0x30] sm:$0xff]   ;;  %v12870_v21 = vld [vmem:[%s13097_s9 + $0x164] ss:$0 sps:$4 sm:$0x11]  }
 0x1e6   : > { %19993 = vst [vmem:[#allocation36_spill] sm:$0xff] %v16151_v34  ;;  %v5121_v33 = vor.u32 %v5119_v52, %v16153_v3  ;;  %v4593_v44 = vadd.f32 %v15957_v18, %v4372_v13  ;;  %v3400_v12 = vsel %vm3317_vm4, %v3300_v57, %v1642_v17  ;;  %5548 = vst [vmem:[#allocation2 + $0x64] sm:$0xf] %v5547_v49  ;;  %7915 = vrot.lane.b32.xlu0 %v15981_v14, %s13004_s12  ;;  %v1175_v39 = vpop.permute.xlu1 %1174  ;;  %v5952_v14 = vld [vmem:[#allocation2 + $0x3c] sm:$0xe]  ;;  %v16183_v57 = vld [vmem:[#allocation2 + $0x44] sm:$0xff]  }
 0x1e7   : > { %v3688_v48 = vsel %vm3317_vm4, %v3589_v6, %v3010_v32  ;;  %v11829_v1 = vcombine.low %v5843_v62, %v16134_v15  ;;  %v6248_v46 = vrot.slane %v6246_v4, 1  ;;  %v11758_v30 = vcombine.low %v5736_v61, %v16078_v42  ;;  %v2274_v17 = vpop.permute.xlu0 %2273  ;;  %v5756_v42 = vld [vmem:[#allocation2 + $0x28] sm:$0xf]  ;;  %7033 = vrot.lane.b32.xlu1 %v15943_v53, %s13006_s22  ;;  %v19996_v49 = vld [vmem:[#allocation16_spill] sm:$0xff] }
 0x1e8   : > { %v5122_v8 = vsel %vm15383_vm9, %v5114_v55, %v5121_v33  ;;  %v4647_v59 = vmax.f32 %v4593_v44, 0.0  ;;  %4201 = vmatprep.mubr.bf16.mxu0 %v3688_v48  ;;  %v2045_v52 = vshrl.u32 %v16020_v41, 16  ;;  %v2049_v13 = vshll.u32 %v12870_v21, 16  ;;  %v19995_v55 = vld [vmem:[#allocation23_spill] sm:$0xff]  ;;  %v16214_v21 = vpop.f32.mrb[40].mxu1 }
 0x1e9   : > { %5549 = vst.msk [vmem:[#allocation2 + $0x68] sm:$0xf] %vm4687_vm7, %v5122_v8  ;;  %4202 = vmatmul.mubr.bf16.gmra.mrb[108].mxu0 %v3400_v12  ;;  %v19743_v4 = vrot.slane %v16158_v2, 1  ;;  %v16188_v6 = vsel %vm757_vm1, %v16124_v26, %v19995_v55  ;;  %v6244_v7 = vshrl.u32 %v16097_v40, 16  ;;  %v11901_v41 = vcombine.low %v5952_v14, %v16136_v45  ;;  %19998 = vst [vmem:[#allocation7_spill] sm:$0xff] %v16214_v21  ;;  %v16220_v14 = vld [vmem:[#allocation2 + $0x58] sm:$0xff]  }
 0x1ea   : > { %v12043_v32 = vpack.c.bf16 %v4647_v59, %v4647_v59  ;;  %v8058_v33 = vsel %vm757_vm1, %v8053_v28, %v19996_v49  ;;  %v16197_v44 = vcombine.low %v5756_v42, %v16134_v15  ;;  %v8062_v50 = vshll.u32 %v16161_v29, 16  ;;  %v1392_v48 = vpop.permute.xlu1 %1391  ;;  %v16207_v59 = vld [vmem:[#allocation2 + $0x54] sm:$0xf]  ;;  %v4075_v40 = vpop.f32.mrb[40].mxu0 }
 0x1eb   : > { %8401 = vrot.lane.b32.xlu0 %v8058_v33, %s13006_s22  ;;  %v7576_v26 = vrot.slane %v11829_v1, 1  ;;  %v16201_v12 = vor.u32 %v6248_v46, %v6244_v7  ;;  %v16203_v62 = vrot.slane %v11758_v30, 1  ;;  %v6251_v8 = vshll.u32 %v16177_v38, 16  ;;  %v2526_v1 = vpop.permute.xlu0 %2525  ;;  %v16223_v7 = vpop.f32.mrb[41].mxu1  ;;  %6567 = vrot.lane.b32.xlu1 %v16116_v31, %s13005_s20  ;;  %v5953_v33 = vld [vmem:[#allocation2 + $0x50] sm:$0xe] }
 0x1ec   : > { %19997 = vst [vmem:[#allocation37_spill] sm:$0xff] %v16197_v44  ;;  %v5125_v61 = vshrl.u32 %v12043_v32, 16  ;;  %v16210_v15 = vor.u32 %v2045_v52, %v16090_v5  ;;  %v16212_v28 = vrot.slane %v2049_v13, 1  ;;  %v8067_v30 = vshll.u32 %v16183_v57, 16  ;;  %19999 = vst [vmem:[#allocation34_spill] sm:$0xff] %v16223_v7  ;;  %v20000_v45 = vld [vmem:[#allocation19_spill] sm:$0xff] }
 0x1ed   : > { %v7578_v46 = vsel %vm1244_vm0, %v7576_v26, %v19743_v4  ;;  %v8530_v42 = vrot.slane %v11901_v41, 1  ;;  %v19745_v55 = vrot.slane %v16183_v57, 1  ;;  %v5128_v52 = vshll.u32 %v12043_v32, 16  ;;  %v20002_v21 = vld [vmem:[#allocation40_spill] sm:$0xff] }
 0x1ee   : > { %v5127_v5 = vrot.slane %v5125_v61, 7  ;;  %v8060_v13 = vshrl.u32 %v16161_v29, 16  ;;  %v8064_v49 = vrot.slane %v8062_v50, 1  ;;  %v5123_v26 = vrot.slane %v16153_v3, 4  ;;  %v5550_v61 = vld [vmem:[#allocation2 + $0x6c] sm:$0x3] }
 0x1ef   : > { %v3229_v4 = vsel %vm3171_vm2, %v20000_v45, %v1175_v39  ;;  %7665 = vrot.lane.b32.xlu0 %v7578_v46, %s13005_s20  ;;  %v16235_v41 = vsel %vm1244_vm0, %v8530_v42, %v19745_v55  ;;  %v11902_v32 = vcombine.low %v5953_v33, %v16207_v59  ;;  %v3512_v50 = vsel %vm3171_vm2, %v15886_v63, %v2274_v17  ;;  %v4077_v39 = vpop.f32.mrb[41].mxu0  ;;  %v1644_v45 = vpop.permute.xlu1 %1643  ;;  %v20003_v17 = vld [vmem:[#allocation27_spill] sm:$0xff] }
 0x1f0   : > { %20001 = vst [vmem:[#allocation35_spill] sm:$0xff] %v16235_v41  ;;  %v5130_v31 = vor.u32 %v5128_v52, %v5127_v5  ;;  %v3302_v3 = vsel %vm3244_vm3, %v3229_v4, %v1392_v48  ;;  %v4379_v7 = vadd.f32 %v20002_v21, %v4075_v40  ;;  %v3591_v46 = vsel %vm3244_vm3, %v3512_v50, %v2526_v1  ;;  %v4078_v23 = vpop.f32.mrb[42].mxu0  ;;  %v3012_v34 = vpop.permute.xlu0 %3011  ;;  %v16254_v21 = vld [vmem:[#allocation2 + $0x40] sm:$0xf] }
 0x1f1   : > { %v3403_v42 = vsel %vm3317_vm4, %v3302_v3, %v1644_v45  ;;  %v16244_v55 = vrot.slane %v8067_v30, 1  ;;  %v19746_v5 = vrot.slane %v16220_v14, 1  ;;  %v4382_v4 = vadd.f32 %v20003_v17, %v4078_v23  ;;  %v4080_v40 = vpop.f32.mrb[43].mxu0  ;;  %6783 = vrot.lane.b32.xlu1 %v16106_v0, %s13004_s12  ;;  %v12251_v1 = vpop.f32.mrb[42].mxu1  ;;  %v5656_v3 = vld [vmem:[#allocation2 + $0x3c] sm:$0xf] }
 0x1f2   : > { %v5131_v52 = vsel %vm15383_vm9, %v5123_v26, %v5130_v31  ;;  %v4594_v63 = vadd.f32 %v15957_v18, %v4379_v7  ;;  %v3691_v48 = vsel %vm3317_vm4, %v3591_v46, %v3012_v34  ;;  %v6253_v7 = vrot.slane %v6251_v8, 1  ;;  %v16268_v8 = vld [vmem:[%s13097_s9 + $0x170] sm:$0xff]   ;;  %v20009_v1 = vld [vmem:[#allocation41_spill] sm:$0xff] }
 0x1f3   : > { %v5551_v30 = vsel %vm15455_vm6, %v5131_v52, %v5550_v61  ;;  %7917 = vrot.lane.b32.xlu0 %v16161_v29, %s13004_s12  ;;  %4208 = vmatprep.mubr.bf16.mxu0 %v3691_v48  ;;  %v6700_v23 = vrot.slane %v16177_v38, 1  ;;  %v8535_v33 = vrot.slane %v11902_v32, 1  ;;  %v4595_v0 = vadd.f32 %v15957_v18, %v4382_v4  ;;  %v1177_v34 = vpop.permute.xlu1 %1176  ;;  %v4795_v46 = vld [vmem:[#allocation2 + $0xd0] sm:$0x2]  ;;  %v16285_v4 = vld [vmem:[#allocation2 + $0x40] sm:$0xf] }
 0x1f4   : > { %5552 = vst [vmem:[#allocation2 + $0x6c] sm:$0x3] %v5551_v30  ;;  %v4648_v26 = vmax.f32 %v4594_v63, 0.0  ;;  %4209 = vmatmul.mubr.bf16.gmra.mrb[112].mxu0 %v3403_v42  ;;  %v8065_v31 = vor.u32 %v8064_v49, %v8060_v13  ;;  %v6255_v50 = vshrl.u32 %v16177_v38, 16  ;;  %v2276_v61 = vpop.permute.xlu0 %2275  ;;  %v16264_v39 = vcombine.low %v5656_v3, %v16254_v21  ;;  %v20006_v42 = vld [vmem:[#allocation21_spill] sm:$0xff]  ;;  %v4083_v41 = vpop.f32.mrb[44].mxu0 }
 0x1f5   : > { %v2056_v29 = vshll.u32 %v15581_v20, 16  ;;  %v2061_v32 = vshll.u32 %v16268_v8, 16  ;;  %v16274_v45 = vsel %vm1244_vm0, %v8535_v33, %v19746_v5  ;;  %v4649_v49 = vmax.f32 %v4595_v0, 0.0  ;;  %7035 = vrot.lane.b32.xlu1 %v16197_v44, %s13006_s22  ;;  %v4085_v19 = vpop.f32.mrb[45].mxu0 }
 0x1f6   : > { %20004 = vst [vmem:[#allocation23_spill] sm:$0xff] %v16264_v39  ;;  %20005 = vst [vmem:[#allocation16_spill] sm:$0xff] %v16274_v45  ;;  %v12044_v13 = vpack.c.bf16 %v4648_v26, %v4648_v26  ;;  %v8070_v38 = vsel %vm757_vm1, %v8065_v31, %v16244_v55  ;;  %v20007_v52 = vrot.slane %v20006_v42, 1  ;;  %v20008_v63 = vrot.slane %v16158_v2, 1  ;;  %v16301_v26 = vld [vmem:[#allocation2 + $0x44] sm:$0xff]   ;;  %v16308_v31 = vpop.f32.mrb[43].mxu1 }
 0x1f7   : > { %8403 = vrot.lane.b32.xlu0 %v8070_v38, %s13006_s22  ;;  %v16290_v40 = vsel %vm757_vm1, %v16201_v12, %v6253_v7  ;;  %v16294_v48 = vsel %vm1244_vm0, %v16203_v62, %v6700_v23  ;;  %v20010_v30 = vrot.slane %v20009_v1, 1  ;;  %v16306_v0 = vsel %vm757_vm1, %v16210_v15, %v16212_v28  ;;  %20012 = vst [vmem:[#allocation40_spill] sm:$0xff] %v16308_v31  ;;  %v1394_v38 = vpop.permute.xlu1 %1393  ;;  %v16310_v42 = vld [vmem:[#allocation2 + $0x3c] sm:$0xe] }
 0x1f8   : > { %v7580_v17 = vsel %vm1244_vm0, %v20008_v63, %v20007_v52  ;;  %20011 = vst [vmem:[#allocation19_spill] sm:$0xff] %v16306_v0  ;;  %v5133_v12 = vshrl.u32 %v12044_v13, 16  ;;  %v12045_v3 = vpack.c.bf16 %v4649_v49, %v4649_v49  ;;  %v6257_v62 = vor.u32 %v6255_v50, %v6253_v7  ;;  %v5553_v52 = vld [vmem:[#allocation2 + $0x78] sm:$0xf]  ;;  %v2528_v63 = vpop.permute.xlu0 %2527  ;;  %v5737_v50 = vld [vmem:[#allocation2 + $0x3c] sm:$0xe] }
 0x1f9   : > { %v16299_v33 = vsel %vm1244_vm0, %v6700_v23, %v20010_v30  ;;  %v4796_v23 = vsel %vm14201_vm11, 0, %v4795_v46  ;;  %v6266_v15 = vshll.u32 %v16264_v39, 16  ;;  %v2058_v28 = vrot.slane %v2056_v29, 1  ;;  %6569 = vrot.lane.b32.xlu1 %v16188_v6, %s13005_s20  ;;  %v12872_v46 = vld [vmem:[%s13097_s9 + $0x120] sm:$0xff]  }
 0x1fa   : > { %v16317_v30 = vrot.slane %v2061_v32, 1  ;;  %4797 = vst [vmem:[#allocation2 + $0xd0] sm:$0x2] %v4796_v23  ;;  %v5135_v49 = vrot.slane %v5133_v12, 7  ;;  %v5136_v5 = vshll.u32 %v12044_v13, 16  ;;  %v5141_v31 = vshrl.u32 %v12045_v3, 16 }
 0x1fb   : > { %v8071_v7 = vshrl.u32 %v16183_v57, 16  ;;  %v3231_v45 = vsel %vm3171_vm2, %v12872_v46, %v1177_v34  ;;  %v3515_v1 = vsel %vm3171_vm2, %v15986_v47, %v2276_v61  ;;  %7667 = vrot.lane.b32.xlu0 %v7580_v17, %s13005_s20  ;;  %v6271_v29 = vshll.u32 %v16301_v26, 16  ;;  %v20013_v23 = vld [vmem:[#allocation29_spill] sm:$0xff]  ;;  %v1646_v44 = vpop.permute.xlu1 %1645  ;;  %v4086_v61 = vpop.f32.mrb[46].mxu0 }
 0x1fc   : > { %v11759_v32 = vcombine.low %v5737_v50, %v16254_v21  ;;  %v5138_v13 = vor.u32 %v5136_v5, %v5135_v49  ;;  %v16329_v12 = vrot.slane %v5141_v31, 7  ;;  %v5144_v6 = vshll.u32 %v12045_v3, 16  ;;  %v3014_v46 = vpop.permute.xlu0 %3013  ;;  %v16335_v0 = vld [vmem:[#allocation2 + $0x44] sm:$0xff]   ;;  %v4087_v19 = vpop.f32.mrb[47].mxu0  ;;  %v5869_v31 = vld [vmem:[#allocation2 + $0x50] sm:$0xf] }
 0x1fd   : > { %v4387_v56 = vadd.f32 %v20013_v23, %v4083_v41  ;;  %v5139_v25 = vrot.slane %v5135_v49, 4  ;;  %v3304_v34 = vsel %vm3244_vm3, %v3231_v45, %v1394_v38  ;;  %v3593_v47 = vsel %vm3244_vm3, %v3515_v1, %v2528_v63  ;;  %6785 = vrot.lane.b32.xlu1 %v16121_v43, %s13004_s12  ;;  %v5760_v1 = vld [vmem:[#allocation2 + $0x3c] sm:$0xf] }
 0x1fe   : > { %v8073_v17 = vor.u32 %v8071_v7, %v16244_v55  ;;  %v5554_v5 = vsel %vm15361_vm5, %v5138_v13, %v5553_v52  ;;  %v5146_v21 = vor.u32 %v5144_v6, %v16329_v12  ;;  %v3406_v45 = vsel %vm3317_vm4, %v3304_v34, %v1646_v44  ;;  %v20015_v49 = vld [vmem:[#allocation44_spill] sm:$0xff] }
 0x1ff   : > { %v4596_v41 = vadd.f32 %v15957_v18, %v4387_v56  ;;  %5555 = vst [vmem:[#allocation2 + $0x78] sm:$0xf] %v5554_v5  ;;  %7919 = vrot.lane.b32.xlu0 %v16183_v57, %s13004_s12  ;;  %v3694_v55 = vsel %vm3317_vm4, %v3593_v47, %v3014_v46  ;;  %v16348_v3 = vcombine.low %v5869_v31, %v16207_v59  ;;  %v6268_v38 = vrot.slane %v6266_v15, 1  ;;  %v1179_v44 = vpop.permute.xlu1 %1178 }
 0x200   : > { %v20014_v56 = vshrl.u32 %v15581_v20, 16  ;;  %v5147_v43 = vsel %vm15383_vm9, %v5139_v25, %v5146_v21  ;;  %4216 = vmatprep.mubr.bf16.mxu0 %v3694_v55  ;;  %v16356_v7 = vsel %vm757_vm1, %v6257_v62, %v20015_v49  ;;  %v2065_v50 = vshrl.u32 %v16268_v8, 16  ;;  %v2278_v59 = vpop.permute.xlu0 %2277  ;;  %v4090_v49 = vpop.f32.mrb[48].mxu0 }
 0x201   : > { %v4650_v63 = vmax.f32 %v4596_v41, 0.0  ;;  %5556 = vst.msk [vmem:[#allocation2 + $0x7c] sm:$0xf] %vm4687_vm7, %v5147_v43  ;;  %4217 = vmatmul.mubr.bf16.gmra.mrb[116].mxu0 %v3406_v45  ;;  %v7582_v20 = vrot.slane %v16335_v0, 1  ;;  %v16362_v15 = vcombine.low %v5760_v1, %v16285_v4  ;;  %v6264_v25 = vshrl.u32 %v16264_v39, 16  ;;  %7037 = vrot.lane.b32.xlu1 %v16158_v2, %s13006_s22  ;;  %v20018_v1 = vld [vmem:[#allocation15_spill] sm:$0xff] }
 0x202   : > { %v2059_v52 = vor.u32 %v2058_v28, %v20014_v56  ;;  %v12873_v28 = vld [vmem:[%s13097_s9 + $0x178] ss:$0 sps:$4 sm:$0x11]   ;;  %v8078_v8 = vsel %vm757_vm1, %v8073_v17, %v15756_v24  ;;  %v20016_v62 = vcombine.low %v16310_v42, %v16285_v4  ;;  %v16373_v34 = vrot.slane %v6271_v29, 1  ;;  %v4735_v29 = vld [vmem:[#allocation2 + $0xdc] sm:$0x1] }
 0x203   : > { %v2069_v13 = vshll.u32 %v12873_v28, 16  ;;  %v12046_v6 = vpack.c.bf16 %v4650_v63, %v4650_v63  ;;  %8405 = vrot.lane.b32.xlu0 %v8078_v8, %s13006_s22  ;;  %v8082_v47 = vshll.u32 %v16348_v3, 16  ;;  %v16377_v61 = vor.u32 %v6268_v38, %v6264_v25  ;;  %v1396_v21 = vpop.permute.xlu1 %1395  ;;  %v5557_v63 = vld [vmem:[#allocation2 + $0x80] sm:$0x3] }
 0x204   : > { %v7581_v23 = vrot.slane %v20016_v62, 1  ;;  %v6704_v46 = vrot.slane %v11759_v32, 1  ;;  %v16381_v5 = vsel %vm757_vm1, %v2059_v52, %v16317_v30  ;;  %v6705_v24 = vrot.slane %v16301_v26, 1  ;;  %v2530_v17 = vpop.permute.xlu0 %2529  ;;  %v16399_v52 = vld [vmem:[#allocation2 + $0x54] sm:$0xf] }
 0x205   : > { %v5150_v2 = vshrl.u32 %v12046_v6, 16  ;;  %v6275_v4 = vshrl.u32 %v16301_v26, 16  ;;  %v16386_v42 = vor.u32 %v2065_v50, %v16317_v30  ;;  %v8087_v19 = vshll.u32 %v16220_v14, 16  ;;  %6571 = vrot.lane.b32.xlu1 %v16290_v40, %s13005_s20  ;;  %v5765_v62 = vld [vmem:[#allocation2 + $0x54] sm:$0xf] }
 0x206   : > { %v7583_v41 = vsel %vm1244_vm0, %v7581_v23, %v7582_v20  ;;  %v20017_v32 = vrot.slane %v15735_v9, 1  ;;  %v2071_v31 = vrot.slane %v2069_v13, 1  ;;  %v5153_v38 = vshll.u32 %v12046_v6, 16  ;;  %v20019_v13 = vld [vmem:[#allocation42_spill] sm:$0xff]  ;;  %v5660_v23 = vld [vmem:[#allocation2 + $0x50] sm:$0xf] }
 0x207   : > { %v5152_v55 = vrot.slane %v5150_v2, 7  ;;  %v8080_v30 = vshrl.u32 %v16348_v3, 16  ;;  %v6277_v56 = vor.u32 %v6275_v4, %v16373_v34  ;;  %v5148_v43 = vrot.slane %v16329_v12, 4  ;;  %7669 = vrot.lane.b32.xlu0 %v7583_v41, %s13005_s20  ;;  %v4092_v12 = vpop.f32.mrb[49].mxu0  ;;  %v1648_v8 = vpop.permute.xlu1 %1647 }
 0x208   : > { %v16393_v45 = vsel %vm1244_vm0, %v7582_v20, %v20017_v32  ;;  %v3233_v9 = vsel %vm3171_vm2, %v20018_v1, %v1179_v44  ;;  %v8084_v50 = vrot.slane %v8082_v47, 1  ;;  %v4736_v20 = vsel %vm14118_vm8, 0, %v4735_v29  ;;  %v4093_v2 = vpop.f32.mrb[50].mxu0  ;;  %v3016_v47 = vpop.permute.xlu0 %3015 }
 0x209   : > { %v5155_v40 = vor.u32 %v5153_v38, %v5152_v55  ;;  %v3518_v25 = vsel %vm3171_vm2, %v15991_v51, %v2278_v59  ;;  %v3306_v28 = vsel %vm3244_vm3, %v3233_v9, %v1396_v21  ;;  %v4394_v6 = vadd.f32 %v20019_v13, %v4090_v49  ;;  %4737 = vst [vmem:[#allocation2 + $0xdc] sm:$0x1] %v4736_v20  ;;  %v20021_v21 = vld [vmem:[#allocation43_spill] sm:$0xff]  ;;  %v4095_v55 = vpop.f32.mrb[51].mxu0  ;;  %v16425_v1 = vpop.f32.mrb[44].mxu1  ;;  %v16436_v49 = vld [vmem:[#allocation2 + $0x58] sm:$0xff]  }
 0x20a   : > { %v3595_v44 = vsel %vm3244_vm3, %v3518_v25, %v2530_v17  ;;  %v3409_v4 = vsel %vm3317_vm4, %v3306_v28, %v1648_v8  ;;  %v16413_v29 = vrot.slane %v8087_v19, 1  ;;  %v16416_v41 = vcombine.low %v5660_v23, %v16399_v52  ;;  %6787 = vrot.lane.b32.xlu1 %v16294_v48, %s13004_s12  ;;  %v5845_v38 = vld [vmem:[#allocation2 + $0x50] sm:$0xe]  ;;  %20022 = vst [vmem:[#allocation21_spill] sm:$0xff] %v16425_v1  ;;  %v16441_v28 = vpop.f32.mrb[45].mxu1 }
 0x20b   : > { %v5156_v51 = vsel %vm15383_vm9, %v5148_v43, %v5155_v40  ;;  %v4597_v59 = vadd.f32 %v15957_v18, %v4394_v6  ;;  %v4397_v32 = vadd.f32 %v20021_v21, %v4093_v2  ;;  %v3697_v17 = vsel %vm3317_vm4, %v3595_v44, %v3016_v47  ;;  %7921 = vrot.lane.b32.xlu0 %v16348_v3, %s13004_s12  ;;  %v16448_v6 = vld [vmem:[#allocation2 + $0x58] sm:$0xff]   ;;  %v5560_v21 = vld [vmem:[#allocation2 + $0x8c] sm:$0xf] }
 0x20c   : > { %20020 = vst [vmem:[#allocation27_spill] sm:$0xff] %v16416_v41  ;;  %v5558_v19 = vsel %vm15455_vm6, %v5156_v51, %v5557_v63  ;;  %4223 = vmatprep.mubr.bf16.mxu0 %v3697_v17  ;;  %v11831_v43 = vcombine.low %v5845_v38, %v5765_v62  ;;  %v16434_v9 = vsel %vm1244_vm0, %v6704_v46, %v6705_v24  ;;  %v7160_v48 = vshll.u32 %v16074_v58, 16  ;;  %v1181_v63 = vpop.permute.xlu1 %1180  ;;  %v2280_v13 = vpop.permute.xlu0 %2279  ;;  %v5738_v38 = vld [vmem:[#allocation2 + $0x50] sm:$0xe] }
 0x20d   : > { %5559 = vst [vmem:[#allocation2 + $0x80] sm:$0x3] %v5558_v19  ;;  %v4651_v20 = vmax.f32 %v4597_v59, 0.0  ;;  %v4598_v40 = vadd.f32 %v15957_v18, %v4397_v32  ;;  %4224 = vmatmul.mubr.bf16.gmra.mrb[120].mxu0 %v3409_v4  ;;  %v8085_v25 = vor.u32 %v8084_v50, %v8080_v30  ;;  %v7165_v3 = vshll.u32 %v15943_v53, 16  ;;  %20023 = vst [vmem:[#allocation41_spill] sm:$0xff] %v16441_v28  ;;  %v12255_v50 = vpop.f32.mrb[46].mxu1 }
 0x20e   : > { %v16446_v46 = vsel %vm757_vm1, %v16377_v61, %v16373_v34  ;;  %v20024_v12 = vrot.slane %v15684_v16, 1  ;;  %v6286_v30 = vshll.u32 %v16416_v41, 16  ;;  %v16460_v53 = vsel %vm757_vm1, %v16386_v42, %v2071_v31  ;;  %7039 = vrot.lane.b32.xlu1 %v16362_v15, %s13006_s22  ;;  %v5764_v34 = vld [vmem:[#allocation2 + $0x50] sm:$0xf]  ;;  %v16478_v47 = vpop.f32.mrb[47].mxu1 }
 0x20f   : > { %v12047_v23 = vpack.c.bf16 %v4651_v20, %v4651_v20  ;;  %v4652_v44 = vmax.f32 %v4598_v40, 0.0  ;;  %v8090_v16 = vsel %vm757_vm1, %v8085_v25, %v16413_v29  ;;  %v16468_v26 = vsel %vm757_vm1, %v6277_v56, %v15763_v27  ;;  %v16470_v61 = vld [vmem:[#allocation2 + $0x88] ss:$0 sps:$4 sm:$0x11]   ;;  %20026 = vst [vmem:[#allocation44_spill] sm:$0xff] %v16478_v47 }
 0x210   : > { %v16455_v8 = vsel %vm1244_vm0, %v6705_v24, %v20024_v12  ;;  %8407 = vrot.lane.b32.xlu0 %v8090_v16, %s13006_s22  ;;  %v16473_v24 = vrot.slane %v11831_v43, 1  ;;  %v16475_v42 = vcombine.low %v5764_v34, %v5765_v62  ;;  %v6291_v31 = vshll.u32 %v16436_v49, 16  ;;  %v1398_v59 = vpop.permute.xlu1 %1397  ;;  %v2532_v32 = vpop.permute.xlu0 %2531  ;;  %v16488_v40 = vld [vmem:[#allocation2 + $0x68] sm:$0xf] }
 0x211   : > { %v7162_v2 = vrot.slane %v7160_v48, 1  ;;  %v5158_v4 = vshrl.u32 %v12047_v23, 16  ;;  %v12048_v51 = vpack.c.bf16 %v4652_v44, %v4652_v44  ;;  %v6284_v27 = vshrl.u32 %v16416_v41, 16  ;;  %v20051_v47 = vld [vmem:[#allocation6_spill] sm:$0xff] }
 0x212   : > { %20025 = vst [vmem:[#allocation29_spill] sm:$0xff] %v16475_v42  ;;  %v16481_v56 = vrot.slane %v7165_v3, 1  ;;  %v8091_v55 = vshrl.u32 %v16220_v14, 16  ;;  %v6288_v17 = vrot.slane %v6286_v30, 1  ;;  %v8135_v19 = vshll.u32 %v16470_v61, 16  ;;  %6573 = vrot.lane.b32.xlu1 %v16356_v7, %s13005_s20  ;;  %v12874_v3 = vld [vmem:[%s13097_s9 + $0x134] sm:$0xff]  }
 0x213   : > { %v5160_v43 = vrot.slane %v5158_v4, 7  ;;  %v5161_v48 = vshll.u32 %v12047_v23, 16  ;;  %v5166_v20 = vshrl.u32 %v12048_v51, 16  ;;  %v6295_v25 = vshrl.u32 %v16436_v49, 16  ;;  %v4098_v30 = vpop.f32.mrb[52].mxu0  ;;  %v20027_v4 = vld [vmem:[#allocation26_spill] sm:$0xff] }
 0x214   : > { %v3235_v12 = vsel %vm3171_vm2, %v12874_v3, %v1181_v63  ;;  %v3521_v50 = vsel %vm3171_vm2, %v15999_v36, %v2280_v13  ;;  %7671 = vrot.lane.b32.xlu0 %v16393_v45, %s13005_s20  ;;  %v6293_v44 = vrot.slane %v6291_v31, 1  ;;  %v11760_v23 = vcombine.low %v5738_v38, %v16399_v52  ;;  %v4100_v41 = vpop.f32.mrb[53].mxu0  ;;  %v1650_v39 = vpop.permute.xlu1 %1649 }
 0x215   : > { %v5163_v16 = vor.u32 %v5161_v48, %v5160_v43  ;;  %v16498_v34 = vrot.slane %v5166_v20, 7  ;;  %v5169_v7 = vshll.u32 %v12048_v51, 16  ;;  %v4402_v62 = vadd.f32 %v20027_v4, %v4098_v30  ;;  %v4101_v13 = vpop.f32.mrb[54].mxu0  ;;  %v3018_v3 = vpop.permute.xlu0 %3017  ;;  %v16522_v20 = vld [vmem:[#allocation2 + $0x68] sm:$0xf] }
 0x216   : > { %v5164_v1 = vrot.slane %v5160_v43, 4  ;;  %v3308_v63 = vsel %vm3244_vm3, %v3235_v12, %v1398_v59  ;;  %v3597_v36 = vsel %vm3244_vm3, %v3521_v50, %v2532_v32  ;;  %v8093_v45 = vor.u32 %v8091_v55, %v16413_v29  ;;  %v4102_v38 = vpop.f32.mrb[55].mxu0  ;;  %6789 = vrot.lane.b32.xlu1 %v16299_v33, %s13004_s12  ;;  %v5873_v59 = vld [vmem:[#allocation2 + $0x64] sm:$0xf]  ;;  %v16525_v50 = vld [vmem:[#allocation2 + $0x6c] sm:$0xff]  }
 0x217   : > { %v5561_v52 = vsel %vm15361_vm5, %v5163_v16, %v5560_v21  ;;  %v5171_v31 = vor.u32 %v5169_v7, %v16498_v34  ;;  %v4599_v51 = vadd.f32 %v15957_v18, %v4402_v62  ;;  %v3412_v41 = vsel %vm3317_vm4, %v3308_v63, %v1650_v39  ;;  %v16548_v13 = vld [vmem:[#allocation2 + $0x74] ss:$0 sps:$4 sm:$0x11]  }
 0x218   : > { %5562 = vst [vmem:[#allocation2 + $0x8c] sm:$0xf] %v5561_v52  ;;  %7923 = vrot.lane.b32.xlu0 %v16220_v14, %s13004_s12  ;;  %v3700_v29 = vsel %vm3317_vm4, %v3597_v36, %v3018_v3  ;;  %v16515_v32 = vcombine.low %v5873_v59, %v16488_v40  ;;  %v6710_v21 = vrot.slane %v16436_v49, 1  ;;  %v20028_v18 = vshrl.u32 %v16074_v58, 16  ;;  %v1183_v39 = vpop.permute.xlu1 %1182  ;;  %v5664_v36 = vld [vmem:[#allocation2 + $0x64] sm:$0xf] }
 0x219   : > { %v5172_v33 = vsel %vm15383_vm9, %v5164_v1, %v5171_v31  ;;  %v4653_v62 = vmax.f32 %v4599_v51, 0.0  ;;  %4231 = vmatprep.mubr.bf16.mxu0 %v3700_v29  ;;  %v6709_v43 = vrot.slane %v11760_v23, 1  ;;  %v6297_v48 = vor.u32 %v6295_v25, %v6293_v44  ;;  %v2282_v12 = vpop.permute.xlu0 %2281  ;;  %v12875_v1 = vld [vmem:[#allocation2 + $0x4c] ss:$0 sps:$4 sm:$0x11]   ;;  %v20029_v25 = vld [vmem:[#allocation9_spill] sm:$0xff] }
 0x21a   : > { %v7163_v55 = vor.u32 %v7162_v2, %v20028_v18  ;;  %5563 = vst.msk [vmem:[#allocation2 + $0x90] sm:$0xf] %vm4687_vm7, %v5172_v33  ;;  %4232 = vmatmul.mubr.bf16.gmra.mrb[124].mxu0 %v3412_v41  ;;  %v6289_v49 = vor.u32 %v6288_v17, %v6284_v27  ;;  %v16531_v2 = vrot.slane %v8135_v19, 1  ;;  %v8533_v30 = vrot.slane %v12875_v1, 1  ;;  %7041 = vrot.lane.b32.xlu1 %v16335_v0, %s13006_s22  ;;  %v20031_v17 = vld [vmem:[#allocation17_spill] sm:$0xff]  ;;  %v20035_v59 = vld [vmem:[#allocation11_spill] sm:$0xff] }
 0x21b   : > { %v12049_v16 = vpack.c.bf16 %v4653_v62, %v4653_v62  ;;  %v8098_v23 = vsel %vm757_vm1, %v8093_v45, %v20029_v25  ;;  %v20030_v7 = vrot.slane %v16448_v6, 1  ;;  %v20032_v4 = vrot.slane %v20031_v17, 1  ;;  %v5769_v3 = vld [vmem:[#allocation2 + $0x68] sm:$0xf]  ;;  %v12876_v52 = vld [vmem:[#allocation2 + $0x1c] sm:$0xff]  }
 0x21c   : > { %v16529_v58 = vsel %vm757_vm1, %v7163_v55, %v16481_v56  ;;  %8409 = vrot.lane.b32.xlu0 %v8098_v23, %s13006_s22  ;;  %v8102_v0 = vshll.u32 %v16515_v32, 16  ;;  %v16553_v45 = vsel %vm1244_vm0, %v6709_v43, %v6710_v21  ;;  %v7169_v31 = vshrl.u32 %v12876_v52, 16  ;;  %v1400_v38 = vpop.permute.xlu1 %1399  ;;  %v20036_v18 = vld [vmem:[#allocation32_spill] sm:$0xff]  ;;  %v5846_v1 = vld [vmem:[#allocation2 + $0x64] sm:$0xe] }
 0x21d   : > { %v7588_v27 = vsel %vm1244_vm0, %v16473_v24, %v20030_v7  ;;  %v20033_v63 = vmov %v20030_v7  ;;  %v16556_v24 = vcombine.low %v5664_v36, %v16522_v20  ;;  %v5175_v51 = vshrl.u32 %v12049_v16, 16  ;;  %v2534_v62 = vpop.permute.xlu0 %2533  ;;  %v4105_v36 = vpop.f32.mrb[56].mxu0 }
 0x21e   : > { %v16546_v19 = vsel %vm1244_vm0, %v20033_v63, %v20032_v4  ;;  %v16559_v41 = vsel %vm757_vm1, %v6289_v49, %v6293_v44  ;;  %v16563_v29 = vsel %vm757_vm1, %v6297_v48, %v20035_v59  ;;  %v20037_v55 = vrot.slane %v20036_v18, 1  ;;  %v16578_v48 = vpop.f32.mrb[48].mxu1  ;;  %6575 = vrot.lane.b32.xlu1 %v16446_v46, %s13005_s20  ;;  %v20042_v59 = vld [vmem:[#allocation13_spill] sm:$0xff] }
 0x21f   : > { %20034 = vst [vmem:[#allocation15_spill] sm:$0xff] %v16556_v24  ;;  %v8107_v43 = vshll.u32 %v16525_v50, 16  ;;  %v7171_v25 = vor.u32 %v7169_v31, %v16481_v56  ;;  %v20038_v23 = vrot.slane %v16183_v57, 1  ;;  %v6319_v49 = vshll.u32 %v16548_v13, 16  ;;  %20040 = vst [vmem:[#allocation43_spill] sm:$0xff] %v16578_v48  ;;  %v20041_v56 = vld [vmem:[#allocation30_spill] sm:$0xff] }
 0x220   : > { %v16568_v33 = vsel %vm1244_vm0, %v6710_v21, %v20037_v55  ;;  %v5177_v7 = vrot.slane %v5175_v51, 7  ;;  %v5178_v17 = vshll.u32 %v12049_v16, 16  ;;  %v8100_v21 = vshrl.u32 %v16515_v32, 16  ;;  %7673 = vrot.lane.b32.xlu0 %v7588_v27, %s13005_s20  ;;  %v5564_v51 = vld [vmem:[#allocation2 + $0x94] sm:$0x3]  ;;  %v4107_v55 = vpop.f32.mrb[57].mxu0 }
 0x221   : > { %v16575_v44 = vsel %vm1244_vm0, %v20038_v23, %v8533_v30  ;;  %v11832_v4 = vcombine.low %v5846_v1, %v5769_v3  ;;  %v5173_v63 = vrot.slane %v16498_v34, 4  ;;  %v3237_v57 = vsel %vm3171_vm2, %v20041_v56, %v1183_v39  ;;  %v1652_v34 = vpop.permute.xlu1 %1651  ;;  %v5739_v1 = vld [vmem:[#allocation2 + $0x64] sm:$0xe]  ;;  %v4108_v23 = vpop.f32.mrb[58].mxu0 }
 0x222   : > { %20039 = vst [vmem:[#allocation42_spill] sm:$0xff] %v16575_v44  ;;  %v8104_v30 = vrot.slane %v8102_v0, 1  ;;  %v6306_v52 = vshll.u32 %v16556_v24, 16  ;;  %v5180_v31 = vor.u32 %v5178_v17, %v5177_v7  ;;  %v3524_v16 = vsel %vm3171_vm2, %v16128_v37, %v2282_v12  ;;  %v3020_v56 = vpop.permute.xlu0 %3019  ;;  %v16600_v37 = vld [vmem:[%s19694_s3] ss:$0 sm:$0xff]  ;;  %6791 = vrot.lane.b32.xlu1 %v16434_v9, %s13004_s12  ;;  %v16623_v55 = vpop.f32.mrb[49].mxu1 }
 0x223   : > { %v3310_v46 = vsel %vm3244_vm3, %v3237_v57, %v1400_v38  ;;  %v4409_v18 = vadd.f32 %v20042_v59, %v4105_v36  ;;  %v3599_v39 = vsel %vm3244_vm3, %v3524_v16, %v2534_v62  ;;  %v8109_v0 = vrot.slane %v8107_v43, 1  ;;  %v20043_v38 = vld [vmem:[#allocation18_spill] sm:$0xff]  ;;  %v4110_v62 = vpop.f32.mrb[59].mxu0  ;;  %v4798_v16 = vld [vmem:[#allocation2 + $0xe4] sm:$0x2]  ;;  %20046 = vst [vmem:[#allocation17_spill] sm:$0xff] %v16623_v55 }
 0x224   : > { %v3415_v27 = vsel %vm3317_vm4, %v3310_v46, %v1652_v34  ;;  %v11761_v7 = vcombine.low %v5739_v1, %v16522_v20  ;;  %v5181_v17 = vsel %vm15383_vm9, %v5173_v63, %v5180_v31  ;;  %v4412_v57 = vadd.f32 %v20043_v38, %v4108_v23  ;;  %v16607_v36 = vld [vmem:[#allocation2 + $0x6c] sm:$0xff]   ;;  %v5768_v20 = vld [vmem:[#allocation2 + $0x64] sm:$0xf]  ;;  %7925 = vrot.lane.b32.xlu0 %v16515_v32, %s13004_s12 }
 0x225   : > { %v4600_v12 = vadd.f32 %v16600_v37, %v4409_v18  ;;  %v3703_v43 = vsel %vm3317_vm4, %v3599_v39, %v3020_v56  ;;  %v5565_v63 = vsel %vm15455_vm6, %v5181_v17, %v5564_v51  ;;  %v7591_v31 = vrot.slane %v11832_v4, 1  ;;  %v16615_v59 = vld [vmem:[#allocation2 + $0x6c] sm:$0xff]   ;;  %v16621_v18 = vld [vmem:[#allocation2 + $0x88] ss:$0 sps:$4 sm:$0x11]   ;;  %v1185_v32 = vpop.permute.xlu1 %1184 }
 0x226   : > { %4238 = vmatprep.mubr.bf16.mxu0 %v3703_v43  ;;  %v16613_v46 = vcombine.low %v5768_v20, %v5769_v3  ;;  %v16619_v9 = vsel %vm757_vm1, %v7171_v25, %v15977_v54  ;;  %5566 = vst [vmem:[#allocation2 + $0x94] sm:$0x3] %v5565_v63  ;;  %v4601_v51 = vadd.f32 %v16600_v37, %v4412_v57  ;;  %v6308_v4 = vrot.slane %v6306_v52, 1  ;;  %v12259_v3 = vpop.f32.mrb[50].mxu1  ;;  %v2284_v39 = vpop.permute.xlu0 %2283 }
 0x227   : > { %20045 = vst [vmem:[#allocation9_spill] sm:$0xff] %v16619_v9  ;;  %v4654_v34 = vmax.f32 %v4600_v12, 0.0  ;;  %4239 = vmatmul.mubr.bf16.gmra.mrb[128].mxu0 %v3415_v27  ;;  %v8105_v1 = vor.u32 %v8104_v30, %v8100_v21  ;;  %v6304_v23 = vshrl.u32 %v16556_v24, 16  ;;  %v16627_v56 = vrot.slane %v11761_v7, 1  ;;  %7043 = vrot.lane.b32.xlu1 %v16475_v42, %s13006_s22  ;;  %v16637_v30 = vld [vmem:[#allocation2 + $0x64] sm:$0xe] }
 0x228   : > { %20044 = vst [vmem:[#allocation26_spill] sm:$0xff] %v16613_v46  ;;  %v16629_v54 = vrot.slane %v6319_v49, 1  ;;  %v4799_v25 = vsel %vm14201_vm11, 0, %v4798_v16  ;;  %v4655_v38 = vmax.f32 %v4601_v51, 0.0  ;;  %v7592_v21 = vrot.slane %v16607_v36, 1  ;;  %v16644_v57 = vpop.f32.mrb[51].mxu1 }
 0x229   : > { %v12050_v17 = vpack.c.bf16 %v4654_v34, %v4654_v34  ;;  %v8110_v27 = vsel %vm757_vm1, %v8105_v1, %v8109_v0  ;;  %4800 = vst [vmem:[#allocation2 + $0xe4] sm:$0x2] %v4799_v25  ;;  %v8111_v49 = vshrl.u32 %v16525_v50, 16  ;;  %v6311_v52 = vshll.u32 %v16615_v59, 16  ;;  %20047 = vst [vmem:[#allocation11_spill] sm:$0xff] %v16644_v57  ;;  %v1402_v20 = vpop.permute.xlu1 %1401 }
 0x22a   : > { %8411 = vrot.lane.b32.xlu0 %v8110_v27, %s13006_s22  ;;  %v12051_v43 = vpack.c.bf16 %v4655_v38, %v4655_v38  ;;  %v16646_v16 = vor.u32 %v6308_v4, %v6304_v23  ;;  %v5567_v34 = vld [vmem:[#allocation2 + $0xa0] sm:$0xf]  ;;  %v2536_v51 = vpop.permute.xlu0 %2535  ;;  %v6715_v3 = vrot.slane %v16615_v59, 1  ;;  %v6315_v25 = vshrl.u32 %v16615_v59, 16  ;;  %v16657_v23 = vld [vmem:[#allocation2 + $0x7c] sm:$0xf] }
 0x22b   : > { %v5183_v62 = vshrl.u32 %v12050_v17, 16  ;;  %v8113_v1 = vor.u32 %v8111_v49, %v8109_v0  ;;  %v12878_v27 = vld [vmem:[#allocation2 + $0x60] ss:$0 sps:$4 sm:$0x11]   ;;  %v5186_v24 = vshll.u32 %v12050_v17, 16  ;;  %6577 = vrot.lane.b32.xlu1 %v16468_v26, %s13005_s20  ;;  %v16655_v4 = vsel %vm1244_vm0, %v7591_v31, %v7592_v21  ;;  %v12879_v38 = vld [vmem:[%s13097_s9 + $0x148] sm:$0xff]  }
 0x22c   : > { %v8538_v7 = vrot.slane %v12878_v27, 1  ;;  %v5191_v48 = vshrl.u32 %v12051_v43, 16  ;;  %v3239_v0 = vsel %vm3171_vm2, %v12879_v38, %v1185_v32  ;;  %v20048_v49 = vld [vmem:[#allocation19_spill] sm:$0xff]  ;;  %v4113_v59 = vpop.f32.mrb[60].mxu0  ;;  %v20049_v17 = vld [vmem:[#allocation28_spill] sm:$0xff]  ;;  %v6313_v26 = vrot.slane %v6311_v52, 1 }
 0x22d   : > { %v5185_v12 = vrot.slane %v5183_v62, 7  ;;  %v3527_v63 = vsel %vm3171_vm2, %v20048_v49, %v2284_v39  ;;  %v20050_v62 = vrot.slane %v20049_v17, 1  ;;  %v5194_v55 = vshll.u32 %v12051_v43, 16  ;;  %v4115_v32 = vpop.f32.mrb[61].mxu0  ;;  %v1654_v38 = vpop.permute.xlu1 %1653  ;;  %v20052_v17 = vld [vmem:[#allocation37_spill] sm:$0xff] }
 0x22e   : > { %7675 = vrot.lane.b32.xlu0 %v16546_v19, %s13005_s20  ;;  %v16670_v57 = vrot.slane %v5191_v48, 7  ;;  %v4417_v28 = vadd.f32 %v20051_v47, %v4113_v59  ;;  %v3312_v39 = vsel %vm3244_vm3, %v3239_v0, %v1402_v20  ;;  %v3601_v49 = vsel %vm3244_vm3, %v3527_v63, %v2536_v51  ;;  %v4116_v19 = vpop.f32.mrb[62].mxu0  ;;  %v3022_v9 = vpop.permute.xlu0 %3021  ;;  %v5773_v43 = vld [vmem:[#allocation2 + $0x7c] sm:$0xf]  ;;  %v5847_v59 = vld [vmem:[#allocation2 + $0x78] sm:$0xe] }
 0x22f   : > { %v16668_v27 = vsel %vm1244_vm0, %v7592_v21, %v20050_v62  ;;  %v5188_v31 = vor.u32 %v5186_v24, %v5185_v12  ;;  %v5189_v42 = vrot.slane %v5185_v12, 4  ;;  %v7180_v44 = vshll.u32 %v20052_v17, 16  ;;  %v4117_v52 = vpop.f32.mrb[63].mxu0  ;;  %6793 = vrot.lane.b32.xlu1 %v16455_v8, %s13004_s12  ;;  %v5877_v12 = vld [vmem:[#allocation2 + $0x78] sm:$0xf] }
 0x230   : > { %v5196_v24 = vor.u32 %v5194_v55, %v16670_v57  ;;  %v4602_v48 = vadd.f32 %v16600_v37, %v4417_v28  ;;  %v3418_v47 = vsel %vm3317_vm4, %v3312_v39, %v1654_v38  ;;  %v3706_v20 = vsel %vm3317_vm4, %v3601_v49, %v3022_v9  ;;  %v20053_v63 = vld [vmem:[#allocation20_spill] sm:$0xff]  ;;  %v4738_v52 = vld [vmem:[#allocation2 + $0xf0] sm:$0x1] }
 0x231   : > { %v5568_v21 = vsel %vm15361_vm5, %v5188_v31, %v5567_v34  ;;  %v8118_v34 = vsel %vm757_vm1, %v8113_v1, %v20053_v63  ;;  %v16689_v55 = vcombine.low %v5877_v12, %v16657_v23  ;;  %v6317_v28 = vor.u32 %v6315_v25, %v6313_v26  ;;  %4246 = vmatprep.mubr.bf16.mxu0 %v3706_v20  ;;  %v1187_v0 = vpop.permute.xlu1 %1186  ;;  %v16698_v31 = vld [vmem:[#allocation2 + $0x7c] sm:$0xf]  ;;  %v16701_v25 = vld [vmem:[#allocation2 + $0x80] sm:$0xff]  }
 0x232   : > { %5569 = vst [vmem:[#allocation2 + $0xa0] sm:$0xf] %v5568_v21  ;;  %7927 = vrot.lane.b32.xlu0 %v16525_v50, %s13004_s12  ;;  %v5197_v8 = vsel %vm15383_vm9, %v5189_v42, %v5196_v24  ;;  %v4656_v51 = vmax.f32 %v4602_v48, 0.0  ;;  %v16695_v62 = vsel %vm1244_vm0, %v16627_v56, %v6715_v3  ;;  %v19755_v9 = vrot.slane %v16525_v50, 1  ;;  %4247 = vmatmul.mubr.bf16.gmra.mrb[132].mxu0 %v3418_v47  ;;  %v2286_v1 = vpop.permute.xlu0 %2285  ;;  %v16724_v48 = vld [vmem:[#allocation2 + $0x30] sm:$0xff]  }
 0x233   : > { %5570 = vst.msk [vmem:[#allocation2 + $0xa4] sm:$0xf] %vm4687_vm7, %v5197_v8  ;;  %v11833_v32 = vcombine.low %v5847_v59, %v5773_v43  ;;  %v20054_v42 = vrot.slane %v16548_v13, 1  ;;  %v20055_v39 = vrot.slane %v16220_v14, 1  ;;  %v20056_v49 = vcombine.low %v16637_v30, %v16488_v40  ;;  %7045 = vrot.lane.b32.xlu1 %v16448_v6, %s13006_s22  ;;  %v5772_v30 = vld [vmem:[#allocation2 + $0x78] sm:$0xf] }
 0x234   : > { %v16716_v21 = vld [vmem:[#allocation2 + $0x9c] ss:$0 sps:$4 sm:$0x11]   ;;  %v12052_v24 = vpack.c.bf16 %v4656_v51, %v4656_v51  ;;  %v16722_v13 = vsel %vm757_vm1, %v16646_v16, %v6313_v26  ;;  %v7185_v14 = vshll.u32 %v16724_v48, 16  ;;  %v8122_v40 = vshll.u32 %v16689_v55, 16 }
 0x235   : > { %v16706_v38 = vsel %vm1244_vm0, %v6715_v3, %v20054_v42  ;;  %v16711_v56 = vsel %vm1244_vm0, %v20055_v39, %v8538_v7  ;;  %v8540_v19 = vrot.slane %v20056_v49, 1  ;;  %v7182_v3 = vrot.slane %v7180_v44, 1  ;;  %v5668_v7 = vld [vmem:[#allocation2 + $0x78] sm:$0xf]  ;;  %v1404_v26 = vpop.permute.xlu1 %1403  ;;  %v20059_v49 = vld [vmem:[#allocation22_spill] sm:$0xff] }
 0x236   : > { %8413 = vrot.lane.b32.xlu0 %v8118_v34, %s13006_s22  ;;  %v16731_v47 = vsel %vm757_vm1, %v6317_v28, %v16629_v54  ;;  %v7178_v6 = vshrl.u32 %v20052_v17, 16  ;;  %v16735_v16 = vcombine.low %v5668_v7, %v16698_v31  ;;  %v5200_v44 = vshrl.u32 %v12052_v24, 16  ;;  %v2538_v34 = vpop.permute.xlu0 %2537  ;;  %v4120_v7 = vpop.f32.mrb[64].mxu0 }
 0x237   : > { %v16737_v12 = vcombine.low %v5772_v30, %v5773_v43  ;;  %v16742_v20 = vsel %vm1244_vm0, %v8540_v19, %v19755_v9  ;;  %v8155_v63 = vshll.u32 %v16716_v21, 16  ;;  %v8120_v54 = vshrl.u32 %v16689_v55, 16  ;;  %6579 = vrot.lane.b32.xlu1 %v16559_v41, %s13005_s20  ;;  %v5571_v30 = vld [vmem:[#allocation2 + $0xa8] sm:$0x3]  ;;  %v16767_v9 = vld [vmem:[#allocation2 + $0x80] sm:$0xff]  }
 0x238   : > { %20057 = vst [vmem:[#allocation32_spill] sm:$0xff] %v16735_v16  ;;  %v8127_v28 = vshll.u32 %v16701_v25, 16  ;;  %v16747_v17 = vrot.slane %v11833_v32, 1  ;;  %v4739_v8 = vsel %vm14118_vm8, 0, %v4738_v52  ;;  %v5202_v51 = vrot.slane %v5200_v44, 7 }
 0x239   : > { %20058 = vst [vmem:[#allocation30_spill] sm:$0xff] %v16737_v12  ;;  %v5203_v43 = vshll.u32 %v12052_v24, 16  ;;  %v7183_v59 = vor.u32 %v7182_v3, %v7178_v6  ;;  %v16753_v42 = vrot.slane %v7185_v14, 1  ;;  %4740 = vst [vmem:[#allocation2 + $0xf0] sm:$0x1] %v4739_v8  ;;  %v5198_v39 = vrot.slane %v16670_v57, 4  ;;  %v1656_v44 = vpop.permute.xlu1 %1655 }
 0x23a   : > { %v3241_v19 = vsel %vm3171_vm2, %v20059_v49, %v1187_v0  ;;  %7677 = vrot.lane.b32.xlu0 %v16655_v4, %s13005_s20  ;;  %v8124_v32 = vrot.slane %v8122_v40, 1  ;;  %v6326_v52 = vshll.u32 %v16735_v16, 16  ;;  %v3530_v41 = vsel %vm3171_vm2, %v16381_v5, %v2286_v1  ;;  %v20060_v14 = vld [vmem:[#allocation12_spill] sm:$0xff]  ;;  %v4122_v57 = vpop.f32.mrb[65].mxu0  ;;  %v3024_v49 = vpop.permute.xlu0 %3023 }
 0x23b   : > { %v5205_v24 = vor.u32 %v5203_v43, %v5202_v51  ;;  %v3314_v3 = vsel %vm3244_vm3, %v3241_v19, %v1404_v26  ;;  %v4424_v6 = vadd.f32 %v20060_v14, %v4120_v7  ;;  %v3603_v0 = vsel %vm3244_vm3, %v3530_v41, %v2538_v34  ;;  %v4123_v8 = vpop.f32.mrb[66].mxu0  ;;  %v12881_v51 = vld [vmem:[#allocation2 + $0x74] ss:$0 sps:$4 sm:$0x11]   ;;  %v20061_v26 = vld [vmem:[#allocation38_spill] sm:$0xff]  ;;  %6795 = vrot.lane.b32.xlu1 %v16553_v45, %s13004_s12 }
 0x23c   : > { %v3421_v4 = vsel %vm3317_vm4, %v3314_v3, %v1656_v44  ;;  %v8129_v40 = vrot.slane %v8127_v28, 1  ;;  %v8543_v43 = vrot.slane %v12881_v51, 1  ;;  %v4427_v19 = vadd.f32 %v20061_v26, %v4123_v8  ;;  %v4125_v7 = vpop.f32.mrb[67].mxu0  ;;  %v5955_v41 = vld [vmem:[#allocation2 + $0x78] sm:$0xe]  ;;  %v16776_v3 = vpop.f32.mrb[52].mxu1 }
 0x23d   : > { %v5206_v5 = vsel %vm15383_vm9, %v5198_v39, %v5205_v24  ;;  %v4603_v1 = vadd.f32 %v16600_v37, %v4424_v6  ;;  %v3709_v34 = vsel %vm3317_vm4, %v3603_v0, %v3024_v49  ;;  %20062 = vst [vmem:[#allocation13_spill] sm:$0xff] %v16776_v3  ;;  %v16782_v39 = vld [vmem:[#allocation2 + $0x80] sm:$0xff]   ;;  %v16784_v24 = vrot.slane %v8155_v63, 1  ;;  %v5740_v45 = vld [vmem:[#allocation2 + $0x78] sm:$0xe]  ;;  %v1189_v0 = vpop.permute.xlu1 %1188  ;;  %v16789_v49 = vpop.f32.mrb[53].mxu1 }
 0x23e   : > { %v5572_v28 = vsel %vm15455_vm6, %v5206_v5, %v5571_v30  ;;  %7929 = vrot.lane.b32.xlu0 %v16689_v55, %s13004_s12  ;;  %4253 = vmatprep.mubr.bf16.mxu0 %v3709_v34  ;;  %v6328_v14 = vrot.slane %v6326_v52, 1  ;;  %v11904_v6 = vcombine.low %v5955_v41, %v16657_v23  ;;  %v4604_v44 = vadd.f32 %v16600_v37, %v4427_v19  ;;  %v2288_v55 = vpop.permute.xlu0 %2287  ;;  %v4801_v26 = vld [vmem:[#allocation2 + $0xf8] sm:$0x2] }
 0x23f   : > { %5573 = vst [vmem:[#allocation2 + $0xa8] sm:$0x3] %v5572_v28  ;;  %v4657_v57 = vmax.f32 %v4603_v1, 0.0  ;;  %4254 = vmatmul.mubr.bf16.gmra.mrb[136].mxu0 %v3421_v4  ;;  %v8125_v8 = vor.u32 %v8124_v32, %v8120_v54  ;;  %v11762_v30 = vcombine.low %v5740_v45, %v16698_v31  ;;  %20063 = vst [vmem:[#allocation18_spill] sm:$0xff] %v16789_v49  ;;  %v6324_v52 = vshrl.u32 %v16735_v16, 16  ;;  %v12263_v4 = vpop.f32.mrb[54].mxu1 }
 0x240   : > { %v16793_v63 = vsel %vm757_vm1, %v7183_v59, %v16753_v42  ;;  %v6331_v23 = vshll.u32 %v16767_v9, 16  ;;  %v20064_v51 = vrot.slane %v16525_v50, 1  ;;  %v4658_v32 = vmax.f32 %v4604_v44, 0.0  ;;  %7047 = vrot.lane.b32.xlu1 %v16613_v46, %s13006_s22  ;;  %v16806_v1 = vld [vmem:[#allocation2 + $0x90] sm:$0xf]  ;;  %v16815_v34 = vpop.f32.mrb[55].mxu1 }
 0x241   : > { %v12053_v54 = vpack.c.bf16 %v4657_v57, %v4657_v57  ;;  %v8130_v31 = vsel %vm757_vm1, %v8125_v8, %v8129_v40  ;;  %v8131_v59 = vshrl.u32 %v16701_v25, 16  ;;  %v16810_v19 = vor.u32 %v6328_v14, %v6324_v52  ;;  %20065 = vst [vmem:[#allocation19_spill] sm:$0xff] %v16815_v34  ;;  %v1406_v45 = vpop.permute.xlu1 %1405  ;;  %v5881_v44 = vld [vmem:[#allocation2 + $0x8c] sm:$0xf]  ;;  %v4128_v16 = vpop.f32.mrb[68].mxu0 }
 0x242   : > { %v16800_v5 = vsel %vm1244_vm0, %v20064_v51, %v8543_v43  ;;  %8415 = vrot.lane.b32.xlu0 %v8130_v31, %s13006_s22  ;;  %v16812_v43 = vrot.slane %v11904_v6, 1  ;;  %v12054_v28 = vpack.c.bf16 %v4658_v32, %v4658_v32  ;;  %v16819_v8 = vrot.slane %v11762_v30, 1  ;;  %v2540_v51 = vpop.permute.xlu0 %2539  ;;  %v16827_v52 = vld [vmem:[#allocation2 + $0x88] ss:$0 sps:$4 sm:$0x11]   ;;  %v4130_v3 = vpop.f32.mrb[69].mxu0 }
 0x243   : > { %v5208_v41 = vshrl.u32 %v12053_v54, 16  ;;  %v16817_v57 = vor.u32 %v8131_v59, %v8129_v40  ;;  %v16822_v4 = vcombine.low %v5881_v44, %v16806_v1  ;;  %v16824_v14 = vrot.slane %v6331_v23, 1  ;;  %v5574_v59 = vld [vmem:[#allocation2 + $0xb4] sm:$0xf]  ;;  %v12883_v44 = vld [vmem:[%s13097_s9 + $0x15c] sm:$0xff]   ;;  %v4131_v49 = vpop.f32.mrb[70].mxu0 }
 0x244   : > { %v7189_v6 = vshrl.u32 %v16724_v48, 16  ;;  %v4802_v32 = vsel %vm14201_vm11, 0, %v4801_v26  ;;  %v5211_v40 = vshll.u32 %v12053_v54, 16  ;;  %v5216_v7 = vshrl.u32 %v12054_v28, 16  ;;  %6581 = vrot.lane.b32.xlu1 %v16563_v29, %s13005_s20  ;;  %v5777_v3 = vld [vmem:[#allocation2 + $0x90] sm:$0xf] }
 0x245   : > { %v5210_v31 = vrot.slane %v5208_v41, 7  ;;  %v12882_v30 = vld [vmem:[#allocation2 + $0x38] ss:$0 sps:$4 sm:$0x11]   ;;  %4803 = vst [vmem:[#allocation2 + $0xf8] sm:$0x2] %v4802_v32  ;;  %v3243_v23 = vsel %vm3171_vm2, %v12883_v44, %v1189_v0  ;;  %v3533_v48 = vsel %vm3171_vm2, %v16460_v53, %v2288_v55  ;;  %v1658_v53 = vpop.permute.xlu1 %1657 }
 0x246   : > { %v7193_v50 = vshll.u32 %v12882_v30, 16  ;;  %7679 = vrot.lane.b32.xlu0 %v16668_v27, %s13005_s20  ;;  %v20066_v54 = vrot.slane %v16782_v39, 1  ;;  %v6339_v29 = vshll.u32 %v16827_v52, 16  ;;  %v16846_v32 = vrot.slane %v5216_v7, 7  ;;  %v20067_v0 = vld [vmem:[#allocation24_spill] sm:$0xff]  ;;  %v3026_v46 = vpop.permute.xlu0 %3025 }
 0x247   : > { %v5213_v41 = vor.u32 %v5211_v40, %v5210_v31  ;;  %v5219_v30 = vshll.u32 %v12054_v28, 16  ;;  %v4432_v44 = vadd.f32 %v20067_v0, %v4128_v16  ;;  %v5214_v55 = vrot.slane %v5210_v31, 4  ;;  %v4132_v40 = vpop.f32.mrb[71].mxu0 }
 0x248   : > { %v16843_v26 = vsel %vm1244_vm0, %v16747_v17, %v20066_v54  ;;  %v3316_v34 = vsel %vm3244_vm3, %v3243_v23, %v1406_v45  ;;  %v3605_v27 = vsel %vm3244_vm3, %v3533_v48, %v2540_v51  ;;  %v8142_v17 = vshll.u32 %v16822_v4, 16  ;;  %6797 = vrot.lane.b32.xlu1 %v16568_v33, %s13004_s12  ;;  %v5848_v45 = vld [vmem:[#allocation2 + $0x8c] sm:$0xe] }
 0x249   : > { %v5575_v54 = vsel %vm15361_vm5, %v5213_v41, %v5574_v59  ;;  %v5221_v7 = vor.u32 %v5219_v30, %v16846_v32  ;;  %v4605_v28 = vadd.f32 %v16600_v37, %v4432_v44  ;;  %v3424_v16 = vsel %vm3317_vm4, %v3316_v34, %v1658_v53  ;;  %v6564_v34 = vpop.permute.xlu1 %6563  ;;  %v5956_v41 = vld [vmem:[#allocation2 + $0x8c] sm:$0xe] }
 0x24a   : > { %5576 = vst [vmem:[#allocation2 + $0xb4] sm:$0xf] %v5575_v54  ;;  %7931 = vrot.lane.b32.xlu0 %v16701_v25, %s13004_s12  ;;  %v3712_v49 = vsel %vm3317_vm4, %v3605_v27, %v3026_v46  ;;  %v6720_v51 = vrot.slane %v16767_v9, 1  ;;  %v7191_v31 = vor.u32 %v7189_v6, %v16753_v42  ;;  %v8548_v59 = vrot.slane %v16470_v61, 1  ;;  %v7662_v46 = vpop.permute.xlu0 %7661 }
 0x24b   : > { %v5222_v23 = vsel %vm15383_vm9, %v5214_v55, %v5221_v7  ;;  %v4659_v33 = vmax.f32 %v4605_v28, 0.0  ;;  %4261 = vmatprep.mubr.bf16.mxu0 %v3712_v49  ;;  %v7195_v48 = vrot.slane %v7193_v50, 1  ;;  %v6335_v30 = vshrl.u32 %v16767_v9, 16  ;;  %v20070_v50 = vld [vmem:[#allocation39_spill] sm:$0xff] }
 0x24c   : > { %5577 = vst.msk [vmem:[#allocation2 + $0xb8] sm:$0xf] %vm4687_vm7, %v5222_v23  ;;  %4262 = vmatmul.mubr.bf16.gmra.mrb[140].mxu0 %v3424_v16  ;;  %v8144_v0 = vrot.slane %v8142_v17, 1  ;;  %v20068_v44 = vrot.slane %v16621_v18, 1  ;;  %v20069_v42 = vrot.slane %v16782_v39, 1  ;;  %v11834_v6 = vcombine.low %v5848_v45, %v5777_v3  ;;  %7049 = vrot.lane.b32.xlu1 %v16607_v36, %s13006_s22  ;;  %v16884_v18 = vld [vmem:[#allocation2 + $0x94] sm:$0xff]  }
 0x24d   : > { %v11905_v53 = vcombine.low %v5956_v41, %v16806_v1  ;;  %v12055_v55 = vpack.c.bf16 %v4659_v33, %v4659_v33  ;;  %12284 = vmatprep.mubr.msk.bf16.mxu0 %vm3171_vm2, %v20070_v50  ;;  %v8138_v27 = vsel %vm757_vm1, %v16817_v57, %v16531_v2  ;;  %v6337_v17 = vor.u32 %v6335_v30, %v16824_v14  ;;  %v5776_v57 = vld [vmem:[#allocation2 + $0x8c] sm:$0xf]  ;;  %v6780_v16 = vpop.permute.xlu1 %6779  ;;  %v16925_v30 = vpop.f32.mrb[56].mxu1 }
 0x24e   : > { %v16874_v61 = vsel %vm1244_vm0, %v20069_v42, %v20068_v44  ;;  %v6341_v54 = vrot.slane %v6339_v29, 1  ;;  %8417 = vrot.lane.b32.xlu0 %v8138_v27, %s13006_s22  ;;  %v8140_v1 = vshrl.u32 %v16822_v4, 16  ;;  %v16892_v7 = vsel %vm757_vm1, %v16810_v19, %v16824_v14  ;;  %v16906_v29 = vld [vmem:[#allocation2 + $0x9c] ss:$0 sps:$4 sm:$0x11]   ;;  %v7914_v45 = vpop.permute.xlu0 %7913  ;;  %20074 = vst [vmem:[#allocation6_spill] sm:$0xff] %v16925_v30 }
 0x24f   : > { %v20071_v36 = vrot.slane %v16701_v25, 1  ;;  %v16904_v2 = vsel %vm1244_vm0, %v16819_v8, %v6720_v51  ;;  %v5225_v40 = vshrl.u32 %v12055_v55, 16  ;;  %v16909_v19 = vsel %vm757_vm1, %v7191_v31, %v7195_v48  ;;  %v4135_v42 = vpop.f32.mrb[72].mxu0  ;;  %v20077_v27 = vld [vmem:[#allocation8_spill] sm:$0xff] }
 0x250   : > { %20072 = vst [vmem:[#allocation28_spill] sm:$0xff] %v16909_v19  ;;  %v16911_v14 = vcombine.low %v5776_v57, %v5777_v3  ;;  %v16918_v23 = vor.u32 %v8144_v0, %v8140_v1  ;;  %v16920_v8 = vrot.slane %v11834_v6, 1  ;;  %v16922_v33 = vrot.slane %v11905_v53, 1  ;;  %6583 = vrot.lane.b32.xlu1 %v16722_v13, %s13005_s20  ;;  %v20075_v0 = vld [vmem:[#allocation10_spill] sm:$0xff]  ;;  %v16940_v53 = vpop.f32.mrb[57].mxu1  ;;  %v16946_v1 = vld [vmem:[#allocation2 + $0x94] sm:$0xff]  }
 0x251   : > { %v16898_v28 = vsel %vm1244_vm0, %v16812_v43, %v20071_v36  ;;  %v20073_v49 = vmov %v20071_v36  ;;  %v6722_v41 = vrot.slane %v16827_v52, 1  ;;  %v5227_v31 = vrot.slane %v5225_v40, 7  ;;  %20076 = vst [vmem:[#allocation37_spill] sm:$0xff] %v16940_v53  ;;  %20078 = vst [vmem:[#allocation20_spill] sm:$0xff] %v16946_v1  ;;  %v20088_v53 = vld [vmem:[#allocation9_spill] sm:$0xff] }
 0x252   : > { %v16916_v43 = vsel %vm1244_vm0, %v20073_v49, %v8548_v59  ;;  %v5228_v48 = vshll.u32 %v12055_v55, 16  ;;  %v8147_v25 = vshll.u32 %v16884_v18, 16  ;;  %v16931_v3 = vsel %vm757_vm1, %v6337_v17, %v6341_v54  ;;  %7681 = vrot.lane.b32.xlu0 %v16843_v26, %s13005_s20  ;;  %v5578_v55 = vld [vmem:[#allocation2 + $0xbc] sm:$0x3]  ;;  %v7032_v54 = vpop.permute.xlu1 %7031  ;;  %v16948_v26 = vld [vmem:[#allocation2 + $0x90] sm:$0xf]  ;;  %v8400_v49 = vpop.permute.xlu0 %8399 }
 0x253   : > { %v5223_v59 = vrot.slane %v16846_v32, 4  ;;  %v8616_v44 = vsel %vm3171_vm2, %v20075_v0, %v6564_v34  ;;  %v8553_v6 = vrot.slane %v16716_v21, 1  ;;  %v8869_v50 = vsel %vm3171_vm2, %v16529_v58, %v7662_v46  ;;  %v4137_v34 = vpop.f32.mrb[73].mxu0  ;;  %v20079_v21 = vld [vmem:[#allocation36_spill] sm:$0xff]  ;;  %v20082_v0 = vld [vmem:[#allocation35_spill] sm:$0xff] }
 0x254   : > { %v5230_v13 = vor.u32 %v5228_v48, %v5227_v31  ;;  %v8688_v32 = vsel %vm3244_vm3, %v8616_v44, %v6780_v16  ;;  %v4439_v17 = vadd.f32 %v20077_v27, %v4135_v42  ;;  %v8976_v36 = vsel %vm3244_vm3, %v8869_v50, %v7914_v45  ;;  %12285 = vmatmul.mubr.msk.bf16.vlgmr.msra.gmra.mrb[144].mxu0 %vm3171_vm2, %v20079_v21  ;;  %v4138_v40 = vpop.f32.mrb[74].mxu0  ;;  %v20081_v45 = vld [vmem:[#allocation14_spill] sm:$0xff]  ;;  %v16974_v50 = vld [vmem:[#allocation2 + $0xb0] ss:$0 sps:$4 sm:$0x11]   ;;  %v12267_v34 = vpop.f32.mrb[58].mxu1 }
 0x255   : > { %v8760_v57 = vsel %vm3317_vm4, %v8688_v32, %v7032_v54  ;;  %v16957_v58 = vsel %vm1244_vm0, %v6720_v51, %v6722_v41  ;;  %v7200_v46 = vshll.u32 %v16362_v15, 16  ;;  %v4442_v48 = vadd.f32 %v20081_v45, %v4138_v40  ;;  %12288 = vmatprep.mubr.msk.bf16.mxu0 %vm3171_vm2, %v20082_v0  ;;  %v4140_v44 = vpop.f32.mrb[75].mxu0  ;;  %6799 = vrot.lane.b32.xlu1 %v16695_v62, %s13004_s12  ;;  %v5672_v42 = vld [vmem:[#allocation2 + $0x8c] sm:$0xf]  ;;  %v4741_v51 = vld [vmem:[#allocation2 + $0x104] sm:$0x1] }
 0x256   : > { %20080 = vst [vmem:[#allocation22_spill] sm:$0xff] %v16957_v58  ;;  %v5231_v16 = vsel %vm15383_vm9, %v5223_v59, %v5230_v13  ;;  %v4606_v31 = vadd.f32 %v16600_v37, %v4439_v17  ;;  %v8149_v9 = vrot.slane %v8147_v25, 1  ;;  %7933 = vrot.lane.b32.xlu0 %v16822_v4, %s13004_s12  ;;  %v9048_v59 = vsel %vm3317_vm4, %v8976_v36, %v8400_v49  ;;  %v6566_v27 = vpop.permute.xlu1 %6565  ;;  %v16982_v4 = vld [vmem:[#allocation2 + $0x8c] sm:$0xe]  ;;  %v7664_v54 = vpop.permute.xlu0 %7663  ;;  %v16985_v21 = vld [vmem:[#allocation2 + $0x44] sm:$0xff]   ;;  %v16988_v49 = vld [vmem:[#allocation2 + $0x94] sm:$0xff]  }
 0x257   : > { %v5579_v41 = vsel %vm15455_vm6, %v5231_v16, %v5578_v55  ;;  %v8551_v13 = vrot.slane %v16884_v18, 1  ;;  %v16977_v32 = vcombine.low %v5672_v42, %v16948_v26  ;;  %v4607_v25 = vadd.f32 %v16600_v37, %v4442_v48  ;;  %9439 = vmatprep.mubr.bf16.mxu1 %v9048_v59  ;;  %v16998_v0 = vld [vmem:[#allocation2 + $0xa4] sm:$0xf] }
 0x258   : > { %5580 = vst [vmem:[#allocation2 + $0xbc] sm:$0x3] %v5579_v41  ;;  %v4660_v62 = vmax.f32 %v4606_v31, 0.0  ;;  %v7602_v55 = vrot.slane %v16946_v1, 1  ;;  %9440 = vmatmul.mubr.bf16.vlgmr.msra.gmra.mrb[72].mxu1 %v8760_v57  ;;  %v8151_v36 = vshrl.u32 %v16884_v18, 16  ;;  %v7205_v40 = vshll.u32 %v16985_v21, 16 }
 0x259   : > { %20083 = vst [vmem:[#allocation12_spill] sm:$0xff] %v16977_v32  ;;  %v4742_v31 = vsel %vm14118_vm8, 0, %v4741_v51  ;;  %v4661_v48 = vmax.f32 %v4607_v25, 0.0  ;;  %7051 = vrot.lane.b32.xlu1 %v16737_v12, %s13006_s22  ;;  %v8150_v57 = vsel %vm757_vm1, %v16918_v23, %v8149_v9  ;;  %v8175_v44 = vshll.u32 %v16974_v50, 16  ;;  %v12885_v42 = vld [vmem:[%s19693_s2 + $0x80] sm:$0xff]   ;;  %v12886_v25 = vld [vmem:[%s19693_s2 + $0x88] sm:$0xff]  }
 0x25a   : > { %v12056_v45 = vpack.c.bf16 %v4660_v62, %v4660_v62  ;;  %4743 = vst [vmem:[#allocation2 + $0x104] sm:$0x1] %v4742_v31  ;;  %12358 = vmatpush3.bf16.msra.mxu1 %v12885_v42  ;;  %8419 = vrot.lane.b32.xlu0 %v8150_v57, %s13006_s22  ;;  %v17007_v51 = vsel %vm1244_vm0, %v16922_v33, %v8551_v13  ;;  %v7202_v23 = vrot.slane %v7200_v46, 1  ;;  %v6346_v59 = vshll.u32 %v16977_v32, 16  ;;  %v17013_v62 = vpop.f32.mrb[59].mxu1  ;;  %v6782_v57 = vpop.permute.xlu1 %6781 }
 0x25b   : > { %v17010_v41 = vsel %vm1244_vm0, %v8551_v13, %v8553_v6  ;;  %20085 = vst [vmem:[#allocation24_spill] sm:$0xff] %v17013_v62  ;;  %12357 = vmatprep.subr.bf16.mxu1 %v12886_v25  ;;  %v12057_v31 = vpack.c.bf16 %v4661_v48, %v4661_v48  ;;  %v8153_v42 = vor.u32 %v8151_v36, %v8149_v9  ;;  %v5885_v6 = vld [vmem:[#allocation2 + $0xa0] sm:$0xf]  ;;  %v20086_v13 = vld [vmem:[#allocation42_spill] sm:$0xff]  ;;  %v7916_v46 = vpop.permute.xlu0 %7915  ;;  %v17027_v17 = vrot.slane %v7205_v40, 1  ;;  %v4143_v12 = vpop.f32.mrb[76].mxu0 }
 0x25c   : > { %20084 = vst [vmem:[#allocation38_spill] sm:$0xff] %v17010_v41  ;;  %v5233_v34 = vshrl.u32 %v12056_v45, 16  ;;  %v17020_v33 = vsel %vm1244_vm0, %v16920_v8, %v7602_v55  ;;  %12289 = vmatmul.mubr.msk.bf16.gmra.mrb[148].mxu0 %vm3171_vm2, %v20086_v13  ;;  %v17025_v16 = vcombine.low %v5885_v6, %v16998_v0  ;;  %v6351_v48 = vshll.u32 %v16988_v49, 16  ;;  %v5581_v36 = vld [vmem:[#allocation2 + $0xc8] sm:$0xf]  ;;  %v20087_v8 = vld [vmem:[#allocation16_spill] sm:$0xff] }
 0x25d   : > { %v5236_v9 = vshll.u32 %v12056_v45, 16  ;;  %v5241_v62 = vshrl.u32 %v12057_v31, 16  ;;  %12292 = vmatprep.mubr.msk.bf16.mxu0 %vm3171_vm2, %v20087_v8  ;;  %6585 = vrot.lane.b32.xlu1 %v16731_v47, %s13005_s20  ;;  %v17035_v13 = vrot.slane %v8175_v44, 1  ;;  %v12887_v6 = vld [vmem:[#allocation2 + $0x8] sm:$0xff]   ;;  %v8872_v52 = vsel %vm3171_vm2, %v20088_v53, %v7664_v54  ;;  %v20090_v41 = vld [vmem:[#allocation33_spill] sm:$0xff] }
 0x25e   : > { %v5235_v30 = vrot.slane %v5233_v34, 7  ;;  %v8618_v40 = vsel %vm3171_vm2, %v12887_v6, %v6566_v27  ;;  %7683 = vrot.lane.b32.xlu0 %v16874_v61, %s13005_s20  ;;  %v20089_v45 = vrot.slane %v16906_v29, 1  ;;  %v6348_v8 = vrot.slane %v6346_v59, 1  ;;  %v4145_v27 = vpop.f32.mrb[77].mxu0  ;;  %v7034_v6 = vpop.permute.xlu1 %7033  ;;  %12359 = vmatpush3.bf16.msra.mxu1 %v12886_v25  ;;  %v5957_v25 = vld [vmem:[#allocation2 + $0xa0] sm:$0xe] }
 0x25f   : > { %v17047_v47 = vrot.slane %v5241_v62, 7  ;;  %v5244_v44 = vshll.u32 %v12057_v31, 16  ;;  %v4447_v58 = vadd.f32 %v20090_v41, %v4143_v12  ;;  %v8690_v54 = vsel %vm3244_vm3, %v8618_v40, %v6782_v57  ;;  %v4146_v19 = vpop.f32.mrb[78].mxu0  ;;  %v8402_v29 = vpop.permute.xlu0 %8401 }
 0x260   : > { %v17045_v34 = vsel %vm1244_vm0, %v7602_v55, %v20089_v45  ;;  %v5238_v1 = vor.u32 %v5236_v9, %v5235_v30  ;;  %v5239_v53 = vrot.slane %v5235_v30, 4  ;;  %v8978_v61 = vsel %vm3244_vm3, %v8872_v52, %v7916_v46  ;;  %v5781_v45 = vld [vmem:[#allocation2 + $0xa4] sm:$0xf]  ;;  %v4147_v41 = vpop.f32.mrb[79].mxu0 }
 0x261   : > { %v8162_v55 = vshll.u32 %v17025_v16, 16  ;;  %v5246_v62 = vor.u32 %v5244_v44, %v17047_v47  ;;  %v4608_v12 = vadd.f32 %v16600_v37, %v4447_v58  ;;  %6801 = vrot.lane.b32.xlu1 %v16706_v38, %s13004_s12  ;;  %v8763_v30 = vsel %vm3317_vm4, %v8690_v54, %v7034_v6  ;;  %v5849_v38 = vld [vmem:[#allocation2 + $0xa0] sm:$0xe]  ;;  %v4804_v44 = vld [vmem:[#allocation2 + $0x10c] sm:$0x2] }
 0x262   : > { %v5582_v59 = vsel %vm15361_vm5, %v5238_v1, %v5581_v36  ;;  %7935 = vrot.lane.b32.xlu0 %v16884_v18, %s13004_s12  ;;  %v9051_v19 = vsel %vm3317_vm4, %v8978_v61, %v8402_v29  ;;  %v8158_v52 = vsel %vm757_vm1, %v8153_v42, %v16784_v24  ;;  %v17065_v1 = vld [vmem:[#allocation2 + $0xa8] sm:$0xff]   ;;  %v20091_v58 = vshrl.u32 %v16362_v15, 16  ;;  %v6568_v18 = vpop.permute.xlu1 %6567 }
 0x263   : > { %5583 = vst [vmem:[#allocation2 + $0xc8] sm:$0xf] %v5582_v59  ;;  %v17069_v57 = vrot.slane %v6351_v48, 1  ;;  %v5247_v46 = vsel %vm15383_vm9, %v5239_v53, %v5246_v62  ;;  %v4662_v9 = vmax.f32 %v4608_v12, 0.0  ;;  %9447 = vmatprep.mubr.bf16.mxu1 %v9051_v19  ;;  %v11906_v36 = vcombine.low %v5957_v25, %v16998_v0  ;;  %v7666_v15 = vpop.permute.xlu0 %7665  ;;  %v5780_v12 = vld [vmem:[#allocation2 + $0xa0] sm:$0xf] }
 0x264   : > { %v7203_v31 = vor.u32 %v7202_v23, %v20091_v58  ;;  %v11835_v40 = vcombine.low %v5849_v38, %v5781_v45  ;;  %5584 = vst.msk [vmem:[#allocation2 + $0xcc] sm:$0xf] %vm4687_vm7, %v5247_v46  ;;  %9448 = vmatmul.mubr.bf16.gmra.mrb[76].mxu1 %v8763_v30  ;;  %12293 = vmatmul.mubr.msk.bf16.gmra.mrb[152].mxu0 %vm3171_vm2, %v16711_v56  ;;  %v8164_v24 = vrot.slane %v8162_v55, 1  ;;  %v8558_v42 = vrot.slane %v16974_v50, 1  ;;  %v5889_v50 = vld [vmem:[#allocation2 + $0xb4] sm:$0xf] }
 0x265   : > { %v19762_v48 = vrot.slane %v16988_v49, 1  ;;  %v12058_v27 = vpack.c.bf16 %v4662_v9, %v4662_v9  ;;  %12296 = vmatprep.mubr.msk.bf16.mxu0 %vm3171_vm2, %v16742_v20  ;;  %7053 = vrot.lane.b32.xlu1 %v16782_v39, %s13006_s22  ;;  %v20092_v0 = vshrl.u32 %v16977_v32, 16  ;;  %v20093_v6 = vcombine.low %v16982_v4, %v16948_v26  ;;  %v12888_v54 = vld [vmem:[#allocation2 + $0x4c] ss:$0 sps:$4 sm:$0x11]   ;;  %v17121_v9 = vpop.f32.mrb[60].mxu1 }
 0x266   : > { %v17079_v23 = vsel %vm757_vm1, %v7203_v31, %v17027_v17  ;;  %v7213_v61 = vshll.u32 %v12888_v54, 16  ;;  %8421 = vrot.lane.b32.xlu0 %v8158_v52, %s13006_s22  ;;  %v8160_v29 = vshrl.u32 %v17025_v16, 16  ;;  %v8167_v55 = vshll.u32 %v17065_v1, 16  ;;  %v6784_v62 = vpop.permute.xlu1 %6783  ;;  %v17116_v25 = vld [vmem:[#allocation2 + $0x9c] ss:$0 sps:$4 sm:$0x11]  }
 0x267   : > { %v6349_v56 = vor.u32 %v6348_v8, %v20092_v0  ;;  %v6724_v53 = vrot.slane %v20093_v6, 1  ;;  %v7209_v20 = vshrl.u32 %v16985_v21, 16  ;;  %v4805_v39 = vsel %vm14201_vm11, 0, %v4804_v44  ;;  %v7918_v41 = vpop.permute.xlu0 %7917  ;;  %20094 = vst [vmem:[#allocation39_spill] sm:$0xff] %v17121_v9  ;;  %v5585_v0 = vld [vmem:[#allocation2 + $0xd0] sm:$0x3] }
 0x268   : > { %v5250_v59 = vshrl.u32 %v12058_v27, 16  ;;  %v17098_v8 = vrot.slane %v11906_v36, 1  ;;  %v17104_v4 = vrot.slane %v11835_v40, 1  ;;  %4806 = vst [vmem:[#allocation2 + $0x10c] sm:$0x2] %v4805_v39  ;;  %v17106_v30 = vor.u32 %v8164_v24, %v8160_v29  ;;  %v20095_v40 = vld [vmem:[#allocation25_spill] sm:$0xff] }
 0x269   : > { %v17102_v26 = vsel %vm757_vm1, %v6349_v56, %v17069_v57  ;;  %v17111_v21 = vsel %vm1244_vm0, %v6724_v53, %v19762_v48  ;;  %v7211_v19 = vor.u32 %v7209_v20, %v17027_v17  ;;  %v17114_v52 = vcombine.low %v5780_v12, %v5781_v45  ;;  %6587 = vrot.lane.b32.xlu1 %v16892_v7, %s13005_s20  ;;  %v4150_v17 = vpop.f32.mrb[80].mxu0  ;;  %v17128_v24 = vld [vmem:[#allocation2 + $0xa8] sm:$0xff]  }
 0x26a   : > { %v5252_v58 = vrot.slane %v5250_v59, 7  ;;  %v5253_v31 = vshll.u32 %v12058_v27, 16  ;;  %v7215_v38 = vrot.slane %v7213_v61, 1  ;;  %v6355_v46 = vshrl.u32 %v16988_v49, 16  ;;  %7685 = vrot.lane.b32.xlu0 %v17020_v33, %s13005_s20  ;;  %v4152_v54 = vpop.f32.mrb[81].mxu0 }
 0x26b   : > { %v5248_v36 = vrot.slane %v17047_v47, 4  ;;  %v8620_v44 = vsel %vm3171_vm2, %v20095_v40, %v6568_v18  ;;  %v8169_v45 = vrot.slane %v8167_v55, 1  ;;  %v6359_v27 = vshll.u32 %v17116_v25, 16  ;;  %v20096_v47 = vld [vmem:[#allocation34_spill] sm:$0xff]  ;;  %v7036_v18 = vpop.permute.xlu1 %7035  ;;  %v4153_v29 = vpop.f32.mrb[82].mxu0 }
 0x26c   : > { %v5255_v7 = vor.u32 %v5253_v31, %v5252_v58  ;;  %v8875_v56 = vsel %vm3171_vm2, %v16793_v63, %v7666_v15  ;;  %v8692_v6 = vsel %vm3244_vm3, %v8620_v44, %v6784_v62  ;;  %v4454_v53 = vadd.f32 %v20096_v47, %v4150_v17  ;;  %v17135_v61 = vld [vmem:[#allocation2 + $0xc4] ss:$0 sps:$4 sm:$0x11]   ;;  %12297 = vmatmul.mubr.msk.bf16.gmra.mrb[156].mxu0 %vm3171_vm2, %v16800_v5  ;;  %v8404_v55 = vpop.permute.xlu0 %8403  ;;  %v20097_v62 = vld [vmem:[#allocation40_spill] sm:$0xff]  ;;  %v17162_v40 = vld [vmem:[#allocation2 + $0xa0] sm:$0xe] }
 0x26d   : > { %v8980_v33 = vsel %vm3244_vm3, %v8875_v56, %v7918_v41  ;;  %v8766_v20 = vsel %vm3317_vm4, %v8692_v6, %v7036_v18  ;;  %v8556_v39 = vrot.slane %v17065_v1, 1  ;;  %v6357_v63 = vor.u32 %v6355_v46, %v17069_v57  ;;  %12300 = vmatprep.mubr.msk.bf16.mxu0 %vm3171_vm2, %v16898_v28  ;;  %v4155_v41 = vpop.f32.mrb[83].mxu0  ;;  %6803 = vrot.lane.b32.xlu1 %v16904_v2, %s13004_s12  ;;  %v17152_v58 = vld [vmem:[#allocation2 + $0xb0] ss:$0 sps:$4 sm:$0x11]   ;;  %v17171_v6 = vpop.f32.mrb[61].mxu1 }
 0x26e   : > { %v5256_v15 = vsel %vm15383_vm9, %v5248_v36, %v5255_v7  ;;  %v4609_v59 = vadd.f32 %v16600_v37, %v4454_v53  ;;  %v4457_v12 = vadd.f32 %v20097_v62, %v4153_v29  ;;  %v8171_v5 = vshrl.u32 %v17065_v1, 16  ;;  %v17154_v31 = vld [vmem:[#allocation2 + $0xa4] sm:$0xf]  ;;  %7937 = vrot.lane.b32.xlu0 %v17025_v16, %s13004_s12  ;;  %v5676_v36 = vld [vmem:[#allocation2 + $0xa0] sm:$0xf] }
 0x26f   : > { %v5586_v57 = vsel %vm15455_vm6, %v5256_v15, %v5585_v0  ;;  %v9054_v37 = vsel %vm3317_vm4, %v8980_v33, %v8404_v55  ;;  %v7607_v28 = vrot.slane %v17128_v24, 1  ;;  %v6361_v46 = vrot.slane %v6359_v27, 1  ;;  %v17167_v44 = vld [vmem:[%s19694_s3] ss:$0 sm:$0xff]  ;;  %v6570_v7 = vpop.permute.xlu1 %6569  ;;  %v4744_v56 = vld [vmem:[#allocation2 + $0x118] sm:$0x1] }
 0x270   : > { %5587 = vst [vmem:[#allocation2 + $0xd0] sm:$0x3] %v5586_v57  ;;  %v4663_v2 = vmax.f32 %v4609_v59, 0.0  ;;  %v4610_v17 = vadd.f32 %v17167_v44, %v4457_v12  ;;  %9454 = vmatprep.mubr.bf16.mxu1 %v9054_v37  ;;  %v8173_v16 = vor.u32 %v8171_v5, %v8169_v45  ;;  %v7668_v27 = vpop.permute.xlu0 %7667  ;;  %v17175_v47 = vsel %vm1244_vm0, %v17098_v8, %v8556_v39  ;;  %v12271_v33 = vpop.f32.mrb[62].mxu1  ;;  %v17189_v8 = vld [vmem:[#allocation2 + $0xb8] sm:$0xf] }
 0x271   : > { %9455 = vmatmul.mubr.bf16.gmra.mrb[80].mxu1 %v8766_v20  ;;  %v17178_v53 = vsel %vm757_vm1, %v7211_v19, %v7215_v38  ;;  %v17181_v54 = vcombine.low %v5676_v36, %v17154_v31  ;;  %7055 = vrot.lane.b32.xlu1 %v16911_v14, %s13006_s22  ;;  %v8170_v20 = vsel %vm757_vm1, %v17106_v30, %v8169_v45  ;;  %v20099_v15 = vld [vmem:[#allocation29_spill] sm:$0xff]  ;;  %v17207_v30 = vld [vmem:[#allocation2 + $0xa8] sm:$0xff]   ;;  %v4745_v45 = vsel %vm14118_vm8, 0, %v4744_v56  ;;  %v17211_v12 = vpop.f32.mrb[63].mxu1 }
 0x272   : > { %v12059_v29 = vpack.c.bf16 %v4663_v2, %v4663_v2  ;;  %v4664_v55 = vmax.f32 %v4610_v17, 0.0  ;;  %v7220_v19 = vshll.u32 %v20099_v15, 16  ;;  %8423 = vrot.lane.b32.xlu0 %v8170_v20, %s13006_s22  ;;  %v17197_v38 = vsel %vm1244_vm0, %v17104_v4, %v7607_v28  ;;  %4746 = vst [vmem:[#allocation2 + $0x118] sm:$0x1] %v4745_v45  ;;  %v17226_v36 = vld [vmem:[#allocation2 + $0x58] sm:$0xff]  }
 0x273   : > { %20098 = vst [vmem:[#allocation10_spill] sm:$0xff] %v17181_v54  ;;  %v17202_v59 = vsel %vm1244_vm0, %v8556_v39, %v8558_v42  ;;  %v17205_v62 = vsel %vm757_vm1, %v6357_v63, %v6361_v46  ;;  %v6786_v57 = vpop.permute.xlu1 %6785  ;;  %v17215_v4 = vsel %vm757_vm1, %v8173_v16, %v17035_v13  ;;  %v7609_v42 = vrot.slane %v17152_v58, 1  ;;  %v17224_v46 = vld [vmem:[#allocation2 + $0xd8] ss:$0 sps:$4 sm:$0x11]   ;;  %v12891_v33 = vld [vmem:[#allocation2 + $0x1c] sm:$0xff]  }
 0x274   : > { %v5258_v41 = vshrl.u32 %v12059_v29, 16  ;;  %v12060_v5 = vpack.c.bf16 %v4664_v55, %v4664_v55  ;;  %12301 = vmatmul.mubr.msk.bf16.gmra.mrb[160].mxu0 %vm3171_vm2, %v16916_v43  ;;  %v7920_v39 = vpop.permute.xlu0 %7919  ;;  %v17221_v63 = vcombine.low %v5889_v50, %v17189_v8  ;;  %v7225_v13 = vshll.u32 %v17226_v36, 16  ;;  %v5588_v16 = vld [vmem:[#allocation2 + $0xdc] sm:$0xf] }
 0x275   : > { %v5261_v58 = vshll.u32 %v12059_v29, 16  ;;  %12304 = vmatprep.mubr.msk.bf16.mxu0 %vm3171_vm2, %v17007_v51  ;;  %6589 = vrot.lane.b32.xlu1 %v16931_v3, %s13005_s20  ;;  %v7222_v43 = vrot.slane %v7220_v19, 1  ;;  %v8622_v55 = vsel %vm3171_vm2, %v12891_v33, %v6570_v7  ;;  %v20100_v20 = vld [vmem:[#allocation28_spill] sm:$0xff]  ;;  %v6366_v29 = vshll.u32 %v17181_v54, 16  ;;  %v4158_v19 = vpop.f32.mrb[84].mxu0  ;;  %v20101_v33 = vld [vmem:[#allocation7_spill] sm:$0xff] }
 0x276   : > { %v5260_v17 = vrot.slane %v5258_v41, 7  ;;  %v5266_v56 = vshrl.u32 %v12060_v5, 16  ;;  %v8878_v45 = vsel %vm3171_vm2, %v20100_v20, %v7668_v27  ;;  %7687 = vrot.lane.b32.xlu0 %v17045_v34, %s13005_s20  ;;  %v6371_v41 = vshll.u32 %v17207_v30, 16  ;;  %v4160_v27 = vpop.f32.mrb[85].mxu0 }
 0x277   : > { %v5269_v51 = vshll.u32 %v12060_v5, 16  ;;  %v8694_v3 = vsel %vm3244_vm3, %v8622_v55, %v6786_v57  ;;  %v7038_v18 = vpop.permute.xlu1 %7037  ;;  %v8982_v7 = vsel %vm3244_vm3, %v8878_v45, %v7920_v39  ;;  %v4462_v2 = vadd.f32 %v20101_v33, %v4158_v19  ;;  %v20102_v57 = vld [vmem:[#allocation22_spill] sm:$0xff]  ;;  %v5958_v55 = vld [vmem:[#allocation2 + $0xb4] sm:$0xe]  ;;  %v17254_v45 = vld [vmem:[#allocation2 + $0xb8] sm:$0xf] }
 0x278   : > { %v5263_v50 = vor.u32 %v5261_v58, %v5260_v17  ;;  %v17241_v0 = vrot.slane %v5266_v56, 7  ;;  %v8406_v20 = vpop.permute.xlu0 %8405  ;;  %v8769_v34 = vsel %vm3317_vm4, %v8694_v3, %v7038_v18  ;;  %v8182_v48 = vshll.u32 %v17221_v63, 16  ;;  %v4161_v56 = vpop.f32.mrb[86].mxu0  ;;  %v20103_v27 = vld [vmem:[#allocation38_spill] sm:$0xff] }
 0x279   : > { %v5264_v37 = vrot.slane %v5260_v17, 4  ;;  %6805 = vrot.lane.b32.xlu1 %v20102_v57, %s13004_s12  ;;  %v9057_v39 = vsel %vm3317_vm4, %v8982_v7, %v8406_v20  ;;  %v4611_v18 = vadd.f32 %v17167_v44, %v4462_v2  ;;  %v4162_v3 = vpop.f32.mrb[87].mxu0  ;;  %v11907_v17 = vcombine.low %v5958_v55, %v17189_v8  ;;  %v17263_v7 = vld [vmem:[#allocation2 + $0xbc] sm:$0xff]   ;;  %v5850_v8 = vld [vmem:[#allocation2 + $0xb4] sm:$0xe] }
 0x27a   : > { %v5589_v58 = vsel %vm15361_vm5, %v5263_v50, %v5588_v16  ;;  %v5271_v5 = vor.u32 %v5269_v51, %v17241_v0  ;;  %7939 = vrot.lane.b32.xlu0 %v17065_v1, %s13004_s12  ;;  %9462 = vmatprep.mubr.bf16.mxu1 %v9057_v39  ;;  %v6368_v50 = vrot.slane %v6366_v29, 1  ;;  %v17268_v2 = vsel %vm1244_vm0, %v7607_v28, %v7609_v42  ;;  %v4807_v28 = vld [vmem:[#allocation2 + $0x120] sm:$0x2]  ;;  %v17295_v55 = vld [vmem:[#allocation2 + $0xec] ss:$0 sps:$4 sm:$0x11]  }
 0x27b   : > { %5590 = vst [vmem:[#allocation2 + $0xdc] sm:$0xf] %v5589_v58  ;;  %9463 = vmatmul.mubr.bf16.gmra.mrb[84].mxu1 %v8769_v34  ;;  %v6572_v19 = vpop.permute.xlu1 %6571  ;;  %v7218_v1 = vshrl.u32 %v20099_v15, 16  ;;  %v17271_v33 = vrot.slane %v7225_v13, 1  ;;  %v4665_v29 = vmax.f32 %v4611_v18, 0.0  ;;  %v6364_v20 = vshrl.u32 %v17181_v54, 16 }
 0x27c   : > { %v5272_v51 = vsel %vm15383_vm9, %v5264_v37, %v5271_v5  ;;  %12305 = vmatmul.mubr.msk.bf16.gmra.mrb[164].mxu0 %vm3171_vm2, %v20103_v27  ;;  %v7670_v37 = vpop.permute.xlu0 %7669  ;;  %v17277_v34 = vrot.slane %v6371_v41, 1  ;;  %v11836_v58 = vcombine.low %v5850_v8, %v17254_v45  ;;  %v20104_v15 = vld [vmem:[#allocation20_spill] sm:$0xff]  ;;  %v8184_v42 = vrot.slane %v8182_v48, 1 }
 0x27d   : > { %5591 = vst.msk [vmem:[#allocation2 + $0xe0] sm:$0xf] %vm4687_vm7, %v5272_v51  ;;  %12308 = vmatprep.mubr.msk.bf16.mxu0 %vm3171_vm2, %v17175_v47  ;;  %7057 = vrot.lane.b32.xlu1 %v20104_v15, %s13006_s22  ;;  %v20105_v13 = vrot.slane %v17116_v25, 1  ;;  %v20106_v5 = vrot.slane %v16988_v49, 1  ;;  %v7223_v57 = vor.u32 %v7222_v43, %v7218_v1  ;;  %v20107_v41 = vshll.u32 %v17135_v61, 16 }
 0x27e   : > { %v12061_v18 = vpack.c.bf16 %v4665_v29, %v4665_v29  ;;  %8425 = vrot.lane.b32.xlu0 %v17215_v4, %s13006_s22  ;;  %v8560_v47 = vrot.slane %v11907_v17, 1  ;;  %v6369_v48 = vor.u32 %v6368_v50, %v6364_v20  ;;  %v19763_v25 = vrot.slane %v17207_v30, 1 }
 0x27f   : > { %v17289_v56 = vsel %vm1244_vm0, %v20106_v5, %v20105_v13  ;;  %v17293_v39 = vrot.slane %v20107_v41, 1  ;;  %v6788_v3 = vpop.permute.xlu1 %6787  ;;  %v8561_v49 = vrot.slane %v17263_v7, 1  ;;  %v8180_v51 = vshrl.u32 %v17221_v63, 16 }
 0x280   : > { %v17304_v43 = vsel %vm757_vm1, %v7223_v57, %v17271_v33  ;;  %v4808_v1 = vsel %vm14201_vm11, 0, %v4807_v28  ;;  %v5275_v8 = vshrl.u32 %v12061_v18, 16  ;;  %v7922_v29 = vpop.permute.xlu0 %7921  ;;  %v17310_v4 = vsel %vm757_vm1, %v6369_v48, %v17277_v34  ;;  %v4165_v48 = vpop.f32.mrb[88].mxu0 }
 0x281   : > { %v17312_v17 = vrot.slane %v11836_v58, 1  ;;  %v20108_v50 = vcombine.low %v17162_v40, %v17154_v31  ;;  %4809 = vst [vmem:[#allocation2 + $0x120] sm:$0x2] %v4808_v1  ;;  %6591 = vrot.lane.b32.xlu1 %v17102_v26, %s13005_s20  ;;  %v17319_v20 = vor.u32 %v8184_v42, %v8180_v51  ;;  %v8187_v28 = vshll.u32 %v17263_v7, 16  ;;  %v20109_v58 = vld [vmem:[#allocation31_spill] sm:$0xff] }
 0x282   : > { %v7229_v13 = vshrl.u32 %v17226_v36, 16  ;;  %v5277_v5 = vrot.slane %v5275_v8, 7  ;;  %v5278_v57 = vshll.u32 %v12061_v18, 16  ;;  %v8624_v41 = vsel %vm3171_vm2, %v20109_v58, %v6572_v19  ;;  %7689 = vrot.lane.b32.xlu0 %v17197_v38, %s13005_s20  ;;  %v20110_v36 = vld [vmem:[#allocation41_spill] sm:$0xff]  ;;  %v4167_v18 = vpop.f32.mrb[89].mxu0 }
 0x283   : > { %v6729_v27 = vrot.slane %v20108_v50, 1  ;;  %v8881_v31 = vsel %vm3171_vm2, %v17079_v23, %v7670_v37  ;;  %v8696_v40 = vsel %vm3244_vm3, %v8624_v41, %v6788_v3  ;;  %v4469_v42 = vadd.f32 %v20110_v36, %v4165_v48  ;;  %v7040_v51 = vpop.permute.xlu1 %7039  ;;  %v17340_v1 = vld [vmem:[#allocation2 + $0xcc] sm:$0xf]  ;;  %v17342_v38 = vld [vmem:[#allocation2 + $0xbc] sm:$0xff]   ;;  %v4168_v37 = vpop.f32.mrb[90].mxu0  ;;  %v17349_v41 = vld [vmem:[#allocation2 + $0xd0] sm:$0xff]  }
 0x284   : > { %v8562_v19 = vsel %vm1244_vm0, %v8560_v47, %v8561_v49  ;;  %v5273_v8 = vrot.slane %v17241_v0, 4  ;;  %v5280_v50 = vor.u32 %v5278_v57, %v5277_v5  ;;  %v8984_v23 = vsel %vm3244_vm3, %v8881_v31, %v7922_v29  ;;  %12309 = vmatmul.mubr.msk.bf16.gmra.mrb[168].mxu0 %vm3171_vm2, %v17202_v59  ;;  %v8408_v3 = vpop.permute.xlu0 %8407  ;;  %v20111_v48 = vld [vmem:[#allocation44_spill] sm:$0xff]  ;;  %v4170_v0 = vpop.f32.mrb[91].mxu0  ;;  %v5959_v59 = vld [vmem:[#allocation2 + $0xc8] sm:$0xe] }
 0x285   : > { %v17331_v26 = vsel %vm1244_vm0, %v6729_v27, %v19763_v25  ;;  %v5592_v27 = vld [vmem:[#allocation2 + $0xe4] sm:$0x3]  ;;  %v8772_v58 = vsel %vm3317_vm4, %v8696_v40, %v7040_v51  ;;  %v4612_v47 = vadd.f32 %v17167_v44, %v4469_v42  ;;  %v4472_v36 = vadd.f32 %v20111_v48, %v4168_v37  ;;  %12312 = vmatprep.mubr.msk.bf16.mxu0 %vm3171_vm2, %v8562_v19  ;;  %v17357_v57 = vld [vmem:[#allocation2 + $0xb8] sm:$0xf]  ;;  %v5784_v51 = vld [vmem:[#allocation2 + $0xb4] sm:$0xf] }
 0x286   : > { %6807 = vrot.lane.b32.xlu1 %v17111_v21, %s13004_s12  ;;  %v9060_v29 = vsel %vm3317_vm4, %v8984_v23, %v8408_v3  ;;  %v8189_v5 = vrot.slane %v8187_v28, 1  ;;  %v5281_v31 = vsel %vm15383_vm9, %v5273_v8, %v5280_v50  ;;  %7941 = vrot.lane.b32.xlu0 %v17221_v63, %s13004_s12  ;;  %v11908_v40 = vcombine.low %v5959_v59, %v17340_v1  ;;  %v12892_v18 = vld [vmem:[#allocation2 + $0x60] ss:$0 sps:$4 sm:$0x11]   ;;  %v5680_v37 = vld [vmem:[#allocation2 + $0xb4] sm:$0xf] }
 0x287   : > { %9469 = vmatprep.mubr.bf16.mxu1 %v9060_v29  ;;  %v17365_v42 = vor.u32 %v7229_v13, %v17271_v33  ;;  %v7233_v21 = vshll.u32 %v12892_v18, 16  ;;  %v17367_v19 = vld [vmem:[#allocation2 + $0xb0] ss:$0 sps:$4 sm:$0x11]   ;;  %v5593_v28 = vsel %vm15455_vm6, %v5281_v31, %v5592_v27  ;;  %v4666_v23 = vmax.f32 %v4612_v47, 0.0  ;;  %v6574_v50 = vpop.permute.xlu1 %6573  ;;  %v17373_v3 = vpop.f32.mrb[64].mxu1 }
 0x288   : > { %v4613_v8 = vadd.f32 %v17167_v44, %v4472_v36  ;;  %9470 = vmatmul.mubr.bf16.gmra.mrb[88].mxu1 %v8772_v58  ;;  %v19765_v63 = vrot.slane %v17342_v38, 1  ;;  %20112 = vst [vmem:[#allocation8_spill] sm:$0xff] %v17373_v3  ;;  %5594 = vst [vmem:[#allocation2 + $0xe4] sm:$0x3] %v5593_v28  ;;  %v7672_v33 = vpop.permute.xlu0 %7671  ;;  %v17377_v48 = vcombine.low %v5784_v51, %v17254_v45  ;;  %v6379_v0 = vshll.u32 %v17367_v19, 16  ;;  %v17385_v58 = vpop.f32.mrb[65].mxu1 }
 0x289   : > { %v17380_v27 = vld [vmem:[#allocation2 + $0xc4] ss:$0 sps:$4 sm:$0x11]   ;;  %v17383_v47 = vcombine.low %v5680_v37, %v17357_v57  ;;  %20115 = vst [vmem:[#allocation35_spill] sm:$0xff] %v17385_v58  ;;  %v12062_v36 = vpack.c.bf16 %v4666_v23, %v4666_v23  ;;  %v8190_v59 = vsel %vm757_vm1, %v17319_v20, %v8189_v5  ;;  %v8191_v45 = vshrl.u32 %v17263_v7, 16  ;;  %v12275_v18 = vpop.f32.mrb[66].mxu1 }
 0x28a   : > { %20113 = vst [vmem:[#allocation36_spill] sm:$0xff] %v17377_v48  ;;  %v4667_v29 = vmax.f32 %v4613_v8, 0.0  ;;  %7059 = vrot.lane.b32.xlu1 %v17114_v52, %s13006_s22  ;;  %v4747_v31 = vld [vmem:[#allocation2 + $0x12c] sm:$0x1]  ;;  %8427 = vrot.lane.b32.xlu0 %v8190_v59, %s13006_s22  ;;  %v20116_v51 = vrot.slane %v17135_v61, 1  ;;  %v8565_v23 = vrot.slane %v11908_v40, 1  ;;  %v17409_v61 = vsel %vm1244_vm0, %v17312_v17, %v19765_v63 }
 0x28b   : > { %20114 = vst [vmem:[#allocation14_spill] sm:$0xff] %v17383_v47  ;;  %v17398_v8 = vrot.slane %v7233_v21, 1  ;;  %v6375_v37 = vshrl.u32 %v17207_v30, 16  ;;  %v17401_v15 = vpop.f32.mrb[67].mxu1  ;;  %v5283_v20 = vshrl.u32 %v12062_v36, 16  ;;  %v6790_v16 = vpop.permute.xlu1 %6789  ;;  %v8193_v18 = vor.u32 %v8191_v45, %v8189_v5 }
 0x28c   : > { %v8564_v28 = vsel %vm1244_vm0, %v8561_v49, %v20116_v51  ;;  %20117 = vst [vmem:[#allocation42_spill] sm:$0xff] %v17401_v15  ;;  %v12063_v25 = vpack.c.bf16 %v4667_v29, %v4667_v29  ;;  %v17403_v13 = vld [vmem:[#allocation2 + $0xe0] sm:$0xf]  ;;  %v20118_v49 = vrot.slane %v17349_v41, 1  ;;  %v7924_v21 = vpop.permute.xlu0 %7923  ;;  %v17418_v29 = vrot.slane %v6379_v0, 1 }
 0x28d   : > { %12313 = vmatmul.mubr.msk.bf16.gmra.mrb[172].mxu0 %vm3171_vm2, %v8564_v28  ;;  %v17416_v59 = vor.u32 %v6375_v37, %v17277_v34  ;;  %v4748_v5 = vsel %vm14118_vm8, 0, %v4747_v31  ;;  %v5285_v45 = vrot.slane %v5283_v20, 7  ;;  %v5286_v51 = vshll.u32 %v12062_v36, 16  ;;  %v5960_v17 = vld [vmem:[#allocation2 + $0xdc] sm:$0xe]  ;;  %v12893_v34 = vld [vmem:[#allocation2 + $0x30] sm:$0xff]  }
 0x28e   : > { %v8567_v40 = vsel %vm1244_vm0, %v8565_v23, %v20118_v49  ;;  %v5291_v54 = vshrl.u32 %v12063_v25, 16  ;;  %6593 = vrot.lane.b32.xlu1 %v17205_v62, %s13005_s20  ;;  %4749 = vst [vmem:[#allocation2 + $0x12c] sm:$0x1] %v4748_v5  ;;  %v5595_v23 = vld [vmem:[#allocation2 + $0xf0] sm:$0xf]  ;;  %v8626_v0 = vsel %vm3171_vm2, %v12893_v34, %v6574_v50  ;;  %v8884_v37 = vsel %vm3171_vm2, %v17178_v53, %v7672_v33  ;;  %v20119_v20 = vld [vmem:[#allocation26_spill] sm:$0xff] }
 0x28f   : > { %12316 = vmatprep.mubr.msk.bf16.mxu0 %vm3171_vm2, %v8567_v40  ;;  %7691 = vrot.lane.b32.xlu0 %v17268_v2, %s13005_s20  ;;  %v11909_v36 = vcombine.low %v5960_v17, %v17403_v13  ;;  %v5893_v31 = vld [vmem:[#allocation2 + $0xc8] sm:$0xf]  ;;  %v7240_v49 = vshll.u32 %v20119_v20, 16  ;;  %v5288_v62 = vor.u32 %v5286_v51, %v5285_v45  ;;  %v5294_v63 = vshll.u32 %v12063_v25, 16  ;;  %v4173_v28 = vpop.f32.mrb[92].mxu0  ;;  %v7042_v3 = vpop.permute.xlu1 %7041  ;;  %v20120_v33 = vld [vmem:[#allocation21_spill] sm:$0xff] }
 0x290   : > { %v17433_v40 = vrot.slane %v5291_v54, 7  ;;  %v8698_v5 = vsel %vm3244_vm3, %v8626_v0, %v6790_v16  ;;  %v17436_v50 = vld [vmem:[#allocation2 + $0xe4] sm:$0xff]   ;;  %v8986_v53 = vsel %vm3244_vm3, %v8884_v37, %v7924_v21  ;;  %v4477_v34 = vadd.f32 %v20120_v33, %v4173_v28  ;;  %v4175_v2 = vpop.f32.mrb[93].mxu0  ;;  %v8410_v15 = vpop.permute.xlu0 %8409  ;;  %v17450_v28 = vld [vmem:[#allocation2 + $0xbc] sm:$0xff]   ;;  %v17470_v33 = vld [vmem:[#allocation2 + $0x6c] sm:$0xff]  }
 0x291   : > { %v8775_v17 = vsel %vm3317_vm4, %v8698_v5, %v7042_v3  ;;  %v17442_v58 = vcombine.low %v5893_v31, %v17340_v1  ;;  %v5289_v54 = vrot.slane %v5285_v45, 4  ;;  %v5596_v25 = vsel %vm15361_vm5, %v5288_v62, %v5595_v23  ;;  %v4176_v51 = vpop.f32.mrb[94].mxu0  ;;  %v4810_v2 = vld [vmem:[#allocation2 + $0x134] sm:$0x2] }
 0x292   : > { %v5296_v16 = vor.u32 %v5294_v63, %v17433_v40  ;;  %6809 = vrot.lane.b32.xlu1 %v17289_v56, %s13004_s12  ;;  %v9063_v21 = vsel %vm3317_vm4, %v8986_v53, %v8410_v15  ;;  %5597 = vst [vmem:[#allocation2 + $0xf0] sm:$0xf] %v5596_v25  ;;  %v4614_v3 = vadd.f32 %v17167_v44, %v4477_v34  ;;  %v4177_v0 = vpop.f32.mrb[95].mxu0  ;;  %v8570_v1 = vrot.slane %v11909_v36, 1  ;;  %v17502_v51 = vld [vmem:[#allocation2 + $0xcc] sm:$0xf] }
 0x293   : > { %7943 = vrot.lane.b32.xlu0 %v17263_v7, %s13004_s12  ;;  %9477 = vmatprep.mubr.bf16.mxu1 %v9063_v21  ;;  %v8571_v45 = vrot.slane %v17436_v50, 1  ;;  %v6732_v63 = vrot.slane %v17367_v19, 1  ;;  %v20121_v15 = vrot.slane %v17224_v46, 1  ;;  %v20122_v23 = vrot.slane %v17349_v41, 1  ;;  %v6576_v31 = vpop.permute.xlu1 %6575 }
 0x294   : > { %v5297_v56 = vsel %vm15383_vm9, %v5289_v54, %v5296_v16  ;;  %9478 = vmatmul.mubr.bf16.gmra.mrb[92].mxu1 %v8775_v17  ;;  %v8198_v7 = vsel %vm757_vm1, %v8193_v18, %v17293_v39  ;;  %v7242_v62 = vrot.slane %v7240_v49, 1  ;;  %v4668_v36 = vmax.f32 %v4614_v3, 0.0  ;;  %v7674_v5 = vpop.permute.xlu0 %7673 }
 0x295   : > { %v8569_v37 = vsel %vm1244_vm0, %v20122_v23, %v20121_v15  ;;  %5598 = vst.msk [vmem:[#allocation2 + $0xf4] sm:$0xf] %vm4687_vm7, %v5297_v56  ;;  %v8572_v19 = vsel %vm1244_vm0, %v8570_v1, %v8571_v45  ;;  %v8202_v53 = vshll.u32 %v17442_v58, 16  ;;  %v7245_v34 = vshll.u32 %v17470_v33, 16 }
 0x296   : > { %12317 = vmatmul.mubr.msk.bf16.gmra.mrb[176].mxu0 %vm3171_vm2, %v8569_v37  ;;  %7061 = vrot.lane.b32.xlu1 %v17128_v24, %s13006_s22  ;;  %v17479_v39 = vsel %vm757_vm1, %v17365_v42, %v17398_v8  ;;  %v7238_v18 = vshrl.u32 %v20119_v20, 16  ;;  %v6386_v49 = vshll.u32 %v17383_v47, 16  ;;  %v6391_v17 = vshll.u32 %v17450_v28, 16 }
 0x297   : > { %12320 = vmatprep.mubr.msk.bf16.mxu0 %vm3171_vm2, %v8572_v19  ;;  %v12064_v54 = vpack.c.bf16 %v4668_v36, %v4668_v36  ;;  %8429 = vrot.lane.b32.xlu0 %v8198_v7, %s13006_s22  ;;  %v17488_v25 = vsel %vm757_vm1, %v17416_v59, %v17418_v29  ;;  %v20123_v24 = vrot.slane %v17380_v27, 1  ;;  %v20124_v16 = vrot.slane %v17342_v38, 1  ;;  %v6792_v21 = vpop.permute.xlu1 %6791 }
 0x298   : > { %v20125_v8 = vrot.slane %v17207_v30, 1  ;;  %v7243_v3 = vor.u32 %v7242_v62, %v7238_v18  ;;  %v8215_v0 = vshll.u32 %v17224_v46, 16  ;;  %v6384_v59 = vshrl.u32 %v17383_v47, 16  ;;  %v7926_v1 = vpop.permute.xlu0 %7925  ;;  %v5743_v62 = vld [vmem:[#allocation2 + $0xb4] sm:$0xe] }
 0x299   : > { %v17495_v42 = vsel %vm1244_vm0, %v20124_v16, %v20123_v24  ;;  %v4811_v27 = vsel %vm14201_vm11, 0, %v4810_v2  ;;  %v5300_v29 = vshrl.u32 %v12064_v54, 16  ;;  %v8200_v56 = vshrl.u32 %v17442_v58, 16  ;;  %v20126_v2 = vld [vmem:[#allocation23_spill] sm:$0xff]  ;;  %v20127_v24 = vld [vmem:[#allocation17_spill] sm:$0xff] }
 0x29a   : > { %v17500_v20 = vsel %vm1244_vm0, %v20125_v8, %v6732_v63  ;;  %v8204_v15 = vrot.slane %v8202_v53, 1  ;;  %v17509_v30 = vrot.slane %v7245_v34, 1  ;;  %v5851_v63 = vld [vmem:[#allocation2 + $0xc8] sm:$0xe]  ;;  %4812 = vst [vmem:[#allocation2 + $0x134] sm:$0x2] %v4811_v27  ;;  %6595 = vrot.lane.b32.xlu1 %v17310_v4, %s13005_s20  ;;  %v8628_v53 = vsel %vm3171_vm2, %v20126_v2, %v6576_v31 }
 0x29b   : > { %v8207_v23 = vshll.u32 %v17349_v41, 16  ;;  %v6388_v46 = vrot.slane %v6386_v49, 1  ;;  %v17514_v37 = vrot.slane %v6391_v17, 1  ;;  %v11837_v7 = vcombine.low %v5851_v63, %v17502_v51  ;;  %v4180_v34 = vpop.f32.mrb[96].mxu0  ;;  %7693 = vrot.lane.b32.xlu0 %v17409_v61, %s13005_s20  ;;  %v7044_v27 = vpop.permute.xlu1 %7043  ;;  %v5599_v63 = vld [vmem:[#allocation2 + $0xf8] sm:$0x3] }
 0x29c   : > { %v5302_v36 = vrot.slane %v5300_v29, 7  ;;  %v5303_v19 = vshll.u32 %v12064_v54, 16  ;;  %v17521_v18 = vld [vmem:[#allocation2 + $0x100] ss:$0 sps:$4 sm:$0x11]   ;;  %v11765_v4 = vcombine.low %v5743_v62, %v17357_v57  ;;  %v8887_v49 = vsel %vm3171_vm2, %v17304_v43, %v7674_v5  ;;  %v4182_v8 = vpop.f32.mrb[97].mxu0  ;;  %v8412_v43 = vpop.permute.xlu0 %8411 }
 0x29d   : > { %v8700_v17 = vsel %vm3244_vm3, %v8628_v53, %v6792_v21  ;;  %v4484_v16 = vadd.f32 %v20127_v24, %v4180_v34  ;;  %v20128_v54 = vrot.slane %v17295_v55, 1  ;;  %v5298_v29 = vrot.slane %v17433_v40, 4  ;;  %v4183_v57 = vpop.f32.mrb[98].mxu0  ;;  %v20129_v62 = vld [vmem:[#allocation11_spill] sm:$0xff] }
 0x29e   : > { %v5305_v61 = vor.u32 %v5303_v19, %v5302_v36  ;;  %v8988_v2 = vsel %vm3244_vm3, %v8887_v49, %v7926_v1  ;;  %v8778_v5 = vsel %vm3317_vm4, %v8700_v17, %v7044_v27  ;;  %v4487_v53 = vadd.f32 %v20129_v62, %v4183_v57  ;;  %v4185_v34 = vpop.f32.mrb[99].mxu0  ;;  %6811 = vrot.lane.b32.xlu1 %v17331_v26, %s13004_s12  ;;  %v17549_v17 = vld [vmem:[#allocation2 + $0xd0] sm:$0xff]   ;;  %v12896_v19 = vld [vmem:[#allocation2 + $0x44] sm:$0xff]  }
 0x29f   : > { %v8574_v31 = vsel %vm1244_vm0, %v8571_v45, %v20128_v54  ;;  %v4615_v21 = vadd.f32 %v17167_v44, %v4484_v16  ;;  %v9066_v40 = vsel %vm3317_vm4, %v8988_v2, %v8412_v43  ;;  %v8209_v45 = vrot.slane %v8207_v23, 1  ;;  %7945 = vrot.lane.b32.xlu0 %v17442_v58, %s13004_s12  ;;  %v6578_v16 = vpop.permute.xlu1 %6577  ;;  %v17554_v58 = vld [vmem:[#allocation2 + $0xcc] sm:$0xf]  ;;  %v17576_v2 = vld [vmem:[#allocation2 + $0xc4] ss:$0 sps:$4 sm:$0x11]  }
 0x2a0   : > { %12321 = vmatmul.mubr.msk.bf16.gmra.mrb[180].mxu0 %vm3171_vm2, %v8574_v31  ;;  %v5306_v1 = vsel %vm15383_vm9, %v5298_v29, %v5305_v61  ;;  %9484 = vmatprep.mubr.bf16.mxu1 %v9066_v40  ;;  %v17546_v36 = vsel %vm757_vm1, %v7243_v3, %v17509_v30  ;;  %v6389_v49 = vor.u32 %v6388_v46, %v6384_v59  ;;  %v7676_v54 = vpop.permute.xlu0 %7675  ;;  %v17556_v3 = vrot.slane %v8215_v0, 1  ;;  %v5897_v61 = vld [vmem:[#allocation2 + $0xdc] sm:$0xf]  ;;  %v5684_v0 = vld [vmem:[#allocation2 + $0xc8] sm:$0xf] }
 0x2a1   : > { %v5600_v26 = vsel %vm15455_vm6, %v5306_v1, %v5599_v63  ;;  %v4669_v23 = vmax.f32 %v4615_v21, 0.0  ;;  %v4616_v24 = vadd.f32 %v17167_v44, %v4487_v53  ;;  %9485 = vmatmul.mubr.bf16.gmra.mrb[96].mxu1 %v8778_v5  ;;  %v8205_v8 = vor.u32 %v8204_v15, %v8200_v56  ;;  %v17581_v62 = vld [vmem:[#allocation2 + $0xf4] sm:$0xf]  ;;  %v4750_v40 = vld [vmem:[#allocation2 + $0x140] sm:$0x1]  ;;  %v17586_v1 = vpop.f32.mrb[68].mxu1 }
 0x2a2   : > { %5601 = vst [vmem:[#allocation2 + $0xf8] sm:$0x3] %v5600_v26  ;;  %v17560_v59 = vsel %vm757_vm1, %v6389_v49, %v17514_v37  ;;  %v17562_v46 = vrot.slane %v11837_v7, 1  ;;  %v17564_v31 = vrot.slane %v11765_v4, 1  ;;  %7063 = vrot.lane.b32.xlu1 %v17377_v48, %s13006_s22  ;;  %v8211_v15 = vshrl.u32 %v17349_v41, 16  ;;  %20130 = vst [vmem:[#allocation16_spill] sm:$0xff] %v17586_v1 }
 0x2a3   : > { %v12065_v27 = vpack.c.bf16 %v4669_v23, %v4669_v23  ;;  %v4670_v29 = vmax.f32 %v4616_v24, 0.0  ;;  %v8210_v56 = vsel %vm757_vm1, %v8205_v8, %v8209_v45  ;;  %v17574_v4 = vcombine.low %v5897_v61, %v17403_v13  ;;  %v6794_v21 = vpop.permute.xlu1 %6793  ;;  %v12895_v13 = vld [vmem:[#allocation2 + $0x74] ss:$0 sps:$4 sm:$0x11]   ;;  %v20131_v8 = vld [vmem:[#allocation30_spill] sm:$0xff]  ;;  %v4188_v48 = vpop.f32.mrb[100].mxu0 }
 0x2a4   : > { %8431 = vrot.lane.b32.xlu0 %v8210_v56, %s13006_s22  ;;  %v17579_v57 = vcombine.low %v5684_v0, %v17554_v58  ;;  %v17583_v53 = vor.u32 %v8211_v15, %v8209_v45  ;;  %v7249_v34 = vshrl.u32 %v17470_v33, 16  ;;  %v7928_v49 = vpop.permute.xlu0 %7927  ;;  %v7253_v26 = vshll.u32 %v12895_v13, 16  ;;  %v5961_v33 = vld [vmem:[#allocation2 + $0xf0] sm:$0xe]  ;;  %v5602_v7 = vld [vmem:[#allocation2 + $0x104] sm:$0xf] }
 0x2a5   : > { %v5308_v43 = vshrl.u32 %v12065_v27, 16  ;;  %v12066_v5 = vpack.c.bf16 %v4670_v29, %v4670_v29  ;;  %v6395_v23 = vshrl.u32 %v17450_v28, 16  ;;  %v6399_v24 = vshll.u32 %v17576_v2, 16  ;;  %v17591_v29 = vpop.f32.mrb[69].mxu1  ;;  %v4190_v32 = vpop.f32.mrb[101].mxu0 }
 0x2a6   : > { %v7260_v56 = vshll.u32 %v20131_v8, 16  ;;  %20132 = vst [vmem:[#allocation9_spill] sm:$0xff] %v17591_v29  ;;  %v5311_v0 = vshll.u32 %v12065_v27, 16  ;;  %6597 = vrot.lane.b32.xlu1 %v17488_v25, %s13005_s20  ;;  %v17596_v15 = vor.u32 %v7249_v34, %v17509_v30  ;;  %v17598_v63 = vld [vmem:[#allocation2 + $0xd8] ss:$0 sps:$4 sm:$0x11]   ;;  %v8630_v47 = vsel %vm3171_vm2, %v12896_v19, %v6578_v16 }
 0x2a7   : > { %v5310_v61 = vrot.slane %v5308_v43, 7  ;;  %v5316_v45 = vshrl.u32 %v12066_v5, 16  ;;  %v12279_v13 = vpop.f32.mrb[70].mxu1  ;;  %v8890_v1 = vsel %vm3171_vm2, %v17479_v39, %v7676_v54  ;;  %v11910_v27 = vcombine.low %v5961_v33, %v17581_v62  ;;  %v7046_v19 = vpop.permute.xlu1 %7045  ;;  %v20133_v54 = vld [vmem:[#allocation43_spill] sm:$0xff] }
 0x2a8   : > { %7695 = vrot.lane.b32.xlu0 %v17495_v42, %s13005_s20  ;;  %v8222_v25 = vshll.u32 %v17574_v4, 16  ;;  %v17607_v43 = vpop.f32.mrb[71].mxu1  ;;  %v5319_v13 = vshll.u32 %v12066_v5, 16  ;;  %v8702_v29 = vsel %vm3244_vm3, %v8630_v47, %v6794_v21  ;;  %v8990_v39 = vsel %vm3244_vm3, %v8890_v1, %v7928_v49  ;;  %v8414_v33 = vpop.permute.xlu0 %8413 }
 0x2a9   : > { %v5313_v30 = vor.u32 %v5311_v0, %v5310_v61  ;;  %v17609_v34 = vrot.slane %v5316_v45, 7  ;;  %v17612_v16 = vld [vmem:[#allocation2 + $0xf8] sm:$0xff]   ;;  %v4492_v42 = vadd.f32 %v20133_v54, %v4188_v48  ;;  %v8781_v9 = vsel %vm3317_vm4, %v8702_v29, %v7046_v19  ;;  %v4191_v21 = vpop.f32.mrb[102].mxu0  ;;  %v5788_v54 = vld [vmem:[#allocation2 + $0xc8] sm:$0xf] }
 0x2aa   : > { %v4751_v0 = vsel %vm14118_vm8, 0, %v4750_v40  ;;  %v5314_v45 = vrot.slane %v5310_v61, 4  ;;  %6813 = vrot.lane.b32.xlu1 %v17500_v20, %s13004_s12  ;;  %v9069_v1 = vsel %vm3317_vm4, %v8990_v39, %v8414_v33  ;;  %v4192_v48 = vpop.f32.mrb[103].mxu0  ;;  %v8575_v40 = vrot.slane %v11910_v27, 1 }
 0x2ab   : > { %v5603_v5 = vsel %vm15361_vm5, %v5313_v30, %v5602_v7  ;;  %v5321_v47 = vor.u32 %v5319_v13, %v17609_v34  ;;  %4752 = vst [vmem:[#allocation2 + $0x140] sm:$0x1] %v4751_v0  ;;  %v4617_v32 = vadd.f32 %v17167_v44, %v4492_v42  ;;  %9492 = vmatprep.mubr.bf16.mxu1 %v9069_v1  ;;  %v8576_v7 = vrot.slane %v17612_v16, 1  ;;  %v6580_v20 = vpop.permute.xlu1 %6579 }
 0x2ac   : > { %5604 = vst [vmem:[#allocation2 + $0x104] sm:$0xf] %v5603_v5  ;;  %7947 = vrot.lane.b32.xlu0 %v17349_v41, %s13004_s12  ;;  %v7255_v49 = vrot.slane %v7253_v26, 1  ;;  %9493 = vmatmul.mubr.bf16.gmra.mrb[100].mxu1 %v8781_v9  ;;  %v6397_v61 = vor.u32 %v6395_v23, %v17514_v37  ;;  %v6401_v30 = vrot.slane %v6399_v24, 1  ;;  %v7619_v13 = vrot.slane %v17598_v63, 1  ;;  %v7678_v39 = vpop.permute.xlu0 %7677  ;;  %v17647_v23 = vld [vmem:[#allocation2 + $0x80] sm:$0xff]  }
 0x2ad   : > { %v5322_v29 = vsel %vm15383_vm9, %v5314_v45, %v5321_v47  ;;  %v4671_v19 = vmax.f32 %v4617_v32, 0.0  ;;  %v8577_v41 = vsel %vm1244_vm0, %v8575_v40, %v8576_v7  ;;  %v20134_v27 = vrot.slane %v17521_v18, 1 }
 0x2ae   : > { %5605 = vst.msk [vmem:[#allocation2 + $0x108] sm:$0xf] %vm4687_vm7, %v5322_v29  ;;  %v7262_v42 = vrot.slane %v7260_v56, 1  ;;  %12324 = vmatprep.mubr.msk.bf16.mxu0 %vm3171_vm2, %v8577_v41  ;;  %7065 = vrot.lane.b32.xlu1 %v17342_v38, %s13006_s22  ;;  %v8218_v9 = vsel %vm757_vm1, %v17583_v53, %v17556_v3  ;;  %v17645_v37 = vcombine.low %v5788_v54, %v17502_v51  ;;  %v8224_v63 = vrot.slane %v8222_v25, 1  ;;  %v17687_v41 = vld [vmem:[#allocation2 + $0xd0] sm:$0xff]   ;;  %v20139_v54 = vld [vmem:[#allocation18_spill] sm:$0xff] }
 0x2af   : > { %v8579_v26 = vsel %vm1244_vm0, %v8576_v7, %v20134_v27  ;;  %v7265_v24 = vshll.u32 %v17647_v23, 16  ;;  %v12067_v33 = vpack.c.bf16 %v4671_v19, %v4671_v19  ;;  %v20135_v56 = vrot.slane %v17450_v28, 1  ;;  %v6796_v53 = vpop.permute.xlu1 %6795  ;;  %v20138_v19 = vld [vmem:[#allocation27_spill] sm:$0xff] }
 0x2b0   : > { %12325 = vmatmul.mubr.msk.bf16.gmra.mrb[184].mxu0 %vm3171_vm2, %v8579_v26  ;;  %8433 = vrot.lane.b32.xlu0 %v8218_v9, %s13006_s22  ;;  %v7258_v3 = vshrl.u32 %v20131_v8, 16  ;;  %v6406_v51 = vshll.u32 %v17579_v57, 16  ;;  %v20136_v25 = vrot.slane %v17549_v17, 1  ;;  %v17664_v45 = vsel %vm757_vm1, %v17596_v15, %v7255_v49  ;;  %v7930_v21 = vpop.permute.xlu0 %7929 }
 0x2b1   : > { %v6736_v38 = vsel %vm1244_vm0, %v17564_v31, %v20135_v56  ;;  %v8220_v5 = vshrl.u32 %v17574_v4, 16  ;;  %v5325_v8 = vshrl.u32 %v12067_v33, 16  ;;  %v17673_v1 = vsel %vm757_vm1, %v6397_v61, %v6401_v30  ;;  %v4195_v30 = vpop.f32.mrb[104].mxu0  ;;  %v5606_v56 = vld [vmem:[#allocation2 + $0x10c] sm:$0x3] }
 0x2b2   : > { %v7618_v0 = vsel %vm1244_vm0, %v17562_v46, %v20136_v25  ;;  %v20137_v47 = vmov %v20136_v25  ;;  %v6737_v32 = vrot.slane %v17576_v2, 1  ;;  %v7263_v48 = vor.u32 %v7262_v42, %v7258_v3  ;;  %v4813_v46 = vld [vmem:[#allocation2 + $0x148] sm:$0x2]  ;;  %6599 = vrot.lane.b32.xlu1 %v17560_v59, %s13005_s20  ;;  %v17685_v2 = vld [vmem:[#allocation2 + $0x114] ss:$0 sps:$4 sm:$0x11]  }
 0x2b3   : > { %v17670_v31 = vsel %vm1244_vm0, %v20137_v47, %v7619_v13  ;;  %v8225_v15 = vor.u32 %v8224_v63, %v8220_v5  ;;  %v8227_v40 = vshll.u32 %v17436_v50, 16  ;;  %v17679_v7 = vrot.slane %v7265_v24, 1  ;;  %v4197_v42 = vpop.f32.mrb[105].mxu0  ;;  %v7048_v9 = vpop.permute.xlu1 %7047  ;;  %v5793_v63 = vld [vmem:[#allocation2 + $0xe0] sm:$0xf] }
 0x2b4   : > { %v8235_v49 = vshll.u32 %v17295_v55, 16  ;;  %v5327_v29 = vrot.slane %v5325_v8, 7  ;;  %v5328_v13 = vshll.u32 %v12067_v33, 16  ;;  %v8632_v61 = vsel %vm3171_vm2, %v20138_v19, %v6580_v20  ;;  %7697 = vrot.lane.b32.xlu0 %v7618_v0, %s13005_s20  ;;  %v8416_v25 = vpop.permute.xlu0 %8415  ;;  %v5744_v19 = vld [vmem:[#allocation2 + $0xc8] sm:$0xe] }
 0x2b5   : > { %v6408_v59 = vrot.slane %v6406_v51, 1  ;;  %v8893_v27 = vsel %vm3171_vm2, %v17546_v36, %v7678_v39  ;;  %v8704_v26 = vsel %vm3244_vm3, %v8632_v61, %v6796_v53  ;;  %v4499_v55 = vadd.f32 %v20139_v54, %v4195_v30  ;;  %v4198_v51 = vpop.f32.mrb[106].mxu0  ;;  %v20140_v53 = vld [vmem:[#allocation19_spill] sm:$0xff] }
 0x2b6   : > { %v4814_v20 = vsel %vm14201_vm11, 0, %v4813_v46  ;;  %v5323_v24 = vrot.slane %v17609_v34, 4  ;;  %v5330_v33 = vor.u32 %v5328_v13, %v5327_v29  ;;  %v8992_v3 = vsel %vm3244_vm3, %v8893_v27, %v7930_v21  ;;  %v4200_v5 = vpop.f32.mrb[107].mxu0  ;;  %6815 = vrot.lane.b32.xlu1 %v6736_v38, %s13004_s12  ;;  %v5852_v34 = vld [vmem:[#allocation2 + $0xdc] sm:$0xe]  ;;  %v17711_v27 = vld [vmem:[#allocation2 + $0xe4] sm:$0xff]  }
 0x2b7   : > { %v8784_v36 = vsel %vm3317_vm4, %v8704_v26, %v7048_v9  ;;  %4815 = vst [vmem:[#allocation2 + $0x148] sm:$0x2] %v4814_v20  ;;  %v4618_v39 = vadd.f32 %v17167_v44, %v4499_v55  ;;  %v4502_v0 = vadd.f32 %v20140_v53, %v4198_v51  ;;  %v9072_v47 = vsel %vm3317_vm4, %v8992_v3, %v8416_v25  ;;  %v6582_v30 = vpop.permute.xlu1 %6581  ;;  %v17737_v3 = vld [vmem:[#allocation2 + $0xd8] ss:$0 sps:$4 sm:$0x11]  }
 0x2b8   : > { %v8229_v8 = vrot.slane %v8227_v40, 1  ;;  %v5331_v46 = vsel %vm15383_vm9, %v5323_v24, %v5330_v33  ;;  %7949 = vrot.lane.b32.xlu0 %v17574_v4, %s13004_s12  ;;  %9499 = vmatprep.mubr.bf16.mxu1 %v9072_v47  ;;  %v6404_v21 = vshrl.u32 %v17579_v57, 16  ;;  %v6411_v29 = vshll.u32 %v17687_v41, 16  ;;  %v7680_v4 = vpop.permute.xlu0 %7679  ;;  %v12898_v47 = vld [vmem:[#allocation2 + $0x88] ss:$0 sps:$4 sm:$0x11]  }
 0x2b9   : > { %v11838_v13 = vcombine.low %v5852_v34, %v5793_v63  ;;  %v5607_v38 = vsel %vm15455_vm6, %v5331_v46, %v5606_v56  ;;  %v4672_v61 = vmax.f32 %v4618_v39, 0.0  ;;  %v4619_v40 = vadd.f32 %v17167_v44, %v4502_v0  ;;  %9500 = vmatmul.mubr.bf16.gmra.mrb[104].mxu1 %v8784_v36  ;;  %v17739_v39 = vld [vmem:[#allocation2 + $0x108] sm:$0xf] }
 0x2ba   : > { %v11766_v26 = vcombine.low %v5744_v19, %v17554_v58  ;;  %5608 = vst [vmem:[#allocation2 + $0x10c] sm:$0x3] %v5607_v38  ;;  %v20141_v54 = vrot.slane %v17450_v28, 1  ;;  %v17719_v42 = vsel %vm757_vm1, %v7263_v48, %v17679_v7  ;;  %v8583_v9 = vrot.slane %v17685_v2, 1  ;;  %7067 = vrot.lane.b32.xlu1 %v17645_v37, %s13006_s22  ;;  %v5792_v28 = vld [vmem:[#allocation2 + $0xdc] sm:$0xf] }
 0x2bb   : > { %v17722_v20 = vrot.slane %v8235_v49, 1  ;;  %v12068_v44 = vpack.c.bf16 %v4672_v61, %v4672_v61  ;;  %v4673_v24 = vmax.f32 %v4619_v40, 0.0  ;;  %v8230_v58 = vsel %vm757_vm1, %v8225_v15, %v8229_v8  ;;  %v6798_v36 = vpop.permute.xlu1 %6797  ;;  %v5609_v38 = vld [vmem:[#allocation2 + $0x118] sm:$0xf] }
 0x2bc   : > { %v6738_v55 = vsel %vm1244_vm0, %v20141_v54, %v6737_v32  ;;  %v17727_v33 = vor.u32 %v6408_v59, %v6404_v21  ;;  %8435 = vrot.lane.b32.xlu0 %v8230_v58, %s13006_s22  ;;  %v8231_v32 = vshrl.u32 %v17436_v50, 16  ;;  %v17731_v48 = vrot.slane %v6411_v29, 1  ;;  %v7932_v53 = vpop.permute.xlu0 %7931  ;;  %v12899_v61 = vld [vmem:[#allocation2 + $0x58] sm:$0xff]   ;;  %v5901_v54 = vld [vmem:[#allocation2 + $0xf0] sm:$0xf] }
 0x2bd   : > { %v17733_v56 = vrot.slane %v11838_v13, 1  ;;  %v17735_v49 = vcombine.low %v5792_v28, %v5793_v63  ;;  %v5333_v51 = vshrl.u32 %v12068_v44, 16  ;;  %v12069_v25 = vpack.c.bf16 %v4673_v24, %v4673_v24  ;;  %v5962_v13 = vld [vmem:[#allocation2 + $0x104] sm:$0xe]  ;;  %v4203_v28 = vpop.f32.mrb[108].mxu0 }
 0x2be   : > { %v7622_v15 = vrot.slane %v17711_v27, 1  ;;  %v17742_v59 = vrot.slane %v11766_v26, 1  ;;  %v7269_v5 = vshrl.u32 %v17647_v23, 16  ;;  %v7273_v34 = vshll.u32 %v12898_v47, 16  ;;  %6601 = vrot.lane.b32.xlu1 %v17673_v1, %s13005_s20  ;;  %v4205_v47 = vpop.f32.mrb[109].mxu0 }
 0x2bf   : > { %v6415_v63 = vshrl.u32 %v17687_v41, 16  ;;  %v5335_v46 = vrot.slane %v5333_v51, 7  ;;  %v5336_v21 = vshll.u32 %v12068_v44, 16  ;;  %v5341_v29 = vshrl.u32 %v12069_v25, 16  ;;  %v4206_v0 = vpop.f32.mrb[110].mxu0 }
 0x2c0   : > { %v8233_v19 = vor.u32 %v8231_v32, %v8229_v8  ;;  %v8634_v40 = vsel %vm3171_vm2, %v12899_v61, %v6582_v30  ;;  %v8896_v26 = vsel %vm3171_vm2, %v17664_v45, %v7680_v4  ;;  %7699 = vrot.lane.b32.xlu0 %v17670_v31, %s13005_s20  ;;  %v11911_v23 = vcombine.low %v5962_v13, %v17739_v39  ;;  %v7050_v32 = vpop.permute.xlu1 %7049  ;;  %v17761_v51 = vld [vmem:[#allocation2 + $0xec] ss:$0 sps:$4 sm:$0x11]   ;;  %v20142_v31 = vld [vmem:[#allocation13_spill] sm:$0xff]  ;;  %v8418_v13 = vpop.permute.xlu0 %8417 }
 0x2c1   : > { %v6419_v44 = vshll.u32 %v17737_v3, 16  ;;  %v5338_v24 = vor.u32 %v5336_v21, %v5335_v46  ;;  %v17756_v58 = vrot.slane %v5341_v29, 7  ;;  %v5344_v1 = vshll.u32 %v12069_v25, 16  ;;  %v17759_v30 = vld [vmem:[#allocation2 + $0x10c] sm:$0xff]   ;;  %v4753_v25 = vld [vmem:[#allocation2 + $0x154] sm:$0x1] }
 0x2c2   : > { %v8706_v8 = vsel %vm3244_vm3, %v8634_v40, %v6798_v36  ;;  %v8994_v45 = vsel %vm3244_vm3, %v8896_v26, %v7932_v53  ;;  %v4507_v4 = vadd.f32 %v20142_v31, %v4203_v28  ;;  %v17767_v21 = vcombine.low %v5901_v54, %v17581_v62  ;;  %6817 = vrot.lane.b32.xlu1 %v6738_v55, %s13004_s12  ;;  %v17777_v26 = vld [vmem:[%s19694_s3] ss:$0 sm:$0xff]  ;;  %v4207_v54 = vpop.f32.mrb[111].mxu0 }
 0x2c3   : > { %v8787_v61 = vsel %vm3317_vm4, %v8706_v8, %v7050_v32  ;;  %v5339_v29 = vrot.slane %v5335_v46, 4  ;;  %v5610_v36 = vsel %vm15361_vm5, %v5338_v24, %v5609_v38  ;;  %v5346_v40 = vor.u32 %v5344_v1, %v17756_v58 }
 0x2c4   : > { %v9075_v53 = vsel %vm3317_vm4, %v8994_v45, %v8418_v13  ;;  %5611 = vst [vmem:[#allocation2 + $0x118] sm:$0xf] %v5610_v36  ;;  %v4620_v62 = vadd.f32 %v17777_v26, %v4507_v4  ;;  %7951 = vrot.lane.b32.xlu0 %v17436_v50, %s13004_s12  ;;  %v8580_v46 = vrot.slane %v11911_v23, 1  ;;  %v8581_v0 = vrot.slane %v17759_v30, 1  ;;  %v6584_v24 = vpop.permute.xlu1 %6583  ;;  %v7682_v32 = vpop.permute.xlu0 %7681  ;;  %v17794_v45 = vld [vmem:[#allocation2 + $0xe0] sm:$0xf] }
 0x2c5   : > { %9507 = vmatprep.mubr.bf16.mxu1 %v9075_v53  ;;  %v7271_v55 = vor.u32 %v7269_v5, %v17679_v7  ;;  %v5347_v38 = vsel %vm15383_vm9, %v5339_v29, %v5346_v40  ;;  %v7275_v1 = vrot.slane %v7273_v34, 1  ;;  %v6417_v8 = vor.u32 %v6415_v63, %v17731_v48 }
 0x2c6   : > { %9508 = vmatmul.mubr.bf16.gmra.mrb[108].mxu1 %v8787_v61  ;;  %v4754_v28 = vsel %vm14118_vm8, 0, %v4753_v25  ;;  %5612 = vst.msk [vmem:[#allocation2 + $0x11c] sm:$0xf] %vm4687_vm7, %v5347_v38  ;;  %v4674_v50 = vmax.f32 %v4620_v62, 0.0  ;;  %v8582_v23 = vsel %vm1244_vm0, %v8580_v46, %v8581_v0  ;;  %v8584_v7 = vsel %vm1244_vm0, %v8581_v0, %v8583_v9  ;;  %7069 = vrot.lane.b32.xlu1 %v17549_v17, %s13006_s22  ;;  %v20144_v46 = vld [vmem:[#allocation15_spill] sm:$0xff] }
 0x2c7   : > { %v6421_v5 = vrot.slane %v6419_v44, 1  ;;  %4755 = vst [vmem:[#allocation2 + $0x154] sm:$0x1] %v4754_v28  ;;  %12328 = vmatprep.mubr.msk.bf16.mxu0 %vm3171_vm2, %v8582_v23  ;;  %v8238_v34 = vsel %vm757_vm1, %v8233_v19, %v17722_v20  ;;  %v8242_v63 = vshll.u32 %v17767_v21, 16  ;;  %v7624_v31 = vrot.slane %v17761_v51, 1 }
 0x2c8   : > { %v7280_v4 = vshll.u32 %v16911_v14, 16  ;;  %v12070_v47 = vpack.c.bf16 %v4674_v50, %v4674_v50  ;;  %12329 = vmatmul.mubr.msk.bf16.gmra.mrb[188].mxu0 %vm3171_vm2, %v8584_v7  ;;  %8437 = vrot.lane.b32.xlu0 %v8238_v34, %s13006_s22  ;;  %v6414_v9 = vsel %vm757_vm1, %v17727_v33, %v17731_v48  ;;  %v7623_v17 = vsel %vm1244_vm0, %v17733_v56, %v7622_v15  ;;  %v5688_v20 = vld [vmem:[#allocation2 + $0xdc] sm:$0xf]  ;;  %v6800_v19 = vpop.permute.xlu1 %6799  ;;  %v7934_v48 = vpop.permute.xlu0 %7933  ;;  %v17846_v7 = vld [vmem:[#allocation2 + $0x128] ss:$0 sps:$4 sm:$0x11]  }
 0x2c9   : > { %v20143_v44 = vrot.slane %v17687_v41, 1  ;;  %v17818_v13 = vsel %vm757_vm1, %v7271_v55, %v7275_v1  ;;  %v6742_v61 = vrot.slane %v17737_v3, 1  ;;  %v17822_v25 = vcombine.low %v5688_v20, %v17794_v45  ;;  %v4210_v55 = vpop.f32.mrb[112].mxu0 }
 0x2ca   : > { %v5350_v33 = vshrl.u32 %v12070_v47, 16  ;;  %v8240_v29 = vshrl.u32 %v17767_v21, 16  ;;  %v17826_v56 = vsel %vm757_vm1, %v6417_v8, %v6421_v5  ;;  %v7278_v36 = vshrl.u32 %v16911_v14, 16  ;;  %6603 = vrot.lane.b32.xlu1 %v6414_v9, %s13005_s20  ;;  %v17839_v14 = vld [vmem:[#allocation2 + $0x94] sm:$0xff]   ;;  %v4212_v50 = vpop.f32.mrb[113].mxu0  ;;  %v17848_v5 = vld [vmem:[#allocation2 + $0xe4] sm:$0xff]  }
 0x2cb   : > { %v6741_v51 = vsel %vm1244_vm0, %v17742_v59, %v20143_v44  ;;  %v8244_v59 = vrot.slane %v8242_v63, 1  ;;  %v8247_v40 = vshll.u32 %v17612_v16, 16  ;;  %v17834_v3 = vsel %vm1244_vm0, %v7622_v15, %v7624_v31  ;;  %v20145_v15 = vld [vmem:[#allocation37_spill] sm:$0xff] }
 0x2cc   : > { %v7282_v53 = vrot.slane %v7280_v4, 1  ;;  %v5352_v62 = vrot.slane %v5350_v33, 7  ;;  %v5353_v54 = vshll.u32 %v12070_v47, 16  ;;  %v8636_v0 = vsel %vm3171_vm2, %v20144_v46, %v6584_v24  ;;  %7701 = vrot.lane.b32.xlu0 %v7623_v17, %s13005_s20  ;;  %v7052_v23 = vpop.permute.xlu1 %7051  ;;  %v5613_v31 = vld [vmem:[#allocation2 + $0x120] sm:$0x3]  ;;  %v4213_v47 = vpop.f32.mrb[114].mxu0 }
 0x2cd   : > { %v7285_v38 = vshll.u32 %v17839_v14, 16  ;;  %v8899_v1 = vsel %vm3171_vm2, %v17719_v42, %v7682_v32  ;;  %v8708_v8 = vsel %vm3244_vm3, %v8636_v0, %v6800_v19  ;;  %v4514_v28 = vadd.f32 %v20145_v15, %v4210_v55  ;;  %v8420_v42 = vpop.permute.xlu0 %8419  ;;  %v20146_v17 = vld [vmem:[#allocation24_spill] sm:$0xff]  ;;  %v4215_v19 = vpop.f32.mrb[115].mxu0 }
 0x2ce   : > { %v6426_v24 = vshll.u32 %v17822_v25, 16  ;;  %v5348_v34 = vrot.slane %v17756_v58, 4  ;;  %v5355_v63 = vor.u32 %v5353_v54, %v5352_v62  ;;  %v8996_v4 = vsel %vm3244_vm3, %v8899_v1, %v7934_v48  ;;  %6819 = vrot.lane.b32.xlu1 %v6741_v51, %s13004_s12  ;;  %v17858_v46 = vld [vmem:[#allocation2 + $0xf4] sm:$0xf]  ;;  %v4816_v15 = vld [vmem:[#allocation2 + $0x15c] sm:$0x2] }
 0x2cf   : > { %v8790_v32 = vsel %vm3317_vm4, %v8708_v8, %v7052_v23  ;;  %v4621_v9 = vadd.f32 %v17777_v26, %v4514_v28  ;;  %v4517_v20 = vadd.f32 %v20146_v17, %v4213_v47  ;;  %v9078_v44 = vsel %vm3317_vm4, %v8996_v4, %v8420_v42  ;;  %v5853_v8 = vld [vmem:[#allocation2 + $0xf0] sm:$0xe]  ;;  %v17891_v42 = vld [vmem:[#allocation2 + $0x11c] sm:$0xf] }
 0x2d0   : > { %v8249_v33 = vrot.slane %v8247_v40, 1  ;;  %v5356_v58 = vsel %vm15383_vm9, %v5348_v34, %v5355_v63  ;;  %7953 = vrot.lane.b32.xlu0 %v17767_v21, %s13004_s12  ;;  %9514 = vmatprep.mubr.bf16.mxu1 %v9078_v44  ;;  %v8245_v48 = vor.u32 %v8244_v59, %v8240_v29  ;;  %v17864_v62 = vrot.slane %v7285_v38, 1  ;;  %v6586_v55 = vpop.permute.xlu1 %6585 }
 0x2d1   : > { %v8255_v54 = vshll.u32 %v17521_v18, 16  ;;  %v5614_v51 = vsel %vm15455_vm6, %v5356_v58, %v5613_v31  ;;  %v4675_v0 = vmax.f32 %v4621_v9, 0.0  ;;  %v4622_v40 = vadd.f32 %v17777_v26, %v4517_v20  ;;  %9515 = vmatmul.mubr.bf16.gmra.mrb[112].mxu1 %v8790_v32  ;;  %v7684_v21 = vpop.permute.xlu0 %7683 }
 0x2d2   : > { %v6431_v1 = vshll.u32 %v17848_v5, 16  ;;  %5615 = vst [vmem:[#allocation2 + $0x120] sm:$0x3] %v5614_v51  ;;  %v20147_v29 = vrot.slane %v17687_v41, 1  ;;  %v7283_v38 = vor.u32 %v7282_v53, %v7278_v36  ;;  %v6428_v18 = vrot.slane %v6426_v24, 1  ;;  %7071 = vrot.lane.b32.xlu1 %v17735_v49, %s13006_s22 }
 0x2d3   : > { %v11839_v28 = vcombine.low %v5853_v8, %v17858_v46  ;;  %v12071_v50 = vpack.c.bf16 %v4675_v0, %v4675_v0  ;;  %v4676_v23 = vmax.f32 %v4622_v40, 0.0  ;;  %v8250_v34 = vsel %vm757_vm1, %v8245_v48, %v8249_v33  ;;  %v17887_v53 = vld [vmem:[#allocation2 + $0xdc] sm:$0xe]  ;;  %v5963_v0 = vld [vmem:[#allocation2 + $0x118] sm:$0xe]  ;;  %v12902_v8 = vld [vmem:[#allocation2 + $0x6c] sm:$0xff]  }
 0x2d4   : > { %v6743_v59 = vsel %vm1244_vm0, %v20147_v29, %v6742_v61  ;;  %v8588_v63 = vrot.slane %v17846_v7, 1  ;;  %8439 = vrot.lane.b32.xlu0 %v8250_v34, %s13006_s22  ;;  %v17882_v41 = vsel %vm757_vm1, %v7283_v38, %v17864_v62  ;;  %v17884_v61 = vrot.slane %v8255_v54, 1  ;;  %v6802_v47 = vpop.permute.xlu1 %6801  ;;  %v17911_v38 = vld [vmem:[#allocation2 + $0xf8] sm:$0xff]  }
 0x2d5   : > { %v6424_v36 = vshrl.u32 %v17822_v25, 16  ;;  %v4817_v24 = vsel %vm14201_vm11, 0, %v4816_v15  ;;  %v5358_v31 = vshrl.u32 %v12071_v50, 16  ;;  %v12072_v4 = vpack.c.bf16 %v4676_v23, %v4676_v23  ;;  %v7936_v17 = vpop.permute.xlu0 %7935 }
 0x2d6   : > { %v8251_v32 = vshrl.u32 %v17612_v16, 16  ;;  %v17894_v9 = vrot.slane %v6431_v1, 1  ;;  %4818 = vst [vmem:[#allocation2 + $0x15c] sm:$0x2] %v4817_v24  ;;  %v17898_v19 = vrot.slane %v11839_v28, 1  ;;  %v11767_v44 = vcombine.low %v17887_v53, %v17794_v45  ;;  %6605 = vrot.lane.b32.xlu1 %v17826_v56, %s13005_s20 }
 0x2d7   : > { %v17896_v20 = vor.u32 %v6428_v18, %v6424_v36  ;;  %v7289_v58 = vshrl.u32 %v17839_v14, 16  ;;  %v5360_v48 = vrot.slane %v5358_v31, 7  ;;  %v5361_v54 = vshll.u32 %v12071_v50, 16  ;;  %v5616_v1 = vld [vmem:[#allocation2 + $0x12c] sm:$0xf] }
 0x2d8   : > { %v5366_v51 = vshrl.u32 %v12072_v4, 16  ;;  %v8253_v40 = vor.u32 %v8251_v32, %v8249_v33  ;;  %v8638_v15 = vsel %vm3171_vm2, %v12902_v8, %v6586_v55  ;;  %v8902_v29 = vsel %vm3171_vm2, %v17818_v13, %v7684_v21  ;;  %7703 = vrot.lane.b32.xlu0 %v17834_v3, %s13005_s20  ;;  %v5905_v18 = vld [vmem:[#allocation2 + $0x104] sm:$0xf]  ;;  %v12903_v28 = vld [vmem:[#allocation2 + $0x9c] ss:$0 sps:$4 sm:$0x11]   ;;  %v7054_v36 = vpop.permute.xlu1 %7053 }
 0x2d9   : > { %v11912_v14 = vcombine.low %v5963_v0, %v17891_v42  ;;  %v7293_v50 = vshll.u32 %v12903_v28, 16  ;;  %v5363_v56 = vor.u32 %v5361_v54, %v5360_v48  ;;  %v5369_v33 = vshll.u32 %v12072_v4, 16  ;;  %v4218_v55 = vpop.f32.mrb[116].mxu0  ;;  %v17916_v24 = vld [vmem:[#allocation2 + $0x120] sm:$0xff]   ;;  %v8422_v32 = vpop.permute.xlu0 %8421 }
 0x2da   : > { %v17913_v23 = vrot.slane %v5366_v51, 7  ;;  %v8710_v34 = vsel %vm3244_vm3, %v8638_v15, %v6802_v47  ;;  %v8998_v13 = vsel %vm3244_vm3, %v8902_v29, %v7936_v17  ;;  %v20148_v3 = vld [vmem:[#allocation6_spill] sm:$0xff]  ;;  %v4220_v31 = vpop.f32.mrb[117].mxu0  ;;  %v17922_v8 = vcombine.low %v5905_v18, %v17739_v39  ;;  %v12759_v4 = vld [vmem:[#allocation2 + $0x100] ss:$0 sps:$4 sm:$0x11]   ;;  %6821 = vrot.lane.b32.xlu1 %v6743_v59, %s13004_s12 }
 0x2db   : > { %v4522_v21 = vadd.f32 %v20148_v3, %v4218_v55  ;;  %v8793_v0 = vsel %vm3317_vm4, %v8710_v34, %v7054_v36  ;;  %v17924_v54 = vld [vmem:[#allocation2 + $0xec] ss:$0 sps:$4 sm:$0x11]   ;;  %v5364_v51 = vrot.slane %v5360_v48, 4  ;;  %v5617_v47 = vsel %vm15361_vm5, %v5363_v56, %v5616_v1  ;;  %v4221_v28 = vpop.f32.mrb[118].mxu0 }
 0x2dc   : > { %v5371_v15 = vor.u32 %v5369_v33, %v17913_v23  ;;  %v9081_v17 = vsel %vm3317_vm4, %v8998_v13, %v8422_v32  ;;  %5618 = vst [vmem:[#allocation2 + $0x12c] sm:$0xf] %v5617_v47  ;;  %v4222_v34 = vpop.f32.mrb[119].mxu0  ;;  %7955 = vrot.lane.b32.xlu0 %v17612_v16, %s13004_s12  ;;  %v8585_v39 = vrot.slane %v11912_v14, 1  ;;  %v8586_v48 = vrot.slane %v17916_v24, 1  ;;  %v6588_v59 = vpop.permute.xlu1 %6587 }
 0x2dd   : > { %v4623_v29 = vadd.f32 %v17777_v26, %v4522_v21  ;;  %9522 = vmatprep.mubr.bf16.mxu1 %v9081_v17  ;;  %v7627_v1 = vrot.slane %v17911_v38, 1  ;;  %v6745_v56 = vrot.slane %v17848_v5, 1  ;;  %v7291_v33 = vor.u32 %v7289_v58, %v17864_v62  ;;  %v4756_v36 = vld [vmem:[#allocation2 + $0x168] sm:$0x1]  ;;  %v7686_v13 = vpop.permute.xlu0 %7685  ;;  %v17976_v17 = vld [vmem:[#allocation2 + $0xf4] sm:$0xf] }
 0x2de   : > { %v5372_v18 = vsel %vm15383_vm9, %v5364_v51, %v5371_v15  ;;  %9523 = vmatmul.mubr.bf16.gmra.mrb[116].mxu1 %v8793_v0  ;;  %v7295_v55 = vrot.slane %v7293_v50, 1  ;;  %v8587_v14 = vsel %vm1244_vm0, %v8585_v39, %v8586_v48  ;;  %v8589_v3 = vsel %vm1244_vm0, %v8586_v48, %v8588_v63  ;;  %7073 = vrot.lane.b32.xlu1 %v17711_v27, %s13006_s22  ;;  %v5796_v27 = vld [vmem:[#allocation2 + $0xf0] sm:$0xf] }
 0x2df   : > { %5619 = vst.msk [vmem:[#allocation2 + $0x130] sm:$0xf] %vm4687_vm7, %v5372_v18  ;;  %v4677_v16 = vmax.f32 %v4623_v29, 0.0  ;;  %v6439_v21 = vshll.u32 %v17924_v54, 16  ;;  %12332 = vmatprep.mubr.msk.bf16.mxu0 %vm3171_vm2, %v8587_v14  ;;  %v8258_v62 = vsel %vm757_vm1, %v8253_v40, %v17884_v61  ;;  %v6744_v58 = vrot.slane %v11767_v44, 1  ;;  %v20149_v18 = vld [vmem:[#allocation32_spill] sm:$0xff] }
 0x2e0   : > { %v8262_v50 = vshll.u32 %v17922_v8, 16  ;;  %v7629_v31 = vrot.slane %v12759_v4, 1  ;;  %12333 = vmatmul.mubr.msk.bf16.gmra.mrb[192].mxu0 %vm3171_vm2, %v8589_v3  ;;  %8441 = vrot.lane.b32.xlu0 %v8258_v62, %s13006_s22  ;;  %v6434_v63 = vsel %vm757_vm1, %v17896_v20, %v17894_v9  ;;  %v6435_v0 = vshrl.u32 %v17848_v5, 16  ;;  %v6804_v45 = vpop.permute.xlu1 %6803 }
 0x2e1   : > { %v12073_v32 = vpack.c.bf16 %v4677_v16, %v4677_v16  ;;  %v4757_v61 = vsel %vm14118_vm8, 0, %v4756_v36  ;;  %v7628_v53 = vsel %vm1244_vm0, %v17898_v19, %v7627_v1  ;;  %v6746_v44 = vsel %vm1244_vm0, %v6744_v58, %v6745_v56  ;;  %v7938_v51 = vpop.permute.xlu0 %7937  ;;  %v5692_v36 = vld [vmem:[#allocation2 + $0xf0] sm:$0xf]  ;;  %v5620_v58 = vld [vmem:[#allocation2 + $0x134] sm:$0x3] }
 0x2e2   : > { %v17969_v40 = vsel %vm757_vm1, %v7291_v33, %v7295_v55  ;;  %v17972_v4 = vcombine.low %v5796_v27, %v17858_v46  ;;  %4758 = vst [vmem:[#allocation2 + $0x168] sm:$0x1] %v4757_v61  ;;  %v8260_v47 = vshrl.u32 %v17922_v8, 16  ;;  %v6437_v15 = vor.u32 %v6435_v0, %v17894_v9  ;;  %6607 = vrot.lane.b32.xlu1 %v6434_v63, %s13005_s20  ;;  %v4225_v55 = vpop.f32.mrb[120].mxu0 }
 0x2e3   : > { %v5375_v20 = vshrl.u32 %v12073_v32, 16  ;;  %v6441_v28 = vrot.slane %v6439_v21, 1  ;;  %v8264_v19 = vrot.slane %v8262_v50, 1  ;;  %v8267_v29 = vshll.u32 %v17759_v30, 16  ;;  %v4227_v3 = vpop.f32.mrb[121].mxu0 }
 0x2e4   : > { %v17981_v34 = vsel %vm1244_vm0, %v7627_v1, %v7629_v31  ;;  %v6747_v46 = vrot.slane %v17924_v54, 1  ;;  %v5378_v48 = vshll.u32 %v12073_v32, 16  ;;  %v8640_v33 = vsel %vm3171_vm2, %v20149_v18, %v6588_v59  ;;  %7705 = vrot.lane.b32.xlu0 %v7628_v53, %s13005_s20  ;;  %v7056_v54 = vpop.permute.xlu1 %7055  ;;  %v4228_v31 = vpop.f32.mrb[122].mxu0  ;;  %v5854_v3 = vld [vmem:[#allocation2 + $0x104] sm:$0xe] }
 0x2e5   : > { %v5377_v39 = vrot.slane %v5375_v20, 7  ;;  %v7300_v9 = vshll.u32 %v17114_v52, 16  ;;  %v8905_v16 = vsel %vm3171_vm2, %v17882_v41, %v7686_v13  ;;  %v8712_v14 = vsel %vm3244_vm3, %v8640_v33, %v6804_v45  ;;  %v8424_v32 = vpop.permute.xlu0 %8423  ;;  %v17998_v41 = vld [vmem:[#allocation2 + $0xf8] sm:$0xff]   ;;  %v4230_v27 = vpop.f32.mrb[123].mxu0  ;;  %v18008_v20 = vld [vmem:[#allocation2 + $0xa8] sm:$0xff]  }
 0x2e6   : > { %v4529_v1 = vadd.f32 %v17171_v6, %v4225_v55  ;;  %v17993_v21 = vcombine.low %v5692_v36, %v17976_v17  ;;  %v5373_v59 = vrot.slane %v17913_v23, 4  ;;  %v9000_v50 = vsel %vm3244_vm3, %v8905_v16, %v7938_v51  ;;  %6823 = vrot.lane.b32.xlu1 %v6746_v44, %s13004_s12  ;;  %v18021_v36 = vld [vmem:[#allocation2 + $0x108] sm:$0xf]  ;;  %v5856_v35 = vld [vmem:[#allocation2 + $0x12c] sm:$0xe] }
 0x2e7   : > { %v5380_v62 = vor.u32 %v5378_v48, %v5377_v39  ;;  %v8796_v63 = vsel %vm3317_vm4, %v8712_v14, %v7056_v54  ;;  %v4532_v6 = vadd.f32 %v17211_v12, %v4228_v31  ;;  %v9084_v0 = vsel %vm3317_vm4, %v9000_v50, %v8424_v32  ;;  %v18011_v12 = vld [vmem:[#allocation2 + $0x13c] ss:$0 sps:$4 sm:$0x11]   ;;  %v18037_v50 = vld [vmem:[#allocation2 + $0x130] sm:$0xf] }
 0x2e8   : > { %v4624_v13 = vadd.f32 %v17777_v26, %v4529_v1  ;;  %v8269_v23 = vrot.slane %v8267_v29, 1  ;;  %7957 = vrot.lane.b32.xlu0 %v17922_v8, %s13004_s12  ;;  %9529 = vmatprep.mubr.bf16.mxu1 %v9084_v0  ;;  %v8265_v45 = vor.u32 %v8264_v19, %v8260_v47  ;;  %v7302_v53 = vrot.slane %v7300_v9, 1  ;;  %v6590_v48 = vpop.permute.xlu1 %6589  ;;  %v4819_v8 = vld [vmem:[#allocation2 + $0x170] sm:$0x2] }
 0x2e9   : > { %v5381_v61 = vsel %vm15383_vm9, %v5373_v59, %v5380_v62  ;;  %v7305_v51 = vshll.u32 %v18008_v20, 16  ;;  %v4625_v29 = vadd.f32 %v17777_v26, %v4532_v6  ;;  %9530 = vmatmul.mubr.bf16.gmra.mrb[120].mxu1 %v8796_v63  ;;  %v8275_v18 = vshll.u32 %v17685_v2, 16  ;;  %v7688_v47 = vpop.permute.xlu0 %7687  ;;  %v5746_v6 = vld [vmem:[#allocation2 + $0xf0] sm:$0xe] }
 0x2ea   : > { %v5621_v44 = vsel %vm15455_vm6, %v5381_v61, %v5620_v58  ;;  %v4678_v39 = vmax.f32 %v4624_v13, 0.0  ;;  %v6442_v19 = vsel %vm757_vm1, %v6437_v15, %v6441_v28  ;;  %v7298_v33 = vshrl.u32 %v17114_v52, 16  ;;  %7075 = vrot.lane.b32.xlu1 %v17972_v4, %s13006_s22 }
 0x2eb   : > { %5622 = vst [vmem:[#allocation2 + $0x134] sm:$0x3] %v5621_v44  ;;  %v6446_v55 = vshll.u32 %v17993_v21, 16  ;;  %v6451_v9 = vshll.u32 %v17998_v41, 16  ;;  %v4679_v14 = vmax.f32 %v4625_v29, 0.0  ;;  %v8270_v2 = vsel %vm757_vm1, %v8265_v45, %v8269_v23  ;;  %v12905_v44 = vld [vmem:[#allocation2 + $0x80] sm:$0xff]  }
 0x2ec   : > { %v12074_v16 = vpack.c.bf16 %v4678_v39, %v4678_v39  ;;  %v6748_v1 = vsel %vm1244_vm0, %v6745_v56, %v6747_v46  ;;  %8443 = vrot.lane.b32.xlu0 %v8270_v2, %s13006_s22  ;;  %v18030_v52 = vor.u32 %v7302_v53, %v7298_v33  ;;  %v18032_v15 = vrot.slane %v7305_v51, 1  ;;  %v6806_v58 = vpop.permute.xlu1 %6805  ;;  %v5964_v45 = vld [vmem:[#allocation2 + $0x12c] sm:$0xe]  ;;  %v5623_v51 = vld [vmem:[#allocation2 + $0x140] sm:$0xf] }
 0x2ed   : > { %v8593_v28 = vrot.slane %v18011_v12, 1  ;;  %v4820_v54 = vsel %vm14201_vm11, 0, %v4819_v8  ;;  %v12075_v62 = vpack.c.bf16 %v4679_v14, %v4679_v14  ;;  %v18039_v5 = vrot.slane %v8275_v18, 1  ;;  %v7940_v46 = vpop.permute.xlu0 %7939  ;;  %v18054_v33 = vld [vmem:[#allocation2 + $0x10c] sm:$0xff]   ;;  %v4233_v14 = vpop.f32.mrb[124].mxu0 }
 0x2ee   : > { %v5383_v59 = vshrl.u32 %v12074_v16, 16  ;;  %v11840_v56 = vcombine.low %v5854_v3, %v18021_v36  ;;  %4821 = vst [vmem:[#allocation2 + $0x170] sm:$0x2] %v4820_v54  ;;  %v8271_v31 = vshrl.u32 %v17759_v30, 16  ;;  %v6444_v32 = vshrl.u32 %v17993_v21, 16  ;;  %6609 = vrot.lane.b32.xlu1 %v6442_v19, %s13005_s20  ;;  %v4235_v3 = vpop.f32.mrb[125].mxu0 }
 0x2ef   : > { %v6448_v63 = vrot.slane %v6446_v55, 1  ;;  %v18044_v13 = vrot.slane %v6451_v9, 1  ;;  %v5386_v0 = vshll.u32 %v12074_v16, 16  ;;  %v5391_v61 = vshrl.u32 %v12075_v62, 16  ;;  %v5909_v55 = vld [vmem:[#allocation2 + $0x118] sm:$0xf] }
 0x2f0   : > { %v5385_v27 = vrot.slane %v5383_v59, 7  ;;  %v11768_v53 = vcombine.low %v5746_v6, %v17976_v17  ;;  %v8642_v39 = vsel %vm3171_vm2, %v12905_v44, %v6590_v48  ;;  %v8908_v29 = vsel %vm3171_vm2, %v17969_v40, %v7688_v47  ;;  %7707 = vrot.lane.b32.xlu0 %v17981_v34, %s13005_s20  ;;  %v7058_v48 = vpop.permute.xlu1 %7057  ;;  %v20150_v47 = vld [vmem:[#allocation39_spill] sm:$0xff]  ;;  %v4236_v6 = vpop.f32.mrb[126].mxu0 }
 0x2f1   : > { %v11913_v18 = vcombine.low %v5964_v45, %v18037_v50  ;;  %v8273_v8 = vor.u32 %v8271_v31, %v8269_v23  ;;  %v18056_v9 = vrot.slane %v5391_v61, 7  ;;  %v5394_v17 = vshll.u32 %v12075_v62, 16  ;;  %v8426_v54 = vpop.permute.xlu0 %8425  ;;  %v4237_v61 = vpop.f32.mrb[127].mxu0 }
 0x2f2   : > { %v5388_v19 = vor.u32 %v5386_v0, %v5385_v27  ;;  %v8714_v16 = vsel %vm3244_vm3, %v8642_v39, %v6806_v58  ;;  %v18059_v2 = vld [vmem:[#allocation2 + $0x134] sm:$0xff]   ;;  %v9002_v40 = vsel %vm3244_vm3, %v8908_v29, %v7940_v46  ;;  %v4537_v34 = vadd.f32 %v20150_v47, %v4233_v14  ;;  %6825 = vrot.lane.b32.xlu1 %v6748_v1, %s13004_s12 }
 0x2f3   : > { %v8799_v23 = vsel %vm3317_vm4, %v8714_v16, %v7058_v48  ;;  %v18065_v59 = vcombine.low %v5909_v55, %v17891_v42  ;;  %v5389_v31 = vrot.slane %v5385_v27, 4  ;;  %v5396_v58 = vor.u32 %v5394_v17, %v18056_v9  ;;  %v18080_v55 = vld [vmem:[#allocation2 + $0x100] ss:$0 sps:$4 sm:$0x11]  }
 0x2f4   : > { %v5624_v62 = vsel %vm15361_vm5, %v5388_v19, %v5623_v51  ;;  %v9087_v46 = vsel %vm3317_vm4, %v9002_v40, %v8426_v54  ;;  %v4626_v0 = vadd.f32 %v17777_v26, %v4537_v34  ;;  %7959 = vrot.lane.b32.xlu0 %v17759_v30, %s13004_s12  ;;  %v8590_v42 = vrot.slane %v11913_v18, 1  ;;  %v6592_v1 = vpop.permute.xlu1 %6591  ;;  %v12906_v16 = vld [vmem:[#allocation2 + $0xb0] ss:$0 sps:$4 sm:$0x11]  }
 0x2f5   : > { %5625 = vst [vmem:[#allocation2 + $0x140] sm:$0xf] %v5624_v62  ;;  %9537 = vmatprep.mubr.bf16.mxu1 %v9087_v46  ;;  %v8591_v27 = vrot.slane %v18059_v2, 1  ;;  %v7632_v45 = vrot.slane %v18054_v33, 1  ;;  %v5397_v51 = vsel %vm15383_vm9, %v5389_v31, %v5396_v58  ;;  %v6449_v44 = vor.u32 %v6448_v63, %v6444_v32  ;;  %v7690_v19 = vpop.permute.xlu0 %7689 }
 0x2f6   : > { %9538 = vmatmul.mubr.bf16.gmra.mrb[124].mxu1 %v8799_v23  ;;  %v7631_v39 = vrot.slane %v11840_v56, 1  ;;  %v6750_v29 = vrot.slane %v17998_v41, 1  ;;  %5626 = vst.msk [vmem:[#allocation2 + $0x144] sm:$0xf] %vm4687_vm7, %v5397_v51  ;;  %v4680_v30 = vmax.f32 %v4626_v0, 0.0  ;;  %v7313_v14 = vshll.u32 %v12906_v16, 16  ;;  %7077 = vrot.lane.b32.xlu1 %v17911_v38, %s13006_s22 }
 0x2f7   : > { %v8592_v18 = vsel %vm1244_vm0, %v8590_v42, %v8591_v27  ;;  %v8594_v17 = vsel %vm1244_vm0, %v8591_v27, %v8593_v28  ;;  %v8278_v56 = vsel %vm757_vm1, %v8273_v8, %v18039_v5  ;;  %v6749_v32 = vrot.slane %v11768_v53, 1  ;;  %v5800_v53 = vld [vmem:[#allocation2 + $0x104] sm:$0xf]  ;;  %v18103_v8 = vld [vmem:[#allocation2 + $0x114] ss:$0 sps:$4 sm:$0x11]  }
 0x2f8   : > { %12336 = vmatprep.mubr.msk.bf16.mxu0 %vm3171_vm2, %v8592_v18  ;;  %v8282_v63 = vshll.u32 %v18065_v59, 16  ;;  %v6459_v48 = vshll.u32 %v18080_v55, 16  ;;  %v12076_v40 = vpack.c.bf16 %v4680_v30, %v4680_v30  ;;  %v7308_v28 = vsel %vm757_vm1, %v18030_v52, %v18032_v15  ;;  %8445 = vrot.lane.b32.xlu0 %v8278_v56, %s13006_s22  ;;  %v6808_v47 = vpop.permute.xlu1 %6807  ;;  %v20151_v27 = vld [vmem:[#allocation12_spill] sm:$0xff]  ;;  %v20152_v18 = vld [vmem:[#allocation35_spill] sm:$0xff] }
 0x2f9   : > { %12337 = vmatmul.mubr.msk.bf16.gmra.mrb[196].mxu0 %vm3171_vm2, %v8594_v17  ;;  %v7633_v38 = vsel %vm1244_vm0, %v7631_v39, %v7632_v45  ;;  %v7309_v5 = vshrl.u32 %v18008_v20, 16  ;;  %v6454_v34 = vsel %vm757_vm1, %v6449_v44, %v18044_v13  ;;  %v6751_v52 = vsel %vm1244_vm0, %v6749_v32, %v6750_v29  ;;  %v7942_v31 = vpop.permute.xlu0 %7941  ;;  %v18127_v32 = vld [vmem:[#allocation2 + $0x108] sm:$0xf] }
 0x2fa   : > { %v18111_v3 = vcombine.low %v5800_v53, %v18021_v36  ;;  %v6455_v54 = vshrl.u32 %v17998_v41, 16  ;;  %v5400_v23 = vshrl.u32 %v12076_v40, 16  ;;  %v7315_v62 = vrot.slane %v7313_v14, 1  ;;  %6611 = vrot.lane.b32.xlu1 %v6454_v34, %s13005_s20  ;;  %v4240_v44 = vpop.f32.mrb[128].mxu0  ;;  %v20154_v53 = vld [vmem:[#allocation42_spill] sm:$0xff] }
 0x2fb   : > { %v7311_v20 = vor.u32 %v7309_v5, %v18032_v15  ;;  %v8280_v58 = vshrl.u32 %v18065_v59, 16  ;;  %v8284_v6 = vrot.slane %v8282_v63, 1  ;;  %v8287_v46 = vshll.u32 %v17916_v24, 16  ;;  %v4242_v16 = vpop.f32.mrb[129].mxu0 }
 0x2fc   : > { %v6457_v0 = vor.u32 %v6455_v54, %v18044_v13  ;;  %v6461_v61 = vrot.slane %v6459_v48, 1  ;;  %v5402_v42 = vrot.slane %v5400_v23, 7  ;;  %v5403_v36 = vshll.u32 %v12076_v40, 16  ;;  %7709 = vrot.lane.b32.xlu0 %v7633_v38, %s13005_s20  ;;  %v7060_v14 = vpop.permute.xlu1 %7059  ;;  %v20153_v13 = vld [vmem:[#allocation36_spill] sm:$0xff]  ;;  %v5627_v48 = vld [vmem:[#allocation2 + $0x148] sm:$0x3] }
 0x2fd   : > { %v8644_v51 = vsel %vm3171_vm2, %v20151_v27, %v6592_v1  ;;  %v7634_v15 = vrot.slane %v18103_v8, 1  ;;  %v8911_v39 = vsel %vm3171_vm2, %v7308_v28, %v7690_v19  ;;  %v4544_v17 = vadd.f32 %v20152_v18, %v4240_v44  ;;  %v4243_v38 = vpop.f32.mrb[130].mxu0  ;;  %v8428_v5 = vpop.permute.xlu0 %8427  ;;  %v5696_v23 = vld [vmem:[#allocation2 + $0x104] sm:$0xf]  ;;  %v18157_v16 = vld [vmem:[#allocation2 + $0x11c] sm:$0xf] }
 0x2fe   : > { %v8716_v30 = vsel %vm3244_vm3, %v8644_v51, %v6808_v47  ;;  %v7320_v56 = vshll.u32 %v20153_v13, 16  ;;  %v5398_v63 = vrot.slane %v18056_v9, 4  ;;  %v5405_v1 = vor.u32 %v5403_v36, %v5402_v42  ;;  %v4245_v47 = vpop.f32.mrb[131].mxu0  ;;  %6827 = vrot.lane.b32.xlu1 %v6751_v52, %s13004_s12  ;;  %v18142_v36 = vld [vmem:[#allocation2 + $0x150] ss:$0 sps:$4 sm:$0x11]  }
 0x2ff   : > { %v9004_v40 = vsel %vm3244_vm3, %v8911_v39, %v7942_v31  ;;  %v8802_v19 = vsel %vm3317_vm4, %v8716_v30, %v7060_v14  ;;  %v4627_v28 = vadd.f32 %v17777_v26, %v4544_v17  ;;  %v4547_v8 = vadd.f32 %v20154_v53, %v4243_v38  ;;  %v18155_v17 = vld [vmem:[#allocation2 + $0x10c] sm:$0xff]  }
 0x300   : > { %v9090_v34 = vsel %vm3317_vm4, %v9004_v40, %v8428_v5  ;;  %v8289_v54 = vrot.slane %v8287_v46, 1  ;;  %v5406_v9 = vsel %vm15383_vm9, %v5398_v63, %v5405_v1  ;;  %7961 = vrot.lane.b32.xlu0 %v18065_v59, %s13004_s12  ;;  %v7316_v31 = vsel %vm757_vm1, %v7311_v20, %v7315_v62  ;;  %v6594_v44 = vpop.permute.xlu1 %6593  ;;  %v18172_v1 = vld [vmem:[#allocation2 + $0x118] sm:$0xe]  ;;  %v18174_v5 = vld [vmem:[#allocation2 + $0x144] sm:$0xf] }
 0x301   : > { %9544 = vmatprep.mubr.bf16.mxu1 %v9090_v34  ;;  %v6752_v42 = vrot.slane %v18080_v55, 1  ;;  %v18145_v27 = vcombine.low %v5696_v23, %v18127_v32  ;;  %v5628_v52 = vsel %vm15455_vm6, %v5406_v9, %v5627_v48  ;;  %v4681_v46 = vmax.f32 %v4627_v28, 0.0  ;;  %v7692_v59 = vpop.permute.xlu0 %7691  ;;  %v18151_v55 = vld [vmem:[#allocation2 + $0xbc] sm:$0xff]   ;;  %v5630_v9 = vld [vmem:[#allocation2 + $0x154] sm:$0xf] }
 0x302   : > { %v4628_v51 = vadd.f32 %v17777_v26, %v4547_v8  ;;  %9545 = vmatmul.mubr.bf16.gmra.mrb[128].mxu1 %v8802_v19  ;;  %v8285_v39 = vor.u32 %v8284_v6, %v8280_v58  ;;  %5629 = vst [vmem:[#allocation2 + $0x148] sm:$0x3] %v5628_v52  ;;  %v6462_v20 = vsel %vm757_vm1, %v6457_v0, %v6461_v61  ;;  %v7322_v62 = vrot.slane %v7320_v56, 1  ;;  %v5965_v34 = vld [vmem:[#allocation2 + $0x140] sm:$0xe] }
 0x303   : > { %v7325_v30 = vshll.u32 %v18151_v55, 16  ;;  %v8295_v18 = vshll.u32 %v17846_v7, 16  ;;  %v12077_v14 = vpack.c.bf16 %v4681_v46, %v4681_v46  ;;  %7079 = vrot.lane.b32.xlu1 %v18111_v3, %s13006_s22  ;;  %v7635_v6 = vsel %vm1244_vm0, %v7632_v45, %v7634_v15 }
 0x304   : > { %v4682_v63 = vmax.f32 %v4628_v51, 0.0  ;;  %v8290_v58 = vsel %vm757_vm1, %v8285_v39, %v8289_v54  ;;  %v6753_v7 = vsel %vm1244_vm0, %v6750_v29, %v6752_v42  ;;  %v7318_v0 = vshrl.u32 %v20153_v13, 16  ;;  %v6810_v38 = vpop.permute.xlu1 %6809  ;;  %v12908_v42 = vld [vmem:[#allocation2 + $0x94] sm:$0xff]  }
 0x305   : > { %8447 = vrot.lane.b32.xlu0 %v8290_v58, %s13006_s22  ;;  %v8598_v61 = vrot.slane %v18142_v36, 1  ;;  %v6466_v56 = vshll.u32 %v18145_v27, 16  ;;  %v5408_v48 = vshrl.u32 %v12077_v14, 16  ;;  %v8291_v45 = vshrl.u32 %v17916_v24, 16  ;;  %v7944_v15 = vpop.permute.xlu0 %7943 }
 0x306   : > { %v12078_v40 = vpack.c.bf16 %v4682_v63, %v4682_v63  ;;  %v11841_v41 = vcombine.low %v18172_v1, %v18157_v16  ;;  %v18179_v29 = vor.u32 %v7322_v62, %v7318_v0  ;;  %v18181_v13 = vrot.slane %v7325_v30, 1  ;;  %v18189_v62 = vld [vmem:[#allocation2 + $0x120] sm:$0xff]   ;;  %v5913_v30 = vld [vmem:[#allocation2 + $0x12c] sm:$0xf]  ;;  %v4248_v63 = vpop.f32.mrb[132].mxu0 }
 0x307   : > { %v8297_v19 = vrot.slane %v8295_v18, 1  ;;  %v6471_v28 = vshll.u32 %v18155_v17, 16  ;;  %v5410_v53 = vrot.slane %v5408_v48, 7  ;;  %v5411_v8 = vshll.u32 %v12077_v14, 16  ;;  %6613 = vrot.lane.b32.xlu1 %v6462_v20, %s13005_s20 }
 0x308   : > { %v5416_v47 = vshrl.u32 %v12078_v40, 16  ;;  %v8293_v23 = vor.u32 %v8291_v45, %v8289_v54  ;;  %v8646_v52 = vsel %vm3171_vm2, %v12908_v42, %v6594_v44  ;;  %v8914_v46 = vsel %vm3171_vm2, %v7316_v31, %v7692_v59  ;;  %v7062_v58 = vpop.permute.xlu1 %7061  ;;  %v20155_v44 = vld [vmem:[#allocation8_spill] sm:$0xff] }
 0x309   : > { %7711 = vrot.lane.b32.xlu0 %v7635_v6, %s13005_s20  ;;  %v11914_v51 = vcombine.low %v5965_v34, %v18174_v5  ;;  %v6468_v39 = vrot.slane %v6466_v56, 1  ;;  %v5413_v18 = vor.u32 %v5411_v8, %v5410_v53  ;;  %v5419_v20 = vshll.u32 %v12078_v40, 16  ;;  %v18194_v0 = vld [vmem:[#allocation2 + $0x148] sm:$0xff]   ;;  %v4250_v6 = vpop.f32.mrb[133].mxu0  ;;  %v8430_v48 = vpop.permute.xlu0 %8429  ;;  %v5747_v34 = vld [vmem:[#allocation2 + $0x104] sm:$0xe] }
 0x30a   : > { %v18191_v14 = vrot.slane %v5416_v47, 7  ;;  %v8718_v54 = vsel %vm3244_vm3, %v8646_v52, %v6810_v38  ;;  %v9006_v31 = vsel %vm3244_vm3, %v8914_v46, %v7944_v15  ;;  %v4552_v59 = vadd.f32 %v20155_v44, %v4248_v63  ;;  %v4251_v47 = vpop.f32.mrb[134].mxu0 }
 0x30b   : > { %v8805_v56 = vsel %vm3317_vm4, %v8718_v54, %v7062_v58  ;;  %v18200_v45 = vcombine.low %v5913_v30, %v18037_v50  ;;  %v5414_v8 = vrot.slane %v5410_v53, 4  ;;  %v5631_v40 = vsel %vm15361_vm5, %v5413_v18, %v5630_v9  ;;  %6829 = vrot.lane.b32.xlu1 %v6753_v7, %s13004_s12  ;;  %v4252_v52 = vpop.f32.mrb[135].mxu0  ;;  %v12909_v58 = vld [vmem:[#allocation2 + $0xc4] ss:$0 sps:$4 sm:$0x11]  }
 0x30c   : > { %v5421_v38 = vor.u32 %v5419_v20, %v18191_v14  ;;  %v9093_v15 = vsel %vm3317_vm4, %v9006_v31, %v8430_v48  ;;  %5632 = vst [vmem:[#allocation2 + $0x154] sm:$0xf] %v5631_v40  ;;  %v4629_v42 = vadd.f32 %v17777_v26, %v4552_v59  ;;  %v8595_v50 = vrot.slane %v11914_v51, 1  ;;  %v6596_v7 = vpop.permute.xlu1 %6595  ;;  %v20156_v52 = vld [vmem:[#allocation10_spill] sm:$0xff] }
 0x30d   : > { %7963 = vrot.lane.b32.xlu0 %v17916_v24, %s13004_s12  ;;  %9552 = vmatprep.mubr.bf16.mxu1 %v9093_v15  ;;  %v8596_v53 = vrot.slane %v18194_v0, 1  ;;  %v11769_v9 = vcombine.low %v5747_v34, %v18127_v32  ;;  %v6464_v30 = vshrl.u32 %v18145_v27, 16  ;;  %v18215_v18 = vrot.slane %v6471_v28, 1  ;;  %v7694_v20 = vpop.permute.xlu0 %7693 }
 0x30e   : > { %v5422_v46 = vsel %vm15383_vm9, %v5414_v8, %v5421_v38  ;;  %9553 = vmatmul.mubr.bf16.gmra.mrb[132].mxu1 %v8805_v56  ;;  %v7637_v26 = vrot.slane %v18189_v62, 1  ;;  %v4683_v24 = vmax.f32 %v4629_v42, 0.0  ;;  %v6755_v54 = vrot.slane %v18155_v17, 1 }
 0x30f   : > { %5633 = vst.msk [vmem:[#allocation2 + $0x158] sm:$0xf] %vm4687_vm7, %v5422_v46  ;;  %v8597_v51 = vsel %vm1244_vm0, %v8595_v50, %v8596_v53  ;;  %v8599_v32 = vsel %vm1244_vm0, %v8596_v53, %v8598_v61  ;;  %7081 = vrot.lane.b32.xlu1 %v18054_v33, %s13006_s22  ;;  %v8298_v28 = vsel %vm757_vm1, %v8293_v23, %v8297_v19  ;;  %v7636_v63 = vrot.slane %v11841_v41, 1  ;;  %v5804_v33 = vld [vmem:[#allocation2 + $0x118] sm:$0xf] }
 0x310   : > { %12340 = vmatprep.mubr.msk.bf16.mxu0 %vm3171_vm2, %v8597_v51  ;;  %v7333_v31 = vshll.u32 %v12909_v58, 16  ;;  %v8302_v44 = vshll.u32 %v18200_v45, 16  ;;  %v12079_v59 = vpack.c.bf16 %v4683_v24, %v4683_v24  ;;  %v6469_v61 = vor.u32 %v6468_v39, %v6464_v30  ;;  %v6812_v1 = vpop.permute.xlu1 %6811  ;;  %v20157_v30 = vld [vmem:[#allocation9_spill] sm:$0xff] }
 0x311   : > { %12341 = vmatmul.mubr.msk.bf16.gmra.mrb[200].mxu0 %vm3171_vm2, %v8599_v32  ;;  %8449 = vrot.lane.b32.xlu0 %v8298_v28, %s13006_s22  ;;  %v6754_v6 = vrot.slane %v11769_v9, 1  ;;  %v7329_v48 = vshrl.u32 %v18151_v55, 16  ;;  %v7328_v19 = vsel %vm757_vm1, %v18179_v29, %v18181_v13  ;;  %v7638_v41 = vsel %vm1244_vm0, %v7636_v63, %v7637_v26  ;;  %v7946_v8 = vpop.permute.xlu0 %7945  ;;  %v18250_v29 = vld [vmem:[#allocation2 + $0x114] ss:$0 sps:$4 sm:$0x11]  }
 0x312   : > { %v18242_v23 = vcombine.low %v5804_v33, %v18157_v16  ;;  %v5425_v56 = vshrl.u32 %v12079_v59, 16  ;;  %v6474_v39 = vsel %vm757_vm1, %v6469_v61, %v18215_v18  ;;  %v7335_v38 = vrot.slane %v7333_v31, 1  ;;  %v4255_v53 = vpop.f32.mrb[136].mxu0  ;;  %v12777_v63 = vld [vmem:[#allocation2 + $0x128] ss:$0 sps:$4 sm:$0x11]  }
 0x313   : > { %v6756_v55 = vsel %vm1244_vm0, %v6754_v6, %v6755_v54  ;;  %v7331_v40 = vor.u32 %v7329_v48, %v18181_v13  ;;  %6615 = vrot.lane.b32.xlu1 %v6474_v39, %s13005_s20  ;;  %v8300_v47 = vshrl.u32 %v18200_v45, 16  ;;  %v8304_v16 = vrot.slane %v8302_v44, 1  ;;  %v4257_v51 = vpop.f32.mrb[137].mxu0 }
 0x314   : > { %v8307_v15 = vshll.u32 %v18059_v2, 16  ;;  %v5427_v34 = vrot.slane %v5425_v56, 7  ;;  %v5428_v42 = vshll.u32 %v12079_v59, 16  ;;  %v8648_v50 = vsel %vm3171_vm2, %v20156_v52, %v6596_v7  ;;  %v7064_v32 = vpop.permute.xlu1 %7063  ;;  %v5634_v7 = vld [vmem:[#allocation2 + $0x15c] sm:$0x3]  ;;  %v4258_v59 = vpop.f32.mrb[138].mxu0 }
 0x315   : > { %7713 = vrot.lane.b32.xlu0 %v7638_v41, %s13005_s20  ;;  %v6479_v13 = vshll.u32 %v18250_v29, 16  ;;  %v8917_v9 = vsel %vm3171_vm2, %v7328_v19, %v7694_v20  ;;  %v8720_v46 = vsel %vm3244_vm3, %v8648_v50, %v6812_v1  ;;  %v4559_v24 = vadd.f32 %v20157_v30, %v4255_v53  ;;  %v18269_v20 = vld [vmem:[%s19694_s3] ss:$0 sm:$0xff]  ;;  %v4260_v19 = vpop.f32.mrb[139].mxu0  ;;  %v18283_v52 = vld [vmem:[#allocation2 + $0x11c] sm:$0xf] }
 0x316   : > { %v6475_v28 = vshrl.u32 %v18155_v17, 16  ;;  %v5423_v58 = vrot.slane %v18191_v14, 4  ;;  %v5430_v31 = vor.u32 %v5428_v42, %v5427_v34  ;;  %v9008_v44 = vsel %vm3244_vm3, %v8917_v9, %v7946_v8  ;;  %v8432_v61 = vpop.permute.xlu0 %8431  ;;  %v12912_v17 = vld [vmem:[#allocation2 + $0xa8] sm:$0xff]  }
 0x317   : > { %v8808_v6 = vsel %vm3317_vm4, %v8720_v46, %v7064_v32  ;;  %v4630_v48 = vadd.f32 %v18269_v20, %v4559_v24  ;;  %v4562_v33 = vadd.f32 %v17607_v43, %v4258_v59  ;;  %6831 = vrot.lane.b32.xlu1 %v6756_v55, %s13004_s12  ;;  %v9096_v14 = vsel %vm3317_vm4, %v9008_v44, %v8432_v61 }
 0x318   : > { %v8309_v1 = vrot.slane %v8307_v15, 1  ;;  %v5431_v41 = vsel %vm15383_vm9, %v5423_v58, %v5430_v31  ;;  %9559 = vmatprep.mubr.bf16.mxu1 %v9096_v14  ;;  %v8305_v56 = vor.u32 %v8304_v16, %v8300_v47  ;;  %v6477_v8 = vor.u32 %v6475_v28, %v18215_v18  ;;  %v6598_v42 = vpop.permute.xlu1 %6597  ;;  %v18315_v14 = vld [vmem:[#allocation2 + $0x130] sm:$0xf] }
 0x319   : > { %7965 = vrot.lane.b32.xlu0 %v18200_v45, %s13004_s12  ;;  %v6481_v39 = vrot.slane %v6479_v13, 1  ;;  %v5635_v43 = vsel %vm15455_vm6, %v5431_v41, %v5634_v7  ;;  %v4684_v34 = vmax.f32 %v4630_v48, 0.0  ;;  %v4631_v55 = vadd.f32 %v18269_v20, %v4562_v33  ;;  %9560 = vmatmul.mubr.bf16.gmra.mrb[136].mxu1 %v8808_v6  ;;  %v5700_v13 = vld [vmem:[#allocation2 + $0x118] sm:$0xf]  ;;  %v18308_v7 = vld [vmem:[#allocation2 + $0x120] sm:$0xff]  }
 0x31a   : > { %v7639_v15 = vrot.slane %v12777_v63, 1  ;;  %5636 = vst [vmem:[#allocation2 + $0x15c] sm:$0x3] %v5635_v43  ;;  %v7696_v50 = vpop.permute.xlu0 %7695  ;;  %v6757_v45 = vrot.slane %v18250_v29, 1  ;;  %v8310_v18 = vsel %vm757_vm1, %v8305_v56, %v8309_v1  ;;  %v8315_v16 = vshll.u32 %v18011_v12, 16  ;;  %v18304_v63 = vld [vmem:[#allocation2 + $0xd0] sm:$0xff]  }
 0x31b   : > { %v12080_v53 = vpack.c.bf16 %v4684_v34, %v4684_v34  ;;  %v4685_v47 = vmax.f32 %v4631_v55, 0.0  ;;  %7083 = vrot.lane.b32.xlu1 %v18242_v23, %s13006_s22  ;;  %v7336_v9 = vsel %vm757_vm1, %v7331_v40, %v7335_v38  ;;  %v6482_v46 = vsel %vm757_vm1, %v6477_v8, %v6481_v39  ;;  %v5637_v6 = vld [vmem:[#allocation2 + $0x168] sm:$0xf] }
 0x31c   : > { %v18294_v30 = vcombine.low %v5700_v13, %v18283_v52  ;;  %v6814_v51 = vpop.permute.xlu1 %6813  ;;  %v7640_v32 = vsel %vm1244_vm0, %v7637_v26, %v7639_v15  ;;  %v7338_v28 = vshrl.u32 %v17645_v37, 16  ;;  %v6758_v40 = vsel %vm1244_vm0, %v6755_v54, %v6757_v45  ;;  %v5748_v13 = vld [vmem:[#allocation2 + $0x118] sm:$0xe] }
 0x31d   : > { %8451 = vrot.lane.b32.xlu0 %v8310_v18, %s13006_s22  ;;  %v5433_v29 = vshrl.u32 %v12080_v53, 16  ;;  %v12081_v24 = vpack.c.bf16 %v4685_v47, %v4685_v47  ;;  %v7340_v38 = vshll.u32 %v17645_v37, 16  ;;  %v7345_v58 = vshll.u32 %v18304_v63, 16  ;;  %v18325_v47 = vld [vmem:[%s13097_s9 + $0x14] sm:$0xff]  }
 0x31e   : > { %v7948_v12 = vpop.permute.xlu0 %7947  ;;  %v8311_v31 = vshrl.u32 %v18059_v2, 16  ;;  %v5436_v59 = vshll.u32 %v12080_v53, 16  ;;  %v8317_v61 = vrot.slane %v8315_v16, 1  ;;  %v8650_v54 = vsel %vm3171_vm2, %v12912_v17, %v6598_v42  ;;  %v20158_v42 = vld [vmem:[#allocation16_spill] sm:$0xff] }
 0x31f   : > { %v5435_v44 = vrot.slane %v5433_v29, 7  ;;  %v5441_v26 = vshrl.u32 %v12081_v24, 16  ;;  %6617 = vrot.lane.b32.xlu1 %v6482_v46, %s13005_s20  ;;  %v8920_v48 = vsel %vm3171_vm2, %v7336_v9, %v7696_v50  ;;  %v6486_v19 = vshll.u32 %v18294_v30, 16  ;;  %v4263_v43 = vpop.f32.mrb[140].mxu0  ;;  %v18327_v18 = vld [vmem:[#allocation2 + $0x134] sm:$0xff]  }
 0x320   : > { %v8313_v33 = vor.u32 %v8311_v31, %v8309_v1  ;;  %v5444_v8 = vshll.u32 %v12081_v24, 16  ;;  %v8722_v39 = vsel %vm3244_vm3, %v8650_v54, %v6814_v51  ;;  %v7066_v34 = vpop.permute.xlu1 %7065  ;;  %v9010_v55 = vsel %vm3244_vm3, %v8920_v48, %v7948_v12  ;;  %v4265_v50 = vpop.f32.mrb[141].mxu0  ;;  %v11974_v16 = vld [vmem:[%s13097_s9 + $0x1c] sm:$0x3] }
 0x321   : > { %7715 = vrot.lane.b32.xlu0 %v7640_v32, %s13005_s20  ;;  %v5438_v41 = vor.u32 %v5436_v59, %v5435_v44  ;;  %v18317_v56 = vrot.slane %v5441_v26, 7  ;;  %v4567_v15 = vadd.f32 %v20158_v42, %v4263_v43  ;;  %v8811_v1 = vsel %vm3317_vm4, %v8722_v39, %v7066_v34  ;;  %v4266_v24 = vpop.f32.mrb[142].mxu0  ;;  %v5917_v32 = vld [vmem:[#allocation2 + $0x140] sm:$0xf] }
 0x322   : > { %v8434_v45 = vpop.permute.xlu0 %8433  ;;  %v6491_v53 = vshll.u32 %v18308_v7, 16  ;;  %v5439_v9 = vrot.slane %v5435_v44, 4  ;;  %v4267_v31 = vpop.f32.mrb[143].mxu0  ;;  %v7342_v44 = vrot.slane %v7340_v38, 1  ;;  %v6488_v59 = vrot.slane %v6486_v19, 1 }
 0x323   : > { %v5638_v46 = vsel %vm15361_vm5, %v5438_v41, %v5637_v6  ;;  %v5446_v29 = vor.u32 %v5444_v8, %v18317_v56  ;;  %6833 = vrot.lane.b32.xlu1 %v6758_v40, %s13004_s12  ;;  %v9099_v51 = vsel %vm3317_vm4, %v9010_v55, %v8434_v45  ;;  %v4632_v12 = vadd.f32 %v18269_v20, %v4567_v15 }
 0x324   : > { %5639 = vst [vmem:[#allocation2 + $0x168] sm:$0xf] %v5638_v46  ;;  %9567 = vmatprep.mubr.bf16.mxu1 %v9099_v51  ;;  %v18339_v26 = vcombine.low %v5917_v32, %v18174_v5  ;;  %v6600_v6 = vpop.permute.xlu1 %6599  ;;  %v18343_v17 = vrot.slane %v7345_v58, 1  ;;  %v11842_v20 = vcombine.low %v5856_v35, %v18315_v14  ;;  %v11770_v54 = vcombine.low %v5748_v13, %v18283_v52  ;;  %v20159_v32 = vld [vmem:[#allocation14_spill] sm:$0xff] }
 0x325   : > { %7967 = vrot.lane.b32.xlu0 %v18059_v2, %s13004_s12  ;;  %v5447_v40 = vsel %vm15383_vm9, %v5439_v9, %v5446_v29  ;;  %9568 = vmatmul.mubr.bf16.gmra.mrb[140].mxu1 %v8811_v1  ;;  %v4686_v2 = vmax.f32 %v4632_v12, 0.0  ;;  %v6484_v48 = vshrl.u32 %v18294_v30, 16  ;;  %v18349_v19 = vrot.slane %v6491_v53, 1  ;;  %v18379_v29 = vld [vmem:[#allocation2 + $0x128] ss:$0 sps:$4 sm:$0x11]  }
 0x326   : > { %5640 = vst.msk [vmem:[#allocation2 + $0x16c] sm:$0xf] %vm4687_vm7, %v5447_v40  ;;  %v7698_v38 = vpop.permute.xlu0 %7697  ;;  %v10068_v5 = vunpack.c.h.bf16 %v18325_v47  ;;  %v8318_v58 = vsel %vm757_vm1, %v8313_v33, %v8317_v61  ;;  %v7642_v41 = vrot.slane %v18327_v18, 1  ;;  %v10069_v8 = vunpack.c.l.bf16 %v11974_v16 }
 0x327   : > { %7085 = vrot.lane.b32.xlu1 %v18189_v62, %s13006_s22  ;;  %v6760_v52 = vrot.slane %v18308_v7, 1  ;;  %v12082_v39 = vpack.c.bf16 %v4686_v2, %v4686_v2  ;;  %v7343_v43 = vor.u32 %v7342_v44, %v7338_v28  ;;  %v6489_v34 = vor.u32 %v6488_v59, %v6484_v48  ;;  %v18361_v42 = vpop.f32.mrb[144].mxu0 }
 0x328   : > { %v8322_v55 = vshll.u32 %v18339_v26, 16  ;;  %v6816_v15 = vpop.permute.xlu1 %6815  ;;  %v7641_v62 = vrot.slane %v11842_v20, 1  ;;  %v6759_v50 = vrot.slane %v11770_v54, 1  ;;  %v9744_v45 = vpop.f32.mrb[145].mxu0  ;;  %v18367_v28 = vrot.slane %v10068_v5, 1 }
 0x329   : > { %8453 = vrot.lane.b32.xlu0 %v8318_v58, %s13006_s22  ;;  %v5450_v61 = vshrl.u32 %v12082_v39, 16  ;;  %v7348_v33 = vsel %vm757_vm1, %v7343_v43, %v18343_v17  ;;  %v6494_v37 = vsel %vm757_vm1, %v6489_v34, %v18349_v19  ;;  %v12287_v53 = vpop.f32.mrb[146].mxu0  ;;  %v18373_v13 = vrot.slane %v10069_v8, 1  ;;  %v5641_v5 = vld [vmem:[#allocation2 + $0x170] sm:$0x3] }
 0x32a   : > { %v7950_v1 = vpop.permute.xlu0 %7949  ;;  %v7643_v16 = vsel %vm1244_vm0, %v7641_v62, %v7642_v41  ;;  %v6761_v9 = vsel %vm1244_vm0, %v6759_v50, %v6760_v52  ;;  %v8327_v46 = vshll.u32 %v18194_v0, 16  ;;  %v5453_v51 = vshll.u32 %v12082_v39, 16  ;;  %v9747_v31 = vpop.f32.mrb[147].mxu0  ;;  %v12785_v62 = vld [vmem:[#allocation2 + $0x13c] ss:$0 sps:$4 sm:$0x11]  }
 0x32b   : > { %6619 = vrot.lane.b32.xlu1 %v6494_v37, %s13005_s20  ;;  %v5452_v24 = vrot.slane %v5450_v61, 7  ;;  %v8652_v12 = vsel %vm3171_vm2, %v20159_v32, %v6600_v6  ;;  %v8324_v44 = vrot.slane %v8322_v55, 1  ;;  %v5448_v59 = vrot.slane %v18317_v56, 4  ;;  %v9441_v20 = vpop.f32.mrb[72].mxu1  ;;  %v18405_v37 = vld [vmem:[#allocation2 + $0x130] sm:$0xf] }
 0x32c   : > { %v8923_v35 = vsel %vm3171_vm2, %v7348_v33, %v7698_v38  ;;  %v8724_v40 = vsel %vm3244_vm3, %v8652_v12, %v6816_v15  ;;  %v7068_v54 = vpop.permute.xlu1 %7067  ;;  %v6499_v2 = vshll.u32 %v18379_v29, 16  ;;  %v18389_v8 = vadd.f32 %v9744_v45, %v9441_v20  ;;  %v9443_v6 = vpop.f32.mrb[73].mxu1  ;;  %v5808_v45 = vld [vmem:[#allocation2 + $0x12c] sm:$0xf] }
 0x32d   : > { %7717 = vrot.lane.b32.xlu0 %v7643_v16, %s13005_s20  ;;  %v5455_v48 = vor.u32 %v5453_v51, %v5452_v24  ;;  %v9012_v58 = vsel %vm3244_vm3, %v8923_v35, %v7950_v1  ;;  %v8814_v43 = vsel %vm3317_vm4, %v8724_v40, %v7068_v54  ;;  %v9444_v34 = vpop.f32.mrb[74].mxu1  ;;  %v10180_v56 = vsel %vm1244_vm0, %v18367_v28, %v18373_v13  ;;  %v18434_v6 = vld [vmem:[#allocation2 + $0x134] sm:$0xff]  }
 0x32e   : > { %v8436_v39 = vpop.permute.xlu0 %8435  ;;  %v8320_v55 = vshrl.u32 %v18339_v26, 16  ;;  %v18398_v15 = vrot.slane %v8327_v46, 1  ;;  %v9748_v61 = vadd.f32 %v9747_v31, %v9444_v34  ;;  %v9446_v33 = vpop.f32.mrb[75].mxu1  ;;  %v6495_v1 = vshrl.u32 %v18308_v7, 16 }
 0x32f   : > { %6835 = vrot.lane.b32.xlu1 %v6761_v9, %s13004_s12  ;;  %v9102_v38 = vsel %vm3317_vm4, %v9012_v58, %v8436_v39  ;;  %v5456_v50 = vsel %vm15383_vm9, %v5448_v59, %v5455_v48  ;;  %v18409_v16 = vpop.f32.mrb[148].mxu0  ;;  %v7353_v46 = vshll.u32 %v12913_v11, 16  ;;  %v18412_v24 = vcombine.low %v5808_v45, %v18315_v14  ;;  %v5704_v59 = vld [vmem:[#allocation2 + $0x12c] sm:$0xf]  ;;  %v12915_v11 = vld [vmem:[#allocation2 + $0xbc] sm:$0xff]  }
 0x330   : > { %9574 = vmatprep.mubr.bf16.mxu1 %v9102_v38  ;;  %v5642_v53 = vsel %vm15455_vm6, %v5456_v50, %v5641_v5  ;;  %v6602_v9 = vpop.permute.xlu1 %6601  ;;  %v8325_v51 = vor.u32 %v8324_v44, %v8320_v55  ;;  %v18416_v32 = vpop.f32.mrb[149].mxu0  ;;  %v6497_v31 = vor.u32 %v6495_v1, %v18349_v19  ;;  %v6501_v22 = vrot.slane %v6499_v2, 1  ;;  %v18452_v38 = vld [vmem:[#allocation2 + $0xe4] sm:$0xff]  }
 0x331   : > { %7969 = vrot.lane.b32.xlu0 %v18339_v26, %s13004_s12  ;;  %9575 = vmatmul.mubr.bf16.gmra.mrb[144].mxu1 %v8814_v43  ;;  %5643 = vst [vmem:[#allocation2 + $0x170] sm:$0x3] %v5642_v53  ;;  %v18414_v26 = vadd.f32 %v10180_v56, %v9748_v61  ;;  %v12291_v35 = vpop.f32.mrb[150].mxu0  ;;  %v7349_v40 = vshrl.u32 %v18304_v63, 16  ;;  %v7644_v44 = vrot.slane %v12785_v62, 1  ;;  %v18425_v20 = vcombine.low %v5704_v59, %v18405_v37 }
 0x332   : > { %v7700_v12 = vpop.permute.xlu0 %7699  ;;  %v8330_v14 = vsel %vm757_vm1, %v8325_v51, %v18398_v15  ;;  %v10067_v54 = vunpack.c.l.bf16 %v18325_v47  ;;  %v18428_v19 = vpop.f32.mrb[151].mxu0  ;;  %v7355_v2 = vrot.slane %v7353_v46, 1  ;;  %v6762_v5 = vrot.slane %v18379_v29, 1  ;;  %v18446_v56 = vld [vmem:[%s13097_s9 + $0x30] sm:$0x3] }
 0x333   : > { %7087 = vrot.lane.b32.xlu1 %v18412_v24, %s13006_s22  ;;  %20160 = vst [vmem:[#allocation33_spill] sm:$0xff] %v18425_v20  ;;  %v7351_v63 = vor.u32 %v7349_v40, %v18343_v17  ;;  %v8335_v58 = vshll.u32 %v18142_v36, 16  ;;  %v6502_v43 = vsel %vm757_vm1, %v6497_v31, %v6501_v22  ;;  %v7645_v47 = vsel %vm1244_vm0, %v7642_v41, %v7644_v44  ;;  %v18443_v17 = vld [vmem:[%s13097_s9 + $0x28] sm:$0xff]   ;;  %v18456_v50 = vld [vmem:[#allocation2 + $0x144] sm:$0xf] }
 0x334   : > { %v6818_v48 = vpop.permute.xlu1 %6817  ;;  %v6506_v34 = vshll.u32 %v18425_v20, 16  ;;  %v18448_v29 = vrot.slane %v10067_v54, 1  ;;  %v7360_v36 = vshll.u32 %v17735_v49, 16  ;;  %v7365_v55 = vshll.u32 %v18452_v38, 16  ;;  %v5922_v40 = vld [vmem:[#allocation2 + $0x158] sm:$0xf] }
 0x335   : > { %8455 = vrot.lane.b32.xlu0 %v8330_v14, %s13006_s22  ;;  %v8331_v62 = vshrl.u32 %v18194_v0, 16  ;;  %v7356_v41 = vsel %vm757_vm1, %v7351_v63, %v7355_v2  ;;  %v6763_v45 = vsel %vm1244_vm0, %v6760_v52, %v6762_v5  ;;  %v8337_v1 = vrot.slane %v8335_v58, 1 }
 0x336   : > { %v7952_v39 = vpop.permute.xlu0 %7951  ;;  %v6511_v53 = vshll.u32 %v18434_v6, 16  ;;  %v8654_v46 = vsel %vm3171_vm2, %v12915_v11, %v6602_v9  ;;  %v12085_v35 = vunpack.c.l.bf16 %v18443_v17  ;;  %v8926_v7 = vsel %vm3171_vm2, %v7356_v41, %v7700_v12 }
 0x337   : > { %6621 = vrot.lane.b32.xlu1 %v6502_v43, %s13005_s20  ;;  %v9449_v61 = vpop.f32.mrb[76].mxu1  ;;  %v18459_v33 = vpop.f32.mrb[152].mxu0  ;;  %v8333_v59 = vor.u32 %v8331_v62, %v18398_v15  ;;  %v8726_v52 = vsel %vm3244_vm3, %v8654_v46, %v6818_v48  ;;  %v6508_v54 = vrot.slane %v6506_v34, 1  ;;  %v12086_v9 = vunpack.c.h.bf16 %v18443_v17  ;;  %v5857_v48 = vld [vmem:[#allocation2 + $0x140] sm:$0xe] }
 0x338   : > { %v9753_v51 = vadd.f32 %v18361_v42, %v9449_v61  ;;  %v9451_v31 = vpop.f32.mrb[77].mxu1  ;;  %v18467_v22 = vpop.f32.mrb[153].mxu0  ;;  %v18475_v42 = vld [vmem:[#allocation2 + $0x148] sm:$0xff]   ;;  %v9014_v63 = vsel %vm3244_vm3, %v8926_v7, %v7952_v39  ;;  %v10072_v58 = vunpack.c.l.bf16 %v18446_v56  ;;  %v5921_v43 = vld [vmem:[#allocation2 + $0x154] sm:$0xf]  ;;  %v6504_v39 = vshrl.u32 %v18425_v20, 16 }
 0x339   : > { %7719 = vrot.lane.b32.xlu0 %v7645_v47, %s13005_s20  ;;  %v7070_v14 = vpop.permute.xlu1 %7069  ;;  %v9452_v44 = vpop.f32.mrb[78].mxu1  ;;  %v5749_v62 = vld [vmem:[#allocation2 + $0x12c] sm:$0xe]  ;;  %v18490_v41 = vcombine.low %v5921_v43, %v5922_v40  ;;  %v7362_v61 = vrot.slane %v7360_v36, 1  ;;  %v18496_v46 = vrot.slane %v7365_v55, 1  ;;  %v7647_v40 = vrot.slane %v18475_v42, 1 }
 0x33a   : > { %v18479_v15 = vadd.f32 %v18373_v13, %v9753_v51  ;;  %v12295_v2 = vpop.f32.mrb[154].mxu0  ;;  %v8438_v5 = vpop.permute.xlu0 %8437  ;;  %v8817_v12 = vsel %vm3317_vm4, %v8726_v52, %v7070_v14  ;;  %v11843_v13 = vcombine.low %v5857_v48, %v18456_v50  ;;  %v11771_v56 = vcombine.low %v5749_v62, %v18405_v37  ;;  %v18502_v7 = vld [vmem:[#allocation2 + $0x15c] sm:$0xff]   ;;  %v18716_v20 = vld [vmem:[#allocation2 + $0x10c] sm:$0xff]  }
 0x33b   : > { %6837 = vrot.lane.b32.xlu1 %v6763_v45, %s13004_s12  ;;  %v9453_v47 = vpop.f32.mrb[79].mxu1  ;;  %v18485_v34 = vpop.f32.mrb[155].mxu0  ;;  %v9105_v17 = vsel %vm3317_vm4, %v9014_v63, %v8438_v5  ;;  %v18493_v45 = vrot.slane %v6511_v53, 1  ;;  %v8338_v51 = vsel %vm757_vm1, %v8333_v59, %v8337_v1  ;;  %v6509_v31 = vor.u32 %v6508_v54, %v6504_v39 }
 0x33c   : > { %9582 = vmatprep.mubr.bf16.mxu1 %v9105_v17  ;;  %v10181_v36 = vrot.slane %v12085_v35, 1  ;;  %v10182_v53 = vrot.slane %v12086_v9, 1  ;;  %v18505_v37 = vrot.slane %v10072_v58, 1  ;;  %v6765_v55 = vrot.slane %v18434_v6, 1 }
 0x33d   : > { %7971 = vrot.lane.b32.xlu0 %v18194_v0, %s13004_s12  ;;  %v7358_v0 = vshrl.u32 %v17735_v49, 16  ;;  %9583 = vmatmul.mubr.bf16.gmra.mrb[148].mxu1 %v8817_v12  ;;  %v6604_v11 = vpop.permute.xlu1 %6603  ;;  %v7646_v14 = vrot.slane %v11843_v13, 1  ;;  %v6514_v44 = vsel %vm757_vm1, %v6509_v31, %v18493_v45  ;;  %v6764_v54 = vrot.slane %v11771_v56, 1  ;;  %v18534_v47 = vld [vmem:[#allocation2 + $0x13c] ss:$0 sps:$4 sm:$0x11]  }
 0x33e   : > { %v7702_v49 = vpop.permute.xlu0 %7701  ;;  %v10178_v35 = vsel %vm1244_vm0, %v18448_v29, %v18367_v28  ;;  %v8347_v5 = vshll.u32 %v18502_v7, 16  ;;  %v10183_v43 = vsel %vm1244_vm0, %v10181_v36, %v10182_v53  ;;  %v10185_v28 = vsel %vm1244_vm0, %v10182_v53, %v18505_v37  ;;  %v12916_v13 = vld [vmem:[#allocation2 + $0xec] ss:$0 sps:$4 sm:$0x11]  }
 0x33f   : > { %7089 = vrot.lane.b32.xlu1 %v18327_v18, %s13006_s22  ;;  %v18508_v52 = vpop.f32.mrb[156].mxu0  ;;  %v8342_v18 = vshll.u32 %v18490_v41, 16  ;;  %v7363_v1 = vor.u32 %v7362_v61, %v7358_v0  ;;  %v7648_v2 = vsel %vm1244_vm0, %v7646_v14, %v7647_v40  ;;  %v6766_v29 = vsel %vm1244_vm0, %v6764_v54, %v6765_v55 }
 0x340   : > { %v18511_v59 = vpop.f32.mrb[157].mxu0  ;;  %v7369_v39 = vshrl.u32 %v18452_v38, 16  ;;  %v7373_v62 = vshll.u32 %v12916_v13, 16  ;;  %v8340_v0 = vshrl.u32 %v18490_v41, 16  ;;  %v8656_v56 = vsel %vm3171_vm2, %v17579_v57, %v6604_v11 }
 0x341   : > { %8457 = vrot.lane.b32.xlu0 %v8338_v51, %s13006_s22  ;;  %v6820_v9 = vpop.permute.xlu1 %6819  ;;  %v12299_v63 = vpop.f32.mrb[158].mxu0  ;;  %v7368_v12 = vsel %vm757_vm1, %v7363_v1, %v18496_v46  ;;  %v8344_v61 = vrot.slane %v8342_v18, 1  ;;  %v6515_v36 = vshrl.u32 %v18434_v6, 16  ;;  %v6519_v53 = vshll.u32 %v18534_v47, 16 }
 0x342   : > { %v7954_v48 = vpop.permute.xlu0 %7953  ;;  %v18525_v58 = vpop.f32.mrb[159].mxu0  ;;  %v10320_v14 = vadd.f32 %v10178_v35, %v18389_v8  ;;  %v8929_v1 = vsel %vm3171_vm2, %v7368_v12, %v7702_v49  ;;  %v8728_v38 = vsel %vm3244_vm3, %v8656_v56, %v6820_v9  ;;  %v18547_v18 = vrot.slane %v8347_v5, 1  ;;  %v12795_v57 = vld [vmem:[#allocation2 + $0x150] ss:$0 sps:$4 sm:$0x11]  }
 0x343   : > { %6623 = vrot.lane.b32.xlu1 %v6514_v44, %s13005_s20  ;;  %v5812_v49 = vld [vmem:[#allocation2 + $0x140] sm:$0xf]  ;;  %v4759_v35 = vld [vmem:[#allocation2 + $0x17c] sm:$0x1] }
 0x344   : > { %v9456_v17 = vpop.f32.mrb[80].mxu1  ;;  %v18558_v12 = vcombine.low %v5812_v49, %v18456_v50 }
 0x345   : > { %7721 = vrot.lane.b32.xlu0 %v7648_v2, %s13005_s20  ;;  %v9760_v51 = vadd.f32 %v18416_v32, %v9456_v17  ;;  %v9458_v31 = vpop.f32.mrb[81].mxu1  ;;  %v7072_v44 = vpop.permute.xlu1 %7071  ;;  %v9016_v32 = vsel %vm3244_vm3, %v8929_v1, %v7954_v48  ;;  %v8345_v48 = vor.u32 %v8344_v61, %v8340_v0  ;;  %v5708_v1 = vld [vmem:[#allocation2 + $0x140] sm:$0xf]  ;;  %v7371_v0 = vor.u32 %v7369_v39, %v18496_v46 }
 0x346   : > { %v9459_v54 = vpop.f32.mrb[82].mxu1  ;;  %v8440_v2 = vpop.permute.xlu0 %8439  ;;  %v8820_v8 = vsel %vm3317_vm4, %v8728_v38, %v7072_v44  ;;  %20161 = vst [vmem:[#allocation25_spill] sm:$0xff] %v18558_v12  ;;  %v7380_v31 = vshll.u32 %v17972_v4, 16  ;;  %v7649_v61 = vrot.slane %v12795_v57, 1  ;;  %v6767_v46 = vrot.slane %v18534_v47, 1  ;;  %v18585_v57 = vld [vmem:[#allocation2 + $0xf8] sm:$0xff]  }
 0x347   : > { %6839 = vrot.lane.b32.xlu1 %v6766_v29, %s13004_s12  ;;  %v10323_v11 = vadd.f32 %v10183_v43, %v9760_v51  ;;  %v9763_v63 = vadd.f32 %v18428_v19, %v9459_v54  ;;  %v9461_v17 = vpop.f32.mrb[83].mxu1  ;;  %v18554_v9 = vpop.f32.mrb[160].mxu0  ;;  %v9108_v5 = vsel %vm3317_vm4, %v9016_v32, %v8440_v2  ;;  %v6517_v43 = vor.u32 %v6515_v36, %v18493_v45  ;;  %v12796_v19 = vld [vmem:[#allocation2 + $0x164] ss:$0 sps:$4 sm:$0x11]  }
 0x348   : > { %v18561_v29 = vld [vmem:[#allocation2 + $0x144] sm:$0xf]  ;;  %9589 = vmatprep.mubr.bf16.mxu1 %v9108_v5  ;;  %v18565_v56 = vpop.f32.mrb[161].mxu0  ;;  %v6521_v51 = vrot.slane %v6519_v53, 1  ;;  %v8350_v45 = vsel %vm757_vm1, %v8345_v48, %v18547_v18  ;;  %v7385_v60 = vshll.u32 %v18585_v57, 16  ;;  %v8355_v32 = vshll.u32 %v12796_v19, 16 }
 0x349   : > { %7973 = vrot.lane.b32.xlu0 %v18490_v41, %s13004_s12  ;;  %v18563_v13 = vadd.f32 %v10323_v11, %v10320_v14  ;;  %v10324_v41 = vadd.f32 %v10185_v28, %v9763_v63  ;;  %9590 = vmatmul.mubr.bf16.gmra.mrb[152].mxu1 %v8820_v8  ;;  %v6606_v38 = vpop.permute.xlu1 %6605  ;;  %v12303_v50 = vpop.f32.mrb[162].mxu0  ;;  %v4760_v28 = vsel %vm14118_vm8, 0, %v4759_v35  ;;  %v4822_v36 = vld [vmem:[#allocation2 + $0x184] sm:$0x2]  ;;  %v7375_v14 = vrot.slane %v7373_v62, 1  ;;  %v18589_v11 = vld [vmem:[#allocation2 + $0x148] sm:$0xff]  }
 0x34a   : > { %v7704_v44 = vpop.permute.xlu0 %7703  ;;  %v18578_v54 = vpop.f32.mrb[163].mxu0  ;;  %v18583_v39 = vcombine.low %v5708_v1, %v18561_v29  ;;  %4761 = vst [vmem:[#allocation2 + $0x17c] sm:$0x1] %v4760_v28  ;;  %v7382_v62 = vrot.slane %v7380_v31, 1  ;;  %v4823_v63 = vsel %vm14201_vm11, 0, %v4822_v36  ;;  %v7650_v47 = vsel %vm1244_vm0, %v7647_v40, %v7649_v61  ;;  %v18607_v19 = vld [vmem:[%s13097_s9 + $0x3c] sm:$0xff]  }
 0x34b   : > { %7091 = vrot.lane.b32.xlu1 %v18558_v12, %s13006_s22  ;;  %v18576_v53 = vadd.f32 %v10324_v41, %v18414_v26  ;;  %v6522_v26 = vsel %vm757_vm1, %v6517_v43, %v6521_v51  ;;  %v8351_v17 = vshrl.u32 %v18502_v7, 16  ;;  %v11980_v8 = vld [vmem:[%s13097_s9 + $0x44] sm:$0x3]  ;;  %4824 = vst [vmem:[#allocation2 + $0x184] sm:$0x2] %v4823_v63  ;;  %v7376_v49 = vsel %vm757_vm1, %v7371_v0, %v7375_v14 }
 0x34c   : > { %20163 = vst [vmem:[#allocation40_spill] sm:$0xff] %v18583_v39  ;;  %v6768_v10 = vsel %vm1244_vm0, %v6765_v55, %v6767_v46  ;;  %v7378_v48 = vshrl.u32 %v17972_v4, 16  ;;  %v6526_v43 = vshll.u32 %v18583_v39, 16  ;;  %v18609_v40 = vld [vmem:[#allocation2 + $0x16c] sm:$0xf]  ;;  %v18614_v1 = vrot.slane %v7385_v60, 1 }
 0x34d   : > { %20162 = vst [vmem:[#allocation34_spill] sm:$0xff] %v18576_v53  ;;  %8459 = vrot.lane.b32.xlu0 %v8350_v45, %s13006_s22  ;;  %v6822_v2 = vpop.permute.xlu1 %6821  ;;  %v8353_v50 = vor.u32 %v8351_v17, %v18547_v18  ;;  %v8357_v6 = vrot.slane %v8355_v32, 1  ;;  %v18617_v0 = vld [vmem:[#allocation2 + $0x158] sm:$0xf]  ;;  %v12918_v55 = vld [vmem:[#allocation2 + $0xd0] sm:$0xff]   ;;  %v6531_v36 = vshll.u32 %v18589_v11, 16  ;;  %v10075_v14 = vunpack.c.l.bf16 %v11980_v8 }
 0x34e   : > { %v7956_v35 = vpop.permute.xlu0 %7955  ;;  %v9464_v5 = vpop.f32.mrb[84].mxu1  ;;  %v8658_v4 = vsel %vm3171_vm2, %v12918_v55, %v6606_v38  ;;  %v7383_v28 = vor.u32 %v7382_v62, %v7378_v48  ;;  %v5925_v46 = vld [vmem:[#allocation2 + $0x168] sm:$0xf]  ;;  %v8932_v60 = vsel %vm3171_vm2, %v7376_v49, %v7704_v44  ;;  %v5858_v38 = vld [vmem:[#allocation2 + $0x154] sm:$0xe] }
 0x34f   : > { %6625 = vrot.lane.b32.xlu1 %v6522_v26, %s13005_s20  ;;  %v9768_v41 = vadd.f32 %v18409_v16, %v9464_v5  ;;  %v18612_v51 = vpop.f32.mrb[164].mxu0  ;;  %v9466_v31 = vpop.f32.mrb[85].mxu1  ;;  %v18623_v16 = vld [vmem:[#allocation2 + $0x15c] sm:$0xff]   ;;  %v8730_v18 = vsel %vm3244_vm3, %v8658_v4, %v6822_v2  ;;  %v9018_v62 = vsel %vm3244_vm3, %v8932_v60, %v7956_v35  ;;  %v6528_v2 = vrot.slane %v6526_v43, 1  ;;  %v18648_v4 = vld [vmem:[#allocation2 + $0x170] sm:$0xff]  }
 0x350   : > { %v18620_v45 = vpop.f32.mrb[165].mxu0  ;;  %v9467_v61 = vpop.f32.mrb[86].mxu1  ;;  %v5750_v8 = vld [vmem:[#allocation2 + $0x140] sm:$0xe]  ;;  %v10074_v35 = vunpack.c.h.bf16 %v18607_v19  ;;  %v6533_v31 = vrot.slane %v6531_v36, 1  ;;  %v10073_v43 = vunpack.c.l.bf16 %v18607_v19  ;;  %v19771_v55 = vrot.slane %v18623_v16, 1 }
 0x351   : > { %7723 = vrot.lane.b32.xlu0 %v7650_v47, %s13005_s20  ;;  %v10325_v32 = vadd.f32 %v18505_v37, %v9768_v41  ;;  %v7074_v26 = vpop.permute.xlu1 %7073  ;;  %v12307_v63 = vpop.f32.mrb[166].mxu0  ;;  %v18630_v47 = vcombine.low %v5925_v46, %v18609_v40  ;;  %v11844_v37 = vcombine.low %v5858_v38, %v18617_v0  ;;  %v11772_v41 = vcombine.low %v5750_v8, %v18561_v29  ;;  %v18711_v53 = vld [vmem:[#allocation2 + $0x178] ss:$0 sps:$4 sm:$0x11]  }
 0x352   : > { %v8442_v17 = vpop.permute.xlu0 %8441  ;;  %v9468_v5 = vpop.f32.mrb[87].mxu1  ;;  %v8823_v44 = vsel %vm3317_vm4, %v8730_v18, %v7074_v26  ;;  %v8358_v61 = vsel %vm757_vm1, %v8353_v50, %v8357_v6  ;;  %v18653_v46 = vrot.slane %v10075_v14, 1  ;;  %v19770_v29 = vrot.slane %v18589_v11, 1  ;;  %v18658_v63 = vld [vmem:[#allocation2 + $0x164] ss:$0 sps:$4 sm:$0x11]  }
 0x353   : > { %6841 = vrot.lane.b32.xlu1 %v6768_v10, %s13004_s12  ;;  %v18638_v49 = vadd.f32 %v10325_v32, %v18479_v15  ;;  %v18640_v10 = vpop.f32.mrb[167].mxu0  ;;  %v9111_v48 = vsel %vm3317_vm4, %v9018_v62, %v8442_v17  ;;  %v8362_v60 = vshll.u32 %v18630_v47, 16  ;;  %v7651_v18 = vrot.slane %v11844_v37, 1  ;;  %v12919_v32 = vld [vmem:[#allocation2 + $0x100] ss:$0 sps:$4 sm:$0x11]  }
 0x354   : > { %9597 = vmatprep.mubr.bf16.mxu1 %v9111_v48  ;;  %v7393_v26 = vshll.u32 %v12919_v32, 16  ;;  %v18664_v50 = vrot.slane %v10074_v35, 1  ;;  %v6769_v6 = vrot.slane %v11772_v41, 1  ;;  %v7389_v14 = vshrl.u32 %v18585_v57, 16  ;;  %v18678_v37 = vld [vmem:[#allocation2 + $0x158] sm:$0xf] }
 0x355   : > { %7975 = vrot.lane.b32.xlu0 %v18502_v7, %s13004_s12  ;;  %20164 = vst [vmem:[#allocation29_spill] sm:$0xff] %v18638_v49  ;;  %v6524_v7 = vshrl.u32 %v18583_v39, 16  ;;  %9598 = vmatmul.mubr.bf16.gmra.mrb[156].mxu1 %v8823_v44  ;;  %v6608_v15 = vpop.permute.xlu1 %6607  ;;  %v18667_v62 = vld [vmem:[#allocation2 + $0x150] ss:$0 sps:$4 sm:$0x11]   ;;  %v18672_v44 = vrot.slane %v10073_v43, 1 }
 0x356   : > { %v7706_v36 = vpop.permute.xlu0 %7705  ;;  %v10190_v57 = vsel %vm1244_vm0, %v18664_v50, %v18653_v46  ;;  %v6771_v35 = vsel %vm1244_vm0, %v6769_v6, %v19770_v29  ;;  %v18688_v41 = vor.u32 %v7389_v14, %v18614_v1  ;;  %v8364_v43 = vrot.slane %v8362_v60, 1  ;;  %v5712_v6 = vld [vmem:[#allocation2 + $0x154] sm:$0xf] }
 0x357   : > { %7093 = vrot.lane.b32.xlu1 %v18475_v42, %s13006_s22  ;;  %v6529_v19 = vor.u32 %v6528_v2, %v6524_v7  ;;  %v7388_v42 = vsel %vm757_vm1, %v7383_v28, %v18614_v1  ;;  %v18662_v38 = vpop.f32.mrb[168].mxu0  ;;  %v7653_v2 = vsel %vm1244_vm0, %v7651_v18, %v19771_v55  ;;  %v8367_v28 = vshll.u32 %v18648_v4, 16  ;;  %v5816_v7 = vld [vmem:[#allocation2 + $0x154] sm:$0xf] }
 0x358   : > { %20165 = vst [vmem:[#allocation28_spill] sm:$0xff] %v18662_v38  ;;  %v18669_v17 = vpop.f32.mrb[169].mxu0  ;;  %v18693_v18 = vrot.slane %v7393_v26, 1  ;;  %v18696_v32 = vcombine.low %v5816_v7, %v18617_v0  ;;  %v6539_v1 = vshll.u32 %v18667_v62, 16  ;;  %v7400_v14 = vshll.u32 %v18111_v3, 16 }
 0x359   : > { %8461 = vrot.lane.b32.xlu0 %v8358_v61, %s13006_s22  ;;  %20166 = vst [vmem:[#allocation7_spill] sm:$0xff] %v18669_v17  ;;  %v6534_v5 = vsel %vm757_vm1, %v6529_v19, %v6533_v31  ;;  %v6824_v8 = vpop.permute.xlu1 %6823  ;;  %v12311_v48 = vpop.f32.mrb[170].mxu0  ;;  %v18704_v55 = vcombine.low %v5712_v6, %v18678_v37  ;;  %v8660_v26 = vsel %vm3171_vm2, %v17822_v25, %v6608_v15  ;;  %v8369_v7 = vrot.slane %v8367_v28, 1  ;;  %v18760_v17 = vld [vmem:[#allocation2 + $0x170] sm:$0xff]  }
 0x35a   : > { %v7958_v61 = vpop.permute.xlu0 %7957  ;;  %v18690_v19 = vpop.f32.mrb[171].mxu0  ;;  %v6535_v48 = vshrl.u32 %v18589_v11, 16  ;;  %v8935_v39 = vsel %vm3171_vm2, %v7388_v42, %v7706_v36  ;;  %v8732_v60 = vsel %vm3244_vm3, %v8660_v26, %v6824_v8  ;;  %v7405_v25 = vshll.u32 %v18716_v20, 16  ;;  %v12120_v8 = vld [vmem:[%s13097_s9 + $0x50] sm:$0xff]  }
 0x35b   : > { %6627 = vrot.lane.b32.xlu1 %v6534_v5, %s13005_s20  ;;  %20167 = vst [vmem:[#allocation22_spill] sm:$0xff] %v18690_v19  ;;  %v8360_v5 = vshrl.u32 %v18630_v47, 16  ;;  %v9471_v29 = vpop.f32.mrb[88].mxu1  ;;  %20168 = vst [vmem:[#allocation38_spill] sm:$0xff] %v18704_v55  ;;  %v8375_v28 = vshll.u32 %v18711_v53, 16 }
 0x35c   : > { %v18709_v0 = vadd.f32 %v18467_v22, %v9471_v29  ;;  %v6537_v49 = vor.u32 %v6535_v48, %v6533_v31  ;;  %v18719_v22 = vld [vmem:[#allocation2 + $0x15c] sm:$0xff]   ;;  %v9020_v31 = vsel %vm3244_vm3, %v8935_v39, %v7958_v61  ;;  %v8371_v48 = vshrl.u32 %v18648_v4, 16  ;;  %v11983_v61 = vld [vmem:[%s13097_s9 + $0x58] sm:$0x3] }
 0x35d   : > { %7725 = vrot.lane.b32.xlu0 %v7653_v2, %s13005_s20  ;;  %v9473_v2 = vpop.f32.mrb[89].mxu1  ;;  %v7076_v38 = vpop.permute.xlu1 %7075  ;;  %v8365_v6 = vor.u32 %v8364_v43, %v8360_v5  ;;  %v7402_v5 = vrot.slane %v7400_v14, 1  ;;  %v6546_v39 = vshll.u32 %v18704_v55, 16 }
 0x35e   : > { %v9474_v19 = vpop.f32.mrb[90].mxu1  ;;  %v8444_v29 = vpop.permute.xlu0 %8443  ;;  %v8826_v42 = vsel %vm3317_vm4, %v8732_v60, %v7076_v38  ;;  %v6541_v38 = vrot.slane %v6539_v1, 1  ;;  %v6772_v60 = vrot.slane %v18667_v62, 1  ;;  %v7398_v2 = vshrl.u32 %v18111_v3, 16 }
 0x35f   : > { %6843 = vrot.lane.b32.xlu1 %v6771_v35, %s13004_s12  ;;  %v9778_v15 = vadd.f32 %v18485_v34, %v9474_v19  ;;  %v9476_v36 = vpop.f32.mrb[91].mxu1  ;;  %v9114_v43 = vsel %vm3317_vm4, %v9020_v31, %v8444_v29  ;;  %v18733_v34 = vld [vmem:[#allocation2 + $0x16c] sm:$0xf]  ;;  %v5930_v19 = vld [vmem:[#allocation2 + $0x180] sm:$0xf]  ;;  %v8377_v3 = vrot.slane %v8375_v28, 1  ;;  %v12089_v62 = vunpack.c.l.bf16 %v12120_v8 }
 0x360   : > { %v18728_v35 = vpop.f32.mrb[172].mxu0  ;;  %9604 = vmatprep.mubr.bf16.mxu1 %v9114_v43  ;;  %v5859_v31 = vld [vmem:[#allocation2 + $0x168] sm:$0xe]  ;;  %v8370_v36 = vsel %vm757_vm1, %v8365_v6, %v8369_v7  ;;  %v5929_v43 = vld [vmem:[#allocation2 + $0x17c] sm:$0xf]  ;;  %v18755_v6 = vsel %vm1244_vm0, %v18672_v44, %v18664_v50  ;;  %v20172_v28 = vrot.slane %v18658_v63, 1 }
 0x361   : > { %7977 = vrot.lane.b32.xlu0 %v18630_v47, %s13004_s12  ;;  %20169 = vst [vmem:[#allocation20_spill] sm:$0xff] %v18728_v35  ;;  %v18736_v26 = vadd.f32 %v10190_v57, %v9778_v15  ;;  %v18738_v47 = vpop.f32.mrb[173].mxu0  ;;  %9605 = vmatmul.mubr.bf16.gmra.mrb[160].mxu1 %v8826_v42  ;;  %v6610_v14 = vpop.permute.xlu1 %6609  ;;  %v18745_v35 = vrot.slane %v7405_v25, 1  ;;  %v8373_v57 = vor.u32 %v8371_v48, %v8369_v7  ;;  %v6551_v15 = vshll.u32 %v18719_v22, 16 }
 0x362   : > { %20170 = vst [vmem:[#allocation31_spill] sm:$0xff] %v18738_v47  ;;  %v12315_v29 = vpop.f32.mrb[174].mxu0  ;;  %v7708_v1 = vpop.permute.xlu0 %7707  ;;  %v12090_v42 = vunpack.c.h.bf16 %v12120_v8  ;;  %v7396_v7 = vsel %vm757_vm1, %v18688_v41, %v18693_v18  ;;  %v7403_v25 = vor.u32 %v7402_v5, %v7398_v2  ;;  %v6548_v48 = vrot.slane %v6546_v39, 1 }
 0x363   : > { %7095 = vrot.lane.b32.xlu1 %v18696_v32, %s13006_s22  ;;  %v18748_v47 = vpop.f32.mrb[175].mxu0  ;;  %v11845_v29 = vcombine.low %v5859_v31, %v18733_v34  ;;  %v20173_v8 = vrot.slane %v18623_v16, 1  ;;  %v18768_v12 = vcombine.low %v5929_v43, %v5930_v19  ;;  %v20174_v44 = vrot.slane %v18589_v11, 1  ;;  %v5751_v11 = vld [vmem:[#allocation2 + $0x154] sm:$0xe] }
 0x364   : > { %20171 = vst [vmem:[#allocation41_spill] sm:$0xff] %v18748_v47  ;;  %v10078_v47 = vunpack.c.l.bf16 %v11983_v61  ;;  %v18776_v18 = vsel %vm757_vm1, %v7403_v25, %v18745_v35  ;;  %v18779_v5 = vrot.slane %v6551_v15, 1  ;;  %v8378_v61 = vsel %vm757_vm1, %v8373_v57, %v8377_v3 }
 0x365   : > { %8463 = vrot.lane.b32.xlu0 %v8370_v36, %s13006_s22  ;;  %v6542_v36 = vsel %vm757_vm1, %v6537_v49, %v6541_v38  ;;  %v7655_v31 = vsel %vm1244_vm0, %v20173_v8, %v20172_v28  ;;  %v6826_v50 = vpop.permute.xlu1 %6825  ;;  %v6773_v41 = vsel %vm1244_vm0, %v20174_v44, %v6772_v60  ;;  %v6544_v49 = vshrl.u32 %v18704_v55, 16  ;;  %v12921_v44 = vld [vmem:[#allocation2 + $0xe4] sm:$0xff]  }
 0x366   : > { %v7960_v39 = vpop.permute.xlu0 %7959  ;;  %v10191_v19 = vrot.slane %v12089_v62, 1  ;;  %v10192_v2 = vrot.slane %v12090_v42, 1  ;;  %v7656_v43 = vrot.slane %v11845_v29, 1  ;;  %v19779_v8 = vrot.slane %v18760_v17, 1 }
 0x367   : > { %6629 = vrot.lane.b32.xlu1 %v6542_v36, %s13005_s20  ;;  %v9479_v38 = vpop.f32.mrb[92].mxu1  ;;  %v6549_v28 = vor.u32 %v6548_v48, %v6544_v49  ;;  %v11773_v15 = vcombine.low %v5751_v11, %v18678_v37  ;;  %v8662_v55 = vsel %vm3171_vm2, %v12921_v44, %v6610_v14  ;;  %v18791_v3 = vrot.slane %v10078_v47, 1 }
 0x368   : > { %v9783_v60 = vadd.f32 %v18459_v33, %v9479_v38  ;;  %v9481_v25 = vpop.f32.mrb[93].mxu1  ;;  %v8382_v62 = vshll.u32 %v18768_v12, 16  ;;  %v7480_v33 = vshll.u32 %v18696_v32, 16  ;;  %v8938_v42 = vsel %vm3171_vm2, %v7396_v7, %v7708_v1  ;;  %v5820_v7 = vld [vmem:[#allocation2 + $0x168] sm:$0xf] }
 0x369   : > { %7727 = vrot.lane.b32.xlu0 %v7655_v31, %s13005_s20  ;;  %v18784_v36 = vpop.f32.mrb[176].mxu0  ;;  %v9482_v57 = vpop.f32.mrb[94].mxu1  ;;  %v8734_v29 = vsel %vm3244_vm3, %v8662_v55, %v6826_v50  ;;  %v7485_v14 = vshll.u32 %v18623_v16, 16  ;;  %v9022_v47 = vsel %vm3244_vm3, %v8938_v42, %v7960_v39  ;;  %v7478_v55 = vshrl.u32 %v18696_v32, 16  ;;  %v18816_v25 = vld [vmem:[#allocation2 + $0x184] sm:$0xff]  }
 0x36a   : > { %20175 = vst [vmem:[#allocation44_spill] sm:$0xff] %v18784_v36  ;;  %v18789_v31 = vpop.f32.mrb[177].mxu0  ;;  %v18798_v48 = vadd.f32 %v18653_v46, %v9783_v60  ;;  %v7078_v37 = vpop.permute.xlu1 %7077  ;;  %v7482_v46 = vrot.slane %v7480_v33, 1  ;;  %v18814_v39 = vcombine.low %v5820_v7, %v18733_v34  ;;  %v7658_v57 = vsel %vm1244_vm0, %v7656_v43, %v19779_v8 }
 0x36b   : > { %20176 = vst [vmem:[#allocation26_spill] sm:$0xff] %v18789_v31  ;;  %v12319_v49 = vpop.f32.mrb[178].mxu0  ;;  %6845 = vrot.lane.b32.xlu1 %v6773_v41, %s13004_s12  ;;  %v8446_v38 = vpop.permute.xlu0 %8445  ;;  %v8829_v1 = vsel %vm3317_vm4, %v8734_v29, %v7078_v37  ;;  %v18811_v41 = vsel %vm1244_vm0, %v10191_v19, %v10192_v2  ;;  %v7487_v44 = vrot.slane %v7485_v14, 1  ;;  %v7489_v33 = vshrl.u32 %v18623_v16, 16 }
 0x36c   : > { %v9483_v11 = vpop.f32.mrb[95].mxu1  ;;  %v18807_v50 = vpop.f32.mrb[179].mxu0  ;;  %v9117_v60 = vsel %vm3317_vm4, %v9022_v47, %v8446_v38  ;;  %v7483_v32 = vor.u32 %v7482_v46, %v7478_v55  ;;  %v7493_v42 = vshll.u32 %v18658_v63, 16  ;;  %v6554_v34 = vsel %vm757_vm1, %v6549_v28, %v18779_v5  ;;  %v18834_v47 = vld [vmem:[#allocation2 + $0x164] ss:$0 sps:$4 sm:$0x11]  }
 0x36d   : > { %7979 = vrot.lane.b32.xlu0 %v18648_v4, %s13004_s12  ;;  %20177 = vst [vmem:[#allocation21_spill] sm:$0xff] %v18807_v50  ;;  %9612 = vmatprep.mubr.bf16.mxu1 %v9117_v60  ;;  %v18829_v19 = vsel %vm1244_vm0, %v10192_v2, %v18791_v3  ;;  %v6774_v37 = vrot.slane %v11773_v15, 1  ;;  %v8380_v63 = vshrl.u32 %v18768_v12, 16  ;;  %v8384_v14 = vrot.slane %v8382_v62, 1 }
 0x36e   : > { %9613 = vmatmul.mubr.bf16.gmra.mrb[164].mxu1 %v8829_v1  ;;  %v6612_v29 = vpop.permute.xlu1 %6611  ;;  %v18836_v38 = vld [vmem:[#allocation2 + $0x178] ss:$0 sps:$4 sm:$0x11]   ;;  %v7491_v28 = vor.u32 %v7489_v33, %v7487_v44  ;;  %v8387_v2 = vshll.u32 %v18816_v25, 16  ;;  %v7495_v15 = vrot.slane %v7493_v42, 1  ;;  %v7500_v1 = vshll.u32 %v18814_v39, 16 }
 0x36f   : > { %7097 = vrot.lane.b32.xlu1 %v18623_v16, %s13006_s22  ;;  %v7710_v49 = vpop.permute.xlu0 %7709  ;;  %v18839_v16 = vsel %vm757_vm1, %v7483_v32, %v7487_v44  ;;  %v18848_v62 = vld [vmem:[#allocation2 + $0x114] ss:$0 sps:$4 sm:$0x11]   ;;  %v6555_v46 = vshrl.u32 %v18719_v22, 16  ;;  %v7498_v60 = vshrl.u32 %v18814_v39, 16  ;;  %v7509_v44 = vshrl.u32 %v18760_v17, 16 }
 0x370   : > { %20178 = vst [vmem:[#allocation23_spill] sm:$0xff] %v18839_v16  ;;  %v18856_v42 = vsel %vm757_vm1, %v7491_v28, %v7495_v15  ;;  %v7502_v8 = vrot.slane %v7500_v1, 1  ;;  %v20183_v55 = vrot.slane %v18719_v22, 1  ;;  %v8385_v31 = vor.u32 %v8384_v14, %v8380_v63 }
 0x371   : > { %8465 = vrot.lane.b32.xlu0 %v8378_v61, %s13006_s22  ;;  %v7505_v61 = vshll.u32 %v18760_v17, 16  ;;  %20181 = vst [vmem:[#allocation30_spill] sm:$0xff] %v18856_v42  ;;  %v8389_v15 = vrot.slane %v8387_v2, 1  ;;  %v10326_v16 = vadd.f32 %v18755_v6, %v18709_v0 }
 0x372   : > { %v6828_v32 = vpop.permute.xlu1 %6827  ;;  %v6776_v50 = vsel %vm1244_vm0, %v6774_v37, %v20183_v55  ;;  %v7503_v1 = vor.u32 %v7502_v8, %v7498_v60  ;;  %v8608_v60 = vrot.slane %v18711_v53, 1 }
 0x373   : > { %v18841_v11 = vpop.f32.mrb[180].mxu0  ;;  %6631 = vrot.lane.b32.xlu1 %v6554_v34, %s13005_s20  ;;  %v7507_v43 = vrot.slane %v7505_v61, 1  ;;  %v6559_v34 = vshll.u32 %v18834_v47, 16 }
 0x374   : > { %20179 = vst [vmem:[#allocation17_spill] sm:$0xff] %v18841_v11  ;;  %v18846_v7 = vpop.f32.mrb[181].mxu0  ;;  %v7513_v11 = vshll.u32 %v18836_v38, 16  ;;  %v9486_v28 = vpop.f32.mrb[96].mxu1 }
 0x375   : > { %20180 = vst [vmem:[#allocation11_spill] sm:$0xff] %v18846_v7  ;;  %v12323_v33 = vpop.f32.mrb[182].mxu0  ;;  %v7962_v7 = vpop.permute.xlu0 %7961  ;;  %7729 = vrot.lane.b32.xlu0 %v7658_v57, %s13005_s20  ;;  %v7511_v61 = vor.u32 %v7509_v44, %v7507_v43  ;;  %v8664_v57 = vsel %vm3171_vm2, %v17993_v21, %v6612_v29  ;;  %v9790_v37 = vadd.f32 %v18511_v59, %v9486_v28  ;;  %v7659_v44 = vrot.slane %v18836_v38, 1 }
 0x376   : > { %v18859_v36 = vpop.f32.mrb[183].mxu0  ;;  %v6557_v33 = vor.u32 %v6555_v46, %v18779_v5  ;;  %v7515_v42 = vrot.slane %v7513_v11, 1  ;;  %v9488_v63 = vpop.f32.mrb[97].mxu1  ;;  %v5967_v5 = vld [vmem:[#allocation2 + $0x168] sm:$0xe]  ;;  %v8736_v14 = vsel %vm3244_vm3, %v8664_v57, %v6828_v32  ;;  %v18877_v8 = vsel %vm757_vm1, %v7503_v1, %v7507_v43 }
 0x377   : > { %20182 = vst [vmem:[#allocation43_spill] sm:$0xff] %v18859_v36  ;;  %v8941_v36 = vsel %vm3171_vm2, %v18776_v18, %v7710_v49  ;;  %v7080_v55 = vpop.permute.xlu1 %7079  ;;  %v9489_v2 = vpop.f32.mrb[98].mxu1  ;;  %6847 = vrot.lane.b32.xlu1 %v6776_v50, %s13004_s12  ;;  %v11916_v21 = vcombine.low %v5967_v5, %v18609_v40  ;;  %v10329_v59 = vadd.f32 %v18811_v41, %v9790_v37  ;;  %v18891_v46 = vld [vmem:[#allocation2 + $0x18c] ss:$0 sps:$4 sm:$0x11]   ;;  %v6777_v28 = vrot.slane %v18834_v47, 1 }
 0x378   : > { %v18880_v0 = vsel %vm757_vm1, %v7511_v61, %v7515_v42  ;;  %v9024_v6 = vsel %vm3244_vm3, %v8941_v36, %v7962_v7  ;;  %v9793_v18 = vadd.f32 %v18525_v58, %v9489_v2  ;;  %v9491_v49 = vpop.f32.mrb[99].mxu1  ;;  %v8832_v50 = vsel %vm3317_vm4, %v8736_v14, %v7080_v55  ;;  %v12923_v14 = vld [vmem:[#allocation2 + $0xf8] sm:$0xff]  }
 0x379   : > { %v8448_v29 = vpop.permute.xlu0 %8447  ;;  %7981 = vrot.lane.b32.xlu0 %v18768_v12, %s13004_s12  ;;  %v8390_v11 = vsel %vm757_vm1, %v8385_v31, %v8389_v15  ;;  %v8605_v40 = vrot.slane %v11916_v21, 1  ;;  %v8606_v36 = vrot.slane %v18648_v4, 1  ;;  %v10377_v7 = vadd.f32 %v10329_v59, %v10326_v16 }
 0x37a   : > { %v9120_v43 = vsel %vm3317_vm4, %v9024_v6, %v8448_v29  ;;  %v10330_v41 = vadd.f32 %v18829_v19, %v9793_v18  ;;  %v6561_v58 = vrot.slane %v6559_v34, 1  ;;  %v7409_v4 = vshrl.u32 %v18716_v20, 16 }
 0x37b   : > { %9619 = vmatprep.mubr.bf16.mxu1 %v9120_v43  ;;  %v6614_v12 = vpop.permute.xlu1 %6613  ;;  %7099 = vrot.lane.b32.xlu1 %v18814_v39, %s13006_s22  ;;  %v18900_v31 = vsel %vm1244_vm0, %v8605_v40, %v8606_v36  ;;  %v18908_v53 = vsel %vm1244_vm0, %v8606_v36, %v8608_v60  ;;  %v8391_v16 = vshrl.u32 %v18816_v25, 16  ;;  %v8395_v39 = vshll.u32 %v18891_v46, 16 }
 0x37c   : > { %9620 = vmatmul.mubr.bf16.gmra.mrb[168].mxu1 %v8832_v50  ;;  %v18903_v32 = vadd.f32 %v10330_v41, %v18736_v26  ;;  %v7411_v38 = vor.u32 %v7409_v4, %v18745_v35  ;;  %v20184_v42 = vshll.u32 %v18848_v62, 16  ;;  %v6562_v26 = vsel %vm757_vm1, %v6557_v33, %v6561_v58  ;;  %v11986_v50 = vld [vmem:[%s13097_s9 + $0x6c] sm:$0x3] }
 0x37d   : > { %v7712_v19 = vpop.permute.xlu0 %7711  ;;  %8467 = vrot.lane.b32.xlu0 %v8390_v11, %s13006_s22  ;;  %v20185_v1 = vrot.slane %v18760_v17, 1  ;;  %v10411_v63 = vrot.slane %v10377_v7, 1  ;;  %v8393_v5 = vor.u32 %v8391_v16, %v8389_v15  ;;  %v8397_v33 = vrot.slane %v8395_v39, 1  ;;  %v12924_v16 = vld [vmem:[#allocation2 + $0x120] sm:$0xff]  }
 0x37e   : > { %v7415_v34 = vrot.slane %v20184_v42, 1  ;;  %v10410_v47 = vrot.slane %v18563_v13, 1  ;;  %v8666_v55 = vsel %vm3171_vm2, %v12923_v14, %v6614_v12  ;;  %v20186_v6 = vrot.slane %v18719_v22, 1 }
 0x37f   : > { %v6830_v20 = vpop.permute.xlu1 %6829  ;;  %6633 = vrot.lane.b32.xlu1 %v6562_v26, %s13005_s20  ;;  %v7660_v61 = vsel %vm1244_vm0, %v20185_v1, %v7659_v44  ;;  %v9494_v37 = vpop.f32.mrb[100].mxu1  ;;  %v7420_v36 = vshll.u32 %v18242_v23, 16  ;;  %v18941_v41 = vadd.f32 %v10411_v63, %v10377_v7  ;;  %v8398_v12 = vsel %vm757_vm1, %v8393_v5, %v8397_v33  ;;  %v18951_v44 = vld [vmem:[%s13097_s9 + $0x64] sm:$0xff]  }
 0x380   : > { %v9798_v35 = vadd.f32 %v18508_v52, %v9494_v37  ;;  %v9496_v62 = vpop.f32.mrb[101].mxu1  ;;  %v7416_v2 = vsel %vm757_vm1, %v7411_v38, %v7415_v34  ;;  %v6778_v59 = vsel %vm1244_vm0, %v20186_v6, %v6777_v28  ;;  %v8738_v52 = vsel %vm3244_vm3, %v8666_v55, %v6830_v20 }
 0x381   : > { %v7964_v57 = vpop.permute.xlu0 %7963  ;;  %7731 = vrot.lane.b32.xlu0 %v7660_v61, %s13005_s20  ;;  %v9497_v21 = vpop.f32.mrb[102].mxu1  ;;  %v8944_v18 = vsel %vm3171_vm2, %v7416_v2, %v7712_v19  ;;  %v18954_v4 = vadd.f32 %v10410_v47, %v18563_v13  ;;  %v7425_v39 = vshll.u32 %v12924_v16, 16  ;;  %v10081_v7 = vunpack.c.l.bf16 %v11986_v50 }
 0x382   : > { %v10331_v29 = vadd.f32 %v18791_v3, %v9798_v35  ;;  %v9026_v43 = vsel %vm3244_vm3, %v8944_v18, %v7964_v57  ;;  %v9498_v40 = vpop.f32.mrb[103].mxu1  ;;  %v7422_v42 = vrot.slane %v7420_v36, 1  ;;  %v10080_v26 = vunpack.c.h.bf16 %v18951_v44 }
 0x383   : > { %v7082_v15 = vpop.permute.xlu1 %7081  ;;  %v18932_v49 = vpop.f32.mrb[184].mxu0  ;;  %6849 = vrot.lane.b32.xlu1 %v6778_v59, %s13004_s12  ;;  %v10519_v13 = vrot.slane %v18941_v41, 2  ;;  %v7418_v28 = vshrl.u32 %v18242_v23, 16  ;;  %v7427_v20 = vrot.slane %v7425_v39, 1  ;;  %v10518_v1 = vrot.slane %v18954_v4, 2 }
 0x384   : > { %v8835_v22 = vsel %vm3317_vm4, %v8738_v52, %v7082_v15  ;;  %v18944_v3 = vadd.f32 %v10331_v29, %v18798_v48  ;;  %v18946_v58 = vpop.f32.mrb[185].mxu0  ;;  %v10199_v61 = vrot.slane %v10081_v7, 1  ;;  %v18966_v35 = vrot.slane %v10080_v26, 1  ;;  %v12925_v15 = vld [vmem:[#allocation2 + $0x128] ss:$0 sps:$4 sm:$0x11]  }
 0x385   : > { %v8450_v11 = vpop.permute.xlu0 %8449  ;;  %7983 = vrot.lane.b32.xlu0 %v18816_v25, %s13004_s12  ;;  %v12327_v19 = vpop.f32.mrb[186].mxu0  ;;  %v7423_v37 = vor.u32 %v7422_v42, %v7418_v28  ;;  %v7433_v50 = vshll.u32 %v12925_v15, 16  ;;  %v12121_v7 = vld [vmem:[%s13097_s9 + $0x78] sm:$0xff]   ;;  %v12926_v42 = vld [vmem:[#allocation2 + $0x10c] sm:$0xff]  }
 0x386   : > { %v9123_v60 = vsel %vm3317_vm4, %v9026_v43, %v8450_v11  ;;  %v18956_v38 = vpop.f32.mrb[187].mxu0  ;;  %v10200_v14 = vsel %vm1244_vm0, %v18966_v35, %v10199_v61  ;;  %v7429_v11 = vshrl.u32 %v12924_v16, 16 }
 0x387   : > { %9627 = vmatprep.mubr.bf16.mxu1 %v9123_v60  ;;  %v6616_v48 = vpop.permute.xlu1 %6615  ;;  %7101 = vrot.lane.b32.xlu1 %v18760_v17, %s13006_s22  ;;  %v7428_v33 = vsel %vm757_vm1, %v7423_v37, %v7427_v20  ;;  %v11989_v37 = vld [vmem:[%s13097_s9 + $0x80] sm:$0x3] }
 0x388   : > { %9628 = vmatmul.mubr.bf16.gmra.mrb[172].mxu1 %v8835_v22  ;;  %v8668_v23 = vsel %vm3171_vm2, %v18145_v27, %v6616_v48  ;;  %v7431_v22 = vor.u32 %v7429_v11, %v7427_v20  ;;  %v10079_v48 = vunpack.c.l.bf16 %v18951_v44 }
 0x389   : > { %v7714_v34 = vpop.permute.xlu0 %7713  ;;  %8469 = vrot.lane.b32.xlu0 %v8398_v12, %s13006_s22 }
 0x38a   : > { %v8947_v55 = vsel %vm3171_vm2, %v7428_v33, %v7714_v34  ;;  %v12094_v33 = vunpack.c.h.bf16 %v12121_v7 }
 0x38b   : > { %v6832_v57 = vpop.permute.xlu1 %6831  ;;  %10529 = vrot.lane.b32.xlu1 %v10519_v13, %s13005_s20 }
 0x38c   : > { %v9501_v17 = vpop.f32.mrb[104].mxu1  ;;  %v8740_v2 = vsel %vm3244_vm3, %v8668_v23, %v6832_v57  ;;  %v12093_v23 = vunpack.c.l.bf16 %v12121_v7  ;;  %v10202_v15 = vrot.slane %v12094_v33, 1 }
 0x38d   : > { %v7966_v63 = vpop.permute.xlu0 %7965  ;;  %10527 = vrot.lane.b32.xlu0 %v10518_v1, %s13005_s20  ;;  %v18970_v62 = vadd.f32 %v18565_v56, %v9501_v17  ;;  %v9503_v5 = vpop.f32.mrb[105].mxu1 }
 0x38e   : > { %v9504_v47 = vpop.f32.mrb[106].mxu1  ;;  %v9028_v56 = vsel %vm3244_vm3, %v8947_v55, %v7966_v63  ;;  %v12927_v55 = vld [vmem:[#allocation2 + $0x134] sm:$0xff]  }
 0x38f   : > { %v7084_v21 = vpop.permute.xlu1 %7083  ;;  %v9808_v6 = vadd.f32 %v18578_v54, %v9504_v47  ;;  %v9506_v59 = vpop.f32.mrb[107].mxu1  ;;  %v7435_v54 = vrot.slane %v7433_v50, 1  ;;  %v7438_v50 = vshrl.u32 %v18412_v24, 16 }
 0x390   : > { %v8838_v52 = vsel %vm3317_vm4, %v8740_v2, %v7084_v21  ;;  %v7445_v2 = vshll.u32 %v12927_v55, 16  ;;  %v10084_v21 = vunpack.c.l.bf16 %v11989_v37 }
 0x391   : > { %v8452_v18 = vpop.permute.xlu0 %8451  ;;  %v18982_v27 = vadd.f32 %v10200_v14, %v9808_v6  ;;  %v7436_v26 = vsel %vm757_vm1, %v7431_v22, %v7435_v54  ;;  %v10196_v6 = vrot.slane %v10079_v48, 1 }
 0x392   : > { %v9126_v29 = vsel %vm3317_vm4, %v9028_v56, %v8452_v18  ;;  %v10204_v11 = vrot.slane %v10084_v21, 1 }
 0x393   : > { %9634 = vmatprep.mubr.bf16.mxu1 %v9126_v29  ;;  %v6618_v43 = vpop.permute.xlu1 %6617  ;;  %v10201_v29 = vrot.slane %v12093_v23, 1 }
 0x394   : > { %9635 = vmatmul.mubr.bf16.gmra.mrb[176].mxu1 %v8838_v52  ;;  %v8670_v34 = vsel %vm3171_vm2, %v12926_v42, %v6618_v43  ;;  %v7447_v43 = vrot.slane %v7445_v2, 1 }
 0x395   : > { %v7716_v40 = vpop.permute.xlu0 %7715 }
 0x396   : > { %v8950_v16 = vsel %vm3171_vm2, %v7436_v26, %v7716_v40  ;;  %v10198_v40 = vsel %vm1244_vm0, %v10196_v6, %v18966_v35 }
 0x397   : > { %v6834_v36 = vpop.permute.xlu1 %6833  ;;  %v10332_v7 = vadd.f32 %v10198_v40, %v18970_v62 }
 0x398   : > { %v8742_v28 = vsel %vm3244_vm3, %v8670_v34, %v6834_v36  ;;  %v10205_v34 = vsel %vm1244_vm0, %v10202_v15, %v10204_v11 }
 0x399   : > { %v7968_v60 = vpop.permute.xlu0 %7967  ;;  %v9509_v12 = vpop.f32.mrb[108].mxu1 }
 0x39a   : > { %v9813_v19 = vadd.f32 %v18554_v9, %v9509_v12  ;;  %v9511_v39 = vpop.f32.mrb[109].mxu1  ;;  %v7440_v9 = vshll.u32 %v18412_v24, 16  ;;  %v9030_v44 = vsel %vm3244_vm3, %v8950_v16, %v7968_v60  ;;  %v10203_v12 = vsel %vm1244_vm0, %v10201_v29, %v10202_v15 }
 0x39b   : > { %v9512_v13 = vpop.f32.mrb[110].mxu1  ;;  %v7086_v1 = vpop.permute.xlu1 %7085 }
 0x39c   : > { %v18992_v20 = vadd.f32 %v10199_v61, %v9813_v19  ;;  %v18994_v57 = vpop.f32.mrb[188].mxu0  ;;  %v9513_v17 = vpop.f32.mrb[111].mxu1  ;;  %v8841_v5 = vsel %vm3317_vm4, %v8742_v28, %v7086_v1  ;;  %v7442_v18 = vrot.slane %v7440_v9, 1 }
 0x39d   : > { %v8454_v63 = vpop.permute.xlu0 %8453  ;;  %v19000_v47 = vpop.f32.mrb[189].mxu0 }
 0x39e   : > { %v9129_v14 = vsel %vm3317_vm4, %v9030_v44, %v8454_v63  ;;  %v12331_v61 = vpop.f32.mrb[190].mxu0  ;;  %v7443_v54 = vor.u32 %v7442_v18, %v7438_v50  ;;  %v12928_v63 = vld [vmem:[#allocation2 + $0x13c] ss:$0 sps:$4 sm:$0x11]  }
 0x39f   : > { %9642 = vmatprep.mubr.bf16.mxu1 %v9129_v14  ;;  %v19003_v59 = vpop.f32.mrb[191].mxu0  ;;  %v6620_v56 = vpop.permute.xlu1 %6619  ;;  %v7453_v17 = vshll.u32 %v12928_v63, 16  ;;  %v20188_v63 = vld [vmem:[#allocation7_spill] sm:$0xff] }
 0x3a0   : > { %9643 = vmatmul.mubr.bf16.gmra.mrb[180].mxu1 %v8841_v5  ;;  %v8672_v48 = vsel %vm3171_vm2, %v18294_v30, %v6620_v56  ;;  %v7448_v24 = vsel %vm757_vm1, %v7443_v54, %v7447_v43 }
 0x3a1   : > { %v7718_v52 = vpop.permute.xlu0 %7717  ;;  %v7455_v21 = vrot.slane %v7453_v17, 1 }
 0x3a2   : > { %v8953_v35 = vsel %vm3171_vm2, %v7448_v24, %v7718_v52 }
 0x3a3   : > { %v6836_v22 = vpop.permute.xlu1 %6835 }
 0x3a4   : > { %v9516_v60 = vpop.f32.mrb[112].mxu1  ;;  %v8744_v26 = vsel %vm3244_vm3, %v8672_v48, %v6836_v22  ;;  %v20187_v48 = vld [vmem:[#allocation25_spill] sm:$0xff] }
 0x3a5   : > { %v7970_v36 = vpop.permute.xlu0 %7969  ;;  %v9820_v19 = vadd.f32 %v18620_v45, %v9516_v60  ;;  %v9518_v39 = vpop.f32.mrb[113].mxu1  ;;  %v7460_v24 = vshll.u32 %v20187_v48, 16 }
 0x3a6   : > { %v9519_v42 = vpop.f32.mrb[114].mxu1  ;;  %v9032_v1 = vsel %vm3244_vm3, %v8953_v35, %v7970_v36 }
 0x3a7   : > { %v10335_v13 = vadd.f32 %v10203_v12, %v9820_v19  ;;  %v7088_v16 = vpop.permute.xlu1 %7087  ;;  %v9823_v28 = vadd.f32 %v18640_v10, %v9519_v42  ;;  %v9521_v45 = vpop.f32.mrb[115].mxu1  ;;  %v7449_v10 = vshrl.u32 %v12927_v55, 16  ;;  %v10555_v12 = vrot.slane %v18941_v41, 4 }
 0x3a8   : > { %v8844_v9 = vsel %vm3317_vm4, %v8744_v26, %v7088_v16  ;;  %v12930_v26 = vld [vmem:[#allocation2 + $0x148] sm:$0xff]   ;;  %v7462_v45 = vrot.slane %v7460_v24, 1  ;;  %v20191_v24 = vld [vmem:[#allocation28_spill] sm:$0xff] }
 0x3a9   : > { %v8456_v62 = vpop.permute.xlu0 %8455  ;;  %v10380_v30 = vadd.f32 %v10335_v13, %v10332_v7  ;;  %v10336_v37 = vadd.f32 %v10205_v34, %v9823_v28  ;;  %v7451_v2 = vor.u32 %v7449_v10, %v7447_v43  ;;  %v7465_v13 = vshll.u32 %v12930_v26, 16 }
 0x3aa   : > { %v9132_v44 = vsel %vm3317_vm4, %v9032_v1, %v8456_v62  ;;  %v7458_v62 = vshrl.u32 %v20187_v48, 16 }
 0x3ab   : > { %9649 = vmatprep.mubr.bf16.mxu1 %v9132_v44  ;;  %v10412_v5 = vrot.slane %v10380_v30, 1  ;;  %v19022_v23 = vadd.f32 %v10336_v37, %v18982_v27  ;;  %v6622_v33 = vpop.permute.xlu1 %6621  ;;  %v12929_v27 = vld [vmem:[#allocation2 + $0x120] sm:$0xff]   ;;  %v7456_v55 = vsel %vm757_vm1, %v7451_v2, %v7455_v21 }
 0x3ac   : > { %9650 = vmatmul.mubr.bf16.gmra.mrb[184].mxu1 %v8844_v9  ;;  %v8674_v50 = vsel %vm3171_vm2, %v12929_v27, %v6622_v33  ;;  %v20189_v33 = vld [vmem:[#allocation33_spill] sm:$0xff] }
 0x3ad   : > { %v7720_v14 = vpop.permute.xlu0 %7719  ;;  %v19024_v61 = vadd.f32 %v10412_v5, %v10380_v30  ;;  %v7463_v30 = vor.u32 %v7462_v45, %v7458_v62 }
 0x3ae   : > { %v8956_v22 = vsel %vm3171_vm2, %v7456_v55, %v7720_v14 }
 0x3af   : > { %v6838_v6 = vpop.permute.xlu1 %6837  ;;  %v10520_v56 = vrot.slane %v19024_v61, 2 }
 0x3b0   : > { %v8746_v43 = vsel %vm3244_vm3, %v8674_v50, %v6838_v6 }
 0x3b1   : > { %v7972_v18 = vpop.permute.xlu0 %7971  ;;  %v9524_v52 = vpop.f32.mrb[116].mxu1  ;;  %10531 = vrot.lane.b32.xlu0 %v10520_v56, %s13005_s20 }
 0x3b2   : > { %v9828_v29 = vadd.f32 %v18612_v51, %v9524_v52  ;;  %v9526_v15 = vpop.f32.mrb[117].mxu1  ;;  %v9034_v51 = vsel %vm3244_vm3, %v8956_v22, %v7972_v18  ;;  %v20190_v18 = vld [vmem:[#allocation22_spill] sm:$0xff] }
 0x3b3   : > { %v9527_v40 = vpop.f32.mrb[118].mxu1  ;;  %v7090_v36 = vpop.permute.xlu1 %7089 }
 0x3b4   : > { %v10337_v54 = vadd.f32 %v10204_v11, %v9828_v29  ;;  %v19033_v60 = vpop.f32.mrb[192].mxu0  ;;  %v9528_v39 = vpop.f32.mrb[119].mxu1  ;;  %v8847_v7 = vsel %vm3317_vm4, %v8746_v43, %v7090_v36  ;;  %v12931_v40 = vld [vmem:[#allocation2 + $0x150] ss:$0 sps:$4 sm:$0x11]  }
 0x3b5   : > { %v8458_v19 = vpop.permute.xlu0 %8457  ;;  %v19042_v34 = vpop.f32.mrb[193].mxu0  ;;  %10565 = vrot.lane.b32.xlu0 %v10555_v12, %s13004_s12  ;;  %v7473_v22 = vshll.u32 %v12931_v40, 16  ;;  %v11990_v39 = vld [vmem:[%s13097_s9 + $0x8c] sm:$0xff]  }
 0x3b6   : > { %v19040_v42 = vadd.f32 %v10337_v54, %v18992_v20  ;;  %v9135_v11 = vsel %vm3317_vm4, %v9034_v51, %v8458_v19  ;;  %v12335_v35 = vpop.f32.mrb[194].mxu0  ;;  %v7467_v20 = vrot.slane %v7465_v13, 1  ;;  %v7469_v54 = vshrl.u32 %v12930_v26, 16  ;;  %v12122_v13 = vld [vmem:[%s13097_s9 + $0xa0] sm:$0xff]  }
 0x3b7   : > { %9657 = vmatprep.mubr.bf16.mxu1 %v9135_v11  ;;  %v19046_v16 = vpop.f32.mrb[195].mxu0  ;;  %v6624_v28 = vpop.permute.xlu1 %6623  ;;  %v7475_v51 = vrot.slane %v7473_v22, 1  ;;  %v10085_v62 = vunpack.c.l.bf16 %v11990_v39 }
 0x3b8   : > { %9658 = vmatmul.mubr.bf16.gmra.mrb[188].mxu1 %v8847_v7  ;;  %v8676_v10 = vsel %vm3171_vm2, %v20189_v33, %v6624_v28  ;;  %v7468_v14 = vsel %vm757_vm1, %v7463_v30, %v7467_v20  ;;  %v7471_v12 = vor.u32 %v7469_v54, %v7467_v20  ;;  %v12932_v28 = vld [vmem:[#allocation2 + $0x134] sm:$0xff]  }
 0x3b9   : > { %v7722_v1 = vpop.permute.xlu0 %7721  ;;  %v11992_v20 = vld [vmem:[%s13097_s9 + $0x94] sm:$0x3] }
 0x3ba   : > { %v8959_v21 = vsel %vm3171_vm2, %v7468_v14, %v7722_v1  ;;  %v7476_v1 = vsel %vm757_vm1, %v7471_v12, %v7475_v51 }
 0x3bb   : > { %v6840_v9 = vpop.permute.xlu1 %6839 }
 0x3bc   : > { %v9531_v44 = vpop.f32.mrb[120].mxu1  ;;  %v8748_v6 = vsel %vm3244_vm3, %v8676_v10, %v6840_v9  ;;  %v10086_v9 = vunpack.c.h.bf16 %v11990_v39 }
 0x3bd   : > { %v7974_v37 = vpop.permute.xlu0 %7973  ;;  %v19050_v17 = vadd.f32 %v20188_v63, %v9531_v44  ;;  %v9533_v5 = vpop.f32.mrb[121].mxu1 }
 0x3be   : > { %v9534_v2 = vpop.f32.mrb[122].mxu1  ;;  %v9036_v15 = vsel %vm3244_vm3, %v8959_v21, %v7974_v37  ;;  %v11995_v5 = vld [vmem:[%s13097_s9 + $0xa8] sm:$0x3]  ;;  %v12097_v21 = vunpack.c.l.bf16 %v12122_v13 }
 0x3bf   : > { %v7092_v56 = vpop.permute.xlu1 %7091  ;;  %v19058_v52 = vadd.f32 %v20190_v18, %v9534_v2  ;;  %v9536_v29 = vpop.f32.mrb[123].mxu1 }
 0x3c0   : > { %v8850_v50 = vsel %vm3317_vm4, %v8748_v6, %v7092_v56  ;;  %v12098_v6 = vunpack.c.h.bf16 %v12122_v13  ;;  %v10087_v29 = vunpack.c.l.bf16 %v11992_v20  ;;  %v10211_v54 = vrot.slane %v12097_v21, 1 }
 0x3c1   : > { %v8460_v27 = vpop.permute.xlu0 %8459 }
 0x3c2   : > { %v9138_v55 = vsel %vm3317_vm4, %v9036_v15, %v8460_v27  ;;  %v10090_v27 = vunpack.c.l.bf16 %v11995_v5  ;;  %v10209_v12 = vrot.slane %v10087_v29, 1 }
 0x3c3   : > { %9664 = vmatprep.mubr.bf16.mxu1 %v9138_v55  ;;  %v6626_v43 = vpop.permute.xlu1 %6625  ;;  %v10207_v55 = vrot.slane %v10086_v9, 1 }
 0x3c4   : > { %9665 = vmatmul.mubr.bf16.gmra.mrb[192].mxu1 %v8850_v50  ;;  %v8678_v45 = vsel %vm3171_vm2, %v12932_v28, %v6626_v43  ;;  %v10206_v50 = vrot.slane %v10085_v62, 1  ;;  %v10214_v51 = vrot.slane %v10090_v27, 1 }
 0x3c5   : > { %v7724_v36 = vpop.permute.xlu0 %7723 }
 0x3c6   : > { %v8962_v30 = vsel %vm3171_vm2, %v7476_v1, %v7724_v36  ;;  %v10212_v36 = vrot.slane %v12098_v6, 1  ;;  %v10210_v1 = vsel %vm1244_vm0, %v10207_v55, %v10209_v12 }
 0x3c7   : > { %v6842_v19 = vpop.permute.xlu1 %6841 }
 0x3c8   : > { %v8750_v37 = vsel %vm3244_vm3, %v8678_v45, %v6842_v19  ;;  %v10208_v19 = vsel %vm1244_vm0, %v10206_v50, %v10207_v55  ;;  %v10215_v20 = vsel %vm1244_vm0, %v10212_v36, %v10214_v51  ;;  %v20196_v50 = vld [vmem:[#allocation34_spill] sm:$0xff] }
 0x3c9   : > { %v7976_v7 = vpop.permute.xlu0 %7975  ;;  %v9539_v48 = vpop.f32.mrb[124].mxu1  ;;  %v10338_v45 = vadd.f32 %v10208_v19, %v19050_v17  ;;  %v10446_v55 = vrot.slane %v20196_v50, 1 }
 0x3ca   : > { %v19065_v11 = vadd.f32 %v20191_v24, %v9539_v48  ;;  %v9541_v35 = vpop.f32.mrb[125].mxu1  ;;  %v9038_v33 = vsel %vm3244_vm3, %v8962_v30, %v7976_v7  ;;  %v10213_v24 = vsel %vm1244_vm0, %v10211_v54, %v10212_v36  ;;  %v20194_v30 = vld [vmem:[#allocation23_spill] sm:$0xff] }
 0x3cb   : > { %v9542_v26 = vpop.f32.mrb[126].mxu1  ;;  %v7094_v44 = vpop.permute.xlu1 %7093  ;;  %v20192_v35 = vld [vmem:[#allocation31_spill] sm:$0xff] }
 0x3cc   : > { %v19073_v63 = vpop.f32.mrb[196].mxu0  ;;  %v9543_v14 = vpop.f32.mrb[127].mxu1  ;;  %v8853_v2 = vsel %vm3317_vm4, %v8750_v37, %v7094_v44  ;;  %v20193_v26 = vld [vmem:[#allocation40_spill] sm:$0xff] }
 0x3cd   : > { %v8462_v10 = vpop.permute.xlu0 %8461  ;;  %v19078_v56 = vpop.f32.mrb[197].mxu0 }
 0x3ce   : > { %v9141_v18 = vsel %vm3317_vm4, %v9038_v33, %v8462_v10  ;;  %v12339_v15 = vpop.f32.mrb[198].mxu0  ;;  %v20195_v10 = vld [vmem:[#allocation41_spill] sm:$0xff] }
 0x3cf   : > { %9672 = vmatprep.mubr.bf16.mxu1 %v9141_v18  ;;  %v19081_v40 = vpop.f32.mrb[199].mxu0  ;;  %v6628_v22 = vpop.permute.xlu1 %6627  ;;  %v10339_v18 = vadd.f32 %v10210_v1, %v19058_v52  ;;  %v10447_v1 = vrot.slane %v18903_v32, 1 }
 0x3d0   : > { %9673 = vmatmul.mubr.bf16.gmra.mrb[196].mxu1 %v8853_v2  ;;  %v8680_v62 = vsel %vm3171_vm2, %v20193_v26, %v6628_v22  ;;  %v12933_v26 = vld [vmem:[#allocation2 + $0x148] sm:$0xff]  }
 0x3d1   : > { %v7726_v43 = vpop.permute.xlu0 %7725 }
 0x3d2   : > { %v8965_v37 = vsel %vm3171_vm2, %v20194_v30, %v7726_v43 }
 0x3d3   : > { %v6844_v39 = vpop.permute.xlu1 %6843 }
 0x3d4   : > { %v8752_v44 = vsel %vm3244_vm3, %v8680_v62, %v6844_v39  ;;  %v19105_v39 = vadd.f32 %v10446_v55, %v20196_v50  ;;  %v10556_v55 = vrot.slane %v19024_v61, 4 }
 0x3d5   : > { %v7978_v7 = vpop.permute.xlu0 %7977  ;;  %v9546_v48 = vpop.f32.mrb[128].mxu1 }
 0x3d6   : > { %v9850_v13 = vadd.f32 %v20192_v35, %v9546_v48  ;;  %v9548_v28 = vpop.f32.mrb[129].mxu1  ;;  %v9040_v17 = vsel %vm3244_vm3, %v8965_v37, %v7978_v7  ;;  %v10635_v30 = vrot.slane %v19105_v39, 2  ;;  %v10340_v37 = vadd.f32 %v10209_v12, %v19065_v11 }
 0x3d7   : > { %v9549_v9 = vpop.f32.mrb[130].mxu1  ;;  %v7096_v33 = vpop.permute.xlu1 %7095 }
 0x3d8   : > { %v10341_v5 = vadd.f32 %v10213_v24, %v9850_v13  ;;  %v9853_v14 = vadd.f32 %v20195_v10, %v9549_v9  ;;  %v9551_v2 = vpop.f32.mrb[131].mxu1  ;;  %v8856_v6 = vsel %vm3317_vm4, %v8752_v44, %v7096_v33  ;;  %v20197_v13 = vld [vmem:[#allocation20_spill] sm:$0xff]  ;;  %v20198_v44 = vld [vmem:[#allocation30_spill] sm:$0xff] }
 0x3d9   : > { %v8464_v21 = vpop.permute.xlu0 %8463 }
 0x3da   : > { %v10383_v29 = vadd.f32 %v10341_v5, %v10338_v45  ;;  %v10342_v15 = vadd.f32 %v10215_v20, %v9853_v14  ;;  %v9144_v27 = vsel %vm3317_vm4, %v9040_v17, %v8464_v21  ;;  %v10554_v20 = vrot.slane %v18954_v4, 4 }
 0x3db   : > { %9679 = vmatprep.mubr.bf16.mxu1 %v9144_v27  ;;  %v6630_v54 = vpop.permute.xlu1 %6629 }
 0x3dc   : > { %v10413_v22 = vrot.slane %v10383_v29, 1  ;;  %v19100_v43 = vadd.f32 %v10342_v15, %v10339_v18  ;;  %9680 = vmatmul.mubr.bf16.gmra.mrb[200].mxu1 %v8856_v6  ;;  %v8682_v62 = vsel %vm3171_vm2, %v12933_v26, %v6630_v54 }
 0x3dd   : > { %v7728_v36 = vpop.permute.xlu0 %7727 }
 0x3de   : > { %v19102_v19 = vadd.f32 %v10413_v22, %v10383_v29  ;;  %v8968_v5 = vsel %vm3171_vm2, %v20198_v44, %v7728_v36 }
 0x3df   : > { %v6846_v7 = vpop.permute.xlu1 %6845 }
 0x3e0   : > { %v10521_v52 = vrot.slane %v19102_v19, 2  ;;  %v10557_v48 = vrot.slane %v19102_v19, 4  ;;  %v8754_v33 = vsel %vm3244_vm3, %v8682_v62, %v6846_v7  ;;  %v20201_v62 = vld [vmem:[#allocation21_spill] sm:$0xff] }
 0x3e1   : > { %v7980_v24 = vpop.permute.xlu0 %7979  ;;  %v9554_v35 = vpop.f32.mrb[132].mxu1 }
 0x3e2   : > { %v9858_v28 = vadd.f32 %v20197_v13, %v9554_v35  ;;  %10533 = vrot.lane.b32.xlu1 %v10521_v52, %s13005_s20  ;;  %v9556_v45 = vpop.f32.mrb[133].mxu1  ;;  %10569 = vrot.lane.b32.xlu0 %v10557_v48, %s13004_s12  ;;  %v9042_v17 = vsel %vm3244_vm3, %v8968_v5, %v7980_v24  ;;  %v20199_v48 = vld [vmem:[#allocation26_spill] sm:$0xff] }
 0x3e3   : > { %v9557_v9 = vpop.f32.mrb[134].mxu1  ;;  %v7098_v14 = vpop.permute.xlu1 %7097  ;;  %v20200_v35 = vld [vmem:[#allocation38_spill] sm:$0xff] }
 0x3e4   : > { %v10343_v10 = vadd.f32 %v10214_v51, %v9858_v28  ;;  %v19120_v2 = vpop.f32.mrb[200].mxu0  ;;  %v9558_v6 = vpop.f32.mrb[135].mxu1  ;;  %v8859_v18 = vsel %vm3317_vm4, %v8754_v33, %v7098_v14  ;;  %v19132_v51 = vadd.f32 %v10447_v1, %v18903_v32 }
 0x3e5   : > { %v8466_v21 = vpop.permute.xlu0 %8465  ;;  %v19126_v15 = vpop.f32.mrb[201].mxu0  ;;  %v5966_v6 = vld [vmem:[#allocation2 + $0x154] sm:$0xe] }
 0x3e6   : > { %v19124_v29 = vadd.f32 %v10343_v10, %v10340_v37  ;;  %v9147_v11 = vsel %vm3317_vm4, %v9042_v17, %v8466_v21  ;;  %10563 = vrot.lane.b32.xlu1 %v10554_v20, %s13004_s12  ;;  %10644 = vrot.lane.b32.xlu0 %v10635_v30, %s13005_s20  ;;  %v12343_v12 = vpop.f32.mrb[202].mxu0  ;;  %v10636_v36 = vrot.slane %v19132_v51, 2 }
 0x3e7   : > { %9687 = vmatprep.mubr.bf16.mxu1 %v9147_v11  ;;  %v19134_v27 = vpop.f32.mrb[203].mxu0  ;;  %v6632_v50 = vpop.permute.xlu1 %6631 }
 0x3e8   : > { %9688 = vmatmul.mubr.bf16.gmra.mrb[204].mxu1 %v8859_v18  ;;  %v8684_v13 = vsel %vm3171_vm2, %v20200_v35, %v6632_v50  ;;  %v20202_v18 = vld [vmem:[#allocation44_spill] sm:$0xff] }
 0x3e9   : > { %v7730_v22 = vpop.permute.xlu0 %7729  ;;  %v12934_v50 = vld [vmem:[#allocation2 + $0x158] sm:$0xf] }
 0x3ea   : > { %10567 = vrot.lane.b32.xlu1 %v10556_v55, %s13004_s12  ;;  %v8971_v45 = vsel %vm3171_vm2, %v18877_v8, %v7730_v22  ;;  %v11996_v8 = vld [vmem:[%s13097_s9 + $0xb4] sm:$0xff]   ;;  %v11915_v55 = vcombine.low %v5966_v6, %v12934_v50  ;;  %v12123_v22 = vld [vmem:[%s13097_s9 + $0xc8] sm:$0xff]  }
 0x3eb   : > { %v6848_v54 = vpop.permute.xlu1 %6847 }
 0x3ec   : > { %v9561_v52 = vpop.f32.mrb[136].mxu1  ;;  %v8756_v1 = vsel %vm3244_vm3, %v8684_v13, %v6848_v54  ;;  %v10091_v54 = vunpack.c.l.bf16 %v11996_v8 }
 0x3ed   : > { %v7982_v7 = vpop.permute.xlu0 %7981  ;;  %v19140_v24 = vadd.f32 %v20199_v48, %v9561_v52  ;;  %v9563_v32 = vpop.f32.mrb[137].mxu1  ;;  %v10092_v48 = vunpack.c.h.bf16 %v11996_v8  ;;  %v8600_v8 = vrot.slane %v11915_v55, 1 }
 0x3ee   : > { %10646 = vrot.lane.b32.xlu1 %v10636_v36, %s13005_s20  ;;  %v9564_v28 = vpop.f32.mrb[138].mxu1  ;;  %v9044_v30 = vsel %vm3244_vm3, %v8971_v45, %v7982_v7  ;;  %v12935_v36 = vld [vmem:[#allocation2 + $0x15c] sm:$0xff]  }
 0x3ef   : > { %v7100_v26 = vpop.permute.xlu1 %7099  ;;  %v19149_v9 = vadd.f32 %v20201_v62, %v9564_v28  ;;  %v9566_v20 = vpop.f32.mrb[139].mxu1  ;;  %v11998_v32 = vld [vmem:[%s13097_s9 + $0xbc] sm:$0x3]  ;;  %v12001_v62 = vld [vmem:[%s13097_s9 + $0xd0] sm:$0x3]  ;;  %v10217_v6 = vrot.slane %v10092_v48, 1 }
 0x3f0   : > { %v8862_v44 = vsel %vm3317_vm4, %v8756_v1, %v7100_v26  ;;  %v12936_v1 = vld [vmem:[#allocation2 + $0x15c] sm:$0xff]  }
 0x3f1   : > { %v8468_v37 = vpop.permute.xlu0 %8467  ;;  %v8601_v26 = vrot.slane %v12936_v1, 1 }
 0x3f2   : > { %v9150_v5 = vsel %vm3317_vm4, %v9044_v30, %v8468_v37 }
 0x3f3   : > { %9694 = vmatprep.mubr.bf16.mxu1 %v9150_v5  ;;  %v6634_v33 = vpop.permute.xlu1 %6633  ;;  %v12102_v5 = vunpack.c.h.bf16 %v12123_v22 }
 0x3f4   : > { %9695 = vmatmul.mubr.bf16.gmra.mrb[208].mxu1 %v8862_v44  ;;  %v8686_v7 = vsel %vm3171_vm2, %v12935_v36, %v6634_v33  ;;  %v12101_v44 = vunpack.c.l.bf16 %v12123_v22  ;;  %v5968_v22 = vld [vmem:[#allocation2 + $0x17c] sm:$0xe] }
 0x3f5   : > { %v7732_v10 = vpop.permute.xlu0 %7731 }
 0x3f6   : > { %v8974_v35 = vsel %vm3171_vm2, %v18880_v0, %v7732_v10  ;;  %v10096_v0 = vunpack.c.l.bf16 %v12001_v62  ;;  %v8602_v10 = vsel %vm1244_vm0, %v8600_v8, %v8601_v26  ;;  %v8611_v8 = vrot.slane %v18816_v25, 1 }
 0x3f7   : > { %v6850_v14 = vpop.permute.xlu1 %6849 }
 0x3f8   : > { %v9569_v21 = vpop.f32.mrb[140].mxu1  ;;  %v8758_v13 = vsel %vm3244_vm3, %v8686_v7, %v6850_v14  ;;  %v10216_v14 = vrot.slane %v10091_v54, 1  ;;  %v10224_v7 = vrot.slane %v10096_v0, 1 }
 0x3f9   : > { %v7984_v17 = vpop.permute.xlu0 %7983  ;;  %v19156_v11 = vadd.f32 %v20202_v18, %v9569_v21  ;;  %v9571_v12 = vpop.f32.mrb[141].mxu1  ;;  %v10093_v21 = vunpack.c.l.bf16 %v11998_v32  ;;  %v10221_v18 = vrot.slane %v12101_v44, 1  ;;  %v20204_v44 = vld [vmem:[#allocation43_spill] sm:$0xff] }
 0x3fa   : > { %v9572_v52 = vpop.f32.mrb[142].mxu1  ;;  %v9046_v20 = vsel %vm3244_vm3, %v8974_v35, %v7984_v17  ;;  %v10222_v17 = vrot.slane %v12102_v5, 1  ;;  %v12937_v12 = vld [vmem:[#allocation2 + $0x164] ss:$0 sps:$4 sm:$0x11]   ;;  %v20203_v35 = vld [vmem:[#allocation11_spill] sm:$0xff] }
 0x3fb   : > { %v7102_v28 = vpop.permute.xlu1 %7101  ;;  %v9573_v45 = vpop.f32.mrb[143].mxu1  ;;  %v8603_v50 = vrot.slane %v12937_v12, 1  ;;  %v10219_v36 = vrot.slane %v10093_v21, 1  ;;  %v10218_v52 = vsel %vm1244_vm0, %v10216_v14, %v10217_v6  ;;  %v10448_v14 = vrot.slane %v19022_v23, 1 }
 0x3fc   : > { %v8865_v37 = vsel %vm3317_vm4, %v8758_v13, %v7102_v28  ;;  %v10223_v32 = vsel %vm1244_vm0, %v10221_v18, %v10222_v17  ;;  %v12938_v45 = vld [vmem:[#allocation2 + $0x180] sm:$0xf] }
 0x3fd   : > { %v8470_v30 = vpop.permute.xlu0 %8469  ;;  %v11917_v54 = vcombine.low %v5968_v22, %v12938_v45  ;;  %v10220_v48 = vsel %vm1244_vm0, %v10217_v6, %v10219_v36  ;;  %v8604_v1 = vsel %vm1244_vm0, %v8601_v26, %v8603_v50  ;;  %v19189_v50 = vadd.f32 %v10448_v14, %v19022_v23  ;;  %v12002_v14 = vld [vmem:[%s13097_s9 + $0xdc] sm:$0xff]  }
 0x3fe   : > { %v9153_v33 = vsel %vm3317_vm4, %v9046_v20, %v8470_v30  ;;  %v10225_v20 = vsel %vm1244_vm0, %v10222_v17, %v10224_v7  ;;  %v10344_v30 = vadd.f32 %v10218_v52, %v19140_v24  ;;  %v10345_v21 = vadd.f32 %v10220_v48, %v19149_v9 }
 0x3ff   : > { %9702 = vmatprep.mubr.bf16.mxu1 %v9153_v33  ;;  %v10449_v24 = vrot.slane %v19100_v43, 1  ;;  %v8613_v52 = vrot.slane %v18891_v46, 1 }
 0x400   : > { %9703 = vmatmul.mubr.bf16.gmra.mrb[212].mxu1 %v8865_v37 }
 0x401   : > { %12344 = vmatprep.mubr.msk.bf16.mxu1 %vm3171_vm2, %v8602_v10  ;;  %v8610_v10 = vrot.slane %v11917_v54, 1  ;;  %v19192_v25 = vadd.f32 %v10449_v24, %v19100_v43  ;;  %v20205_v43 = vld [vmem:[#allocation17_spill] sm:$0xff]  ;;  %v8614_v45 = vsel %vm1244_vm0, %v8611_v8, %v8613_v52  ;;  %v10346_v54 = vadd.f32 %v10219_v36, %v19156_v11  ;;  %v12007_v52 = vld [vmem:[%s13097_s9 + $0xf8] sm:$0x3] }
 0x402   : > { %v10673_v11 = vrot.slane %v19189_v50, 4  ;;  %v10672_v36 = vrot.slane %v19132_v51, 4 }
 0x403   : > { %v8612_v12 = vsel %vm1244_vm0, %v8610_v10, %v8611_v8 }
 0x404   : > { %v9576_v55 = vpop.f32.mrb[144].mxu1 }
 0x405   : > { %v9880_v13 = vadd.f32 %v20203_v35, %v9576_v55  ;;  %v9578_v28 = vpop.f32.mrb[145].mxu1 }
 0x406   : > { %v9579_v62 = vpop.f32.mrb[146].mxu1 }
 0x407   : > { %v10347_v37 = vadd.f32 %v10223_v32, %v9880_v13  ;;  %v9883_v5 = vadd.f32 %v20204_v44, %v9579_v62  ;;  %v9581_v33 = vpop.f32.mrb[147].mxu1  ;;  %v10637_v13 = vrot.slane %v19189_v50, 2  ;;  %v10671_v62 = vrot.slane %v19105_v39, 4 }
 0x408   : > { %12345 = vmatmul.mubr.msk.bf16.vlgmr.msra.gmra.mrb[216].mxu1 %vm3171_vm2, %v8604_v1 }
 0x409   : > { %12348 = vmatprep.mubr.msk.bf16.mxu1 %vm3171_vm2, %v18900_v31  ;;  %v10386_v0 = vadd.f32 %v10347_v37, %v10344_v30  ;;  %v10348_v26 = vadd.f32 %v10225_v20, %v9883_v5  ;;  %v10674_v5 = vrot.slane %v19192_v25, 4 }
 0x40b   : > { %v10414_v6 = vrot.slane %v10386_v0, 1  ;;  %v10387_v18 = vadd.f32 %v10348_v26, %v10345_v21  ;;  %v10593_v26 = vrot.slane %v19102_v19, 6 }
 0x40d   : > { %v19185_v17 = vadd.f32 %v10414_v6, %v10386_v0  ;;  %v10450_v31 = vrot.slane %v10387_v18, 1  ;;  %v10591_v0 = vrot.slane %v18941_v41, 6 }
 0x40f   : > { %v10558_v9 = vrot.slane %v19185_v17, 4  ;;  %v10522_v22 = vrot.slane %v19185_v17, 2  ;;  %v19202_v55 = vadd.f32 %v10450_v31, %v10387_v18  ;;  %v10594_v18 = vrot.slane %v19185_v17, 6 }
 0x410   : > { %12349 = vmatmul.mubr.msk.bf16.gmra.mrb[220].mxu1 %vm3171_vm2, %v18908_v53  ;;  %v9584_v23 = vpop.f32.mrb[148].mxu1  ;;  %v10638_v53 = vrot.slane %v19192_v25, 2 }
 0x411   : > { %12352 = vmatprep.mubr.msk.bf16.mxu1 %vm3171_vm2, %v8612_v12  ;;  %10571 = vrot.lane.b32.xlu1 %v10558_v9, %s13004_s12  ;;  %v9888_v32 = vadd.f32 %v20205_v43, %v9584_v23  ;;  %v9586_v35 = vpop.f32.mrb[149].mxu1  ;;  %v10639_v20 = vrot.slane %v19202_v55, 2  ;;  %v10675_v44 = vrot.slane %v19202_v55, 4  ;;  %v12124_v12 = vld [vmem:[%s13097_s9 + $0xf0] sm:$0xff]   ;;  %v12004_v9 = vld [vmem:[%s13097_s9 + $0xe4] sm:$0x3]  ;;  %v10097_v23 = vunpack.c.l.bf16 %v12002_v14 }
 0x412   : > { %10535 = vrot.lane.b32.xlu0 %v10522_v22, %s13005_s20  ;;  %v9587_v28 = vpop.f32.mrb[150].mxu1  ;;  %v10098_v43 = vunpack.c.h.bf16 %v12002_v14  ;;  %v12106_v35 = vunpack.c.h.bf16 %v12124_v12 }
 0x413   : > { %v10349_v46 = vadd.f32 %v10224_v7, %v9888_v32  ;;  %v9588_v48 = vpop.f32.mrb[151].mxu1  ;;  %v12105_v32 = vunpack.c.l.bf16 %v12124_v12  ;;  %v10226_v28 = vrot.slane %v10097_v23, 1 }
 0x415   : > { %10650 = vrot.lane.b32.xlu1 %v10638_v53, %s13005_s20  ;;  %v19211_v1 = vadd.f32 %v10349_v46, %v10346_v54  ;;  %v10099_v53 = vunpack.c.l.bf16 %v12004_v9  ;;  %v10231_v54 = vrot.slane %v12105_v32, 1 }
 0x416   : > { %10648 = vrot.lane.b32.xlu0 %v10637_v13, %s13005_s20  ;;  %v10102_v13 = vunpack.c.l.bf16 %v12007_v52 }
 0x417   : > { %v10229_v46 = vrot.slane %v10099_v53, 1 }
 0x418   : > { %12353 = vmatmul.mubr.msk.bf16.gmra.mrb[224].mxu1 %vm3171_vm2, %v8614_v45  ;;  %v10227_v45 = vrot.slane %v10098_v43, 1  ;;  %v10234_v48 = vrot.slane %v10102_v13, 1  ;;  %v10708_v13 = vrot.slane %v19132_v51, 6 }
 0x419   : > { %10680 = vrot.lane.b32.xlu1 %v10671_v62, %s13004_s12 }
 0x41a   : > { %10652 = vrot.lane.b32.xlu0 %v10639_v20, %s13005_s20  ;;  %v10228_v62 = vsel %vm1244_vm0, %v10226_v28, %v10227_v45  ;;  %v10710_v28 = vrot.slane %v19192_v25, 6 }
 0x41c   : > { %v9591_v7 = vpop.f32.mrb[152].mxu1 }
 0x41d   : > { %10684 = vrot.lane.b32.xlu1 %v10673_v11, %s13004_s12  ;;  %v9895_v30 = vadd.f32 %v18946_v58, %v9591_v7  ;;  %v9593_v37 = vpop.f32.mrb[153].mxu1  ;;  %v10590_v58 = vrot.slane %v18954_v4, 6 }
 0x41e   : > { %10682 = vrot.lane.b32.xlu0 %v10672_v36, %s13004_s12  ;;  %v9594_v33 = vpop.f32.mrb[154].mxu1  ;;  %v10230_v37 = vsel %vm1244_vm0, %v10227_v45, %v10229_v46 }
 0x41f   : > { %v9898_v8 = vadd.f32 %v18956_v38, %v9594_v33  ;;  %v9596_v21 = vpop.f32.mrb[155].mxu1  ;;  %v10592_v38 = vrot.slane %v19024_v61, 6  ;;  %v10350_v33 = vadd.f32 %v10228_v62, %v9895_v30 }
 0x421   : > { %10688 = vrot.lane.b32.xlu1 %v10675_v44, %s13004_s12 }
 0x422   : > { %10686 = vrot.lane.b32.xlu0 %v10674_v5, %s13004_s12 }
 0x425   : > { %10601 = vrot.lane.b32.xlu1 %v10591_v0, %s13006_s22 }
 0x426   : > { %10599 = vrot.lane.b32.xlu0 %v10590_v58, %s13006_s22 }
 0x428   : > { %v9599_v10 = vpop.f32.mrb[156].mxu1 }
 0x429   : > { %10605 = vrot.lane.b32.xlu1 %v10593_v26, %s13006_s22  ;;  %v9903_v24 = vadd.f32 %v18932_v49, %v9599_v10  ;;  %v9601_v6 = vpop.f32.mrb[157].mxu1  ;;  %v10232_v49 = vrot.slane %v12106_v35, 1  ;;  %v10351_v26 = vadd.f32 %v10230_v37, %v9898_v8 }
 0x42a   : > { %10603 = vrot.lane.b32.xlu0 %v10592_v38, %s13006_s22  ;;  %v9602_v31 = vpop.f32.mrb[158].mxu1 }
 0x42b   : > { %v9603_v22 = vpop.f32.mrb[159].mxu1  ;;  %v10233_v11 = vsel %vm1244_vm0, %v10231_v54, %v10232_v49  ;;  %v10235_v5 = vsel %vm1244_vm0, %v10232_v49, %v10234_v48  ;;  %v10352_v52 = vadd.f32 %v10229_v46, %v9903_v24  ;;  %v10707_v24 = vrot.slane %v19105_v39, 6 }
 0x42e   : > { %10607 = vrot.lane.b32.xlu0 %v10594_v18, %s13006_s22 }
 0x434   : > { %v9606_v20 = vpop.f32.mrb[160].mxu1 }
 0x435   : > { %v9910_v36 = vadd.f32 %v19000_v47, %v9606_v20  ;;  %v9608_v7 = vpop.f32.mrb[161].mxu1  ;;  %v10709_v20 = vrot.slane %v19189_v50, 6 }
 0x436   : > { %v9609_v44 = vpop.f32.mrb[162].mxu1  ;;  %v12008_v7 = vld [vmem:[%s13097_s9 + $0x104] sm:$0xff]  }
 0x437   : > { %v10353_v21 = vadd.f32 %v10233_v11, %v9910_v36  ;;  %v9913_v0 = vadd.f32 %v19003_v59, %v9609_v44  ;;  %v9611_v58 = vpop.f32.mrb[163].mxu1 }
 0x438   : > { %v10103_v58 = vunpack.c.l.bf16 %v12008_v7 }
 0x439   : > { %v10389_v38 = vadd.f32 %v10353_v21, %v10350_v33  ;;  %v10354_v10 = vadd.f32 %v10235_v5, %v9913_v0  ;;  %v12010_v33 = vld [vmem:[%s13097_s9 + $0x10c] sm:$0x3]  ;;  %v12013_v0 = vld [vmem:[%s13097_s9 + $0x120] sm:$0x3] }
 0x43b   : > { %v10415_v14 = vrot.slane %v10389_v38, 1  ;;  %v10390_v6 = vadd.f32 %v10354_v10, %v10351_v26  ;;  %v10104_v26 = vunpack.c.h.bf16 %v12008_v7 }
 0x43d   : > { %v19249_v18 = vadd.f32 %v10415_v14, %v10389_v38  ;;  %v10451_v12 = vrot.slane %v10390_v6, 1  ;;  %v10105_v14 = vunpack.c.l.bf16 %v12010_v33 }
 0x43f   : > { %v19251_v47 = vadd.f32 %v10451_v12, %v10390_v6  ;;  %v10523_v31 = vrot.slane %v19249_v18, 2  ;;  %v10559_v9 = vrot.slane %v19249_v18, 4  ;;  %v10595_v32 = vrot.slane %v19249_v18, 6 }
 0x440   : > { %v10108_v6 = vunpack.c.l.bf16 %v12013_v0  ;;  %v10236_v12 = vrot.slane %v10103_v58, 1 }
 0x441   : > { %v9614_v22 = vpop.f32.mrb[164].mxu1  ;;  %10537 = vrot.lane.b32.xlu1 %v10523_v31, %s13005_s20  ;;  %10573 = vrot.lane.b32.xlu0 %v10559_v9, %s13004_s12  ;;  %v10676_v35 = vrot.slane %v19251_v47, 4  ;;  %v10712_v11 = vrot.slane %v19251_v47, 6  ;;  %v10237_v31 = vrot.slane %v10104_v26, 1 }
 0x442   : > { %v9918_v30 = vadd.f32 %v18994_v57, %v9614_v22  ;;  %v9616_v59 = vpop.f32.mrb[165].mxu1  ;;  %v10640_v57 = vrot.slane %v19251_v47, 2 }
 0x443   : > { %v9617_v8 = vpop.f32.mrb[166].mxu1  ;;  %v10244_v59 = vrot.slane %v10108_v6, 1 }
 0x444   : > { %v10355_v23 = vadd.f32 %v10234_v48, %v9918_v30  ;;  %v9618_v43 = vpop.f32.mrb[167].mxu1  ;;  %v10239_v30 = vrot.slane %v10105_v14, 1 }
 0x445   : > { %10609 = vrot.lane.b32.xlu1 %v10595_v32, %s13006_s22  ;;  %10690 = vrot.lane.b32.xlu0 %v10676_v35, %s13004_s12 }
 0x446   : > { %v19260_v53 = vadd.f32 %v10355_v23, %v10352_v52  ;;  %v10240_v32 = vsel %vm1244_vm0, %v10237_v31, %v10239_v30 }
 0x449   : > { %10654 = vrot.lane.b32.xlu1 %v10640_v57, %s13005_s20  ;;  %10718 = vrot.lane.b32.xlu0 %v10708_v13, %s13006_s22 }
 0x44d   : > { %10716 = vrot.lane.b32.xlu1 %v10707_v24, %s13006_s22  ;;  %10722 = vrot.lane.b32.xlu0 %v10710_v28, %s13006_s22 }
 0x44f   : > { %v9621_v45 = vpop.f32.mrb[168].mxu1 }
 0x450   : > { %v9925_v54 = vadd.f32 %v19042_v34, %v9621_v45  ;;  %v9623_v49 = vpop.f32.mrb[169].mxu1  ;;  %v10711_v34 = vrot.slane %v19202_v55, 6 }
 0x451   : > { %v9624_v46 = vpop.f32.mrb[170].mxu1  ;;  %10720 = vrot.lane.b32.xlu1 %v10709_v20, %s13006_s22  ;;  %10726 = vrot.lane.b32.xlu0 %v10712_v11, %s13006_s22 }
 0x452   : > { %v9928_v48 = vadd.f32 %v19046_v16, %v9624_v46  ;;  %v9626_v62 = vpop.f32.mrb[171].mxu1  ;;  %v12125_v16 = vld [vmem:[%s13097_s9 + $0x118] sm:$0xff]  }
 0x453   : > { %v12109_v38 = vunpack.c.l.bf16 %v12125_v16  ;;  %v12110_v10 = vunpack.c.h.bf16 %v12125_v16  ;;  %v19299_v16 = vpop.permute.xlu1 %10529 }
 0x454   : > { %v10357_v49 = vadd.f32 %v10240_v32, %v9928_v48 }
 0x455   : > { %10724 = vrot.lane.b32.xlu1 %v10711_v34, %s13006_s22  ;;  %v10241_v9 = vrot.slane %v12109_v38, 1  ;;  %v10242_v22 = vrot.slane %v12110_v10, 1  ;;  %v19291_v34 = vpop.permute.xlu0 %10527 }
 0x457   : > { %v10243_v52 = vsel %vm1244_vm0, %v10241_v9, %v10242_v22  ;;  %v10245_v57 = vsel %vm1244_vm0, %v10242_v22, %v10244_v59  ;;  %v19308_v14 = vpop.permute.xlu1 %10533 }
 0x45b   : > { %v9629_v36 = vpop.f32.mrb[172].mxu1 }
 0x45c   : > { %v9933_v37 = vadd.f32 %v19033_v60, %v9629_v36  ;;  %v9631_v44 = vpop.f32.mrb[173].mxu1  ;;  %v10238_v60 = vsel %vm1244_vm0, %v10236_v12, %v10237_v31  ;;  %v19320_v31 = vpop.permute.xlu1 %10563 }
 0x45d   : > { %v9632_v5 = vpop.f32.mrb[174].mxu1  ;;  %v10356_v13 = vadd.f32 %v10238_v60, %v9925_v54 }
 0x45e   : > { %v9633_v21 = vpop.f32.mrb[175].mxu1  ;;  %v19301_v5 = vpop.permute.xlu0 %10531  ;;  %v10358_v0 = vadd.f32 %v10239_v30, %v9933_v37 }
 0x467   : > { %v9636_v8 = vpop.f32.mrb[176].mxu1 }
 0x468   : > { %v9940_v23 = vadd.f32 %v19078_v56, %v9636_v8  ;;  %v9638_v43 = vpop.f32.mrb[177].mxu1 }
 0x469   : > { %v9639_v35 = vpop.f32.mrb[178].mxu1 }
 0x46a   : > { %v10359_v24 = vadd.f32 %v10243_v52, %v9940_v23  ;;  %v9943_v28 = vadd.f32 %v19081_v40, %v9639_v35  ;;  %v9641_v45 = vpop.f32.mrb[179].mxu1  ;;  %v19330_v23 = vpop.permute.xlu1 %10567 }
 0x46c   : > { %v10392_v46 = vadd.f32 %v10359_v24, %v10356_v13  ;;  %v10360_v62 = vadd.f32 %v10245_v57, %v9943_v28 }
 0x46e   : > { %v10416_v20 = vrot.slane %v10392_v46, 1  ;;  %v10393_v11 = vadd.f32 %v10360_v62, %v10357_v49  ;;  %v19336_v35 = vpop.permute.xlu1 %10646 }
 0x470   : > { %v19293_v36 = vadd.f32 %v10416_v20, %v10392_v46  ;;  %v10452_v56 = vrot.slane %v10393_v11, 1 }
 0x472   : > { %20206 = vst [vmem:[#allocation27_spill] sm:$0xff] %v19293_v36  ;;  %v19295_v7 = vadd.f32 %v10452_v56, %v10393_v11  ;;  %v10560_v44 = vrot.slane %v19293_v36, 4  ;;  %v10524_v54 = vrot.slane %v19293_v36, 2  ;;  %v10596_v38 = vrot.slane %v19293_v36, 6 }
 0x473   : > { %v9644_v40 = vpop.f32.mrb[180].mxu1  ;;  %v10484_v36 = vrot.slane %v19040_v42, 1 }
 0x474   : > { %20207 = vst [vmem:[#allocation18_spill] sm:$0xff] %v19295_v7  ;;  %v9948_v48 = vadd.f32 %v19073_v63, %v9644_v40  ;;  %10575 = vrot.lane.b32.xlu1 %v10560_v44, %s13004_s12  ;;  %10539 = vrot.lane.b32.xlu0 %v10524_v54, %s13005_s20  ;;  %v9646_v33 = vpop.f32.mrb[181].mxu1  ;;  %v10677_v10 = vrot.slane %v19295_v7, 4  ;;  %v19314_v63 = vpop.permute.xlu0 %10565  ;;  %v10713_v12 = vrot.slane %v19295_v7, 6  ;;  %v10641_v37 = vrot.slane %v19295_v7, 2 }
 0x475   : > { %v9647_v21 = vpop.f32.mrb[182].mxu1 }
 0x476   : > { %v10361_v58 = vadd.f32 %v10244_v59, %v9948_v48  ;;  %v9648_v26 = vpop.f32.mrb[183].mxu1 }
 0x478   : > { %v19310_v6 = vadd.f32 %v10361_v58, %v10358_v0  ;;  %10611 = vrot.lane.b32.xlu0 %v10596_v38, %s13006_s22  ;;  %10692 = vrot.lane.b32.xlu1 %v10677_v10, %s13004_s12  ;;  %v19322_v9 = vpop.permute.xlu0 %10569 }
 0x47a   : > { %20208 = vst [vmem:[#allocation19_spill] sm:$0xff] %v19310_v6 }
 0x47c   : > { %10728 = vrot.lane.b32.xlu1 %v10713_v12, %s13006_s22  ;;  %10656 = vrot.lane.b32.xlu0 %v10641_v37, %s13005_s20  ;;  %v19332_v43 = vpop.permute.xlu0 %10644  ;;  %v20212_v12 = vld [vmem:[#allocation29_spill] sm:$0xff] }
 0x47d   : > { %v10482_v37 = vrot.slane %v20212_v12, 1 }
 0x47f   : > { %v9651_v22 = vpop.f32.mrb[184].mxu1 }
 0x480   : > { %v19325_v30 = vadd.f32 %v19126_v15, %v9651_v22  ;;  %v9653_v59 = vpop.f32.mrb[185].mxu1  ;;  %v13007_v22 = vmov 1966171168  }
 0x481   : > { %v9654_v60 = vpop.f32.mrb[186].mxu1  ;;  %v10853_v59 = vunpack.c.l.s4 %v13007_v22 }
 0x482   : > { %20209 = vst [vmem:[#allocation13_spill] sm:$0xff] %v19325_v30  ;;  %v19328_v8 = vadd.f32 %v19134_v27, %v9654_v60  ;;  %v9656_v52 = vpop.f32.mrb[187].mxu1  ;;  %v10855_v60 = vlaneseq }
 0x483   : > { %v19341_v24 = vpop.permute.xlu1 %10571  ;;  %v10483_v52 = vrot.slane %v18944_v3, 1 }
 0x484   : > { %20210 = vst [vmem:[#allocation15_spill] sm:$0xff] %v19328_v8  ;;  %v19334_v32 = vpop.permute.xlu0 %10535  ;;  %v10856_v7 = vshrl.u32 %v10855_v60, 7  ;;  %vm19448_vm1 = vcmp.lt.s32.totalorder %v10855_v60, 288 }
 0x485   : > { %v10501_v22 = vadd.f32 %v10483_v52, %v18944_v3  ;;  %v10486_v3 = vrot.slane %v19211_v1, 1 }
 0x487   : > { %v19345_v49 = vpop.permute.xlu1 %10650  ;;  %v19387_v30 = vmul.f32 0.25, %v10501_v22  ;;  %v10747_v22 = vsel %vm3171_vm2, %v19185_v17, %v19334_v32 }
 0x488   : > { %v19343_v45 = vpop.permute.xlu0 %10648 }
 0x48b   : > { %v9659_v57 = vpop.f32.mrb[188].mxu1  ;;  %v19351_v11 = vpop.permute.xlu1 %10680 }
 0x48c   : > { %v19339_v13 = vadd.f32 %v19120_v2, %v9659_v57  ;;  %v9661_v15 = vpop.f32.mrb[189].mxu1  ;;  %v19347_v46 = vpop.permute.xlu0 %10652 }
 0x48d   : > { %v9662_v28 = vpop.f32.mrb[190].mxu1  ;;  %v10485_v15 = vrot.slane %v19124_v29, 1 }
 0x48e   : > { %v9663_v27 = vpop.f32.mrb[191].mxu1 }
 0x48f   : > { %v19357_v54 = vpop.permute.xlu1 %10684  ;;  %v10503_v6 = vadd.f32 %v10485_v15, %v19124_v29 }
 0x490   : > { %v19355_v2 = vpop.permute.xlu0 %10682 }
 0x493   : > { %v19363_v21 = vpop.permute.xlu1 %10688 }
 0x494   : > { %v19359_v40 = vpop.permute.xlu0 %10686 }
 0x497   : > { %v19349_v62 = vpop.f32.mrb[192].mxu1  ;;  %v10602_v38 = vpop.permute.xlu1 %10601 }
 0x498   : > { %v9668_v20 = vpop.f32.mrb[193].mxu1  ;;  %v19365_v58 = vpop.permute.xlu0 %10599 }
 0x499   : > { %v19353_v56 = vpop.f32.mrb[194].mxu1 }
 0x49a   : > { %20211 = vst [vmem:[#allocation37_spill] sm:$0xff] %v19353_v56  ;;  %v9671_v44 = vpop.f32.mrb[195].mxu1 }
 0x49b   : > { %v10606_v27 = vpop.permute.xlu1 %10605 }
 0x49c   : > { %v19367_v10 = vpop.permute.xlu0 %10603 }
 0x4a0   : > { %v19376_v44 = vpop.permute.xlu0 %10607 }
 0x4a3   : > { %v19361_v48 = vpop.f32.mrb[196].mxu1 }
 0x4a4   : > { %v9676_v33 = vpop.f32.mrb[197].mxu1 }
 0x4a5   : > { %v9677_v0 = vpop.f32.mrb[198].mxu1 }
 0x4a6   : > { %v9678_v26 = vpop.f32.mrb[199].mxu1  ;;  %v10500_v0 = vadd.f32 %v10482_v37, %v20212_v12  ;;  %v10502_v12 = vadd.f32 %v10484_v36, %v19040_v42  ;;  %v19390_v37 = vmul.f32 0.25, %v10503_v6  ;;  %v10746_v36 = vsel %vm3171_vm2, %v19102_v19, %v19308_v14 }
 0x4a7   : > { %v10854_v26 = vunpack.c.0.s8 %v10853_v59  ;;  %v10745_v19 = vsel %vm3171_vm2, %v19024_v61, %v19301_v5  ;;  %v10770_v61 = vsel %vm3171_vm2, %v19105_v39, %v19332_v43  ;;  %v10772_v43 = vsel %vm3171_vm2, %v19189_v50, %v19343_v45 }
 0x4a8   : > { %v19383_v56 = vmul.f32 0.25, %v10500_v0  ;;  %v19402_v0 = vmul.f32 0.25, %v10502_v12 }
 0x4af   : > { %v19371_v57 = vpop.f32.mrb[200].mxu1 }
 0x4b0   : > { %20213 = vst [vmem:[#allocation24_spill] sm:$0xff] %v19371_v57  ;;  %v9683_v28 = vpop.f32.mrb[201].mxu1  ;;  %v10487_v57 = vrot.slane %v19260_v53, 1 }
 0x4b1   : > { %v19374_v20 = vpop.f32.mrb[202].mxu1 }
 0x4b2   : > { %20214 = vst [vmem:[#allocation6_spill] sm:$0xff] %v19374_v20  ;;  %v9686_v33 = vpop.f32.mrb[203].mxu1  ;;  %v19385_v20 = vsub.s32 %v10854_v26, %v10856_v7  ;;  %v10505_v59 = vadd.f32 %v10487_v57, %v19260_v53  ;;  %v10744_v53 = vsel %vm3171_vm2, %v18941_v41, %v19299_v16  ;;  %v19416_v57 = vadd.f32 %v10486_v3, %v19211_v1 }
 0x4b3   : > { %v10538_v8 = vpop.permute.xlu1 %10537  ;;  %v10574_v28 = vpop.permute.xlu0 %10573  ;;  %v10753_v26 = vsel %vm3244_vm3, %v10744_v53, %v19314_v63  ;;  %v10755_v63 = vsel %vm3244_vm3, %v10746_v36, %v19322_v9  ;;  %v10756_v9 = vsel %vm3244_vm3, %v10747_v22, %v19341_v24  ;;  %v10779_v24 = vsel %vm3244_vm3, %v10770_v61, %v19351_v11 }
 0x4b4   : > { %v10865_v15 = vrot.slane %v19383_v56, %v19385_v20  ;;  %v10888_v7 = vrot.slane %v19387_v30, %v19385_v20  ;;  %v10934_v42 = vrot.slane %v19390_v37, %v19385_v20  ;;  %v10743_v30 = vsel %vm3171_vm2, %v18954_v4, %v19291_v34 }
 0x4b5   : > { %v19426_v16 = vmul.f32 0.25, %v10505_v59  ;;  %v10771_v4 = vsel %vm3171_vm2, %v19132_v51, %v19336_v35  ;;  %v10762_v1 = vsel %vm3317_vm4, %v10753_v26, %v10602_v38  ;;  %v10752_v17 = vsel %vm3244_vm3, %v10743_v30, %v19320_v31 }
 0x4b6   : > { %v10780_v5 = vsel %vm3244_vm3, %v10771_v4, %v19355_v2  ;;  %v10754_v51 = vsel %vm3244_vm3, %v10745_v19, %v19330_v23  ;;  %v10773_v35 = vsel %vm3171_vm2, %v19192_v25, %v19345_v49  ;;  %v10800_v2 = vmul.f32 0.25, %v10762_v1 }
 0x4b7   : > { %v10610_v52 = vpop.permute.xlu1 %10609  ;;  %v19394_v29 = vpop.permute.xlu0 %10690  ;;  %v10761_v23 = vsel %vm3317_vm4, %v10752_v17, %v19365_v58  ;;  %v10774_v49 = vsel %vm3171_vm2, %v19202_v55, %v19347_v46  ;;  %v10764_v38 = vsel %vm3317_vm4, %v10755_v63, %v10606_v27  ;;  %v10748_v60 = vsel %vm3171_vm2, %v19249_v18, %v10538_v8 }
 0x4b8   : > { %v10782_v45 = vsel %vm3244_vm3, %v10773_v35, %v19359_v40  ;;  %v10763_v58 = vsel %vm3317_vm4, %v10754_v51, %v19367_v10  ;;  %v10797_v59 = vmul.f32 0.25, %v10761_v23  ;;  %v10806_v8 = vmul.f32 0.25, %v10764_v38 }
 0x4b9   : > { %v10757_v40 = vsel %vm3244_vm3, %v10748_v60, %v10574_v28  ;;  %v10781_v53 = vsel %vm3244_vm3, %v10772_v43, %v19357_v54  ;;  %v10803_v36 = vmul.f32 0.25, %v10763_v58  ;;  %v10765_v1 = vsel %vm3317_vm4, %v10756_v9, %v19376_v44  ;;  %v12014_v60 = vld [vmem:[%s13097_s9 + $0x12c] sm:$0xff]   ;;  %v12126_v58 = vld [vmem:[%s13097_s9 + $0x140] sm:$0xff]  }
 0x4ba   : > { %v10783_v44 = vsel %vm3244_vm3, %v10774_v49, %v19363_v21  ;;  %v10980_v23 = vrot.slane %v19426_v16, %v19385_v20 }
 0x4bb   : > { %v19400_v33 = vpop.f32.mrb[204].mxu1  ;;  %v10655_v34 = vpop.permute.xlu1 %10654 }
 0x4bc   : > { %v9691_v6 = vpop.f32.mrb[205].mxu1  ;;  %v10719_v32 = vpop.permute.xlu0 %10718  ;;  %v10775_v55 = vsel %vm3171_vm2, %v19251_v47, %v10655_v34 }
 0x4bd   : > { %v9692_v41 = vpop.f32.mrb[206].mxu1  ;;  %v10789_v39 = vsel %vm3317_vm4, %v10780_v5, %v10719_v32  ;;  %v10766_v6 = vsel %vm3317_vm4, %v10757_v40, %v10610_v52  ;;  %v10784_v19 = vsel %vm3244_vm3, %v10775_v55, %v19394_v29  ;;  %v10911_v5 = vrot.slane %v19402_v0, %v19385_v20  ;;  %v12019_v55 = vld [vmem:[%s13097_s9 + $0x148] sm:$0x3] }
 0x4be   : > { %v9693_v14 = vpop.f32.mrb[207].mxu1  ;;  %v10801_v25 = vmul.f32 0.25, %v10789_v39  ;;  %v10811_v39 = vmul.f32 0.25, %v19416_v57  ;;  %v10809_v0 = vmul.f32 0.25, %v10765_v1  ;;  %v12113_v40 = vunpack.c.l.bf16 %v12126_v58 }
 0x4bf   : > { %v10717_v50 = vpop.permute.xlu1 %10716 }
 0x4c0   : > { %v10874_v12 = vcombine.low %v10800_v2, %v10801_v25  ;;  %v10788_v3 = vsel %vm3317_vm4, %v10779_v24, %v10717_v50  ;;  %v10723_v11 = vpop.permute.xlu0 %10722  ;;  %v10957_v38 = vrot.slane %v10811_v39, %v19385_v20  ;;  %v12020_v39 = vld [vmem:[%s13097_s9 + $0x154] sm:$0xff]  }
 0x4c1   : > { %v10798_v46 = vmul.f32 0.25, %v10788_v3  ;;  %v10791_v18 = vsel %vm3317_vm4, %v10782_v45, %v10723_v11  ;;  %v10109_v3 = vunpack.c.l.bf16 %v12014_v60  ;;  %v12016_v11 = vld [vmem:[%s13097_s9 + $0x134] sm:$0x3] }
 0x4c2   : > { %v10881_v27 = vrot.slane %v10874_v12, %v19385_v20  ;;  %v10807_v10 = vmul.f32 0.25, %v10791_v18 }
 0x4c3   : > { %v10851_v30 = vcombine.low %v10797_v59, %v10798_v46  ;;  %v10721_v47 = vpop.permute.xlu1 %10720  ;;  %v10110_v46 = vunpack.c.h.bf16 %v12014_v60 }
 0x4c4   : > { %v10889_v26 = vcombine.low %v10881_v27, %v10888_v7  ;;  %v10920_v22 = vcombine.low %v10806_v8, %v10807_v10  ;;  %v10790_v41 = vsel %vm3317_vm4, %v10781_v53, %v10721_v47  ;;  %v10727_v4 = vpop.permute.xlu0 %10726  ;;  %v10812_v7 = vmul.f32 0.25, %v10766_v6 }
 0x4c5   : > { %v10858_v54 = vrot.slane %v10851_v30, %v19385_v20  ;;  %v10804_v34 = vmul.f32 0.25, %v10790_v41  ;;  %v10793_v52 = vsel %vm3317_vm4, %v10784_v19, %v10727_v4  ;;  %v12114_v27 = vunpack.c.h.bf16 %v12126_v58 }
 0x4c6   : > { %v10896_v63 = vrot.slane %v10889_v26, %v19385_v20  ;;  %v10927_v17 = vrot.slane %v10920_v22, %v19385_v20  ;;  %v10813_v61 = vmul.f32 0.25, %v10793_v52  ;;  %v10111_v53 = vunpack.c.l.bf16 %v12016_v11 }
 0x4c7   : > { %v19487_v28 = vpop.f32.mrb[208].mxu1  ;;  %v10866_v32 = vcombine.low %v10858_v54, %v10865_v15  ;;  %v10897_v51 = vcombine.low %v10803_v36, %v10804_v34  ;;  %v10725_v35 = vpop.permute.xlu1 %10724  ;;  %v10114_v6 = vunpack.c.l.bf16 %v12019_v55  ;;  %v10246_v30 = vrot.slane %v10109_v3, 1 }
 0x4c8   : > { %v9698_v14 = vpop.f32.mrb[209].mxu1  ;;  %11072 = vst.msk [vmem:[%s19506_s30 + $0x3] sm:$0x7] %vm19448_vm1, %v10896_v63  ;;  %v10935_v21 = vcombine.low %v10927_v17, %v10934_v42  ;;  %v10966_v56 = vcombine.low %v10812_v7, %v10813_v61  ;;  %v10792_v15 = vsel %vm3317_vm4, %v10783_v44, %v10725_v35  ;;  %v10247_v47 = vrot.slane %v10110_v46, 1  ;;  %v20218_v35 = vld [vmem:[#allocation37_spill] sm:$0xff] }
 0x4c9   : > { %v19495_v29 = vpop.f32.mrb[210].mxu1  ;;  %v10873_v43 = vrot.slane %v10866_v32, %v19385_v20  ;;  %v10904_v57 = vrot.slane %v10897_v51, %v19385_v20  ;;  %v10810_v2 = vmul.f32 0.25, %v10792_v15  ;;  %v10251_v26 = vrot.slane %v12113_v40, 1  ;;  %v20217_v32 = vld [vmem:[#allocation13_spill] sm:$0xff] }
 0x4ca   : > { %v9701_v9 = vpop.f32.mrb[211].mxu1  ;;  %v10942_v25 = vrot.slane %v10935_v21, %v19385_v20  ;;  %v10973_v37 = vrot.slane %v10966_v56, %v19385_v20  ;;  %v10252_v22 = vrot.slane %v12114_v27, 1  ;;  %v10249_v41 = vrot.slane %v10111_v53, 1  ;;  %v20221_v27 = vld [vmem:[#allocation6_spill] sm:$0xff] }
 0x4cb   : > { %11071 = vst.msk [vmem:[%s19506_s30] sm:$0x7] %vm19448_vm1, %v10873_v43  ;;  %v10912_v42 = vcombine.low %v10904_v57, %v10911_v5  ;;  %v10943_v24 = vcombine.low %v10809_v0, %v10810_v2  ;;  %v10254_v19 = vrot.slane %v10114_v6, 1  ;;  %v10248_v1 = vsel %vm1244_vm0, %v10246_v30, %v10247_v47  ;;  %v12127_v43 = vld [vmem:[%s13097_s9 + $0x168] sm:$0xff]  }
 0x4cc   : > { %11074 = vst.msk [vmem:[%s19506_s30 + $0x9] sm:$0x7] %vm19448_vm1, %v10942_v25  ;;  %v10981_v49 = vcombine.low %v10973_v37, %v10980_v23  ;;  %v10253_v52 = vsel %vm1244_vm0, %v10251_v26, %v10252_v22  ;;  %v10250_v63 = vsel %vm1244_vm0, %v10247_v47, %v10249_v41  ;;  %v10364_v17 = vadd.f32 %v10249_v41, %v19339_v13  ;;  %v12022_v25 = vld [vmem:[%s13097_s9 + $0x15c] sm:$0x3]  ;;  %v20222_v47 = vld [vmem:[#allocation19_spill] sm:$0xff] }
 0x4cd   : > { %v10919_v16 = vrot.slane %v10912_v42, %v19385_v20  ;;  %v10950_v50 = vrot.slane %v10943_v24, %v19385_v20  ;;  %v10255_v44 = vsel %vm1244_vm0, %v10252_v22, %v10254_v19  ;;  %v10362_v51 = vadd.f32 %v10248_v1, %v20217_v32  ;;  %v12025_v42 = vld [vmem:[%s13097_s9 + $0x170] sm:$0x3]  ;;  %s12362_s9 = smul.u32 432, %s13057_s19  ;;  %s19650_s19 = scalar_lea.sflag [#allocation4], %s188_s28 }
 0x4ce   : > { %v10988_v45 = vrot.slane %v10981_v49, %v19385_v20  ;;  %v10115_v13 = vunpack.c.l.bf16 %v12020_v39  ;;  %v10116_v37 = vunpack.c.h.bf16 %v12020_v39  ;;  %v12118_v60 = vunpack.c.h.bf16 %v12127_v43 }
 0x4cf   : > { %11073 = vst.msk [vmem:[%s19506_s30 + $0x6] sm:$0x7] %vm19448_vm1, %v10919_v16  ;;  %v10958_v12 = vcombine.low %v10950_v50, %v10957_v38  ;;  %v12117_v38 = vunpack.c.l.bf16 %v12127_v43  ;;  %v10117_v3 = vunpack.c.l.bf16 %v12022_v25  ;;  %v10488_v26 = vrot.slane %v20222_v47, 1  ;;  %s19643_s5 = scalar_lea.hbm %s19695_s4, %s12362_s9 }
 0x4d0   : > { %11076 = vst.msk [vmem:[%s19506_s30 + $0xf] sm:$0x7] %vm19448_vm1, %v10988_v45  ;;  %v20220_v45 = vld [vmem:[#allocation24_spill] sm:$0xff]  ;;  %v10256_v11 = vrot.slane %v10115_v13, 1  ;;  %v10257_v40 = vrot.slane %v10116_v37, 1  ;;  %v10262_v30 = vrot.slane %v12118_v60, 1 }
 0x4d1   : > { %v10965_v18 = vrot.slane %v10958_v12, %v19385_v20  ;;  %v10261_v6 = vrot.slane %v12117_v38, 1  ;;  %v10259_v22 = vrot.slane %v10117_v3, 1  ;;  %v20224_v13 = vld [vmem:[#allocation18_spill] sm:$0xff] }
 0x4d3   : > { %v19540_v59 = vpop.f32.mrb[212].mxu1  ;;  %11075 = vst.msk [vmem:[%s19506_s30 + $0xc] sm:$0x7] %vm19448_vm1, %v10965_v18  ;;  %v10120_v18 = vunpack.c.l.bf16 %v12025_v42 }
 0x4d4   : > { %v9706_v8 = vpop.f32.mrb[213].mxu1 }
 0x4d5   : > { %v9707_v10 = vpop.f32.mrb[214].mxu1 }
 0x4d6   : > { %v9708_v36 = vpop.f32.mrb[215].mxu1 }
 0x4db   : > { %v12346_v4 = vpop.f32.mrb[216].mxu1 }
 0x4dc   : > { %v9978_v54 = vadd.f32 %v12346_v4, %v19361_v48  ;;  %v9969_v34 = vpop.f32.mrb[217].mxu1  ;;  %v10258_v4 = vsel %vm1244_vm0, %v10256_v11, %v10257_v40 }
 0x4dd   : > { %v9970_v14 = vadd.f32 %v9969_v34, %v19349_v62  ;;  %v12347_v7 = vpop.f32.mrb[218].mxu1  ;;  %v20219_v62 = vld [vmem:[#allocation15_spill] sm:$0xff] }
 0x4de   : > { %v10367_v61 = vadd.f32 %v10254_v19, %v9978_v54  ;;  %v9972_v5 = vpop.f32.mrb[219].mxu1  ;;  %v10363_v56 = vadd.f32 %v10250_v63, %v20219_v62  ;;  %v10264_v19 = vrot.slane %v10120_v18, 1 }
 0x4df   : > { %v10365_v48 = vadd.f32 %v10253_v52, %v9970_v14  ;;  %v9973_v9 = vadd.f32 %v9972_v5, %v20218_v35  ;;  %v20223_v52 = vld [vmem:[#allocation27_spill] sm:$0xff]  ;;  %v10260_v5 = vsel %vm1244_vm0, %v10257_v40, %v10259_v22 }
 0x4e0   : > { %v19557_v21 = vadd.f32 %v10367_v61, %v10364_v17  ;;  %v10263_v17 = vsel %vm1244_vm0, %v10261_v6, %v10262_v30 }
 0x4e1   : > { %v10395_v15 = vadd.f32 %v10365_v48, %v10362_v51  ;;  %v10366_v0 = vadd.f32 %v10255_v44, %v9973_v9  ;;  %v10506_v51 = vadd.f32 %v10488_v26, %v20222_v47 }
 0x4e3   : > { %v10417_v57 = vrot.slane %v10395_v15, 1  ;;  %v10396_v2 = vadd.f32 %v10366_v0, %v10363_v56  ;;  %v12350_v23 = vpop.f32.mrb[220].mxu1 }
 0x4e4   : > { %v9993_v24 = vadd.f32 %v12350_v23, %v19400_v33  ;;  %v9984_v49 = vpop.f32.mrb[221].mxu1 }
 0x4e5   : > { %v19564_v16 = vadd.f32 %v10417_v57, %v10395_v15  ;;  %v10453_v50 = vrot.slane %v10396_v2, 1  ;;  %v9985_v58 = vadd.f32 %v9984_v49, %v20220_v45  ;;  %v12351_v12 = vpop.f32.mrb[222].mxu1  ;;  %v10817_v49 = vmul.f32 0.25, %v10506_v51 }
 0x4e6   : > { %v10576_v55 = vpop.permute.xlu1 %10575  ;;  %v9987_v46 = vpop.f32.mrb[223].mxu1  ;;  %v10370_v48 = vadd.f32 %v10259_v22, %v9993_v24 }
 0x4e7   : > { %v19567_v8 = vadd.f32 %v10453_v50, %v10396_v2  ;;  %v9988_v10 = vadd.f32 %v9987_v46, %v20221_v27  ;;  %v10540_v33 = vpop.permute.xlu0 %10539  ;;  %v10561_v53 = vrot.slane %v19564_v16, 4  ;;  %v10525_v36 = vrot.slane %v19564_v16, 2 }
 0x4e8   : > { %v10749_v14 = vsel %vm3171_vm2, %v20223_v52, %v10540_v33  ;;  %v10597_v61 = vrot.slane %v19564_v16, 6  ;;  %v10368_v39 = vadd.f32 %v10258_v4, %v9985_v58  ;;  %v11003_v11 = vrot.slane %v10817_v49, %v19385_v20 }
 0x4e9   : > { %10577 = vrot.lane.b32.xlu0 %v10561_v53, %s13004_s12  ;;  %10541 = vrot.lane.b32.xlu1 %v10525_v36, %s13005_s20  ;;  %v10678_v34 = vrot.slane %v19567_v8, 4  ;;  %v10758_v62 = vsel %vm3244_vm3, %v10749_v14, %v10576_v55  ;;  %v10642_v2 = vrot.slane %v19567_v8, 2  ;;  %v10369_v23 = vadd.f32 %v10260_v5, %v9988_v10 }
 0x4ea   : > { %v10693_v41 = vpop.permute.xlu1 %10692 }
 0x4eb   : > { %v10612_v1 = vpop.permute.xlu0 %10611  ;;  %v12354_v54 = vpop.f32.mrb[224].mxu1 }
 0x4ec   : > { %v10008_v7 = vadd.f32 %v12354_v54, %v19540_v59  ;;  %v9999_v63 = vpop.f32.mrb[225].mxu1  ;;  %v10265_v59 = vsel %vm1244_vm0, %v10262_v30, %v10264_v19  ;;  %v10714_v30 = vrot.slane %v19567_v8, 6 }
 0x4ed   : > { %v10000_v44 = vadd.f32 %v9999_v63, %v19487_v28  ;;  %v12355_v32 = vpop.f32.mrb[226].mxu1  ;;  %10694 = vrot.lane.b32.xlu0 %v10678_v34, %s13004_s12  ;;  %10613 = vrot.lane.b32.xlu1 %v10597_v61, %s13006_s22  ;;  %v10767_v28 = vsel %vm3317_vm4, %v10758_v62, %v10612_v1 }
 0x4ee   : > { %v10373_v35 = vadd.f32 %v10264_v19, %v10008_v7  ;;  %v10002_v9 = vpop.f32.mrb[227].mxu1  ;;  %v10729_v37 = vpop.permute.xlu1 %10728  ;;  %v10489_v7 = vrot.slane %v19557_v21, 1 }
 0x4ef   : > { %v10371_v56 = vadd.f32 %v10263_v17, %v10000_v44  ;;  %v10003_v15 = vadd.f32 %v10002_v9, %v19495_v29  ;;  %v10657_v0 = vpop.permute.xlu0 %10656  ;;  %v10815_v29 = vmul.f32 0.25, %v10767_v28 }
 0x4f0   : > { %v10400_v43 = vadd.f32 %v10373_v35, %v10370_v48  ;;  %v10776_v57 = vsel %vm3171_vm2, %v20224_v13, %v10657_v0  ;;  %v10507_v48 = vadd.f32 %v10489_v7, %v19557_v21 }
 0x4f1   : > { %v10398_v25 = vadd.f32 %v10371_v56, %v10368_v39  ;;  %v10372_v42 = vadd.f32 %v10265_v59, %v10003_v15  ;;  %v10785_v24 = vsel %vm3244_vm3, %v10776_v57, %v10693_v41  ;;  %10658 = vrot.lane.b32.xlu1 %v10642_v2, %s13005_s20 }
 0x4f2   : > { %v10794_v38 = vsel %vm3317_vm4, %v10785_v24, %v10729_v37  ;;  %v10490_v54 = vrot.slane %v10400_v43, 1  ;;  %v10820_v21 = vmul.f32 0.25, %v10507_v48 }
 0x4f3   : > { %v10418_v60 = vrot.slane %v10398_v25, 1  ;;  %v10399_v50 = vadd.f32 %v10372_v42, %v10369_v23  ;;  %v10816_v45 = vmul.f32 0.25, %v10794_v38 }
 0x4f4   : > { %v10508_v17 = vadd.f32 %v10490_v54, %v10400_v43  ;;  %v11026_v37 = vrot.slane %v10820_v21, %v19385_v20 }
 0x4f5   : > { %v10436_v58 = vadd.f32 %v10418_v60, %v10398_v25  ;;  %v10454_v12 = vrot.slane %v10399_v50, 1  ;;  %v10989_v3 = vcombine.low %v10815_v29, %v10816_v45 }
 0x4f6   : > { %v10823_v62 = vmul.f32 0.25, %v10508_v17 }
 0x4f7   : > { %v10472_v55 = vadd.f32 %v10454_v12, %v10399_v50  ;;  %v10996_v46 = vrot.slane %v10989_v3, %v19385_v20  ;;  %v10526_v18 = vrot.slane %v10436_v58, 2  ;;  %v10562_v40 = vrot.slane %v10436_v58, 4 }
 0x4f8   : > { %v10598_v33 = vrot.slane %v10436_v58, 6  ;;  %v11049_v2 = vrot.slane %v10823_v62, %v19385_v20 }
 0x4f9   : > { %v11004_v27 = vcombine.low %v10996_v46, %v11003_v11  ;;  %10543 = vrot.lane.b32.xlu0 %v10526_v18, %s13005_s20  ;;  %10579 = vrot.lane.b32.xlu1 %v10562_v40, %s13004_s12  ;;  %v10679_v53 = vrot.slane %v10472_v55, 4  ;;  %v10643_v36 = vrot.slane %v10472_v55, 2  ;;  %v10715_v6 = vrot.slane %v10472_v55, 6 }
 0x4fb   : > { %v11011_v10 = vrot.slane %v11004_v27, %v19385_v20 }
 0x4fd   : > { %11077 = vst.msk [vmem:[%s19506_s30 + $0x12] sm:$0x7] %vm19448_vm1, %v11011_v10  ;;  %10615 = vrot.lane.b32.xlu0 %v10598_v33, %s13006_s22  ;;  %10696 = vrot.lane.b32.xlu1 %v10679_v53, %s13004_s12  ;;  %s11094_s12 = sshll.u32 %s19506_s30, 4  ;;  %s19634_s12 = int_to_ptr.vmem [resolvable:$true] %s11094_s12 }
 0x4fe   : > { %s12939_s6 = scalar_lea.vmem %s19634_s12, 432  ;;  %p12946_p0 = scmp.lt.s32.totalorder %s19634_s12, %s12944_s8 }
 0x4ff   : > { %p12940_p11 = scmp.ne.s32.totalorder %s19634_s12, %s12939_s6  ;;  %p12947_p1 = scmp.lt.s32.totalorder %s12945_s10, %s12939_s6 }
 0x501   : > { %10660 = vrot.lane.b32.xlu0 %v10643_v36, %s13005_s20  ;;  %10732 = vrot.lane.b32.xlu1 %v10715_v6, %s13006_s22  ;;  %p12941_p12 = pnand %p12940_p11, %p13074_p5  ;;  %p12948_p2 = por %p12947_p1, %p12946_p0 }
 0x503   : > { %p12942_p13 = pneg %p12941_p12 }
 0x505   : > { %10730 = vrot.lane.b32.xlu0 %v10714_v30, %s13006_s22  ;;  %p12949_p3 = pnand %p12948_p2, %p12942_p13 }
 0x55b   : > { %v10542_v47 = vpop.permute.xlu1 %10541  ;;  %v10578_v26 = vpop.permute.xlu0 %10577 }
 0x55c   : > { %v10750_v63 = vsel %vm3171_vm2, %v19564_v16, %v10542_v47 }
 0x55d   : > { %v10759_v35 = vsel %vm3244_vm3, %v10750_v63, %v10578_v26 }
 0x55f   : > { %v10614_v22 = vpop.permute.xlu1 %10613  ;;  %v10695_v41 = vpop.permute.xlu0 %10694 }
 0x560   : > { %v10768_v16 = vsel %vm3317_vm4, %v10759_v35, %v10614_v22 }
 0x561   : > { %v10818_v43 = vmul.f32 0.25, %v10768_v16 }
 0x563   : > { %v10659_v19 = vpop.permute.xlu1 %10658 }
 0x564   : > { %v10777_v44 = vsel %vm3171_vm2, %v19567_v8, %v10659_v19 }
 0x565   : > { %v10786_v15 = vsel %vm3244_vm3, %v10777_v44, %v10695_v41 }
 0x56b   : > { %v10580_v4 = vpop.permute.xlu1 %10579  ;;  %v10544_v1 = vpop.permute.xlu0 %10543 }
 0x56c   : > { %v10751_v14 = vsel %vm3171_vm2, %v10436_v58, %v10544_v1 }
 0x56d   : > { %v10760_v61 = vsel %vm3244_vm3, %v10751_v14, %v10580_v4 }
 0x56f   : > { %v10697_v34 = vpop.permute.xlu1 %10696  ;;  %v10616_v52 = vpop.permute.xlu0 %10615 }
 0x570   : > { %v10769_v32 = vsel %vm3317_vm4, %v10760_v61, %v10616_v52 }
 0x571   : > { %v10821_v56 = vmul.f32 0.25, %v10769_v32 }
 0x573   : > { %v10661_v5 = vpop.permute.xlu0 %10660  ;;  %v10733_v9 = vpop.permute.xlu1 %10732 }
 0x574   : > { %v10778_v51 = vsel %vm3171_vm2, %v10472_v55, %v10661_v5 }
 0x575   : > { %v10787_v59 = vsel %vm3244_vm3, %v10778_v51, %v10697_v34 }
 0x576   : > { %v10796_v39 = vsel %vm3317_vm4, %v10787_v59, %v10733_v9 }
 0x577   : > { %v10822_v8 = vmul.f32 0.25, %v10796_v39  ;;  %v10731_v0 = vpop.permute.xlu0 %10730 }
 0x578   : > { %v10795_v28 = vsel %vm3317_vm4, %v10786_v15, %v10731_v0 }
 0x579   : > { %v11035_v13 = vcombine.low %v10821_v56, %v10822_v8  ;;  %v10819_v57 = vmul.f32 0.25, %v10795_v28 }
 0x57b   : > { %v11042_v23 = vrot.slane %v11035_v13, %v19385_v20  ;;  %v11012_v25 = vcombine.low %v10818_v43, %v10819_v57 }
 0x57d   : > { %v11050_v42 = vcombine.low %v11042_v23, %v11049_v2  ;;  %v11019_v24 = vrot.slane %v11012_v25, %v19385_v20 }
 0x57f   : > { %v11057_v49 = vrot.slane %v11050_v42, %v19385_v20  ;;  %v11027_v38 = vcombine.low %v11019_v24, %v11026_v37 }
 0x581   : > { %11079 = vst.msk [vmem:[%s19506_s30 + $0x18] sm:$0x7] %vm19448_vm1, %v11057_v49  ;;  %v11034_v29 = vrot.slane %v11027_v38, %v19385_v20 }
 0x583   : > { %11078 = vst.msk [vmem:[%s19506_s30 + $0x15] sm:$0x7] %vm19448_vm1, %v11034_v29 }
 0x584   : > { %12952 = shalt.err (!%p12949_p3)
}
 0x585   : > { %s12953_s11 = scalar_lea.hbm %s19643_s5, 432  ;;  %s12957_s23 = scalar_lea.hbm %s19695_s4, 864 }
 0x586   : > { %p12954_p4 = scmp.ne.s32.totalorder %s19643_s5, %s12953_s11  ;;  %p12958_p9 = scmp.lt.u32.totalorder %s19643_s5, %s19695_s4 }
 0x587   : > { %p12959_p10 = scmp.lt.u32.totalorder %s12957_s23, %s12953_s11  ;;  %p12961_p12 = scmp.lt.u32.totalorder %s12953_s11, %s19643_s5 }
 0x588   : > { %p12955_p7 = pnand %p12954_p4, %p13074_p5 }
 0x589   : > { %p12960_p11 = por %p12959_p10, %p12958_p9 }
 0x58a   : > { %p12956_p8 = pneg %p12955_p7 }
 0x58b   : > { %p12962_p13 = por %p12961_p12, %p12960_p11 }
 0x58d   : > { %p12963_p0 = pnand %p12962_p13, %p12956_p8 }
 0x58f   : > { %12966 = shalt.err (!%p12963_p0)
}
 0x590   : > { %s13009_s29 = smov 48   ;;  %s13010_s30 = smov 3  }
 0x591   : > { %12363 = dma.vmem_to_hbm [thread:$0]  (%p13074_p5), %s19634_s12, 432, %s19643_s5, %s19650_s19, %s13009_s29, %s13009_s29, %s13010_s30  }
 0x592 PF: > { %p12369_p1 = scmp.ge.s32.totalorder %s13001_s18, 2  ;;  %s11109_s9 = sand.u32 1, %s12989_s15  }
 0x593   : > { %s11110_s20 = scalar_lea.sflag [#allocation4], %s11109_s9 }
 0x594   : > { %p12366_p2 = pnand %p12369_p1, %p13078_p6 }
 0x596   : > { %12984 = dma.done.wait (!%p12366_p2), %s11110_s20, 432  }
 0x597   : > { %12986 = vsyncadd (!%p12366_p2), %s11110_s20, 4294966864  ;;  %p14_p3 = scmp.ge.s32.totalorder %s13061_s21, 4   ;;  %s20225_s15 = smov %s12993_s16 }
 0x598   : > { %s20226_s16 = smov %s12997_s17  ;;  %s20227_s17 = smov %s13072_s24 }
 0x599   : > { %s20228_s18 = smov %s13061_s21  ;;  %16 = sbr.rel (!%p14_p3) target bundleno = 3 (0x3), region = 76 }
 0x5a0   :  { %11115 = vsyncpa [#allocation4], 1 }
 0x5a1   :  { %11117 = vsyncpa [#allocation4 + $0x1], 1 }

</bundles_post_ra>
